<compile_context>
chip_gen: v6e
topology: v6e:2x2x1
jax: 0.10.0
libtpu: 0.0.40
codegen_flags: <defaults>
</compile_context>

<pallas_src>
import math

import jax
import jax.numpy as jnp
import numpy as np
from jax import lax
from jax.experimental import pallas as pl
from jax.experimental.pallas import tpu as pltpu


# ----------------------------- in-kernel helpers -----------------------------

def _layernorm(x, gamma, beta, eps=1e-5):
    # PyTorch nn.LayerNorm over last dim (biased variance, eps=1e-5)
    mu = jnp.mean(x, axis=-1, keepdims=True)
    xc = x - mu
    var = jnp.mean(xc * xc, axis=-1, keepdims=True)
    return xc * lax.rsqrt(var + eps) * gamma + beta


def _gelu_exact(x):
    # PyTorch nn.GELU() default = exact (erf-based) GELU
    return 0.5 * x * (1.0 + lax.erf(x * (1.0 / math.sqrt(2.0))))


# --------------------------------- kernel ------------------------------------

def make_block_kernel(num_heads: int, spatial: int):
    nh = num_heads
    S = spatial

    def kernel(x_ref,
               ln1_g_ref, ln1_b_ref,
               qkv_w_ref,
               pw_ref, pb_ref,
               ln2_g_ref, ln2_b_ref,
               fc1w_ref, fc1b_ref,
               dww_ref, dwb_ref,
               fc2w_ref, fc2b_ref,
               mask_ref,
               o_ref):
        x = x_ref[...]                               # (BT, N, C) f32
        BT, N, C = x.shape
        d = C // nh
        M = BT * N
        bf16 = jnp.bfloat16

        xf = x.reshape(M, C)                         # flatten batch tile into rows

        # ---------------- attention branch: x + proj(softmax(qk^T)v) ----------------
        xn = _layernorm(xf, ln1_g_ref[...], ln1_b_ref[...])
        # fused QKV projection: one (M, C) @ (C, 3C) MXU call (bf16 in, f32 acc).
        # The q block of qkv_w was pre-scaled by 1/sqrt(d) on the host.
        qkv = jnp.dot(xn.astype(bf16), qkv_w_ref[...],
                      preferred_element_type=jnp.float32)      # (M, 3C)
        q = qkv[:, :C].astype(bf16).reshape(BT, N, C)
        k = qkv[:, C:2 * C].astype(bf16).reshape(BT, N, C)
        v = qkv[:, 2 * C:].astype(bf16).reshape(BT, N, C)

        # per-head attention via static lane slices: contraction over d (not C),
        # so no redundant MXU work and no full-slab mask selects.
        outs = []
        for h in range(nh):
            sl = slice(h * d, (h + 1) * d)
            qh = q[:, :, sl]                          # (BT, N, d)
            kh = k[:, :, sl]
            vh = v[:, :, sl]
            s = jnp.einsum('bqd,bkd->bqk', qh, kh,
                           preferred_element_type=jnp.float32)  # (BT, N, N) f32
            smax = jnp.max(s, axis=-1, keepdims=True)
            p = jnp.exp(s - smax)
            denom = jnp.sum(p, axis=-1, keepdims=True)
            p = p * pl.reciprocal(denom, approx=True)
            outs.append(jnp.einsum('bqk,bkd->bqd', p.astype(bf16), vh,
                                   preferred_element_type=jnp.float32))  # (BT, N, d)
        attn = jnp.concatenate(outs, axis=-1).reshape(M, C)

        attn = jnp.dot(attn.astype(bf16), pw_ref[...],
                       preferred_element_type=jnp.float32) + pb_ref[...]
        x1 = xf + attn                               # residual (DropPath = identity)

        # ------------------------------- MLP branch --------------------------------
        xn2 = _layernorm(x1, ln2_g_ref[...], ln2_b_ref[...])
        h1 = jnp.dot(xn2.astype(bf16), fc1w_ref[...],
                     preferred_element_type=jnp.float32) + fc1b_ref[...]   # (M, H)

        # depthwise 3x3 conv, stride 1, zero padding 1, over the S x S spatial grid.
        # flat row r <-> (b, i, j); tap (di, dj) reads flat row r + di*S + dj.
        # Validity masks are precomputed on the host (constant-index input):
        #   col 0: i-1 >= 0, col 1: i+1 < S, col 2: j-1 >= 0, col 3: j+1 < S.
        row_up = mask_ref[:, 0:1]
        row_dn = mask_ref[:, 1:2]
        col_lt = mask_ref[:, 2:3]
        col_rt = mask_ref[:, 3:4]

        # only two misaligned (+-1) rolls; row-shifted taps reuse them via +-S (aligned) rolls.
        # Column masks are applied once to the bases (they are S-periodic, so they stay valid
        # after the row roll); they also kill any cross-row / cross-batch wrap of the roll.
        base_l = jnp.roll(h1, 1, axis=0) * col_lt    # dj = -1
        base_r = jnp.roll(h1, -1, axis=0) * col_rt   # dj = +1
        bases = (base_l, h1, base_r)                 # dj = -1, 0, +1
        row_masks = (row_up, None, row_dn)           # di = -1, 0, +1

        conv = None
        for ki in range(3):
            di = ki - 1
            acc = None
            for kj in range(3):
                w_tap = dww_ref[ki * 3 + kj:ki * 3 + kj + 1, :]      # (1, H)
                b = bases[kj]
                rolled = jnp.roll(b, -di * S, axis=0) if di != 0 else b
                term = rolled * w_tap
                acc = term if acc is None else acc + term
            if row_masks[ki] is not None:
                acc = acc * row_masks[ki]            # row validity (handles roll wrap too)
            conv = acc if conv is None else conv + acc
        conv = conv + dwb_ref[...]

        act = _gelu_exact(conv)
        y = jnp.dot(act.astype(bf16), fc2w_ref[...],
                    preferred_element_type=jnp.float32) + fc2b_ref[...]
        o_ref[...] = (x1 + y).reshape(BT, N, C)       # residual (DropPath = identity)

    return kernel


# ------------------------------- host wrapper ---------------------------------

def _pick_batch_tile(B: int) -> int:
    """bt = B (grid of 1) on single-TC parts; bt = B//2 on dual-TC parts (megacore/v7x)."""
    kind = ""
    try:
        kind = jax.devices()[0].device_kind.lower()
    except Exception:
        pass
    single_tc = any(t in kind for t in ("v5e", "v5 lite", "v6e", "v6 lite", "lite"))
    if single_tc or B < 2 or B % 2 != 0:
        return B
    return B // 2


def block_forward(x, params, num_heads, bt=None):
    B, N, C = x.shape
    assert C % num_heads == 0, "dim must be divisible by num_heads"
    S = int(round(math.sqrt(N)))
    assert S * S == N, "Block.forward implies a square number of tokens"
    if bt is None:
        bt = _pick_batch_tile(B)
    assert B % bt == 0, "batch must be divisible by the batch tile"

    kernel = make_block_kernel(num_heads, S)
    bf16 = jnp.bfloat16
    d = C // num_heads
    scale = 1.0 / math.sqrt(d)

    # fuse q/k/v weights host-side into one (C, 3C) matrix; fold 1/sqrt(d) into q weights.
    qkv_w = jnp.concatenate([params['q_w'] * scale, params['k_w'], params['v_w']],
                            axis=1).astype(bf16)

    # precomputed depthwise-conv tap-validity masks (hoisted out of the kernel body).
    M = bt * N
    r = np.arange(M)
    ii = (r // S) % S
    jj = r % S
    conv_mask = jnp.asarray(np.stack(
        [(ii - 1 >= 0), (ii + 1 < S), (jj - 1 >= 0), (jj + 1 < S)],
        axis=1).astype(np.float32))                            # (M, 4)

    arrays = [params['ln1_g'], params['ln1_b'],
              qkv_w,
              params['proj_w'].astype(bf16), params['proj_b'],
              params['ln2_g'], params['ln2_b'],
              params['fc1_w'].astype(bf16), params['fc1_b'],
              params['dw_w'], params['dw_b'],
              params['fc2_w'].astype(bf16), params['fc2_b'],
              conv_mask]

    def full_spec(a):
        return pl.BlockSpec(a.shape, lambda b, _nd=a.ndim: (0,) * _nd)

    in_specs = [pl.BlockSpec((bt, N, C), lambda b: (b, 0, 0))] + [full_spec(a) for a in arrays]
    out_specs = pl.BlockSpec((bt, N, C), lambda b: (b, 0, 0))

    return pl.pallas_call(
        kernel,
        out_shape=jax.ShapeDtypeStruct((B, N, C), jnp.float32),
        grid_spec=pltpu.PrefetchScalarGridSpec(
            num_scalar_prefetch=0,
            grid=(B // bt,),
            in_specs=in_specs,
            out_specs=out_specs,
        ),
        compiler_params=pltpu.CompilerParams(
            dimension_semantics=("parallel",),
            # per-step footprint is a few MiB at these shapes; explicit limit is a scaling
            # guard for v7x (64 MiB physical / 32 MiB default scoped VMEM).
            vmem_limit_bytes=32 * 1024 * 1024,
        ),
    )(x, *arrays)


# --------------------------- pure-JAX reference -------------------------------

def block_reference(x, p, num_heads):
    B, N, C = x.shape
    S = int(round(math.sqrt(N)))
    d = C // num_heads

    def ln(z, g, b):
        mu = jnp.mean(z, -1, keepdims=True)
        var = jnp.mean((z - mu) ** 2, -1, keepdims=True)
        return (z - mu) / jnp.sqrt(var + 1e-5) * g + b

    xn = ln(x, p['ln1_g'][0], p['ln1_b'][0])
    q = (xn @ p['q_w']).reshape(B, N, num_heads, d).transpose(0, 2, 1, 3)
    k = (xn @ p['k_w']).reshape(B, N, num_heads, d).transpose(0, 2, 1, 3)
    v = (xn @ p['v_w']).reshape(B, N, num_heads, d).transpose(0, 2, 1, 3)
    attn = jnp.einsum('bhnd,bhmd->bhnm', q, k) * (d ** -0.5)
    attn = jax.nn.softmax(attn, axis=-1)
    o = jnp.einsum('bhnm,bhmd->bhnd', attn, v).transpose(0, 2, 1, 3).reshape(B, N, C)
    o = o @ p['proj_w'] + p['proj_b'][0]
    x1 = x + o

    xn2 = ln(x1, p['ln2_g'][0], p['ln2_b'][0])
    h1 = xn2 @ p['fc1_w'] + p['fc1_b'][0]
    H = h1.shape[-1]
    img = h1.reshape(B, S, S, H)
    k_hwio = p['dw_w'].reshape(3, 3, 1, H)
    conv = lax.conv_general_dilated(
        img, k_hwio, window_strides=(1, 1), padding='SAME',
        dimension_numbers=('NHWC', 'HWIO', 'NHWC'),
        feature_group_count=H) + p['dw_b'][0]
    conv = conv.reshape(B, N, H)
    act = jax.nn.gelu(conv, approximate=False)
    y = act @ p['fc2_w'] + p['fc2_b'][0]
    return x1 + y


# ----------------------------------- main --------------------------------------

if __name__ == "__main__":
    B, N, C = 8, 64, 32          # N = 8*8 spatial tokens (forward implies square N)
    num_heads = 4
    mlp_ratio = 4.0
    H = int(C * mlp_ratio)       # 128

    key = jax.random.PRNGKey(0)
    ks = jax.random.split(key, 16)
    f32 = jnp.float32

    params = {
        'ln1_g': 1.0 + 0.1 * jax.random.normal(ks[1], (1, C), f32),
        'ln1_b': 0.05 * jax.random.normal(ks[2], (1, C), f32),
        'q_w': 0.05 * jax.random.normal(ks[3], (C, C), f32),
        'k_w': 0.05 * jax.random.normal(ks[4], (C, C), f32),
        'v_w': 0.05 * jax.random.normal(ks[5], (C, C), f32),
        'proj_w': 0.05 * jax.random.normal(ks[6], (C, C), f32),
        'proj_b': 0.02 * jax.random.normal(ks[7], (1, C), f32),
        'ln2_g': 1.0 + 0.1 * jax.random.normal(ks[8], (1, C), f32),
        'ln2_b': 0.05 * jax.random.normal(ks[9], (1, C), f32),
        'fc1_w': 0.05 * jax.random.normal(ks[10], (C, H), f32),
        'fc1_b': 0.02 * jax.random.normal(ks[11], (1, H), f32),
        'dw_w': 0.1 * jax.random.normal(ks[12], (9, H), f32),   # [ki*3+kj, channel]
        'dw_b': 0.02 * jax.random.normal(ks[13], (1, H), f32),
        'fc2_w': 0.05 * jax.random.normal(ks[14], (H, C), f32),
        'fc2_b': 0.02 * jax.random.normal(ks[15], (1, C), f32),
    }

    x = jax.random.normal(ks[0], (B, N, C), f32)

    out = block_forward(x, params, num_heads)   # bt auto-selected per TPU generation
    out = jax.block_until_ready(out)

    ref = jax.block_until_ready(block_reference(x, params, num_heads))
    np.testing.assert_allclose(np.asarray(out), np.asarray(ref), atol=1e-2, rtol=1e-2)

    print("KERNEL_OK")
</pallas_src>

<mosaic_0001>
module attributes {stable_mosaic.version = 11 : i64} {
  func.func @kernel(%arg0: i32, %arg1: memref<4x64x32xf32, #tpu.memory_space<vmem>>, %arg2: memref<1x32xf32, #tpu.memory_space<vmem>>, %arg3: memref<1x32xf32, #tpu.memory_space<vmem>>, %arg4: memref<32x96xbf16, #tpu.memory_space<vmem>>, %arg5: memref<32x32xbf16, #tpu.memory_space<vmem>>, %arg6: memref<1x32xf32, #tpu.memory_space<vmem>>, %arg7: memref<1x32xf32, #tpu.memory_space<vmem>>, %arg8: memref<1x32xf32, #tpu.memory_space<vmem>>, %arg9: memref<32x128xbf16, #tpu.memory_space<vmem>>, %arg10: memref<1x128xf32, #tpu.memory_space<vmem>>, %arg11: memref<9x128xf32, #tpu.memory_space<vmem>>, %arg12: memref<1x128xf32, #tpu.memory_space<vmem>>, %arg13: memref<128x32xbf16, #tpu.memory_space<vmem>>, %arg14: memref<1x32xf32, #tpu.memory_space<vmem>>, %arg15: memref<256x4xf32, #tpu.memory_space<vmem>>, %arg16: memref<4x64x32xf32, #tpu.memory_space<vmem>>) attributes {dimension_semantics = [#tpu.dimension_semantics<parallel>], iteration_bounds = array<i64: 2>, scalar_prefetch = 0 : i64, scratch_operands = 0 : i64, tpu.core_type = #tpu.core_type<tc>, window_params = [{transform_indices = @transform_0, window_bounds = array<i64: 4, 64, 32>}, {pipeline_mode = #tpu.pipeline_mode<synchronous>, transform_indices = @transform_1, window_bounds = array<i64: 1, 32>}, {pipeline_mode = #tpu.pipeline_mode<synchronous>, transform_indices = @transform_2, window_bounds = array<i64: 1, 32>}, {pipeline_mode = #tpu.pipeline_mode<synchronous>, transform_indices = @transform_3, window_bounds = array<i64: 32, 96>}, {pipeline_mode = #tpu.pipeline_mode<synchronous>, transform_indices = @transform_4, window_bounds = array<i64: 32, 32>}, {pipeline_mode = #tpu.pipeline_mode<synchronous>, transform_indices = @transform_5, window_bounds = array<i64: 1, 32>}, {pipeline_mode = #tpu.pipeline_mode<synchronous>, transform_indices = @transform_6, window_bounds = array<i64: 1, 32>}, {pipeline_mode = #tpu.pipeline_mode<synchronous>, transform_indices = @transform_7, window_bounds = array<i64: 1, 32>}, {pipeline_mode = #tpu.pipeline_mode<synchronous>, transform_indices = @transform_8, window_bounds = array<i64: 32, 128>}, {pipeline_mode = #tpu.pipeline_mode<synchronous>, transform_indices = @transform_9, window_bounds = array<i64: 1, 128>}, {pipeline_mode = #tpu.pipeline_mode<synchronous>, transform_indices = @transform_10, window_bounds = array<i64: 9, 128>}, {pipeline_mode = #tpu.pipeline_mode<synchronous>, transform_indices = @transform_11, window_bounds = array<i64: 1, 128>}, {pipeline_mode = #tpu.pipeline_mode<synchronous>, transform_indices = @transform_12, window_bounds = array<i64: 128, 32>}, {pipeline_mode = #tpu.pipeline_mode<synchronous>, transform_indices = @transform_13, window_bounds = array<i64: 1, 32>}, {pipeline_mode = #tpu.pipeline_mode<synchronous>, transform_indices = @transform_14, window_bounds = array<i64: 256, 4>}, {transform_indices = @transform_15, window_bounds = array<i64: 4, 64, 32>}]} {
    %c0 = arith.constant 0 : index
    %c0_0 = arith.constant 0 : index
    %c0_1 = arith.constant 0 : index
    %0 = vector.load %arg1[%c0, %c0_0, %c0_1] : memref<4x64x32xf32, #tpu.memory_space<vmem>>, vector<4x64x32xf32>
    %1 = vector.shape_cast %0 : vector<4x64x32xf32> to vector<256x32xf32>
    %c0_2 = arith.constant 0 : index
    %c0_3 = arith.constant 0 : index
    %2 = vector.load %arg2[%c0_2, %c0_3] : memref<1x32xf32, #tpu.memory_space<vmem>>, vector<1x32xf32>
    %c0_4 = arith.constant 0 : index
    %c0_5 = arith.constant 0 : index
    %3 = vector.load %arg3[%c0_4, %c0_5] : memref<1x32xf32, #tpu.memory_space<vmem>>, vector<1x32xf32>
    %cst = arith.constant dense<0.000000e+00> : vector<256xf32>
    %4 = vector.multi_reduction <add>, %1, %cst [1] : vector<256x32xf32> to vector<256xf32>
    %5 = vector.shape_cast %4 : vector<256xf32> to vector<256x1xf32>
    %cst_6 = arith.constant 3.200000e+01 : f32
    %6 = vector.broadcast %cst_6 : f32 to vector<256x1xf32>
    %7 = arith.divf %5, %6 : vector<256x1xf32>
    %8 = vector.broadcast %7 : vector<256x1xf32> to vector<256x32xf32>
    %9 = arith.subf %1, %8 : vector<256x32xf32>
    %10 = arith.mulf %9, %9 : vector<256x32xf32>
    %cst_7 = arith.constant dense<0.000000e+00> : vector<256xf32>
    %11 = vector.multi_reduction <add>, %10, %cst_7 [1] : vector<256x32xf32> to vector<256xf32>
    %12 = vector.shape_cast %11 : vector<256xf32> to vector<256x1xf32>
    %cst_8 = arith.constant 3.200000e+01 : f32
    %13 = vector.broadcast %cst_8 : f32 to vector<256x1xf32>
    %14 = arith.divf %12, %13 : vector<256x1xf32>
    %cst_9 = arith.constant 9.99999974E-6 : f32
    %15 = vector.broadcast %cst_9 : f32 to vector<256x1xf32>
    %16 = arith.addf %14, %15 : vector<256x1xf32>
    %17 = math.rsqrt %16 : vector<256x1xf32>
    %18 = vector.broadcast %17 : vector<256x1xf32> to vector<256x32xf32>
    %19 = arith.mulf %9, %18 : vector<256x32xf32>
    %20 = vector.broadcast %2 : vector<1x32xf32> to vector<256x32xf32>
    %21 = arith.mulf %19, %20 : vector<256x32xf32>
    %22 = vector.broadcast %3 : vector<1x32xf32> to vector<256x32xf32>
    %23 = arith.addf %21, %22 : vector<256x32xf32>
    %24 = arith.truncf %23 : vector<256x32xf32> to vector<256x32xbf16>
    %c0_10 = arith.constant 0 : index
    %c0_11 = arith.constant 0 : index
    %25 = vector.load %arg4[%c0_10, %c0_11] : memref<32x96xbf16, #tpu.memory_space<vmem>>, vector<32x96xbf16>
    %cst_12 = arith.constant dense<0.000000e+00> : vector<256x96xf32>
    %26 = tpu.matmul %24, %25, %cst_12 {dimension_numbers = #tpu.dot_dimension_numbers<[1], [0], [0], [1], [0, 0, 1, 1], [], []>} : vector<256x32xbf16>, vector<32x96xbf16>, vector<256x96xf32> -> vector<256x96xf32>
    %27 = vector.extract_strided_slice %26 {offsets = [0, 0], sizes = [256, 32], strides = [1, 1]} : vector<256x96xf32> to vector<256x32xf32>
    %28 = arith.truncf %27 : vector<256x32xf32> to vector<256x32xbf16>
    %29 = vector.shape_cast %28 : vector<256x32xbf16> to vector<4x64x32xbf16>
    %30 = vector.extract_strided_slice %26 {offsets = [0, 32], sizes = [256, 32], strides = [1, 1]} : vector<256x96xf32> to vector<256x32xf32>
    %31 = arith.truncf %30 : vector<256x32xf32> to vector<256x32xbf16>
    %32 = vector.shape_cast %31 : vector<256x32xbf16> to vector<4x64x32xbf16>
    %33 = vector.extract_strided_slice %26 {offsets = [0, 64], sizes = [256, 32], strides = [1, 1]} : vector<256x96xf32> to vector<256x32xf32>
    %34 = arith.truncf %33 : vector<256x32xf32> to vector<256x32xbf16>
    %35 = vector.shape_cast %34 : vector<256x32xbf16> to vector<4x64x32xbf16>
    %36 = vector.extract_strided_slice %29 {offsets = [0, 0, 0], sizes = [4, 64, 8], strides = [1, 1, 1]} : vector<4x64x32xbf16> to vector<4x64x8xbf16>
    %37 = vector.extract_strided_slice %32 {offsets = [0, 0, 0], sizes = [4, 64, 8], strides = [1, 1, 1]} : vector<4x64x32xbf16> to vector<4x64x8xbf16>
    %38 = vector.extract_strided_slice %35 {offsets = [0, 0, 0], sizes = [4, 64, 8], strides = [1, 1, 1]} : vector<4x64x32xbf16> to vector<4x64x8xbf16>
    "tpu.trace_start"() <{level = 10 : i32, message = "bqd,bkd->bqk"}> : () -> ()
    %cst_13 = arith.constant dense<0.000000e+00> : vector<4x64x64xf32>
    %39 = tpu.matmul %36, %37, %cst_13 {dimension_numbers = #tpu.dot_dimension_numbers<[2], [2], [1], [1], [0, 0, 0, 1, 1, 1], [0], [0]>} : vector<4x64x8xbf16>, vector<4x64x8xbf16>, vector<4x64x64xf32> -> vector<4x64x64xf32>
    "tpu.trace_stop"() : () -> ()
    %cst_14 = arith.constant dense<0xFF800000> : vector<4x64xf32>
    %40 = vector.multi_reduction <maximumf>, %39, %cst_14 [2] : vector<4x64x64xf32> to vector<4x64xf32>
    %41 = vector.shape_cast %40 : vector<4x64xf32> to vector<4x64x1xf32>
    %42 = vector.broadcast %41 : vector<4x64x1xf32> to vector<4x64x64xf32>
    %43 = arith.subf %39, %42 : vector<4x64x64xf32>
    %44 = math.exp %43 : vector<4x64x64xf32>
    %cst_15 = arith.constant dense<0.000000e+00> : vector<4x64xf32>
    %45 = vector.multi_reduction <add>, %44, %cst_15 [2] : vector<4x64x64xf32> to vector<4x64xf32>
    %46 = vector.shape_cast %45 : vector<4x64xf32> to vector<4x64x1xf32>
    %47 = tpu.reciprocal %46 {approx = true} : vector<4x64x1xf32> -> vector<4x64x1xf32>
    %48 = vector.broadcast %47 : vector<4x64x1xf32> to vector<4x64x64xf32>
    %49 = arith.mulf %44, %48 : vector<4x64x64xf32>
    %50 = arith.truncf %49 : vector<4x64x64xf32> to vector<4x64x64xbf16>
    "tpu.trace_start"() <{level = 10 : i32, message = "bqk,bkd->bqd"}> : () -> ()
    %cst_16 = arith.constant dense<0.000000e+00> : vector<4x64x8xf32>
    %51 = tpu.matmul %50, %38, %cst_16 {dimension_numbers = #tpu.dot_dimension_numbers<[2], [1], [1], [2], [0, 0, 0, 1, 1, 2], [0], [0]>} : vector<4x64x64xbf16>, vector<4x64x8xbf16>, vector<4x64x8xf32> -> vector<4x64x8xf32>
    "tpu.trace_stop"() : () -> ()
    %52 = vector.extract_strided_slice %29 {offsets = [0, 0, 8], sizes = [4, 64, 8], strides = [1, 1, 1]} : vector<4x64x32xbf16> to vector<4x64x8xbf16>
    %53 = vector.extract_strided_slice %32 {offsets = [0, 0, 8], sizes = [4, 64, 8], strides = [1, 1, 1]} : vector<4x64x32xbf16> to vector<4x64x8xbf16>
    %54 = vector.extract_strided_slice %35 {offsets = [0, 0, 8], sizes = [4, 64, 8], strides = [1, 1, 1]} : vector<4x64x32xbf16> to vector<4x64x8xbf16>
    "tpu.trace_start"() <{level = 10 : i32, message = "bqd,bkd->bqk"}> : () -> ()
    %cst_17 = arith.constant dense<0.000000e+00> : vector<4x64x64xf32>
    %55 = tpu.matmul %52, %53, %cst_17 {dimension_numbers = #tpu.dot_dimension_numbers<[2], [2], [1], [1], [0, 0, 0, 1, 1, 1], [0], [0]>} : vector<4x64x8xbf16>, vector<4x64x8xbf16>, vector<4x64x64xf32> -> vector<4x64x64xf32>
    "tpu.trace_stop"() : () -> ()
    %cst_18 = arith.constant dense<0xFF800000> : vector<4x64xf32>
    %56 = vector.multi_reduction <maximumf>, %55, %cst_18 [2] : vector<4x64x64xf32> to vector<4x64xf32>
    %57 = vector.shape_cast %56 : vector<4x64xf32> to vector<4x64x1xf32>
    %58 = vector.broadcast %57 : vector<4x64x1xf32> to vector<4x64x64xf32>
    %59 = arith.subf %55, %58 : vector<4x64x64xf32>
    %60 = math.exp %59 : vector<4x64x64xf32>
    %cst_19 = arith.constant dense<0.000000e+00> : vector<4x64xf32>
    %61 = vector.multi_reduction <add>, %60, %cst_19 [2] : vector<4x64x64xf32> to vector<4x64xf32>
    %62 = vector.shape_cast %61 : vector<4x64xf32> to vector<4x64x1xf32>
    %63 = tpu.reciprocal %62 {approx = true} : vector<4x64x1xf32> -> vector<4x64x1xf32>
    %64 = vector.broadcast %63 : vector<4x64x1xf32> to vector<4x64x64xf32>
    %65 = arith.mulf %60, %64 : vector<4x64x64xf32>
    %66 = arith.truncf %65 : vector<4x64x64xf32> to vector<4x64x64xbf16>
    "tpu.trace_start"() <{level = 10 : i32, message = "bqk,bkd->bqd"}> : () -> ()
    %cst_20 = arith.constant dense<0.000000e+00> : vector<4x64x8xf32>
    %67 = tpu.matmul %66, %54, %cst_20 {dimension_numbers = #tpu.dot_dimension_numbers<[2], [1], [1], [2], [0, 0, 0, 1, 1, 2], [0], [0]>} : vector<4x64x64xbf16>, vector<4x64x8xbf16>, vector<4x64x8xf32> -> vector<4x64x8xf32>
    "tpu.trace_stop"() : () -> ()
    %68 = vector.extract_strided_slice %29 {offsets = [0, 0, 16], sizes = [4, 64, 8], strides = [1, 1, 1]} : vector<4x64x32xbf16> to vector<4x64x8xbf16>
    %69 = vector.extract_strided_slice %32 {offsets = [0, 0, 16], sizes = [4, 64, 8], strides = [1, 1, 1]} : vector<4x64x32xbf16> to vector<4x64x8xbf16>
    %70 = vector.extract_strided_slice %35 {offsets = [0, 0, 16], sizes = [4, 64, 8], strides = [1, 1, 1]} : vector<4x64x32xbf16> to vector<4x64x8xbf16>
    "tpu.trace_start"() <{level = 10 : i32, message = "bqd,bkd->bqk"}> : () -> ()
    %cst_21 = arith.constant dense<0.000000e+00> : vector<4x64x64xf32>
    %71 = tpu.matmul %68, %69, %cst_21 {dimension_numbers = #tpu.dot_dimension_numbers<[2], [2], [1], [1], [0, 0, 0, 1, 1, 1], [0], [0]>} : vector<4x64x8xbf16>, vector<4x64x8xbf16>, vector<4x64x64xf32> -> vector<4x64x64xf32>
    "tpu.trace_stop"() : () -> ()
    %cst_22 = arith.constant dense<0xFF800000> : vector<4x64xf32>
    %72 = vector.multi_reduction <maximumf>, %71, %cst_22 [2] : vector<4x64x64xf32> to vector<4x64xf32>
    %73 = vector.shape_cast %72 : vector<4x64xf32> to vector<4x64x1xf32>
    %74 = vector.broadcast %73 : vector<4x64x1xf32> to vector<4x64x64xf32>
    %75 = arith.subf %71, %74 : vector<4x64x64xf32>
    %76 = math.exp %75 : vector<4x64x64xf32>
    %cst_23 = arith.constant dense<0.000000e+00> : vector<4x64xf32>
    %77 = vector.multi_reduction <add>, %76, %cst_23 [2] : vector<4x64x64xf32> to vector<4x64xf32>
    %78 = vector.shape_cast %77 : vector<4x64xf32> to vector<4x64x1xf32>
    %79 = tpu.reciprocal %78 {approx = true} : vector<4x64x1xf32> -> vector<4x64x1xf32>
    %80 = vector.broadcast %79 : vector<4x64x1xf32> to vector<4x64x64xf32>
    %81 = arith.mulf %76, %80 : vector<4x64x64xf32>
    %82 = arith.truncf %81 : vector<4x64x64xf32> to vector<4x64x64xbf16>
    "tpu.trace_start"() <{level = 10 : i32, message = "bqk,bkd->bqd"}> : () -> ()
    %cst_24 = arith.constant dense<0.000000e+00> : vector<4x64x8xf32>
    %83 = tpu.matmul %82, %70, %cst_24 {dimension_numbers = #tpu.dot_dimension_numbers<[2], [1], [1], [2], [0, 0, 0, 1, 1, 2], [0], [0]>} : vector<4x64x64xbf16>, vector<4x64x8xbf16>, vector<4x64x8xf32> -> vector<4x64x8xf32>
    "tpu.trace_stop"() : () -> ()
    %84 = vector.extract_strided_slice %29 {offsets = [0, 0, 24], sizes = [4, 64, 8], strides = [1, 1, 1]} : vector<4x64x32xbf16> to vector<4x64x8xbf16>
    %85 = vector.extract_strided_slice %32 {offsets = [0, 0, 24], sizes = [4, 64, 8], strides = [1, 1, 1]} : vector<4x64x32xbf16> to vector<4x64x8xbf16>
    %86 = vector.extract_strided_slice %35 {offsets = [0, 0, 24], sizes = [4, 64, 8], strides = [1, 1, 1]} : vector<4x64x32xbf16> to vector<4x64x8xbf16>
    "tpu.trace_start"() <{level = 10 : i32, message = "bqd,bkd->bqk"}> : () -> ()
    %cst_25 = arith.constant dense<0.000000e+00> : vector<4x64x64xf32>
    %87 = tpu.matmul %84, %85, %cst_25 {dimension_numbers = #tpu.dot_dimension_numbers<[2], [2], [1], [1], [0, 0, 0, 1, 1, 1], [0], [0]>} : vector<4x64x8xbf16>, vector<4x64x8xbf16>, vector<4x64x64xf32> -> vector<4x64x64xf32>
    "tpu.trace_stop"() : () -> ()
    %cst_26 = arith.constant dense<0xFF800000> : vector<4x64xf32>
    %88 = vector.multi_reduction <maximumf>, %87, %cst_26 [2] : vector<4x64x64xf32> to vector<4x64xf32>
    %89 = vector.shape_cast %88 : vector<4x64xf32> to vector<4x64x1xf32>
    %90 = vector.broadcast %89 : vector<4x64x1xf32> to vector<4x64x64xf32>
    %91 = arith.subf %87, %90 : vector<4x64x64xf32>
    %92 = math.exp %91 : vector<4x64x64xf32>
    %cst_27 = arith.constant dense<0.000000e+00> : vector<4x64xf32>
    %93 = vector.multi_reduction <add>, %92, %cst_27 [2] : vector<4x64x64xf32> to vector<4x64xf32>
    %94 = vector.shape_cast %93 : vector<4x64xf32> to vector<4x64x1xf32>
    %95 = tpu.reciprocal %94 {approx = true} : vector<4x64x1xf32> -> vector<4x64x1xf32>
    %96 = vector.broadcast %95 : vector<4x64x1xf32> to vector<4x64x64xf32>
    %97 = arith.mulf %92, %96 : vector<4x64x64xf32>
    %98 = arith.truncf %97 : vector<4x64x64xf32> to vector<4x64x64xbf16>
    "tpu.trace_start"() <{level = 10 : i32, message = "bqk,bkd->bqd"}> : () -> ()
    %cst_28 = arith.constant dense<0.000000e+00> : vector<4x64x8xf32>
    %99 = tpu.matmul %98, %86, %cst_28 {dimension_numbers = #tpu.dot_dimension_numbers<[2], [1], [1], [2], [0, 0, 0, 1, 1, 2], [0], [0]>} : vector<4x64x64xbf16>, vector<4x64x8xbf16>, vector<4x64x8xf32> -> vector<4x64x8xf32>
    "tpu.trace_stop"() : () -> ()
    %100 = tpu.concatenate %51, %67, %83, %99 in 2 : vector<4x64x8xf32>, vector<4x64x8xf32>, vector<4x64x8xf32>, vector<4x64x8xf32> -> vector<4x64x32xf32>
    %101 = vector.shape_cast %100 : vector<4x64x32xf32> to vector<256x32xf32>
    %102 = arith.truncf %101 : vector<256x32xf32> to vector<256x32xbf16>
    %c0_29 = arith.constant 0 : index
    %c0_30 = arith.constant 0 : index
    %103 = vector.load %arg5[%c0_29, %c0_30] : memref<32x32xbf16, #tpu.memory_space<vmem>>, vector<32x32xbf16>
    %cst_31 = arith.constant dense<0.000000e+00> : vector<256x32xf32>
    %104 = tpu.matmul %102, %103, %cst_31 {dimension_numbers = #tpu.dot_dimension_numbers<[1], [0], [0], [1], [0, 0, 1, 1], [], []>} : vector<256x32xbf16>, vector<32x32xbf16>, vector<256x32xf32> -> vector<256x32xf32>
    %c0_32 = arith.constant 0 : index
    %c0_33 = arith.constant 0 : index
    %105 = vector.load %arg6[%c0_32, %c0_33] : memref<1x32xf32, #tpu.memory_space<vmem>>, vector<1x32xf32>
    %106 = vector.broadcast %105 : vector<1x32xf32> to vector<256x32xf32>
    %107 = arith.addf %104, %106 : vector<256x32xf32>
    %108 = arith.addf %1, %107 : vector<256x32xf32>
    %c0_34 = arith.constant 0 : index
    %c0_35 = arith.constant 0 : index
    %109 = vector.load %arg7[%c0_34, %c0_35] : memref<1x32xf32, #tpu.memory_space<vmem>>, vector<1x32xf32>
    %c0_36 = arith.constant 0 : index
    %c0_37 = arith.constant 0 : index
    %110 = vector.load %arg8[%c0_36, %c0_37] : memref<1x32xf32, #tpu.memory_space<vmem>>, vector<1x32xf32>
    %cst_38 = arith.constant dense<0.000000e+00> : vector<256xf32>
    %111 = vector.multi_reduction <add>, %108, %cst_38 [1] : vector<256x32xf32> to vector<256xf32>
    %112 = vector.shape_cast %111 : vector<256xf32> to vector<256x1xf32>
    %cst_39 = arith.constant 3.200000e+01 : f32
    %113 = vector.broadcast %cst_39 : f32 to vector<256x1xf32>
    %114 = arith.divf %112, %113 : vector<256x1xf32>
    %115 = vector.broadcast %114 : vector<256x1xf32> to vector<256x32xf32>
    %116 = arith.subf %108, %115 : vector<256x32xf32>
    %117 = arith.mulf %116, %116 : vector<256x32xf32>
    %cst_40 = arith.constant dense<0.000000e+00> : vector<256xf32>
    %118 = vector.multi_reduction <add>, %117, %cst_40 [1] : vector<256x32xf32> to vector<256xf32>
    %119 = vector.shape_cast %118 : vector<256xf32> to vector<256x1xf32>
    %cst_41 = arith.constant 3.200000e+01 : f32
    %120 = vector.broadcast %cst_41 : f32 to vector<256x1xf32>
    %121 = arith.divf %119, %120 : vector<256x1xf32>
    %cst_42 = arith.constant 9.99999974E-6 : f32
    %122 = vector.broadcast %cst_42 : f32 to vector<256x1xf32>
    %123 = arith.addf %121, %122 : vector<256x1xf32>
    %124 = math.rsqrt %123 : vector<256x1xf32>
    %125 = vector.broadcast %124 : vector<256x1xf32> to vector<256x32xf32>
    %126 = arith.mulf %116, %125 : vector<256x32xf32>
    %127 = vector.broadcast %109 : vector<1x32xf32> to vector<256x32xf32>
    %128 = arith.mulf %126, %127 : vector<256x32xf32>
    %129 = vector.broadcast %110 : vector<1x32xf32> to vector<256x32xf32>
    %130 = arith.addf %128, %129 : vector<256x32xf32>
    %131 = arith.truncf %130 : vector<256x32xf32> to vector<256x32xbf16>
    %c0_43 = arith.constant 0 : index
    %c0_44 = arith.constant 0 : index
    %132 = vector.load %arg9[%c0_43, %c0_44] : memref<32x128xbf16, #tpu.memory_space<vmem>>, vector<32x128xbf16>
    %cst_45 = arith.constant dense<0.000000e+00> : vector<256x128xf32>
    %133 = tpu.matmul %131, %132, %cst_45 {dimension_numbers = #tpu.dot_dimension_numbers<[1], [0], [0], [1], [0, 0, 1, 1], [], []>} : vector<256x32xbf16>, vector<32x128xbf16>, vector<256x128xf32> -> vector<256x128xf32>
    %c0_46 = arith.constant 0 : index
    %c0_47 = arith.constant 0 : index
    %134 = vector.load %arg10[%c0_46, %c0_47] : memref<1x128xf32, #tpu.memory_space<vmem>>, vector<1x128xf32>
    %135 = vector.broadcast %134 : vector<1x128xf32> to vector<256x128xf32>
    %136 = arith.addf %133, %135 : vector<256x128xf32>
    %c0_48 = arith.constant 0 : index
    %c0_49 = arith.constant 0 : index
    %137 = vector.load %arg15[%c0_48, %c0_49] : memref<256x4xf32, #tpu.memory_space<vmem>>, vector<256x1xf32>
    %c0_50 = arith.constant 0 : index
    %c1 = arith.constant 1 : index
    %138 = vector.load %arg15[%c0_50, %c1] : memref<256x4xf32, #tpu.memory_space<vmem>>, vector<256x1xf32>
    %c0_51 = arith.constant 0 : index
    %c2 = arith.constant 2 : index
    %139 = vector.load %arg15[%c0_51, %c2] : memref<256x4xf32, #tpu.memory_space<vmem>>, vector<256x1xf32>
    %c0_52 = arith.constant 0 : index
    %c3 = arith.constant 3 : index
    %140 = vector.load %arg15[%c0_52, %c3] : memref<256x4xf32, #tpu.memory_space<vmem>>, vector<256x1xf32>
    %141 = vector.extract_strided_slice %136 {offsets = [255, 0], sizes = [1, 128], strides = [1, 1]} : vector<256x128xf32> to vector<1x128xf32>
    %142 = vector.extract_strided_slice %136 {offsets = [0, 0], sizes = [255, 128], strides = [1, 1]} : vector<256x128xf32> to vector<255x128xf32>
    %143 = tpu.concatenate %141, %142 in 0 : vector<1x128xf32>, vector<255x128xf32> -> vector<256x128xf32>
    %144 = vector.broadcast %139 : vector<256x1xf32> to vector<256x128xf32>
    %145 = arith.mulf %143, %144 : vector<256x128xf32>
    %146 = vector.extract_strided_slice %136 {offsets = [1, 0], sizes = [255, 128], strides = [1, 1]} : vector<256x128xf32> to vector<255x128xf32>
    %147 = vector.extract_strided_slice %136 {offsets = [0, 0], sizes = [1, 128], strides = [1, 1]} : vector<256x128xf32> to vector<1x128xf32>
    %148 = tpu.concatenate %146, %147 in 0 : vector<255x128xf32>, vector<1x128xf32> -> vector<256x128xf32>
    %149 = vector.broadcast %140 : vector<256x1xf32> to vector<256x128xf32>
    %150 = arith.mulf %148, %149 : vector<256x128xf32>
    %c0_53 = arith.constant 0 : index
    %c0_54 = arith.constant 0 : index
    %151 = vector.load %arg11[%c0_53, %c0_54] : memref<9x128xf32, #tpu.memory_space<vmem>>, vector<1x128xf32>
    %152 = vector.extract_strided_slice %145 {offsets = [248, 0], sizes = [8, 128], strides = [1, 1]} : vector<256x128xf32> to vector<8x128xf32>
    %153 = vector.extract_strided_slice %145 {offsets = [0, 0], sizes = [248, 128], strides = [1, 1]} : vector<256x128xf32> to vector<248x128xf32>
    %154 = tpu.concatenate %152, %153 in 0 : vector<8x128xf32>, vector<248x128xf32> -> vector<256x128xf32>
    %155 = vector.broadcast %151 : vector<1x128xf32> to vector<256x128xf32>
    %156 = arith.mulf %154, %155 : vector<256x128xf32>
    %c1_55 = arith.constant 1 : index
    %c0_56 = arith.constant 0 : index
    %157 = vector.load %arg11[%c1_55, %c0_56] : memref<9x128xf32, #tpu.memory_space<vmem>>, vector<1x128xf32>
    %158 = vector.extract_strided_slice %136 {offsets = [248, 0], sizes = [8, 128], strides = [1, 1]} : vector<256x128xf32> to vector<8x128xf32>
    %159 = vector.extract_strided_slice %136 {offsets = [0, 0], sizes = [248, 128], strides = [1, 1]} : vector<256x128xf32> to vector<248x128xf32>
    %160 = tpu.concatenate %158, %159 in 0 : vector<8x128xf32>, vector<248x128xf32> -> vector<256x128xf32>
    %161 = vector.broadcast %157 : vector<1x128xf32> to vector<256x128xf32>
    %162 = arith.mulf %160, %161 : vector<256x128xf32>
    %163 = arith.addf %156, %162 : vector<256x128xf32>
    %c2_57 = arith.constant 2 : index
    %c0_58 = arith.constant 0 : index
    %164 = vector.load %arg11[%c2_57, %c0_58] : memref<9x128xf32, #tpu.memory_space<vmem>>, vector<1x128xf32>
    %165 = vector.extract_strided_slice %150 {offsets = [248, 0], sizes = [8, 128], strides = [1, 1]} : vector<256x128xf32> to vector<8x128xf32>
    %166 = vector.extract_strided_slice %150 {offsets = [0, 0], sizes = [248, 128], strides = [1, 1]} : vector<256x128xf32> to vector<248x128xf32>
    %167 = tpu.concatenate %165, %166 in 0 : vector<8x128xf32>, vector<248x128xf32> -> vector<256x128xf32>
    %168 = vector.broadcast %164 : vector<1x128xf32> to vector<256x128xf32>
    %169 = arith.mulf %167, %168 : vector<256x128xf32>
    %170 = arith.addf %163, %169 : vector<256x128xf32>
    %171 = vector.broadcast %137 : vector<256x1xf32> to vector<256x128xf32>
    %172 = arith.mulf %170, %171 : vector<256x128xf32>
    %c3_59 = arith.constant 3 : index
    %c0_60 = arith.constant 0 : index
    %173 = vector.load %arg11[%c3_59, %c0_60] : memref<9x128xf32, #tpu.memory_space<vmem>>, vector<1x128xf32>
    %174 = vector.broadcast %173 : vector<1x128xf32> to vector<256x128xf32>
    %175 = arith.mulf %145, %174 : vector<256x128xf32>
    %c4 = arith.constant 4 : index
    %c0_61 = arith.constant 0 : index
    %176 = vector.load %arg11[%c4, %c0_61] : memref<9x128xf32, #tpu.memory_space<vmem>>, vector<1x128xf32>
    %177 = vector.broadcast %176 : vector<1x128xf32> to vector<256x128xf32>
    %178 = arith.mulf %136, %177 : vector<256x128xf32>
    %179 = arith.addf %175, %178 : vector<256x128xf32>
    %c5 = arith.constant 5 : index
    %c0_62 = arith.constant 0 : index
    %180 = vector.load %arg11[%c5, %c0_62] : memref<9x128xf32, #tpu.memory_space<vmem>>, vector<1x128xf32>
    %181 = vector.broadcast %180 : vector<1x128xf32> to vector<256x128xf32>
    %182 = arith.mulf %150, %181 : vector<256x128xf32>
    %183 = arith.addf %179, %182 : vector<256x128xf32>
    %184 = arith.addf %172, %183 : vector<256x128xf32>
    %c6 = arith.constant 6 : index
    %c0_63 = arith.constant 0 : index
    %185 = vector.load %arg11[%c6, %c0_63] : memref<9x128xf32, #tpu.memory_space<vmem>>, vector<1x128xf32>
    %186 = vector.extract_strided_slice %145 {offsets = [8, 0], sizes = [248, 128], strides = [1, 1]} : vector<256x128xf32> to vector<248x128xf32>
    %187 = vector.extract_strided_slice %145 {offsets = [0, 0], sizes = [8, 128], strides = [1, 1]} : vector<256x128xf32> to vector<8x128xf32>
    %188 = tpu.concatenate %186, %187 in 0 : vector<248x128xf32>, vector<8x128xf32> -> vector<256x128xf32>
    %189 = vector.broadcast %185 : vector<1x128xf32> to vector<256x128xf32>
    %190 = arith.mulf %188, %189 : vector<256x128xf32>
    %c7 = arith.constant 7 : index
    %c0_64 = arith.constant 0 : index
    %191 = vector.load %arg11[%c7, %c0_64] : memref<9x128xf32, #tpu.memory_space<vmem>>, vector<1x128xf32>
    %192 = vector.extract_strided_slice %136 {offsets = [8, 0], sizes = [248, 128], strides = [1, 1]} : vector<256x128xf32> to vector<248x128xf32>
    %193 = vector.extract_strided_slice %136 {offsets = [0, 0], sizes = [8, 128], strides = [1, 1]} : vector<256x128xf32> to vector<8x128xf32>
    %194 = tpu.concatenate %192, %193 in 0 : vector<248x128xf32>, vector<8x128xf32> -> vector<256x128xf32>
    %195 = vector.broadcast %191 : vector<1x128xf32> to vector<256x128xf32>
    %196 = arith.mulf %194, %195 : vector<256x128xf32>
    %197 = arith.addf %190, %196 : vector<256x128xf32>
    %c8 = arith.constant 8 : index
    %c0_65 = arith.constant 0 : index
    %198 = vector.load %arg11[%c8, %c0_65] : memref<9x128xf32, #tpu.memory_space<vmem>>, vector<1x128xf32>
    %199 = vector.extract_strided_slice %150 {offsets = [8, 0], sizes = [248, 128], strides = [1, 1]} : vector<256x128xf32> to vector<248x128xf32>
    %200 = vector.extract_strided_slice %150 {offsets = [0, 0], sizes = [8, 128], strides = [1, 1]} : vector<256x128xf32> to vector<8x128xf32>
    %201 = tpu.concatenate %199, %200 in 0 : vector<248x128xf32>, vector<8x128xf32> -> vector<256x128xf32>
    %202 = vector.broadcast %198 : vector<1x128xf32> to vector<256x128xf32>
    %203 = arith.mulf %201, %202 : vector<256x128xf32>
    %204 = arith.addf %197, %203 : vector<256x128xf32>
    %205 = vector.broadcast %138 : vector<256x1xf32> to vector<256x128xf32>
    %206 = arith.mulf %204, %205 : vector<256x128xf32>
    %207 = arith.addf %184, %206 : vector<256x128xf32>
    %c0_66 = arith.constant 0 : index
    %c0_67 = arith.constant 0 : index
    %208 = vector.load %arg12[%c0_66, %c0_67] : memref<1x128xf32, #tpu.memory_space<vmem>>, vector<1x128xf32>
    %209 = vector.broadcast %208 : vector<1x128xf32> to vector<256x128xf32>
    %210 = arith.addf %207, %209 : vector<256x128xf32>
    %cst_68 = arith.constant 5.000000e-01 : f32
    %211 = vector.broadcast %cst_68 : f32 to vector<256x128xf32>
    %212 = arith.mulf %211, %210 : vector<256x128xf32>
    %cst_69 = arith.constant 0.707106769 : f32
    %213 = vector.broadcast %cst_69 : f32 to vector<256x128xf32>
    %214 = arith.mulf %210, %213 : vector<256x128xf32>
    %215 = math.erf %214 : vector<256x128xf32>
    %cst_70 = arith.constant 1.000000e+00 : f32
    %216 = vector.broadcast %cst_70 : f32 to vector<256x128xf32>
    %217 = arith.addf %216, %215 : vector<256x128xf32>
    %218 = arith.mulf %212, %217 : vector<256x128xf32>
    %219 = arith.truncf %218 : vector<256x128xf32> to vector<256x128xbf16>
    %c0_71 = arith.constant 0 : index
    %c0_72 = arith.constant 0 : index
    %220 = vector.load %arg13[%c0_71, %c0_72] : memref<128x32xbf16, #tpu.memory_space<vmem>>, vector<128x32xbf16>
    %cst_73 = arith.constant dense<0.000000e+00> : vector<256x32xf32>
    %221 = tpu.matmul %219, %220, %cst_73 {dimension_numbers = #tpu.dot_dimension_numbers<[1], [0], [0], [1], [0, 0, 1, 1], [], []>} : vector<256x128xbf16>, vector<128x32xbf16>, vector<256x32xf32> -> vector<256x32xf32>
    %c0_74 = arith.constant 0 : index
    %c0_75 = arith.constant 0 : index
    %222 = vector.load %arg14[%c0_74, %c0_75] : memref<1x32xf32, #tpu.memory_space<vmem>>, vector<1x32xf32>
    %223 = vector.broadcast %222 : vector<1x32xf32> to vector<256x32xf32>
    %224 = arith.addf %221, %223 : vector<256x32xf32>
    %225 = arith.addf %108, %224 : vector<256x32xf32>
    %226 = vector.shape_cast %225 : vector<256x32xf32> to vector<4x64x32xf32>
    %c0_76 = arith.constant 0 : index
    %c0_77 = arith.constant 0 : index
    %c0_78 = arith.constant 0 : index
    %227 = vector.load %arg16[%c0_76, %c0_77, %c0_78] : memref<4x64x32xf32, #tpu.memory_space<vmem>>, vector<4x64x32xf32>
    tpu.vector_store %arg16[%c0_76, %c0_77, %c0_78], %226 {strides = array<i32>} : memref<4x64x32xf32, #tpu.memory_space<vmem>>, vector<4x64x32xf32>,
    return
  }
  func.func @transform_0(%arg0: i32) -> (i32, i32, i32) {
    %c0_i32 = arith.constant 0 : i32
    %c0_i32_0 = arith.constant 0 : i32
    %c0_i32_1 = arith.constant 0 : i32
    return %arg0, %c0_i32, %c0_i32_0 : i32, i32, i32
  }
  func.func @transform_1(%arg0: i32) -> (i32, i32) {
    %c0_i32 = arith.constant 0 : i32
    %c0_i32_0 = arith.constant 0 : i32
    %c0_i32_1 = arith.constant 0 : i32
    return %c0_i32, %c0_i32_0 : i32, i32
  }
  func.func @transform_2(%arg0: i32) -> (i32, i32) {
    %c0_i32 = arith.constant 0 : i32
    %c0_i32_0 = arith.constant 0 : i32
    %c0_i32_1 = arith.constant 0 : i32
    return %c0_i32, %c0_i32_0 : i32, i32
  }
  func.func @transform_3(%arg0: i32) -> (i32, i32) {
    %c0_i32 = arith.constant 0 : i32
    %c0_i32_0 = arith.constant 0 : i32
    %c0_i32_1 = arith.constant 0 : i32
    return %c0_i32, %c0_i32_0 : i32, i32
  }
  func.func @transform_4(%arg0: i32) -> (i32, i32) {
    %c0_i32 = arith.constant 0 : i32
    %c0_i32_0 = arith.constant 0 : i32
    %c0_i32_1 = arith.constant 0 : i32
    return %c0_i32, %c0_i32_0 : i32, i32
  }
  func.func @transform_5(%arg0: i32) -> (i32, i32) {
    %c0_i32 = arith.constant 0 : i32
    %c0_i32_0 = arith.constant 0 : i32
    %c0_i32_1 = arith.constant 0 : i32
    return %c0_i32, %c0_i32_0 : i32, i32
  }
  func.func @transform_6(%arg0: i32) -> (i32, i32) {
    %c0_i32 = arith.constant 0 : i32
    %c0_i32_0 = arith.constant 0 : i32
    %c0_i32_1 = arith.constant 0 : i32
    return %c0_i32, %c0_i32_0 : i32, i32
  }
  func.func @transform_7(%arg0: i32) -> (i32, i32) {
    %c0_i32 = arith.constant 0 : i32
    %c0_i32_0 = arith.constant 0 : i32
    %c0_i32_1 = arith.constant 0 : i32
    return %c0_i32, %c0_i32_0 : i32, i32
  }
  func.func @transform_8(%arg0: i32) -> (i32, i32) {
    %c0_i32 = arith.constant 0 : i32
    %c0_i32_0 = arith.constant 0 : i32
    %c0_i32_1 = arith.constant 0 : i32
    return %c0_i32, %c0_i32_0 : i32, i32
  }
  func.func @transform_9(%arg0: i32) -> (i32, i32) {
    %c0_i32 = arith.constant 0 : i32
    %c0_i32_0 = arith.constant 0 : i32
    %c0_i32_1 = arith.constant 0 : i32
    return %c0_i32, %c0_i32_0 : i32, i32
  }
  func.func @transform_10(%arg0: i32) -> (i32, i32) {
    %c0_i32 = arith.constant 0 : i32
    %c0_i32_0 = arith.constant 0 : i32
    %c0_i32_1 = arith.constant 0 : i32
    return %c0_i32, %c0_i32_0 : i32, i32
  }
  func.func @transform_11(%arg0: i32) -> (i32, i32) {
    %c0_i32 = arith.constant 0 : i32
    %c0_i32_0 = arith.constant 0 : i32
    %c0_i32_1 = arith.constant 0 : i32
    return %c0_i32, %c0_i32_0 : i32, i32
  }
  func.func @transform_12(%arg0: i32) -> (i32, i32) {
    %c0_i32 = arith.constant 0 : i32
    %c0_i32_0 = arith.constant 0 : i32
    %c0_i32_1 = arith.constant 0 : i32
    return %c0_i32, %c0_i32_0 : i32, i32
  }
  func.func @transform_13(%arg0: i32) -> (i32, i32) {
    %c0_i32 = arith.constant 0 : i32
    %c0_i32_0 = arith.constant 0 : i32
    %c0_i32_1 = arith.constant 0 : i32
    return %c0_i32, %c0_i32_0 : i32, i32
  }
  func.func @transform_14(%arg0: i32) -> (i32, i32) {
    %c0_i32 = arith.constant 0 : i32
    %c0_i32_0 = arith.constant 0 : i32
    %c0_i32_1 = arith.constant 0 : i32
    return %c0_i32, %c0_i32_0 : i32, i32
  }
  func.func @transform_15(%arg0: i32) -> (i32, i32, i32) {
    %c0_i32 = arith.constant 0 : i32
    %c0_i32_0 = arith.constant 0 : i32
    %c0_i32_1 = arith.constant 0 : i32
    return %arg0, %c0_i32, %c0_i32_0 : i32, i32, i32
  }
}

</mosaic_0001>

<bundles_post_ra>
// kernel: tpu_custom_call.1
= control target key start
LH: loop header
LB: loop body
LE: loop exit
PB: predicated region body
PF: predicated region fallthrough
CT: control target
= control target key end

     0   :  { %s11951_s18 = smov 0   ;;  %s18232_s0 = inlined_call_operand.vmem [shape: f32[8,64,32], index: 0, kind: input, shape index: {}]   ;;  %s18233_s1 = inlined_call_operand.vmem [shape: f32[1,32], index: 1, kind: input, shape index: {}]   ;;  %s18234_s2 = inlined_call_operand.vmem [shape: f32[1,32], index: 2, kind: input, shape index: {}]   ;;  %s18235_s3 = inlined_call_operand.vmem [shape: bf16[32,96], index: 3, kind: input, shape index: {}]   ;;  %s18236_s4 = inlined_call_operand.vmem [shape: bf16[32,32], index: 4, kind: input, shape index: {}]   ;;  %s18237_s5 = inlined_call_operand.vmem [shape: f32[1,32], index: 5, kind: input, shape index: {}]   ;;  %s18238_s6 = inlined_call_operand.vmem [shape: f32[1,32], index: 6, kind: input, shape index: {}]   ;;  %s18239_s7 = inlined_call_operand.vmem [shape: f32[1,32], index: 7, kind: input, shape index: {}]   ;;  %s18240_s8 = inlined_call_operand.vmem [shape: bf16[32,128], index: 8, kind: input, shape index: {}]   ;;  %s18241_s9 = inlined_call_operand.vmem [shape: f32[1,128], index: 9, kind: input, shape index: {}]   ;;  %s18242_s10 = inlined_call_operand.vmem [shape: f32[9,128], index: 10, kind: input, shape index: {}]   ;;  %s18243_s11 = inlined_call_operand.vmem [shape: f32[1,128], index: 11, kind: input, shape index: {}]   ;;  %s18244_s12 = inlined_call_operand.vmem [shape: bf16[128,32], index: 12, kind: input, shape index: {}]   ;;  %s18245_s13 = inlined_call_operand.vmem [shape: f32[1,32], index: 13, kind: input, shape index: {}]   ;;  %s18246_s14 = inlined_call_operand.vmem [shape: f32[256,4], index: 14, kind: input, shape index: {}]   ;;  %s18247_s15 = inlined_call_operand.vmem [shape: f32[8,64,32], index: 15, kind: output, shape index: {}]  }
   0x1 LB: > { %s9445_s19 = sadd.s32 4294967295, %s11851_s18   ;;  %p9449_p0 = scmp.ge.s32.totalorder %s11851_s18, 1  ;;  %s11851_s18 = sphi %s11951_s18, %s25_s18  }
   0x2   : > { %p439_p1 = scmp.lt.s32.totalorder %s11851_s18, 3 }
   0x4   : > { %p440_p2 = pnand %p9449_p0, %p439_p1 }
   0x6   : > { %443 = sbr.rel (%p440_p2) target bundleno = 4686 (0x124e), region = 80 }
   0xb   : > { %s9450_s20 = sshll.u32 %s9445_s19, 2  ;;  %vm538_vm0 = vcmask 261120   ;;  %vm1301_vm1 = vcmask 64512   ;;  %s11853_s19 = smov 96   ;;  %vm1694_vm2 = vcmask 523264   ;;  %vm6267_vm3 = vcmask 130048  }
   0xc   : > { %p490_p3 = scmp.lt.s32.totalorder %s9450_s20, 7  ;;  %s11854_s22 = smov 64   ;;  %vm6300_vm4 = vcmask 195584   ;;  %vm7421_vm5 = vcmask 1040384   ;;  %vm7709_vm6 = vcmask 1046528  }
   0xd   : > { %s11855_s23 = smov 88   ;;  %s11856_s25 = smov 120  }
   0xe   : > { %s19150_s20 = smov (!%p490_p3, %s9450_s20), 7  ;;  %s11857_s26 = smov 56  }
   0xf   : > { %s9665_s21 = sshll.u32 %s19150_s20, 6  ;;  %s11858_s27 = smov 80  }
  0x10   : > { %s11967_s24 = scalar_lea.vmem %s18232_s0, %s9665_s21  ;;  %s11859_s28 = smov 112  }
  0x11   : > { %v11970_v0 = vld [vmem:[%s11967_s24] sm:$0xff]  ;;  %v11973_v1 = vld [vmem:[%s11967_s24 + $0x10] sm:$0xff]  ;;  %v11976_v2 = vld [vmem:[%s11967_s24 + $0x8] sm:$0xff]  ;;  %s11860_s29 = smov 48   ;;  %s11861_s30 = smov 72  }
  0x12   : > { %v539_v3 = vsel %vm538_vm0, %v11970_v0, 0.0  ;;  %v545_v4 = vsel %vm538_vm0, %v11973_v1, 0.0  ;;  %v11983_v5 = vld [vmem:[%s11967_s24 + $0x18] sm:$0xff]  ;;  %v542_v6 = vsel %vm538_vm0, %v11976_v2, 0.0  ;;  %v11990_v8 = vld [vmem:[%s11967_s24 + $0x20] sm:$0xff]  ;;  %v11993_v9 = vld [vmem:[%s11967_s24 + $0x28] sm:$0xff] }
  0x13   : > { %540 = vadd.xlane.f32.xlu0 %v539_v3  ;;  %546 = vadd.xlane.f32.xlu1 %v545_v4  ;;  %v548_v7 = vsel %vm538_vm0, %v11983_v5, 0.0  ;;  %v551_v10 = vsel %vm538_vm0, %v11990_v8, 0.0  ;;  %v554_v11 = vsel %vm538_vm0, %v11993_v9, 0.0  ;;  %v12000_v12 = vld [vmem:[%s11967_s24 + $0x30] sm:$0xff]  ;;  %v12003_v13 = vld [vmem:[%s11967_s24 + $0x38] sm:$0xff]  ;;  %v12008_v15 = vld [vmem:[%s11967_s24 + $0x40] sm:$0xff] }
  0x14   : > { %v557_v14 = vsel %vm538_vm0, %v12000_v12, 0.0  ;;  %v560_v16 = vsel %vm538_vm0, %v12003_v13, 0.0  ;;  %v12013_v17 = vld [vmem:[%s11967_s24 + $0x48] sm:$0xff]  ;;  %v563_v18 = vsel %vm538_vm0, %v12008_v15, 0.0  ;;  %v12020_v20 = vld [vmem:[%s11967_s24 + $0x50] sm:$0xff]  ;;  %v12023_v21 = vld [vmem:[%s11967_s24 + $0x58] sm:$0xff] }
  0x15   : > { %v566_v19 = vsel %vm538_vm0, %v12013_v17, 0.0  ;;  %v569_v22 = vsel %vm538_vm0, %v12020_v20, 0.0  ;;  %v572_v23 = vsel %vm538_vm0, %v12023_v21, 0.0  ;;  %v12030_v24 = vld [vmem:[%s11967_s24 + $0x60] sm:$0xff]  ;;  %v12033_v25 = vld [vmem:[%s11967_s24 + $0x68] sm:$0xff]  ;;  %v12040_v28 = vld [vmem:[%s11967_s24 + $0x70] sm:$0xff] }
  0x16   : > { %v575_v26 = vsel %vm538_vm0, %v12030_v24, 0.0  ;;  %v578_v27 = vsel %vm538_vm0, %v12033_v25, 0.0  ;;  %v12043_v29 = vld [vmem:[%s11967_s24 + $0x78] sm:$0xff]  ;;  %v581_v30 = vsel %vm538_vm0, %v12040_v28, 0.0  ;;  %v12050_v32 = vld [vmem:[%s11967_s24 + $0x80] sm:$0xff]  ;;  %v12053_v33 = vld [vmem:[%s11967_s24 + $0x88] sm:$0xff] }
  0x17   : > { %543 = vadd.xlane.f32.xlu0 %v542_v6  ;;  %549 = vadd.xlane.f32.xlu1 %v548_v7  ;;  %v584_v31 = vsel %vm538_vm0, %v12043_v29, 0.0  ;;  %v587_v34 = vsel %vm538_vm0, %v12050_v32, 0.0  ;;  %v590_v35 = vsel %vm538_vm0, %v12053_v33, 0.0  ;;  %v12060_v36 = vld [vmem:[%s11967_s24 + $0x90] sm:$0xff]  ;;  %v12063_v37 = vld [vmem:[%s11967_s24 + $0x98] sm:$0xff]  ;;  %v12070_v40 = vld [vmem:[%s11967_s24 + $0xa0] sm:$0xff] }
  0x18   : > { %v593_v38 = vsel %vm538_vm0, %v12060_v36, 0.0  ;;  %v596_v39 = vsel %vm538_vm0, %v12063_v37, 0.0  ;;  %v12073_v41 = vld [vmem:[%s11967_s24 + $0xa8] sm:$0xff]  ;;  %v599_v42 = vsel %vm538_vm0, %v12070_v40, 0.0  ;;  %v12080_v44 = vld [vmem:[%s11967_s24 + $0xb0] sm:$0xff]  ;;  %v12083_v45 = vld [vmem:[%s11967_s24 + $0xb8] sm:$0xff] }
  0x19   : > { %v602_v43 = vsel %vm538_vm0, %v12073_v41, 0.0  ;;  %v605_v46 = vsel %vm538_vm0, %v12080_v44, 0.0  ;;  %v608_v47 = vsel %vm538_vm0, %v12083_v45, 0.0  ;;  %v12090_v48 = vld [vmem:[%s11967_s24 + $0xc0] sm:$0xff]  ;;  %v12093_v49 = vld [vmem:[%s11967_s24 + $0xc8] sm:$0xff]  ;;  %v12100_v52 = vld [vmem:[%s11967_s24 + $0xd0] sm:$0xff] }
  0x1a   : > { %v611_v50 = vsel %vm538_vm0, %v12090_v48, 0.0  ;;  %v614_v51 = vsel %vm538_vm0, %v12093_v49, 0.0  ;;  %v12103_v53 = vld [vmem:[%s11967_s24 + $0xd8] sm:$0xff]  ;;  %v617_v54 = vsel %vm538_vm0, %v12100_v52, 0.0  ;;  %v12110_v56 = vld [vmem:[%s11967_s24 + $0xe0] sm:$0xff]  ;;  %v12113_v57 = vld [vmem:[%s11967_s24 + $0xe8] sm:$0xff] }
  0x1b   : > { %552 = vadd.xlane.f32.xlu0 %v551_v10  ;;  %555 = vadd.xlane.f32.xlu1 %v554_v11  ;;  %v620_v55 = vsel %vm538_vm0, %v12103_v53, 0.0  ;;  %v623_v58 = vsel %vm538_vm0, %v12110_v56, 0.0  ;;  %v626_v59 = vsel %vm538_vm0, %v12113_v57, 0.0  ;;  %v12120_v60 = vld [vmem:[%s11967_s24 + $0xf0] sm:$0xff]  ;;  %v12123_v61 = vld [vmem:[%s11967_s24 + $0xf8] sm:$0xff]  ;;  %s11862_s16 = smov 104  }
  0x1c   : > { %v629_v62 = vsel %vm538_vm0, %v12120_v60, 0.0  ;;  %v632_v63 = vsel %vm538_vm0, %v12123_v61, 0.0  ;;  %s11863_s17 = smov 40  }
  0x1f   : > { %558 = vadd.xlane.f32.xlu0 %v557_v14  ;;  %561 = vadd.xlane.f32.xlu1 %v560_v16 }
  0x23   : > { %564 = vadd.xlane.f32.xlu0 %v563_v18  ;;  %567 = vadd.xlane.f32.xlu1 %v566_v19 }
  0x27   : > { %570 = vadd.xlane.f32.xlu0 %v569_v22  ;;  %573 = vadd.xlane.f32.xlu1 %v572_v23 }
  0x2b   : > { %576 = vadd.xlane.f32.xlu0 %v575_v26  ;;  %579 = vadd.xlane.f32.xlu1 %v578_v27 }
  0x2f   : > { %582 = vadd.xlane.f32.xlu0 %v581_v30  ;;  %585 = vadd.xlane.f32.xlu1 %v584_v31 }
  0x33   : > { %588 = vadd.xlane.f32.xlu0 %v587_v34  ;;  %591 = vadd.xlane.f32.xlu1 %v590_v35 }
  0x37   : > { %594 = vadd.xlane.f32.xlu0 %v593_v38  ;;  %597 = vadd.xlane.f32.xlu1 %v596_v39 }
  0x3b   : > { %600 = vadd.xlane.f32.xlu0 %v599_v42  ;;  %603 = vadd.xlane.f32.xlu1 %v602_v43 }
  0x3f   : > { %606 = vadd.xlane.f32.xlu0 %v605_v46  ;;  %609 = vadd.xlane.f32.xlu1 %v608_v47 }
  0x43   : > { %612 = vadd.xlane.f32.xlu0 %v611_v50  ;;  %615 = vadd.xlane.f32.xlu1 %v614_v51 }
  0x47   : > { %618 = vadd.xlane.f32.xlu0 %v617_v54  ;;  %621 = vadd.xlane.f32.xlu1 %v620_v55 }
  0x4b   : > { %624 = vadd.xlane.f32.xlu0 %v623_v58  ;;  %627 = vadd.xlane.f32.xlu1 %v626_v59 }
  0x4f   : > { %630 = vadd.xlane.f32.xlu0 %v629_v62  ;;  %633 = vadd.xlane.f32.xlu1 %v632_v63 }
  0x9c   : > { %v541_v3 = vpop.xlane.xlu0 %540  ;;  %v547_v4 = vpop.xlane.xlu1 %546 }
  0x9d   : > { %v636_v6 = vmul.f32 0.03125, %v541_v3  ;;  %v638_v7 = vmul.f32 0.03125, %v547_v4 }
  0x9f   : > { %v12130_v10 = vsub.f32 %v11970_v0, %v636_v6  ;;  %v12133_v11 = vsub.f32 %v11973_v1, %v638_v7 }
  0xa0   : > { %v544_v14 = vpop.xlane.xlu0 %543  ;;  %v550_v16 = vpop.xlane.xlu1 %549 }
  0xa1   : > { %v637_v18 = vmul.f32 0.03125, %v544_v14  ;;  %v639_v19 = vmul.f32 0.03125, %v550_v16  ;;  %v700_v22 = vmul.f32 %v12130_v10, %v12130_v10  ;;  %v702_v23 = vmul.f32 %v12133_v11, %v12133_v11 }
  0xa3   : > { %v12140_v26 = vsub.f32 %v11976_v2, %v637_v18  ;;  %v12143_v27 = vsub.f32 %v11983_v5, %v639_v19  ;;  %v732_v0 = vsel %vm538_vm0, %v700_v22, 0.0  ;;  %v738_v31 = vsel %vm538_vm0, %v702_v23, 0.0 }
  0xa4   : > { %733 = vadd.xlane.f32.xlu0 %v732_v0  ;;  %v553_v1 = vpop.xlane.xlu0 %552  ;;  %v556_v30 = vpop.xlane.xlu1 %555 }
  0xa5   : > { %v640_v34 = vmul.f32 0.03125, %v553_v1  ;;  %v641_v35 = vmul.f32 0.03125, %v556_v30  ;;  %v701_v38 = vmul.f32 %v12140_v26, %v12140_v26  ;;  %v703_v39 = vmul.f32 %v12143_v27, %v12143_v27 }
  0xa7   : > { %v12152_v2 = vsub.f32 %v11990_v8, %v640_v34  ;;  %v12155_v5 = vsub.f32 %v11993_v9, %v641_v35  ;;  %v735_v42 = vsel %vm538_vm0, %v701_v38, 0.0  ;;  %v741_v47 = vsel %vm538_vm0, %v703_v39, 0.0 }
  0xa8   : > { %739 = vadd.xlane.f32.xlu0 %v738_v31  ;;  %736 = vadd.xlane.f32.xlu1 %v735_v42  ;;  %v559_v43 = vpop.xlane.xlu0 %558  ;;  %v562_v46 = vpop.xlane.xlu1 %561 }
  0xa9   : > { %v642_v50 = vmul.f32 0.03125, %v559_v43  ;;  %v643_v51 = vmul.f32 0.03125, %v562_v46  ;;  %v704_v54 = vmul.f32 %v12152_v2, %v12152_v2  ;;  %v705_v8 = vmul.f32 %v12155_v5, %v12155_v5 }
  0xab   : > { %v12164_v55 = vsub.f32 %v12000_v12, %v642_v50  ;;  %v12167_v9 = vsub.f32 %v12003_v13, %v643_v51  ;;  %v744_v58 = vsel %vm538_vm0, %v704_v54, 0.0  ;;  %v747_v63 = vsel %vm538_vm0, %v705_v8, 0.0 }
  0xac   : > { %742 = vadd.xlane.f32.xlu1 %v741_v47  ;;  %745 = vadd.xlane.f32.xlu0 %v744_v58  ;;  %v565_v59 = vpop.xlane.xlu0 %564  ;;  %v568_v62 = vpop.xlane.xlu1 %567 }
  0xad   : > { %v644_v3 = vmul.f32 0.03125, %v565_v59  ;;  %v645_v4 = vmul.f32 0.03125, %v568_v62  ;;  %v706_v6 = vmul.f32 %v12164_v55, %v12164_v55  ;;  %v707_v12 = vmul.f32 %v12167_v9, %v12167_v9 }
  0xaf   : > { %v12176_v7 = vsub.f32 %v12008_v15, %v644_v3  ;;  %v12179_v13 = vsub.f32 %v12013_v17, %v645_v4  ;;  %v750_v14 = vsel %vm538_vm0, %v706_v6, 0.0  ;;  %v753_v19 = vsel %vm538_vm0, %v707_v12, 0.0 }
  0xb0   : > { %748 = vadd.xlane.f32.xlu1 %v747_v63  ;;  %751 = vadd.xlane.f32.xlu0 %v750_v14  ;;  %v571_v16 = vpop.xlane.xlu0 %570  ;;  %v574_v18 = vpop.xlane.xlu1 %573 }
  0xb1   : > { %v646_v22 = vmul.f32 0.03125, %v571_v16  ;;  %v647_v23 = vmul.f32 0.03125, %v574_v18  ;;  %v708_v0 = vmul.f32 %v12176_v7, %v12176_v7  ;;  %v709_v15 = vmul.f32 %v12179_v13, %v12179_v13 }
  0xb3   : > { %v12188_v1 = vsub.f32 %v12020_v20, %v646_v22  ;;  %v12191_v17 = vsub.f32 %v12023_v21, %v647_v23  ;;  %v756_v30 = vsel %vm538_vm0, %v708_v0, 0.0  ;;  %v759_v35 = vsel %vm538_vm0, %v709_v15, 0.0 }
  0xb4   : > { %754 = vadd.xlane.f32.xlu1 %v753_v19  ;;  %757 = vadd.xlane.f32.xlu0 %v756_v30  ;;  %v577_v31 = vpop.xlane.xlu0 %576  ;;  %v580_v34 = vpop.xlane.xlu1 %579 }
  0xb5   : > { %v648_v38 = vmul.f32 0.03125, %v577_v31  ;;  %v649_v39 = vmul.f32 0.03125, %v580_v34  ;;  %v710_v42 = vmul.f32 %v12188_v1, %v12188_v1  ;;  %v711_v20 = vmul.f32 %v12191_v17, %v12191_v17 }
  0xb7   : > { %v12200_v43 = vsub.f32 %v12030_v24, %v648_v38  ;;  %v12203_v21 = vsub.f32 %v12033_v25, %v649_v39  ;;  %v762_v46 = vsel %vm538_vm0, %v710_v42, 0.0  ;;  %v765_v51 = vsel %vm538_vm0, %v711_v20, 0.0 }
  0xb8   : > { %760 = vadd.xlane.f32.xlu1 %v759_v35  ;;  %763 = vadd.xlane.f32.xlu0 %v762_v46  ;;  %v583_v47 = vpop.xlane.xlu0 %582  ;;  %v586_v50 = vpop.xlane.xlu1 %585 }
  0xb9   : > { %v650_v54 = vmul.f32 0.03125, %v583_v47  ;;  %v651_v8 = vmul.f32 0.03125, %v586_v50  ;;  %v712_v58 = vmul.f32 %v12200_v43, %v12200_v43  ;;  %v713_v24 = vmul.f32 %v12203_v21, %v12203_v21 }
  0xbb   : > { %v12212_v59 = vsub.f32 %v12040_v28, %v650_v54  ;;  %v12215_v25 = vsub.f32 %v12043_v29, %v651_v8  ;;  %v768_v62 = vsel %vm538_vm0, %v712_v58, 0.0  ;;  %v771_v4 = vsel %vm538_vm0, %v713_v24, 0.0 }
  0xbc   : > { %766 = vadd.xlane.f32.xlu1 %v765_v51  ;;  %769 = vadd.xlane.f32.xlu0 %v768_v62  ;;  %v589_v63 = vpop.xlane.xlu0 %588  ;;  %v592_v3 = vpop.xlane.xlu1 %591  ;;  %v11065_v51 = vld [vmem:[%s18235_s3 + $0x8] sm:$0xff]  }
  0xbd   : > { %v652_v6 = vmul.f32 0.03125, %v589_v63  ;;  %v653_v12 = vmul.f32 0.03125, %v592_v3  ;;  %v714_v14 = vmul.f32 %v12212_v59, %v12212_v59  ;;  %v715_v28 = vmul.f32 %v12215_v25, %v12215_v25  ;;  %10001 = vmatprep.subr.bf16.mxu0 %v11065_v51 }
  0xbe   : > { %10002 = vmatpush3.bf16.msra.mxu0 %v11065_v51 }
  0xbf   : > { %v12224_v16 = vsub.f32 %v12050_v32, %v652_v6  ;;  %v12227_v29 = vsub.f32 %v12053_v33, %v653_v12  ;;  %v774_v18 = vsel %vm538_vm0, %v714_v14, 0.0  ;;  %v777_v23 = vsel %vm538_vm0, %v715_v28, 0.0  ;;  %v11066_v6 = vld [vmem:[%s18235_s3] sm:$0xff]  }
  0xc0   : > { %772 = vadd.xlane.f32.xlu1 %v771_v4  ;;  %775 = vadd.xlane.f32.xlu0 %v774_v18  ;;  %v595_v19 = vpop.xlane.xlu0 %594  ;;  %v598_v22 = vpop.xlane.xlu1 %597 }
  0xc1   : > { %v654_v0 = vmul.f32 0.03125, %v595_v19  ;;  %v655_v15 = vmul.f32 0.03125, %v598_v22  ;;  %v716_v30 = vmul.f32 %v12224_v16, %v12224_v16  ;;  %v717_v32 = vmul.f32 %v12227_v29, %v12227_v29  ;;  %10003 = vmatprep.subr.bf16.mxu0 %v11066_v6 }
  0xc2   : > { %10004 = vmatpush3.bf16.msra.mxu0 %v11066_v6 }
  0xc3   : > { %v12236_v31 = vsub.f32 %v12060_v36, %v654_v0  ;;  %v12239_v33 = vsub.f32 %v12063_v37, %v655_v15  ;;  %v780_v34 = vsel %vm538_vm0, %v716_v30, 0.0  ;;  %v783_v39 = vsel %vm538_vm0, %v717_v32, 0.0 }
  0xc4   : > { %778 = vadd.xlane.f32.xlu1 %v777_v23  ;;  %781 = vadd.xlane.f32.xlu0 %v780_v34  ;;  %v601_v35 = vpop.xlane.xlu0 %600  ;;  %v604_v38 = vpop.xlane.xlu1 %603 }
  0xc5   : > { %v656_v42 = vmul.f32 0.03125, %v601_v35  ;;  %v657_v20 = vmul.f32 0.03125, %v604_v38  ;;  %v718_v46 = vmul.f32 %v12236_v31, %v12236_v31  ;;  %v719_v36 = vmul.f32 %v12239_v33, %v12239_v33 }
  0xc7   : > { %v12248_v47 = vsub.f32 %v12070_v40, %v656_v42  ;;  %v12251_v37 = vsub.f32 %v12073_v41, %v657_v20  ;;  %v786_v50 = vsel %vm538_vm0, %v718_v46, 0.0  ;;  %v789_v58 = vsel %vm538_vm0, %v719_v36, 0.0 }
  0xc8   : > { %784 = vadd.xlane.f32.xlu1 %v783_v39  ;;  %787 = vadd.xlane.f32.xlu0 %v786_v50  ;;  %v607_v54 = vpop.xlane.xlu0 %606  ;;  %v610_v8 = vpop.xlane.xlu1 %609 }
  0xc9   : > { %v658_v24 = vmul.f32 0.03125, %v607_v54  ;;  %v659_v62 = vmul.f32 0.03125, %v610_v8  ;;  %v720_v40 = vmul.f32 %v12248_v47, %v12248_v47  ;;  %v721_v41 = vmul.f32 %v12251_v37, %v12251_v37 }
  0xcb   : > { %v12263_v63 = vsub.f32 %v12080_v44, %v658_v24  ;;  %v12266_v3 = vsub.f32 %v12083_v45, %v659_v62  ;;  %v792_v4 = vsel %vm538_vm0, %v720_v40, 0.0  ;;  %v795_v28 = vsel %vm538_vm0, %v721_v41, 0.0 }
  0xcc   : > { %790 = vadd.xlane.f32.xlu1 %v789_v58  ;;  %793 = vadd.xlane.f32.xlu0 %v792_v4  ;;  %v613_v12 = vpop.xlane.xlu0 %612  ;;  %v616_v14 = vpop.xlane.xlu1 %615 }
  0xcd   : > { %v660_v18 = vmul.f32 0.03125, %v613_v12  ;;  %v661_v19 = vmul.f32 0.03125, %v616_v14  ;;  %v722_v44 = vmul.f32 %v12263_v63, %v12263_v63  ;;  %v723_v45 = vmul.f32 %v12266_v3, %v12266_v3 }
  0xcf   : > { %v12278_v22 = vsub.f32 %v12090_v48, %v660_v18  ;;  %v12281_v23 = vsub.f32 %v12093_v49, %v661_v19  ;;  %v798_v0 = vsel %vm538_vm0, %v722_v44, 0.0  ;;  %v801_v32 = vsel %vm538_vm0, %v723_v45, 0.0 }
  0xd0   : > { %796 = vadd.xlane.f32.xlu1 %v795_v28  ;;  %799 = vadd.xlane.f32.xlu0 %v798_v0  ;;  %v619_v15 = vpop.xlane.xlu0 %618  ;;  %v622_v30 = vpop.xlane.xlu1 %621 }
  0xd1   : > { %v662_v34 = vmul.f32 0.03125, %v619_v15  ;;  %v663_v35 = vmul.f32 0.03125, %v622_v30  ;;  %v724_v38 = vmul.f32 %v12278_v22, %v12278_v22  ;;  %v725_v48 = vmul.f32 %v12281_v23, %v12281_v23 }
  0xd3   : > { %v12290_v39 = vsub.f32 %v12100_v52, %v662_v34  ;;  %v12293_v49 = vsub.f32 %v12103_v53, %v663_v35  ;;  %v804_v42 = vsel %vm538_vm0, %v724_v38, 0.0  ;;  %v807_v36 = vsel %vm538_vm0, %v725_v48, 0.0 }
  0xd4   : > { %802 = vadd.xlane.f32.xlu1 %v801_v32  ;;  %805 = vadd.xlane.f32.xlu0 %v804_v42  ;;  %v625_v20 = vpop.xlane.xlu0 %624  ;;  %v628_v46 = vpop.xlane.xlu1 %627 }
  0xd5   : > { %v664_v50 = vmul.f32 0.03125, %v625_v20  ;;  %v665_v51 = vmul.f32 0.03125, %v628_v46  ;;  %v726_v54 = vmul.f32 %v12290_v39, %v12290_v39  ;;  %v727_v52 = vmul.f32 %v12293_v49, %v12293_v49 }
  0xd7   : > { %v12302_v8 = vsub.f32 %v12110_v56, %v664_v50  ;;  %v12305_v53 = vsub.f32 %v12113_v57, %v665_v51  ;;  %v810_v58 = vsel %vm538_vm0, %v726_v54, 0.0  ;;  %v813_v40 = vsel %vm538_vm0, %v727_v52, 0.0 }
  0xd8   : > { %808 = vadd.xlane.f32.xlu1 %v807_v36  ;;  %811 = vadd.xlane.f32.xlu0 %v810_v58  ;;  %v631_v24 = vpop.xlane.xlu0 %630  ;;  %v634_v62 = vpop.xlane.xlu1 %633 }
  0xd9   : > { %v666_v41 = vmul.f32 0.03125, %v631_v24  ;;  %v667_v4 = vmul.f32 0.03125, %v634_v62  ;;  %v728_v6 = vmul.f32 %v12302_v8, %v12302_v8  ;;  %v729_v56 = vmul.f32 %v12305_v53, %v12305_v53 }
  0xdb   : > { %v12314_v12 = vsub.f32 %v12120_v60, %v666_v41  ;;  %v12317_v57 = vsub.f32 %v12123_v61, %v667_v4  ;;  %v816_v14 = vsel %vm538_vm0, %v728_v6, 0.0  ;;  %v819_v28 = vsel %vm538_vm0, %v729_v56, 0.0 }
  0xdc   : > { %814 = vadd.xlane.f32.xlu1 %v813_v40  ;;  %817 = vadd.xlane.f32.xlu0 %v816_v14 }
  0xdd   : > { %v730_v18 = vmul.f32 %v12314_v12, %v12314_v12  ;;  %v731_v19 = vmul.f32 %v12317_v57, %v12317_v57 }
  0xdf   : > { %v822_v44 = vsel %vm538_vm0, %v730_v18, 0.0  ;;  %v825_v60 = vsel %vm538_vm0, %v731_v19, 0.0  ;;  %v12330_v18 = vld [vmem:[%s18233_s1] ss:$0 sm:$0xff] }
  0xe0   : > { %820 = vadd.xlane.f32.xlu1 %v819_v28  ;;  %823 = vadd.xlane.f32.xlu0 %v822_v44 }
  0xe4   : > { %826 = vadd.xlane.f32.xlu1 %v825_v60 }
 0x12d   : > { %v734_v61 = vpop.xlane.xlu0 %733 }
 0x12e   : > { %v828_v45 = vmul.f32 0.03125, %v734_v61 }
 0x130   : > { %v860_v0 = vadd.f32 1e-05, %v828_v45 }
 0x131   : > { %v737_v15 = vpop.xlane.xlu1 %736  ;;  %v740_v30 = vpop.xlane.xlu0 %739 }
 0x132   : > { %11079 = vrsqrt.f32 %v860_v0  ;;  %v829_v32 = vmul.f32 0.03125, %v737_v15  ;;  %v830_v34 = vmul.f32 0.03125, %v740_v30 }
 0x134   : > { %v861_v35 = vadd.f32 1e-05, %v829_v32  ;;  %v862_v38 = vadd.f32 1e-05, %v830_v34 }
 0x135   : > { %v743_v48 = vpop.xlane.xlu1 %742  ;;  %v746_v42 = vpop.xlane.xlu0 %745 }
 0x136   : > { %11081 = vrsqrt.f32 %v861_v35  ;;  %v831_v20 = vmul.f32 0.03125, %v743_v48  ;;  %v832_v46 = vmul.f32 0.03125, %v746_v42  ;;  %v12337_v35 = vld [vmem:[%s18234_s2] ss:$0 sm:$0xff] }
 0x137   : > { %11083 = vrsqrt.f32 %v862_v38 }
 0x138   : > { %v863_v36 = vadd.f32 1e-05, %v831_v20  ;;  %v864_v50 = vadd.f32 1e-05, %v832_v46 }
 0x139   : > { %v749_v51 = vpop.xlane.xlu1 %748  ;;  %v752_v54 = vpop.xlane.xlu0 %751 }
 0x13a   : > { %11085 = vrsqrt.f32 %v863_v36  ;;  %v833_v52 = vmul.f32 0.03125, %v749_v51  ;;  %v834_v58 = vmul.f32 0.03125, %v752_v54 }
 0x13b   : > { %11087 = vrsqrt.f32 %v864_v50 }
 0x13c   : > { %v865_v24 = vadd.f32 1e-05, %v833_v52  ;;  %v866_v62 = vadd.f32 1e-05, %v834_v58 }
 0x13d   : > { %v755_v40 = vpop.xlane.xlu1 %754  ;;  %v758_v41 = vpop.xlane.xlu0 %757 }
 0x13e   : > { %11089 = vrsqrt.f32 %v865_v24  ;;  %v835_v4 = vmul.f32 0.03125, %v755_v40  ;;  %v836_v6 = vmul.f32 0.03125, %v758_v41 }
 0x13f   : > { %v11080_v56 = vpop.eup %11079  ;;  %11091 = vrsqrt.f32 %v866_v62 }
 0x140   : > { %v867_v14 = vadd.f32 1e-05, %v835_v4  ;;  %v868_v28 = vadd.f32 1e-05, %v836_v6  ;;  %v924_v19 = vmul.f32 %v11080_v56, %v12130_v10 }
 0x141   : > { %v761_v44 = vpop.xlane.xlu1 %760  ;;  %v764_v60 = vpop.xlane.xlu0 %763 }
 0x142   : > { %11093 = vrsqrt.f32 %v867_v14  ;;  %v837_v61 = vmul.f32 0.03125, %v761_v44  ;;  %v838_v45 = vmul.f32 0.03125, %v764_v60  ;;  %v962_v15 = vmul.f32 %v12330_v18, %v924_v19 }
 0x143   : > { %v11082_v0 = vpop.eup %11081  ;;  %11095 = vrsqrt.f32 %v868_v28 }
 0x144   : > { %v11084_v30 = vpop.eup %11083  ;;  %v869_v32 = vadd.f32 1e-05, %v837_v61  ;;  %v870_v34 = vadd.f32 1e-05, %v838_v45  ;;  %v925_v38 = vmul.f32 %v11082_v0, %v12140_v26  ;;  %v1000_v51 = vadd.f32 %v12337_v35, %v962_v15 }
 0x145   : > { %v767_v10 = vpop.xlane.xlu1 %766  ;;  %v770_v48 = vpop.xlane.xlu0 %769  ;;  %v926_v42 = vmul.f32 %v11084_v30, %v12133_v11 }
 0x146   : > { %11097 = vrsqrt.f32 %v869_v32  ;;  %v839_v20 = vmul.f32 0.03125, %v767_v10  ;;  %v840_v46 = vmul.f32 0.03125, %v770_v48  ;;  %v963_v36 = vmul.f32 %v12330_v18, %v925_v38 }
 0x147   : > { %v11086_v50 = vpop.eup %11085  ;;  %11099 = vrsqrt.f32 %v870_v34  ;;  %v964_v11 = vmul.f32 %v12330_v18, %v926_v42 }
 0x148   : > { %v11088_v54 = vpop.eup %11087  ;;  %v871_v52 = vadd.f32 1e-05, %v839_v20  ;;  %v872_v58 = vadd.f32 1e-05, %v840_v46  ;;  %v1001_v24 = vadd.f32 %v12337_v35, %v963_v36  ;;  %v927_v26 = vmul.f32 %v11086_v50, %v12143_v27 }
 0x149   : > { %v773_v62 = vpop.xlane.xlu1 %772  ;;  %v776_v40 = vpop.xlane.xlu0 %775  ;;  %v928_v41 = vmul.f32 %v11088_v54, %v12152_v2  ;;  %v1002_v2 = vadd.f32 %v12337_v35, %v964_v11 }
 0x14a   : > { %11101 = vrsqrt.f32 %v871_v52  ;;  %v841_v4 = vmul.f32 0.03125, %v773_v62  ;;  %v842_v6 = vmul.f32 0.03125, %v776_v40  ;;  %v1032_v56 = vpack.c.bf16 %v1001_v24, %v1000_v51 }
 0x14b   : > { %v11090_v14 = vpop.eup %11089  ;;  %11103 = vrsqrt.f32 %v872_v58  ;;  %v965_v28 = vmul.f32 %v12330_v18, %v927_v26  ;;  %v966_v19 = vmul.f32 %v12330_v18, %v928_v41 }
 0x14c   : > { %v11092_v44 = vpop.eup %11091  ;;  %v873_v60 = vadd.f32 1e-05, %v841_v4  ;;  %v874_v61 = vadd.f32 1e-05, %v842_v6  ;;  %10005 = vmatprep.mubr.msk.bf16.mxu0 %vm538_vm0, %v1032_v56  ;;  %v929_v27 = vmul.f32 %v11090_v14, %v12155_v5 }
 0x14d   : > { %v779_v45 = vpop.xlane.xlu1 %778  ;;  %v782_v0 = vpop.xlane.xlu0 %781  ;;  %v1003_v15 = vadd.f32 %v12337_v35, %v965_v28  ;;  %v930_v30 = vmul.f32 %v11092_v44, %v12164_v55  ;;  %v1004_v42 = vadd.f32 %v12337_v35, %v966_v19 }
 0x14e   : > { %11105 = vrsqrt.f32 %v873_v60  ;;  %v843_v32 = vmul.f32 0.03125, %v779_v45  ;;  %v844_v34 = vmul.f32 0.03125, %v782_v0  ;;  %v967_v38 = vmul.f32 %v12330_v18, %v929_v27 }
 0x14f   : > { %v11094_v10 = vpop.eup %11093  ;;  %11107 = vrsqrt.f32 %v874_v61  ;;  %v1033_v48 = vpack.c.bf16 %v1003_v15, %v1002_v2  ;;  %v968_v54 = vmul.f32 %v12330_v18, %v930_v30 }
 0x150   : > { %v11096_v20 = vpop.eup %11095  ;;  %v875_v5 = vadd.f32 1e-05, %v843_v32  ;;  %v876_v46 = vadd.f32 1e-05, %v844_v34  ;;  %v1005_v36 = vadd.f32 %v12337_v35, %v967_v38  ;;  %v931_v50 = vmul.f32 %v11094_v10, %v12167_v9 }
 0x151   : > { %10006 = vmatmul.mubr.msk.bf16.vlgmr.msra.gmra.mxu0 %vm538_vm0, %v1033_v48  ;;  %v785_v55 = vpop.xlane.xlu1 %784  ;;  %v788_v51 = vpop.xlane.xlu0 %787  ;;  %v932_v52 = vmul.f32 %v11096_v20, %v12176_v7  ;;  %v1006_v7 = vadd.f32 %v12337_v35, %v968_v54 }
 0x152   : > { %11109 = vrsqrt.f32 %v875_v5  ;;  %v845_v58 = vmul.f32 0.03125, %v785_v55  ;;  %v846_v24 = vmul.f32 0.03125, %v788_v51  ;;  %v1034_v26 = vpack.c.bf16 %v1005_v36, %v1004_v42 }
 0x153   : > { %v11098_v62 = vpop.eup %11097  ;;  %11111 = vrsqrt.f32 %v876_v46  ;;  %v969_v40 = vmul.f32 %v12330_v18, %v931_v50  ;;  %v970_v11 = vmul.f32 %v12330_v18, %v932_v52 }
 0x154   : > { %v11100_v41 = vpop.eup %11099  ;;  %v877_v9 = vadd.f32 1e-05, %v845_v58  ;;  %v878_v4 = vadd.f32 1e-05, %v846_v24  ;;  %10009 = vmatprep.mubr.msk.bf16.mxu0 %vm538_vm0, %v1034_v26  ;;  %v933_v6 = vmul.f32 %v11098_v62, %v12179_v13 }
 0x155   : > { %v791_v56 = vpop.xlane.xlu1 %790  ;;  %v794_v14 = vpop.xlane.xlu0 %793  ;;  %v1007_v28 = vadd.f32 %v12337_v35, %v969_v40  ;;  %v934_v19 = vmul.f32 %v11100_v41, %v12188_v1  ;;  %v1008_v0 = vadd.f32 %v12337_v35, %v970_v11 }
 0x156   : > { %11113 = vrsqrt.f32 %v877_v9  ;;  %v847_v44 = vmul.f32 0.03125, %v791_v56  ;;  %v848_v60 = vmul.f32 0.03125, %v794_v14  ;;  %v971_v61 = vmul.f32 %v12330_v18, %v933_v6 }
 0x157   : > { %v11102_v27 = vpop.eup %11101  ;;  %11115 = vrsqrt.f32 %v878_v4  ;;  %v1035_v45 = vpack.c.bf16 %v1007_v28, %v1006_v7  ;;  %v972_v38 = vmul.f32 %v12330_v18, %v934_v19 }
 0x158   : > { %v11104_v2 = vpop.eup %11103  ;;  %v879_v13 = vadd.f32 1e-05, %v847_v44  ;;  %v880_v15 = vadd.f32 1e-05, %v848_v60  ;;  %v1009_v30 = vadd.f32 %v12337_v35, %v971_v61  ;;  %v935_v32 = vmul.f32 %v11102_v27, %v12191_v17 }
 0x159   : > { %10010 = vmatmul.mubr.msk.bf16.gmra.mxu0 %vm538_vm0, %v1035_v45  ;;  %v797_v1 = vpop.xlane.xlu1 %796  ;;  %v800_v34 = vpop.xlane.xlu0 %799  ;;  %v936_v10 = vmul.f32 %v11104_v2, %v12200_v43  ;;  %v1010_v43 = vadd.f32 %v12337_v35, %v972_v38 }
 0x15a   : > { %11117 = vrsqrt.f32 %v879_v13  ;;  %v849_v48 = vmul.f32 0.03125, %v797_v1  ;;  %v850_v42 = vmul.f32 0.03125, %v800_v34  ;;  %v1036_v20 = vpack.c.bf16 %v1009_v30, %v1008_v0 }
 0x15b   : > { %v11106_v5 = vpop.eup %11105  ;;  %11119 = vrsqrt.f32 %v880_v15  ;;  %v973_v46 = vmul.f32 %v12330_v18, %v935_v32  ;;  %v974_v36 = vmul.f32 %v12330_v18, %v936_v10 }
 0x15c   : > { %v11108_v50 = vpop.eup %11107  ;;  %v881_v17 = vadd.f32 1e-05, %v849_v48  ;;  %v882_v55 = vadd.f32 1e-05, %v850_v42  ;;  %10013 = vmatprep.mubr.msk.bf16.mxu0 %vm538_vm0, %v1036_v20  ;;  %v937_v51 = vmul.f32 %v11106_v5, %v12203_v21 }
 0x15d   : > { %v803_v54 = vpop.xlane.xlu1 %802  ;;  %v806_v52 = vpop.xlane.xlu0 %805  ;;  %v1011_v58 = vadd.f32 %v12337_v35, %v973_v46  ;;  %v938_v24 = vmul.f32 %v11108_v50, %v12212_v59  ;;  %v1012_v9 = vadd.f32 %v12337_v35, %v974_v36 }
 0x15e   : > { %11121 = vrsqrt.f32 %v881_v17  ;;  %v851_v26 = vmul.f32 0.03125, %v803_v54  ;;  %v852_v62 = vmul.f32 0.03125, %v806_v52  ;;  %v975_v40 = vmul.f32 %v12330_v18, %v937_v51 }
 0x15f   : > { %v11110_v11 = vpop.eup %11109  ;;  %11123 = vrsqrt.f32 %v882_v55  ;;  %v1037_v41 = vpack.c.bf16 %v1011_v58, %v1010_v43  ;;  %v976_v28 = vmul.f32 %v12330_v18, %v938_v24 }
 0x160   : > { %v11112_v4 = vpop.eup %11111  ;;  %v883_v21 = vadd.f32 1e-05, %v851_v26  ;;  %v884_v6 = vadd.f32 1e-05, %v852_v62  ;;  %v1013_v56 = vadd.f32 %v12337_v35, %v975_v40  ;;  %v939_v14 = vmul.f32 %v11110_v11, %v12215_v25 }
 0x161   : > { %10014 = vmatmul.mubr.msk.bf16.gmra.mxu0 %vm538_vm0, %v1037_v41  ;;  %v809_v59 = vpop.xlane.xlu1 %808  ;;  %v812_v7 = vpop.xlane.xlu0 %811  ;;  %v940_v19 = vmul.f32 %v11112_v4, %v12224_v16  ;;  %v1014_v16 = vadd.f32 %v12337_v35, %v976_v28 }
 0x162   : > { %11125 = vrsqrt.f32 %v883_v21  ;;  %v853_v44 = vmul.f32 0.03125, %v809_v59  ;;  %v854_v60 = vmul.f32 0.03125, %v812_v7  ;;  %v1038_v61 = vpack.c.bf16 %v1013_v56, %v1012_v9 }
 0x163   : > { %v11114_v27 = vpop.eup %11113  ;;  %11127 = vrsqrt.f32 %v884_v6  ;;  %v977_v45 = vmul.f32 %v12330_v18, %v939_v14  ;;  %v978_v0 = vmul.f32 %v12330_v18, %v940_v19 }
 0x164   : > { %v11116_v2 = vpop.eup %11115  ;;  %v885_v25 = vadd.f32 1e-05, %v853_v44  ;;  %v886_v13 = vadd.f32 1e-05, %v854_v60  ;;  %10017 = vmatprep.mubr.msk.bf16.mxu0 %vm538_vm0, %v1038_v61  ;;  %v941_v15 = vmul.f32 %v11114_v27, %v12227_v29 }
 0x165   : > { %v815_v30 = vpop.xlane.xlu1 %814  ;;  %v818_v32 = vpop.xlane.xlu0 %817  ;;  %v1015_v1 = vadd.f32 %v12337_v35, %v977_v45  ;;  %v942_v34 = vmul.f32 %v11116_v2, %v12236_v31  ;;  %v1016_v5 = vadd.f32 %v12337_v35, %v978_v0 }
 0x166   : > { %11129 = vrsqrt.f32 %v885_v25  ;;  %v855_v38 = vmul.f32 0.03125, %v815_v30  ;;  %v856_v10 = vmul.f32 0.03125, %v818_v32  ;;  %v979_v48 = vmul.f32 %v12330_v18, %v941_v15 }
 0x167   : > { %v11118_v42 = vpop.eup %11117  ;;  %11131 = vrsqrt.f32 %v886_v13  ;;  %v1039_v20 = vpack.c.bf16 %v1015_v1, %v1014_v16  ;;  %v980_v51 = vmul.f32 %v12330_v18, %v942_v34 }
 0x168   : > { %v11120_v46 = vpop.eup %11119  ;;  %v887_v29 = vadd.f32 1e-05, %v855_v38  ;;  %v888_v36 = vadd.f32 1e-05, %v856_v10  ;;  %v1017_v50 = vadd.f32 %v12337_v35, %v979_v48  ;;  %v943_v17 = vmul.f32 %v11118_v42, %v12239_v33 }
 0x169   : > { %10018 = vmatmul.mubr.msk.bf16.gmra.mxu0 %vm538_vm0, %v1039_v20  ;;  %v821_v31 = vpop.xlane.xlu1 %820  ;;  %v824_v55 = vpop.xlane.xlu0 %823  ;;  %v944_v54 = vmul.f32 %v11120_v46, %v12248_v47  ;;  %v1018_v47 = vadd.f32 %v12337_v35, %v980_v51 }
 0x16a   : > { %11133 = vrsqrt.f32 %v887_v29  ;;  %v857_v52 = vmul.f32 0.03125, %v821_v31  ;;  %v858_v43 = vmul.f32 0.03125, %v824_v55  ;;  %v1040_v58 = vpack.c.bf16 %v1017_v50, %v1016_v5 }
 0x16b   : > { %v11122_v24 = vpop.eup %11121  ;;  %11135 = vrsqrt.f32 %v888_v36  ;;  %v981_v26 = vmul.f32 %v12330_v18, %v943_v17  ;;  %v982_v62 = vmul.f32 %v12330_v18, %v944_v54 }
 0x16c   : > { %v11124_v40 = vpop.eup %11123  ;;  %v889_v33 = vadd.f32 1e-05, %v857_v52  ;;  %v890_v11 = vadd.f32 1e-05, %v858_v43  ;;  %10021 = vmatprep.mubr.msk.bf16.mxu0 %vm538_vm0, %v1040_v58  ;;  %v945_v41 = vmul.f32 %v11122_v24, %v12251_v37 }
 0x16d   : > { %v827_v9 = vpop.xlane.xlu1 %826  ;;  %v1019_v4 = vadd.f32 %v12337_v35, %v981_v26  ;;  %v946_v21 = vmul.f32 %v11124_v40, %v12263_v63  ;;  %v1020_v7 = vadd.f32 %v12337_v35, %v982_v62 }
 0x16e   : > { %11137 = vrsqrt.f32 %v889_v33  ;;  %v859_v6 = vmul.f32 0.03125, %v827_v9  ;;  %v983_v56 = vmul.f32 %v12330_v18, %v945_v41 }
 0x16f   : > { %v11126_v14 = vpop.eup %11125  ;;  %11139 = vrsqrt.f32 %v890_v11  ;;  %v1041_v59 = vpack.c.bf16 %v1019_v4, %v1018_v47  ;;  %v984_v60 = vmul.f32 %v12330_v18, %v946_v21 }
 0x170   : > { %v11128_v28 = vpop.eup %11127  ;;  %v891_v19 = vadd.f32 1e-05, %v859_v6  ;;  %v1021_v37 = vadd.f32 %v12337_v35, %v983_v56  ;;  %v947_v44 = vmul.f32 %v11126_v14, %v12266_v3 }
 0x171   : > { %10022 = vmatmul.mubr.msk.bf16.gmra.mxu0 %vm538_vm0, %v1041_v59  ;;  %v948_v63 = vmul.f32 %v11128_v28, %v12278_v22  ;;  %v1022_v2 = vadd.f32 %v12337_v35, %v984_v60 }
 0x172   : > { %11141 = vrsqrt.f32 %v891_v19  ;;  %v1042_v61 = vpack.c.bf16 %v1021_v37, %v1020_v7  ;;  %v985_v27 = vmul.f32 %v12330_v18, %v947_v44 }
 0x173   : > { %v11130_v45 = vpop.eup %11129  ;;  %v986_v13 = vmul.f32 %v12330_v18, %v948_v63 }
 0x174   : > { %v11132_v0 = vpop.eup %11131  ;;  %10025 = vmatprep.mubr.msk.bf16.mxu0 %vm538_vm0, %v1042_v61  ;;  %v1023_v25 = vadd.f32 %v12337_v35, %v985_v27  ;;  %v949_v3 = vmul.f32 %v11130_v45, %v12281_v23 }
 0x175   : > { %v950_v15 = vmul.f32 %v11132_v0, %v12290_v39  ;;  %v1024_v1 = vadd.f32 %v12337_v35, %v986_v13 }
 0x176   : > { %v1043_v30 = vpack.c.bf16 %v1023_v25, %v1022_v2  ;;  %v987_v22 = vmul.f32 %v12330_v18, %v949_v3 }
 0x177   : > { %v11134_v32 = vpop.eup %11133  ;;  %v988_v10 = vmul.f32 %v12330_v18, %v950_v15 }
 0x178   : > { %v11136_v16 = vpop.eup %11135  ;;  %v1025_v34 = vadd.f32 %v12337_v35, %v987_v22  ;;  %v951_v38 = vmul.f32 %v11134_v32, %v12293_v49 }
 0x179   : > { %10026 = vmatmul.mubr.msk.bf16.gmra.mxu0 %vm538_vm0, %v1043_v30  ;;  %v952_v23 = vmul.f32 %v11136_v16, %v12302_v8  ;;  %v1026_v5 = vadd.f32 %v12337_v35, %v988_v10 }
 0x17a   : > { %v1044_v48 = vpack.c.bf16 %v1025_v34, %v1024_v1  ;;  %v989_v39 = vmul.f32 %v12330_v18, %v951_v38 }
 0x17b   : > { %v11138_v42 = vpop.eup %11137  ;;  %v990_v49 = vmul.f32 %v12330_v18, %v952_v23 }
 0x17c   : > { %v11140_v20 = vpop.eup %11139  ;;  %10029 = vmatprep.mubr.msk.bf16.mxu0 %vm538_vm0, %v1044_v48  ;;  %v1027_v46 = vadd.f32 %v12337_v35, %v989_v39  ;;  %v953_v29 = vmul.f32 %v11138_v42, %v12305_v53 }
 0x17d   : > { %v954_v36 = vmul.f32 %v11140_v20, %v12314_v12  ;;  %v1028_v31 = vadd.f32 %v12337_v35, %v990_v49 }
 0x17e   : > { %v1045_v50 = vpack.c.bf16 %v1027_v46, %v1026_v5  ;;  %v991_v8 = vmul.f32 %v12330_v18, %v953_v29 }
 0x17f   : > { %v11142_v17 = vpop.eup %11141  ;;  %v992_v54 = vmul.f32 %v12330_v18, %v954_v36 }
 0x180   : > { %v1029_v55 = vadd.f32 %v12337_v35, %v991_v8  ;;  %v955_v51 = vmul.f32 %v11142_v17, %v12317_v57 }
 0x181   : > { %10030 = vmatmul.mubr.msk.bf16.gmra.mxu0 %vm538_vm0, %v1045_v50  ;;  %v1030_v12 = vadd.f32 %v12337_v35, %v992_v54 }
 0x182   : > { %v1046_v52 = vpack.c.bf16 %v1029_v55, %v1028_v31  ;;  %v993_v53 = vmul.f32 %v12330_v18, %v955_v51 }
 0x184   : > { %10033 = vmatprep.mubr.msk.bf16.mxu0 %vm538_vm0, %v1046_v52  ;;  %v1031_v43 = vadd.f32 %v12337_v35, %v993_v53 }
 0x186   : > { %v1047_v58 = vpack.c.bf16 %v1031_v43, %v1030_v12 }
 0x189   : > { %10034 = vmatmul.mubr.msk.bf16.gmra.mxu0 %vm538_vm0, %v1047_v58 }
 0x211   : > { %v10007_v24 = vpop.f32.mrf.mxu0 }
 0x213   : > { %v1146_v26 = vpop.f32.mrf.mxu0 }
 0x215   : > { %v10008_v62 = vpop.f32.mrf.mxu0 }
 0x216   : > { %v12461_v21 = vpack.c.bf16 %v10008_v62, %v10007_v24 }
 0x217   : > { %v1149_v57 = vpop.f32.mrf.mxu0 }
 0x218   : > { %v12449_v40 = vpack.c.bf16 %v1149_v57, %v1146_v26  ;;  %18438 = vst [vmem:[#allocation3_spill] sm:$0xff] %v12461_v21 }
 0x219   : > { %v10011_v33 = vpop.f32.mrf.mxu0 }
 0x21a   : > { %18437 = vst [vmem:[#allocation2_spill] sm:$0xff] %v12449_v40  ;;  %10045 = vmatprep.mubr.msk.bf16.mxu0 %vm1301_vm1, %v12449_v40 }
 0x21b   : > { %v1162_v18 = vpop.f32.mrf.mxu0 }
 0x21d   : > { %v10012_v11 = vpop.f32.mrf.mxu0 }
 0x21e   : > { %v12453_v41 = vpack.c.bf16 %v10012_v11, %v10011_v33 }
 0x21f   : > { %v1165_v9 = vpop.f32.mrf.mxu0 }
 0x220   : > { %v12455_v35 = vpack.c.bf16 %v1165_v9, %v1162_v18  ;;  %1299 = vrot.lane.b32.xlu0 %v12453_v41, %s11853_s19 }
 0x221   : > { %v10015_v47 = vpop.f32.mrf.mxu0 }
 0x222   : > { %1297 = vrot.lane.b32.xlu1 %v12455_v35, %s11853_s19 }
 0x223   : > { %v1178_v4 = vpop.f32.mrf.mxu0 }
 0x224   : > { %1293 = vrot.lane.b32.xlu0 %v12449_v40, %s11853_s19 }
 0x225   : > { %v10016_v6 = vpop.f32.mrf.mxu0 }
 0x226   : > { %v12465_v56 = vpack.c.bf16 %v10016_v6, %v10015_v47  ;;  %1295 = vrot.lane.b32.xlu1 %v12461_v21, %s11853_s19 }
 0x227   : > { %v1181_v14 = vpop.f32.mrf.mxu0 }
 0x228   : > { %v12469_v59 = vpack.c.bf16 %v1181_v14, %v1178_v4  ;;  %1397 = vrot.lane.b32.xlu0 %v12465_v56, %s11853_s19 }
 0x229   : > { %v10019_v7 = vpop.f32.mrf.mxu0 }
 0x22a   : > { %10061 = vmatprep.mubr.msk.bf16.mxu1 %vm1301_vm1, %v12469_v59 }
 0x22b   : > { %v1194_v28 = vpop.f32.mrf.mxu0 }
 0x22c   : > { %1395 = vrot.lane.b32.xlu0 %v12469_v59, %s11853_s19 }
 0x22d   : > { %v10020_v19 = vpop.f32.mrf.mxu0 }
 0x22e   : > { %v12477_v37 = vpack.c.bf16 %v10020_v19, %v10019_v7 }
 0x22f   : > { %v1197_v44 = vpop.f32.mrf.mxu0 }
 0x230   : > { %18439 = vst [vmem:[#allocation4_spill] sm:$0xff] %v12477_v37  ;;  %1401 = vrot.lane.b32.xlu1 %v12477_v37, %s11853_s19  ;;  %v12481_v63 = vpack.c.bf16 %v1197_v44, %v1194_v28 }
 0x231   : > { %v10023_v60 = vpop.f32.mrf.mxu0 }
 0x233   : > { %v1210_v61 = vpop.f32.mrf.mxu0 }
 0x234   : > { %1399 = vrot.lane.b32.xlu1 %v12481_v63, %s11853_s19 }
 0x235   : > { %v10024_v27 = vpop.f32.mrf.mxu0 }
 0x236   : > { %v12485_v45 = vpack.c.bf16 %v10024_v27, %v10023_v60 }
 0x237   : > { %v1213_v0 = vpop.f32.mrf.mxu0 }
 0x238   : > { %1498 = vrot.lane.b32.xlu0 %v12485_v45, %s11853_s19  ;;  %v12489_v25 = vpack.c.bf16 %v1213_v0, %v1210_v61 }
 0x239   : > { %v10027_v2 = vpop.f32.mrf.mxu0 }
 0x23a   : > { %18440 = vst [vmem:[#allocation5_spill] sm:$0xff] %v12489_v25 }
 0x23b   : > { %v1226_v3 = vpop.f32.mrf.mxu0 }
 0x23c   : > { %1496 = vrot.lane.b32.xlu0 %v12489_v25, %s11853_s19 }
 0x23d   : > { %v10028_v13 = vpop.f32.mrf.mxu0 }
 0x23e   : > { %v12493_v15 = vpack.c.bf16 %v10028_v13, %v10027_v2 }
 0x23f   : > { %v1229_v30 = vpop.f32.mrf.mxu0 }
 0x240   : > { %18441 = vst [vmem:[#allocation6_spill] sm:$0xff] %v12493_v15  ;;  %1502 = vrot.lane.b32.xlu1 %v12493_v15, %s11853_s19  ;;  %v12497_v32 = vpack.c.bf16 %v1229_v30, %v1226_v3 }
 0x241   : > { %v10031_v22 = vpop.f32.mrf.mxu0 }
 0x243   : > { %v1242_v16 = vpop.f32.mrf.mxu0 }
 0x244   : > { %1500 = vrot.lane.b32.xlu1 %v12497_v32, %s11853_s19 }
 0x245   : > { %v10032_v1 = vpop.f32.mrf.mxu0 }
 0x246   : > { %v12501_v34 = vpack.c.bf16 %v10032_v1, %v10031_v22 }
 0x247   : > { %v1245_v38 = vpop.f32.mrf.mxu0 }
 0x248   : > { %1599 = vrot.lane.b32.xlu0 %v12501_v34, %s11853_s19  ;;  %v12516_v5 = vpack.c.bf16 %v1245_v38, %v1242_v16 }
 0x249   : > { %v10035_v10 = vpop.f32.mrf.mxu0 }
 0x24b   : > { %v1258_v23 = vpop.f32.mrf.mxu0 }
 0x24c   : > { %2069 = vrot.lane.b32.xlu0 %v12453_v41, %s11854_s22 }
 0x24d   : > { %v10036_v48 = vpop.f32.mrf.mxu0 }
 0x24e   : > { %v12506_v39 = vpack.c.bf16 %v10036_v48, %v10035_v10 }
 0x24f   : > { %v1261_v42 = vpop.f32.mrf.mxu0 }
 0x250   : > { %2063 = vrot.lane.b32.xlu0 %v12449_v40, %s11854_s22  ;;  %1603 = vrot.lane.b32.xlu1 %v12506_v39, %s11853_s19  ;;  %v12511_v20 = vpack.c.bf16 %v1261_v42, %v1258_v23 }
 0x254   : > { %2247 = vrot.lane.b32.xlu0 %v12493_v15, %s11854_s22  ;;  %1601 = vrot.lane.b32.xlu1 %v12511_v20, %s11853_s19 }
 0x258   : > { %2156 = vrot.lane.b32.xlu0 %v12481_v63, %s11854_s22  ;;  %1597 = vrot.lane.b32.xlu1 %v12516_v5, %s11853_s19  ;;  %s11864_s19 = smov 8  }
 0x25c   : > { %2154 = vrot.lane.b32.xlu0 %v12465_v56, %s11854_s22  ;;  %2067 = vrot.lane.b32.xlu1 %v12455_v35, %s11854_s22 }
 0x260   : > { %2152 = vrot.lane.b32.xlu0 %v12469_v59, %s11854_s22  ;;  %2065 = vrot.lane.b32.xlu1 %v12461_v21, %s11854_s22 }
 0x264   : > { %2431 = vrot.lane.b32.xlu0 %v12455_v35, %s11855_s23  ;;  %2158 = vrot.lane.b32.xlu1 %v12477_v37, %s11854_s22 }
 0x268   : > { %2429 = vrot.lane.b32.xlu0 %v12461_v21, %s11855_s23  ;;  %2245 = vrot.lane.b32.xlu1 %v12497_v32, %s11854_s22 }
 0x26c   : > { %2419 = vrot.lane.b32.xlu0 %v12449_v40, %s11856_s25  ;;  %2243 = vrot.lane.b32.xlu1 %v12485_v45, %s11854_s22 }
 0x270   : > { %2334 = vrot.lane.b32.xlu0 %v12511_v20, %s11854_s22  ;;  %2241 = vrot.lane.b32.xlu1 %v12489_v25, %s11854_s22 }
 0x274   : > { %2336 = vrot.lane.b32.xlu1 %v12506_v39, %s11854_s22 }
 0x278   : > { %2433 = vrot.lane.b32.xlu1 %v12453_v41, %s11855_s23 }
 0x27c   : > { %2332 = vrot.lane.b32.xlu1 %v12501_v34, %s11854_s22 }
 0x280   : > { %2330 = vrot.lane.b32.xlu1 %v12516_v5, %s11854_s22  ;;  %s11865_s22 = smov 16  }
 0x284   : > { %2538 = vrot.lane.b32.xlu1 %v12477_v37, %s11855_s23 }
 0x288   : > { %2427 = vrot.lane.b32.xlu1 %v12449_v40, %s11855_s23 }
 0x28c   : > { %2536 = vrot.lane.b32.xlu1 %v12481_v63, %s11855_s23 }
 0x290   : > { %2534 = vrot.lane.b32.xlu1 %v12465_v56, %s11855_s23 }
 0x292   : > { %v1300_v46 = vpop.permute.xlu0 %1299 }
 0x293   : > { %10669 = vmatprep.subr.msk.bf16.mxu0 %vm1301_vm1, %v1300_v46  ;;  %v1324_v29 = vsel %vm1301_vm1, %v1300_v46, 0 }
 0x294   : > { %v1298_v49 = vpop.permute.xlu1 %1297  ;;  %10038 = vmatpush3.bf16.xpose.msra.mxu0 %v1324_v29 }
 0x295   : > { %10670 = vmatprep.subr.msk.bf16.mxu0 %vm1301_vm1, %v1298_v49  ;;  %v1321_v36 = vsel %vm1301_vm1, %v1298_v49, 0 }
 0x296   : > { %v1294_v55 = vpop.permute.xlu0 %1293 }
 0x297   : > { %v1315_v54 = vsel %vm1301_vm1, %v1294_v55, 0 }
 0x298   : > { %v1296_v50 = vpop.permute.xlu1 %1295 }
 0x299   : > { %v1318_v17 = vsel %vm1301_vm1, %v1296_v50, 0 }
 0x29a   : > { %v1398_v53 = vpop.permute.xlu0 %1397 }
 0x29b   : > { %v1419_v43 = vsel %vm1301_vm1, %v1398_v53, 0 }
 0x29c   : > { %10040 = vmatpush3.bf16.xpose.msra.mxu0 %v1321_v36 }
 0x29d   : > { %10671 = vmatprep.subr.msk.bf16.mxu0 %vm1301_vm1, %v1296_v50 }
 0x29e   : > { %v1396_v24 = vpop.permute.xlu0 %1395 }
 0x29f   : > { %v1416_v62 = vsel %vm1301_vm1, %v1396_v24, 0 }
 0x2a2   : > { %v1402_v8 = vpop.permute.xlu1 %1401 }
 0x2a3   : > { %10673 = vmatprep.subr.msk.bf16.mxu1 %vm1301_vm1, %v1402_v8  ;;  %v1425_v31 = vsel %vm1301_vm1, %v1402_v8, 0 }
 0x2a4   : > { %10042 = vmatpush3.bf16.xpose.msra.mxu0 %v1318_v17  ;;  %10054 = vmatpush3.bf16.xpose.msra.mxu1 %v1425_v31 }
 0x2a5   : > { %10672 = vmatprep.subr.msk.bf16.mxu0 %vm1301_vm1, %v1294_v55 }
 0x2a6   : > { %v1400_v51 = vpop.permute.xlu1 %1399 }
 0x2a7   : > { %10674 = vmatprep.subr.msk.bf16.mxu1 %vm1301_vm1, %v1400_v51  ;;  %v1422_v52 = vsel %vm1301_vm1, %v1400_v51, 0 }
 0x2aa   : > { %v1499_v33 = vpop.permute.xlu0 %1498 }
 0x2ab   : > { %v1520_v47 = vsel %vm1301_vm1, %v1499_v33, 0 }
 0x2ac   : > { %10044 = vmatpush3.bf16.xpose.msra.mxu0 %v1315_v54  ;;  %10056 = vmatpush3.bf16.xpose.msra.mxu1 %v1422_v52 }
 0x2ad   : > { %10675 = vmatprep.subr.msk.bf16.mxu1 %vm1301_vm1, %v1398_v53 }
 0x2ae   : > { %v1497_v11 = vpop.permute.xlu0 %1496 }
 0x2af   : > { %v1517_v28 = vsel %vm1301_vm1, %v1497_v11, 0 }
 0x2b2   : > { %v1503_v12 = vpop.permute.xlu1 %1502 }
 0x2b3   : > { %10046 = vmatmul.mubr.msk.bf16.vlgmr.msra.gmra.mxu0 %vm1301_vm1, %v12461_v21  ;;  %10677 = vmatprep.subr.msk.bf16.mxu0 %vm1301_vm1, %v1503_v12  ;;  %v1526_v58 = vsel %vm1301_vm1, %v1503_v12, 0 }
 0x2b4   : > { %10049 = vmatprep.mubr.msk.bf16.mxu0 %vm1301_vm1, %v12455_v35  ;;  %10058 = vmatpush3.bf16.xpose.msra.mxu1 %v1419_v43 }
 0x2b5   : > { %10070 = vmatpush3.bf16.xpose.msra.mxu0 %v1526_v58  ;;  %10676 = vmatprep.subr.msk.bf16.mxu1 %vm1301_vm1, %v1396_v24 }
 0x2b6   : > { %v1501_v26 = vpop.permute.xlu1 %1500 }
 0x2b7   : > { %10678 = vmatprep.subr.msk.bf16.mxu0 %vm1301_vm1, %v1501_v26  ;;  %v1523_v57 = vsel %vm1301_vm1, %v1501_v26, 0 }
 0x2ba   : > { %v1600_v6 = vpop.permute.xlu0 %1599 }
 0x2bb   : > { %10050 = vmatmul.mubr.msk.bf16.gmra.mxu0 %vm1301_vm1, %v12453_v41  ;;  %v1621_v61 = vsel %vm1301_vm1, %v1600_v6, 0 }
 0x2bc   : > { %10060 = vmatpush3.bf16.xpose.msra.mxu1 %v1416_v62  ;;  %10077 = vmatprep.mubr.msk.bf16.mxu0 %vm1301_vm1, %v12489_v25 }
 0x2bd   : > { %10072 = vmatpush3.bf16.xpose.msra.mxu0 %v1523_v57 }
 0x2be   : > { %10679 = vmatprep.subr.msk.bf16.mxu0 %vm1301_vm1, %v1499_v33  ;;  %v2070_v19 = vpop.permute.xlu0 %2069 }
 0x2c2   : > { %v1604_v18 = vpop.permute.xlu1 %1603  ;;  %v2064_v27 = vpop.permute.xlu0 %2063 }
 0x2c3   : > { %10062 = vmatmul.mubr.msk.bf16.vlgmr.msra.gmra.mxu1 %vm1301_vm1, %v12465_v56  ;;  %10681 = vmatprep.subr.msk.bf16.mxu1 %vm1301_vm1, %v1604_v18  ;;  %v1627_v9 = vsel %vm1301_vm1, %v1604_v18, 0 }
 0x2c4   : > { %10065 = vmatprep.mubr.msk.bf16.mxu1 %vm1301_vm1, %v12481_v63  ;;  %10086 = vmatpush3.bf16.xpose.msra.mxu1 %v1627_v9 }
 0x2c5   : > { %10074 = vmatpush3.bf16.xpose.msra.mxu0 %v1520_v47 }
 0x2c6   : > { %10680 = vmatprep.subr.msk.bf16.mxu0 %vm1301_vm1, %v1497_v11  ;;  %v1602_v4 = vpop.permute.xlu1 %1601  ;;  %v2248_v13 = vpop.permute.xlu0 %2247 }
 0x2c7   : > { %10682 = vmatprep.subr.msk.bf16.mxu1 %vm1301_vm1, %v1602_v4  ;;  %v1624_v7 = vsel %vm1301_vm1, %v1602_v4, 0 }
 0x2ca   : > { %v1598_v14 = vpop.permute.xlu1 %1597 }
 0x2cb   : > { %10066 = vmatmul.mubr.msk.bf16.gmra.mxu1 %vm1301_vm1, %v12477_v37  ;;  %v1618_v3 = vsel %vm1301_vm1, %v1598_v14, 0 }
 0x2cc   : > { %10088 = vmatpush3.bf16.xpose.msra.mxu1 %v1624_v7  ;;  %10093 = vmatprep.mubr.msk.bf16.mxu1 %vm1301_vm1, %v12516_v5 }
 0x2cd   : > { %10076 = vmatpush3.bf16.xpose.msra.mxu0 %v1517_v28  ;;  %10683 = vmatprep.subr.msk.bf16.mxu1 %vm1301_vm1, %v1600_v6 }
 0x2ce   : > { %10101 = vmatprep.subr.bf16.mxu0 %v2070_v19  ;;  %v2068_v44 = vpop.permute.xlu1 %2067 }
 0x2d2   : > { %v2066_v60 = vpop.permute.xlu1 %2065 }
 0x2d4   : > { %10078 = vmatmul.mubr.msk.bf16.vlgmr.msra.gmra.mxu0 %vm1301_vm1, %v12485_v45  ;;  %10090 = vmatpush3.bf16.xpose.msra.mxu1 %v1621_v61 }
 0x2d5   : > { %10081 = vmatprep.mubr.msk.bf16.mxu0 %vm1301_vm1, %v12497_v32  ;;  %10102 = vmatpush3.bf16.msra.mxu0 %v2070_v19 }
 0x2d6   : > { %10684 = vmatprep.subr.msk.bf16.mxu1 %vm1301_vm1, %v1598_v14  ;;  %10103 = vmatprep.subr.bf16.mxu0 %v2068_v44  ;;  %v12600_v0 = vpop.permute.xlu1 %2158 }
 0x2d9   : > { %10104 = vmatpush3.bf16.msra.mxu0 %v2068_v44 }
 0x2da   : > { %10105 = vmatprep.subr.bf16.mxu0 %v2066_v60  ;;  %v2246_v2 = vpop.permute.xlu1 %2245 }
 0x2dc   : > { %10082 = vmatmul.mubr.msk.bf16.gmra.mxu0 %vm1301_vm1, %v12493_v15  ;;  %10092 = vmatpush3.bf16.xpose.msra.mxu1 %v1618_v3 }
 0x2dd   : > { %10106 = vmatpush3.bf16.msra.mxu0 %v2066_v60  ;;  %10133 = vmatprep.subr.bf16.mxu1 %v2248_v13 }
 0x2de   : > { %10107 = vmatprep.subr.bf16.mxu0 %v2064_v27  ;;  %v2244_v30 = vpop.permute.xlu1 %2243 }
 0x2e1   : > { %10108 = vmatpush3.bf16.msra.mxu0 %v2064_v27 }
 0x2e2   : > { %10117 = vmatprep.subr.bf16.mxu0 %v12600_v0  ;;  %v2242_v22 = vpop.permute.xlu1 %2241 }
 0x2e3   : > { %10094 = vmatmul.mubr.msk.bf16.vlgmr.msra.gmra.mxu1 %vm1301_vm1, %v12501_v34 }
 0x2e4   : > { %10097 = vmatprep.mubr.msk.bf16.mxu1 %vm1301_vm1, %v12511_v20  ;;  %10134 = vmatpush3.bf16.msra.mxu1 %v2248_v13 }
 0x2e5   : > { %10135 = vmatprep.subr.bf16.mxu1 %v2246_v2 }
 0x2e6   : > { %v12610_v16 = vpop.permute.xlu1 %2336 }
 0x2e7   : > { %18442 = vst [vmem:[#allocation7_spill] sm:$0xff] %v12610_v16 }
 0x2e8   : > { %10136 = vmatpush3.bf16.msra.mxu1 %v2246_v2 }
 0x2e9   : > { %10137 = vmatprep.subr.bf16.mxu1 %v2244_v30 }
 0x2ea   : > { %v12614_v1 = vpop.permute.xlu1 %2433 }
 0x2eb   : > { %10098 = vmatmul.mubr.msk.bf16.gmra.mxu1 %vm1301_vm1, %v12506_v39  ;;  %18443 = vst [vmem:[#allocation8_spill] sm:$0xff] %v12614_v1 }
 0x2ec   : > { %10138 = vmatpush3.bf16.msra.mxu1 %v2244_v30 }
 0x2ed   : > { %10139 = vmatprep.subr.bf16.mxu1 %v2242_v22 }
 0x2f0   : > { %10140 = vmatpush3.bf16.msra.mxu1 %v2242_v22 }
 0x2f1   : > { %10685 = vmatprep.subr.msk.bf16.mxu1 %vm1301_vm1, %v12614_v1 }
 0x373   : > { %v12618_v38 = vpop.f32.mrf.mxu0 }
 0x374   : > { %v1701_v10 = vsel %vm1694_vm2, %v12618_v38, -inf }
 0x375   : > { %1702 = vmax.xlane.f32.xlu0 %v1701_v10  ;;  %v12622_v23 = vpop.f32.mrf.mxu0 }
 0x376   : > { %v1695_v42 = vsel %vm1694_vm2, %v12622_v23, -inf }
 0x377   : > { %v12624_v48 = vpop.f32.mrf.mxu0 }
 0x378   : > { %v1704_v36 = vsel %vm1694_vm2, %v12624_v48, -inf }
 0x379   : > { %1696 = vmax.xlane.f32.xlu0 %v1695_v42  ;;  %v12628_v46 = vpop.f32.mrf.mxu0 }
 0x37a   : > { %v1698_v29 = vsel %vm1694_vm2, %v12628_v46, -inf }
 0x37b   : > { %1699 = vmax.xlane.f32.xlu1 %v1698_v29  ;;  %v12632_v49 = vpop.f32.mrf.mxu0 }
 0x37c   : > { %v1713_v17 = vsel %vm1694_vm2, %v12632_v49, -inf }
 0x37d   : > { %1705 = vmax.xlane.f32.xlu0 %v1704_v36  ;;  %v12636_v50 = vpop.f32.mrf.mxu0 }
 0x37e   : > { %v1707_v54 = vsel %vm1694_vm2, %v12636_v50, -inf }
 0x37f   : > { %v12638_v8 = vpop.f32.mrf.mxu0 }
 0x380   : > { %v1716_v31 = vsel %vm1694_vm2, %v12638_v8, -inf }
 0x381   : > { %1714 = vmax.xlane.f32.xlu0 %v1713_v17  ;;  %1717 = vmax.xlane.f32.xlu1 %v1716_v31  ;;  %v12644_v55 = vpop.f32.mrf.mxu0 }
 0x382   : > { %v1710_v52 = vsel %vm1694_vm2, %v12644_v55, -inf }
 0x383   : > { %v12646_v51 = vpop.f32.mrf.mxu1 }
 0x384   : > { %v1725_v43 = vsel %vm1694_vm2, %v12646_v51, -inf }
 0x385   : > { %1708 = vmax.xlane.f32.xlu0 %v1707_v54  ;;  %1711 = vmax.xlane.f32.xlu1 %v1710_v52  ;;  %v12652_v53 = vpop.f32.mrf.mxu1 }
 0x386   : > { %v1719_v62 = vsel %vm1694_vm2, %v12652_v53, -inf }
 0x387   : > { %v12654_v12 = vpop.f32.mrf.mxu1 }
 0x388   : > { %v1728_v58 = vsel %vm1694_vm2, %v12654_v12, -inf }
 0x389   : > { %1726 = vmax.xlane.f32.xlu0 %v1725_v43  ;;  %1729 = vmax.xlane.f32.xlu1 %v1728_v58  ;;  %v12660_v24 = vpop.f32.mrf.mxu1 }
 0x38a   : > { %v1722_v57 = vsel %vm1694_vm2, %v12660_v24, -inf }
 0x38b   : > { %v12662_v26 = vpop.f32.mrf.mxu1 }
 0x38c   : > { %v1737_v11 = vsel %vm1694_vm2, %v12662_v26, -inf }
 0x38d   : > { %1720 = vmax.xlane.f32.xlu0 %v1719_v62  ;;  %1723 = vmax.xlane.f32.xlu1 %v1722_v57  ;;  %v12668_v33 = vpop.f32.mrf.mxu1 }
 0x38e   : > { %v1731_v6 = vsel %vm1694_vm2, %v12668_v33, -inf }
 0x38f   : > { %v12670_v18 = vpop.f32.mrf.mxu1 }
 0x390   : > { %v1740_v9 = vsel %vm1694_vm2, %v12670_v18, -inf }
 0x391   : > { %1738 = vmax.xlane.f32.xlu0 %v1737_v11  ;;  %1741 = vmax.xlane.f32.xlu1 %v1740_v9  ;;  %v12676_v47 = vpop.f32.mrf.mxu1 }
 0x392   : > { %v1734_v14 = vsel %vm1694_vm2, %v12676_v47, -inf }
 0x394   : > { %v12678_v4 = vpop.f32.mrf.mxu0 }
 0x395   : > { %1732 = vmax.xlane.f32.xlu0 %v1731_v6  ;;  %1735 = vmax.xlane.f32.xlu1 %v1734_v14  ;;  %v1749_v19 = vsel %vm1694_vm2, %v12678_v4, -inf }
 0x396   : > { %v12684_v7 = vpop.f32.mrf.mxu0 }
 0x397   : > { %v1743_v27 = vsel %vm1694_vm2, %v12684_v7, -inf }
 0x398   : > { %v12686_v28 = vpop.f32.mrf.mxu0 }
 0x399   : > { %1750 = vmax.xlane.f32.xlu0 %v1749_v19  ;;  %v1752_v44 = vsel %vm1694_vm2, %v12686_v28, -inf }
 0x39a   : > { %1753 = vmax.xlane.f32.xlu1 %v1752_v44  ;;  %v12692_v60 = vpop.f32.mrf.mxu0 }
 0x39b   : > { %v1746_v2 = vsel %vm1694_vm2, %v12692_v60, -inf }
 0x39c   : > { %v12694_v61 = vpop.f32.mrf.mxu0 }
 0x39d   : > { %1744 = vmax.xlane.f32.xlu0 %v1743_v27  ;;  %v1761_v30 = vsel %vm1694_vm2, %v12694_v61, -inf }
 0x39e   : > { %1747 = vmax.xlane.f32.xlu1 %v1746_v2  ;;  %v12700_v3 = vpop.f32.mrf.mxu0  ;;  %v12746_v2 = vpop.permute.xlu0 %2156 }
 0x39f   : > { %v1755_v29 = vsel %vm1694_vm2, %v12700_v3, -inf }
 0x3a0   : > { %v12702_v13 = vpop.f32.mrf.mxu0 }
 0x3a1   : > { %1762 = vmax.xlane.f32.xlu0 %v1761_v30  ;;  %v1764_v22 = vsel %vm1694_vm2, %v12702_v13, -inf }
 0x3a2   : > { %1765 = vmax.xlane.f32.xlu1 %v1764_v22  ;;  %v12708_v10 = vpop.f32.mrf.mxu0  ;;  %v12748_v30 = vpop.permute.xlu0 %2154 }
 0x3a3   : > { %v12710_v42 = vpop.f32.mrf.mxu1  ;;  %v1758_v36 = vsel %vm1694_vm2, %v12708_v10, -inf }
 0x3a4   : > { %v1773_v54 = vsel %vm1694_vm2, %v12710_v42, -inf }
 0x3a5   : > { %1756 = vmax.xlane.f32.xlu0 %v1755_v29  ;;  %v12716_v17 = vpop.f32.mrf.mxu1  ;;  %v12752_v29 = vpop.permute.xlu1 %2332 }
 0x3a6   : > { %1759 = vmax.xlane.f32.xlu1 %v1758_v36  ;;  %v1767_v62 = vsel %vm1694_vm2, %v12716_v17, -inf  ;;  %v12750_v22 = vpop.permute.xlu0 %2152  ;;  %18445 = vst [vmem:[#allocation10_spill] sm:$0xff] %v12752_v29 }
 0x3a7   : > { %v12718_v31 = vpop.f32.mrf.mxu1  ;;  %18444 = vst [vmem:[#allocation9_spill] sm:$0xff] %v12750_v22 }
 0x3a8   : > { %v1776_v52 = vsel %vm1694_vm2, %v12718_v31, -inf }
 0x3a9   : > { %1774 = vmax.xlane.f32.xlu0 %v1773_v54  ;;  %v12724_v43 = vpop.f32.mrf.mxu1  ;;  %v12756_v54 = vpop.permute.xlu1 %2330 }
 0x3aa   : > { %1777 = vmax.xlane.f32.xlu1 %v1776_v52  ;;  %v1770_v57 = vsel %vm1694_vm2, %v12724_v43, -inf  ;;  %v12754_v36 = vpop.permute.xlu0 %2431  ;;  %18447 = vst [vmem:[#allocation12_spill] sm:$0xff] %v12756_v54 }
 0x3ab   : > { %v12726_v58 = vpop.f32.mrf.mxu1  ;;  %18446 = vst [vmem:[#allocation11_spill] sm:$0xff] %v12754_v36 }
 0x3ac   : > { %v1785_v6 = vsel %vm1694_vm2, %v12726_v58, -inf }
 0x3ad   : > { %1768 = vmax.xlane.f32.xlu0 %v1767_v62  ;;  %v12732_v11 = vpop.f32.mrf.mxu1  ;;  %v12760_v62 = vpop.permute.xlu1 %2538 }
 0x3ae   : > { %1771 = vmax.xlane.f32.xlu1 %v1770_v57  ;;  %v1779_v44 = vsel %vm1694_vm2, %v12732_v11, -inf  ;;  %v12758_v52 = vpop.permute.xlu0 %2429  ;;  %18449 = vst [vmem:[#allocation14_spill] sm:$0xff] %v12760_v62 }
 0x3af   : > { %v12734_v9 = vpop.f32.mrf.mxu1  ;;  %18448 = vst [vmem:[#allocation13_spill] sm:$0xff] %v12758_v52 }
 0x3b0   : > { %v1788_v14 = vsel %vm1694_vm2, %v12734_v9, -inf }
 0x3b1   : > { %1786 = vmax.xlane.f32.xlu0 %v1785_v6  ;;  %v12740_v19 = vpop.f32.mrf.mxu1  ;;  %v12764_v6 = vpop.permute.xlu1 %2427 }
 0x3b2   : > { %1789 = vmax.xlane.f32.xlu1 %v1788_v14  ;;  %v1782_v27 = vsel %vm1694_vm2, %v12740_v19, -inf  ;;  %v12762_v57 = vpop.permute.xlu0 %2419  ;;  %18451 = vst [vmem:[#allocation16_spill] sm:$0xff] %v12764_v6 }
 0x3b3   : > { %18450 = vst [vmem:[#allocation15_spill] sm:$0xff] %v12762_v57 }
 0x3b5   : > { %1780 = vmax.xlane.f32.xlu0 %v1779_v44  ;;  %v12768_v44 = vpop.permute.xlu1 %2536 }
 0x3b6   : > { %1783 = vmax.xlane.f32.xlu1 %v1782_v27  ;;  %v12766_v14 = vpop.permute.xlu0 %2334  ;;  %18453 = vst [vmem:[#allocation18_spill] sm:$0xff] %v12768_v44 }
 0x3b7   : > { %18452 = vst [vmem:[#allocation17_spill] sm:$0xff] %v12766_v14 }
 0x3b9   : > { %v12771_v29 = vpop.permute.xlu1 %2534 }
 0x3fe   : > { %v1703_v27 = vpop.xlane.xlu0 %1702 }
 0x3ff   : > { %v1793_v1 = vsub.f32 %v12618_v38, %v1703_v27 }
 0x401   : > { %v1827_v36 = vmul.f32 1.442695, %v1793_v1 }
 0x402   : > { %v1697_v40 = vpop.xlane.xlu0 %1696 }
 0x403   : > { %11143 = vpow2.f32 %v1827_v36  ;;  %v1791_v52 = vsub.f32 %v12622_v23, %v1697_v40 }
 0x404   : > { %v1700_v54 = vpop.xlane.xlu1 %1699 }
 0x405   : > { %v1823_v62 = vmul.f32 1.442695, %v1791_v52  ;;  %v1792_v57 = vsub.f32 %v12628_v46, %v1700_v54 }
 0x406   : > { %v1706_v16 = vpop.xlane.xlu0 %1705 }
 0x407   : > { %11145 = vpow2.f32 %v1823_v62  ;;  %v1794_v6 = vsub.f32 %v12624_v48, %v1706_v16  ;;  %v1825_v14 = vmul.f32 1.442695, %v1792_v57 }
 0x409   : > { %v1829_v44 = vmul.f32 1.442695, %v1794_v6 }
 0x40a   : > { %v1718_v22 = vpop.xlane.xlu1 %1717  ;;  %v1715_v37 = vpop.xlane.xlu0 %1714 }
 0x40b   : > { %11147 = vpow2.f32 %v1829_v44  ;;  %v1798_v38 = vsub.f32 %v12638_v8, %v1718_v22  ;;  %v1797_v1 = vsub.f32 %v12632_v49, %v1715_v37 }
 0x40c   : > { %11149 = vpow2.f32 %v1825_v14 }
 0x40d   : > { %v1837_v36 = vmul.f32 1.442695, %v1798_v38  ;;  %v1835_v40 = vmul.f32 1.442695, %v1797_v1 }
 0x40e   : > { %v1712_v23 = vpop.xlane.xlu1 %1711  ;;  %v1709_v52 = vpop.xlane.xlu0 %1708 }
 0x40f   : > { %v1796_v46 = vsub.f32 %v12644_v55, %v1712_v23  ;;  %v1795_v54 = vsub.f32 %v12636_v50, %v1709_v52  ;;  %11151 = vpow2.f32 %v1835_v40 }
 0x410   : > { %v12780_v62 = vpop.eup %11143  ;;  %11153 = vpow2.f32 %v1837_v36 }
 0x411   : > { %v1833_v16 = vmul.f32 1.442695, %v1796_v46  ;;  %v1831_v48 = vmul.f32 1.442695, %v1795_v54  ;;  %v1893_v8 = vsel %vm1694_vm2, %v12780_v62, 0.0 }
 0x412   : > { %v1730_v22 = vpop.xlane.xlu1 %1729  ;;  %1894 = vadd.xlane.f32.xlu0 %v1893_v8  ;;  %v1727_v37 = vpop.xlane.xlu0 %1726 }
 0x413   : > { %v1801_v49 = vsub.f32 %v12646_v51, %v1727_v37  ;;  %11155 = vpow2.f32 %v1831_v48  ;;  %v1802_v44 = vsub.f32 %v12654_v12, %v1730_v22 }
 0x414   : > { %v12785_v57 = vpop.eup %11145  ;;  %11157 = vpow2.f32 %v1833_v16 }
 0x415   : > { %v1843_v55 = vmul.f32 1.442695, %v1801_v49  ;;  %v1887_v50 = vsel %vm1694_vm2, %v12785_v57, 0.0  ;;  %v1845_v52 = vmul.f32 1.442695, %v1802_v44 }
 0x416   : > { %v1724_v6 = vpop.xlane.xlu1 %1723  ;;  %1888 = vadd.xlane.f32.xlu0 %v1887_v50  ;;  %v1721_v14 = vpop.xlane.xlu0 %1720 }
 0x417   : > { %v1799_v27 = vsub.f32 %v12652_v53, %v1721_v14  ;;  %11159 = vpow2.f32 %v1843_v55  ;;  %v1800_v53 = vsub.f32 %v12660_v24, %v1724_v6 }
 0x418   : > { %v12791_v38 = vpop.eup %11147 }
 0x419   : > { %v1839_v1 = vmul.f32 1.442695, %v1799_v27  ;;  %v1896_v51 = vsel %vm1694_vm2, %v12791_v38, 0.0  ;;  %v12795_v36 = vpop.eup %11149  ;;  %v1841_v55 = vmul.f32 1.442695, %v1800_v53 }
 0x41a   : > { %v1742_v40 = vpop.xlane.xlu1 %1741  ;;  %1897 = vadd.xlane.f32.xlu1 %v1896_v51  ;;  %v1739_v23 = vpop.xlane.xlu0 %1738  ;;  %v1890_v48 = vsel %vm1694_vm2, %v12795_v36, 0.0 }
 0x41b   : > { %v1806_v46 = vsub.f32 %v12670_v18, %v1742_v40  ;;  %v1805_v54 = vsub.f32 %v12662_v26, %v1739_v23  ;;  %11161 = vpow2.f32 %v1839_v1 }
 0x41c   : > { %v12799_v12 = vpop.eup %11151  ;;  %11163 = vpow2.f32 %v1845_v52 }
 0x41d   : > { %v1851_v16 = vmul.f32 1.442695, %v1805_v54  ;;  %v12804_v8 = vpop.eup %11153  ;;  %v1853_v22 = vmul.f32 1.442695, %v1806_v46  ;;  %v1905_v49 = vsel %vm1694_vm2, %v12799_v12, 0.0 }
 0x41e   : > { %v1736_v37 = vpop.xlane.xlu1 %1735  ;;  %1891 = vadd.xlane.f32.xlu1 %v1890_v48  ;;  %v1733_v18 = vpop.xlane.xlu0 %1732  ;;  %1906 = vadd.xlane.f32.xlu0 %v1905_v49  ;;  %v1908_v6 = vsel %vm1694_vm2, %v12804_v8, 0.0 }
 0x41f   : > { %v1804_v26 = vsub.f32 %v12676_v47, %v1736_v37  ;;  %11165 = vpow2.f32 %v1851_v16  ;;  %v1803_v50 = vsub.f32 %v12668_v33, %v1733_v18 }
 0x420   : > { %v12809_v24 = vpop.eup %11155  ;;  %11167 = vpow2.f32 %v1853_v22 }
 0x421   : > { %v12814_v14 = vpop.eup %11157  ;;  %v1849_v44 = vmul.f32 1.442695, %v1804_v26  ;;  %v1899_v27 = vsel %vm1694_vm2, %v12809_v24, 0.0  ;;  %11169 = vpow2.f32 %v1841_v55  ;;  %v1847_v40 = vmul.f32 1.442695, %v1803_v50 }
 0x422   : > { %1909 = vadd.xlane.f32.xlu1 %v1908_v6  ;;  %v1751_v1 = vpop.xlane.xlu0 %1750  ;;  %1900 = vadd.xlane.f32.xlu0 %v1899_v27  ;;  %v1902_v33 = vsel %vm1694_vm2, %v12814_v14, 0.0 }
 0x423   : > { %v1754_v47 = vpop.xlane.xlu1 %1753  ;;  %v1809_v51 = vsub.f32 %v12678_v4, %v1751_v1  ;;  %11171 = vpow2.f32 %v1849_v44 }
 0x424   : > { %v12821_v23 = vpop.eup %11159  ;;  %v1810_v16 = vsub.f32 %v12686_v28, %v1754_v47  ;;  %11173 = vpow2.f32 %v1847_v40 }
 0x425   : > { %v1859_v52 = vmul.f32 1.442695, %v1809_v51  ;;  %v1917_v4 = vsel %vm1694_vm2, %v12821_v23, 0.0 }
 0x426   : > { %1903 = vadd.xlane.f32.xlu1 %v1902_v33  ;;  %v1745_v46 = vpop.xlane.xlu0 %1744  ;;  %v1861_v55 = vmul.f32 1.442695, %v1810_v16 }
 0x427   : > { %v1748_v54 = vpop.xlane.xlu1 %1747  ;;  %v1807_v53 = vsub.f32 %v12684_v7, %v1745_v46  ;;  %11175 = vpow2.f32 %v1859_v52 }
 0x428   : > { %v12827_v22 = vpop.eup %11161  ;;  %v1808_v7 = vsub.f32 %v12692_v60, %v1748_v54 }
 0x429   : > { %v1855_v48 = vmul.f32 1.442695, %v1807_v53  ;;  %v12830_v26 = vpop.eup %11163  ;;  %v1911_v6 = vsel %vm1694_vm2, %v12827_v22, 0.0 }
 0x42a   : > { %1918 = vadd.xlane.f32.xlu1 %v1917_v4  ;;  %v1763_v37 = vpop.xlane.xlu0 %1762  ;;  %v1920_v60 = vsel %vm1694_vm2, %v12830_v26, 0.0  ;;  %v1857_v40 = vmul.f32 1.442695, %v1808_v7 }
 0x42b   : > { %v1766_v49 = vpop.xlane.xlu1 %1765  ;;  %v1813_v18 = vsub.f32 %v12694_v61, %v1763_v37  ;;  %11177 = vpow2.f32 %v1855_v48 }
 0x42c   : > { %v12832_v50 = vpop.eup %11165  ;;  %v1814_v44 = vsub.f32 %v12702_v13, %v1766_v49 }
 0x42d   : > { %v1867_v28 = vmul.f32 1.442695, %v1813_v18  ;;  %v1929_v27 = vsel %vm1694_vm2, %v12832_v50, 0.0  ;;  %v12840_v61 = vpop.eup %11167 }
 0x42e   : > { %1912 = vadd.xlane.f32.xlu1 %v1911_v6  ;;  %v1757_v1 = vpop.xlane.xlu0 %1756  ;;  %1930 = vadd.xlane.f32.xlu0 %v1929_v27  ;;  %v12846_v52 = vpop.eup %11169  ;;  %v1869_v46 = vmul.f32 1.442695, %v1814_v44  ;;  %v1932_v54 = vsel %vm1694_vm2, %v12840_v61, 0.0 }
 0x42f   : > { %11179 = vpow2.f32 %v1867_v28  ;;  %v1760_v47 = vpop.xlane.xlu1 %1759  ;;  %v1811_v51 = vsub.f32 %v12700_v3, %v1757_v1 }
 0x430   : > { %11181 = vpow2.f32 %v1861_v55  ;;  %v1812_v33 = vsub.f32 %v12708_v10, %v1760_v47  ;;  %v12850_v16 = vpop.eup %11171  ;;  %v1914_v10 = vsel %vm1694_vm2, %v12846_v52, 0.0 }
 0x431   : > { %v1863_v13 = vmul.f32 1.442695, %v1811_v51  ;;  %v12855_v37 = vpop.eup %11173  ;;  %v1926_v18 = vsel %vm1694_vm2, %v12850_v16, 0.0 }
 0x432   : > { %1921 = vadd.xlane.f32.xlu1 %v1920_v60  ;;  %v1775_v53 = vpop.xlane.xlu0 %1774  ;;  %1933 = vadd.xlane.f32.xlu0 %v1932_v54  ;;  %v1865_v4 = vmul.f32 1.442695, %v1812_v33  ;;  %v1923_v27 = vsel %vm1694_vm2, %v12855_v37, 0.0 }
 0x433   : > { %11183 = vpow2.f32 %v1863_v13  ;;  %v1778_v3 = vpop.xlane.xlu1 %1777  ;;  %v1817_v48 = vsub.f32 %v12710_v42, %v1775_v53 }
 0x434   : > { %11185 = vpow2.f32 %v1857_v40  ;;  %v12859_v7 = vpop.eup %11175  ;;  %v1818_v44 = vsub.f32 %v12718_v31, %v1778_v3 }
 0x435   : > { %11187 = vpow2.f32 %v1869_v46  ;;  %v1875_v49 = vmul.f32 1.442695, %v1817_v48  ;;  %v1941_v60 = vsel %vm1694_vm2, %v12859_v7, 0.0 }
 0x436   : > { %1915 = vadd.xlane.f32.xlu1 %v1914_v10  ;;  %v1769_v55 = vpop.xlane.xlu0 %1768  ;;  %1927 = vadd.xlane.f32.xlu0 %v1926_v18  ;;  %11189 = vpow2.f32 %v1865_v4  ;;  %v1877_v33 = vmul.f32 1.442695, %v1818_v44 }
 0x437   : > { %v1772_v28 = vpop.xlane.xlu1 %1771  ;;  %v1815_v42 = vsub.f32 %v12716_v17, %v1769_v55  ;;  %11191 = vpow2.f32 %v1875_v49 }
 0x438   : > { %v1816_v6 = vsub.f32 %v12724_v43, %v1772_v28  ;;  %v12866_v1 = vpop.eup %11177 }
 0x439   : > { %v1871_v51 = vmul.f32 1.442695, %v1815_v42  ;;  %v1935_v17 = vsel %vm1694_vm2, %v12866_v1, 0.0 }
 0x43a   : > { %v1873_v47 = vmul.f32 1.442695, %v1816_v6  ;;  %1924 = vadd.xlane.f32.xlu1 %v1923_v27  ;;  %1942 = vadd.xlane.f32.xlu0 %v1941_v60 }
 0x43c   : > { %v12870_v40 = vpop.eup %11179  ;;  %11193 = vpow2.f32 %v1873_v47 }
 0x43d   : > { %v1953_v31 = vsel %vm1694_vm2, %v12870_v40, 0.0  ;;  %v12876_v43 = vpop.eup %11181  ;;  %11195 = vpow2.f32 %v1871_v51  ;;  %v1787_v51 = vpop.xlane.xlu0 %1786 }
 0x43e   : > { %1936 = vadd.xlane.f32.xlu1 %v1935_v17  ;;  %1954 = vadd.xlane.f32.xlu0 %v1953_v31  ;;  %v1944_v46 = vsel %vm1694_vm2, %v12876_v43, 0.0  ;;  %11197 = vpow2.f32 %v1877_v33  ;;  %v1790_v31 = vpop.xlane.xlu1 %1789 }
 0x440   : > { %v12878_v13 = vpop.eup %11183 }
 0x441   : > { %v1947_v54 = vsel %vm1694_vm2, %v12878_v13, 0.0  ;;  %v12884_v53 = vpop.eup %11185  ;;  %v1781_v60 = vpop.xlane.xlu0 %1780 }
 0x442   : > { %1945 = vadd.xlane.f32.xlu1 %v1944_v46  ;;  %v12886_v3 = vpop.eup %11187  ;;  %1948 = vadd.xlane.f32.xlu0 %v1947_v54  ;;  %v1938_v48 = vsel %vm1694_vm2, %v12884_v53, 0.0  ;;  %v1819_v17 = vsub.f32 %v12732_v11, %v1781_v60  ;;  %v1821_v46 = vsub.f32 %v12726_v58, %v1787_v51  ;;  %v1822_v54 = vsub.f32 %v12734_v9, %v1790_v31 }
 0x443   : > { %v12890_v4 = vpop.eup %11189  ;;  %v1956_v10 = vsel %vm1694_vm2, %v12886_v3, 0.0 }
 0x444   : > { %v12894_v49 = vpop.eup %11191  ;;  %v1950_v18 = vsel %vm1694_vm2, %v12890_v4, 0.0  ;;  %v1879_v33 = vmul.f32 1.442695, %v1819_v17 }
 0x445   : > { %v1965_v28 = vsel %vm1694_vm2, %v12894_v49, 0.0 }
 0x446   : > { %1939 = vadd.xlane.f32.xlu1 %v1938_v48  ;;  %1957 = vadd.xlane.f32.xlu0 %v1956_v10  ;;  %11199 = vpow2.f32 %v1879_v33  ;;  %v1883_v48 = vmul.f32 1.442695, %v1821_v46  ;;  %v1784_v10 = vpop.xlane.xlu1 %1783 }
 0x448   : > { %11201 = vpow2.f32 %v1883_v48 }
 0x449   : > { %v12898_v55 = vpop.eup %11193 }
 0x44a   : > { %1951 = vadd.xlane.f32.xlu1 %v1950_v18  ;;  %v12902_v42 = vpop.eup %11195  ;;  %1966 = vadd.xlane.f32.xlu0 %v1965_v28  ;;  %v1962_v6 = vsel %vm1694_vm2, %v12898_v55, 0.0  ;;  %v1885_v18 = vmul.f32 1.442695, %v1822_v54  ;;  %v1820_v28 = vsub.f32 %v12740_v19, %v1784_v10 }
 0x44b   : > { %v1959_v44 = vsel %vm1694_vm2, %v12902_v42, 0.0  ;;  %v12908_v27 = vpop.eup %11197 }
 0x44c   : > { %v1968_v47 = vsel %vm1694_vm2, %v12908_v27, 0.0  ;;  %11203 = vpow2.f32 %v1885_v18 }
 0x44e   : > { %1963 = vadd.xlane.f32.xlu1 %v1962_v6  ;;  %1960 = vadd.xlane.f32.xlu0 %v1959_v44  ;;  %v1881_v6 = vmul.f32 1.442695, %v1820_v28 }
 0x450   : > { %11205 = vpow2.f32 %v1881_v6 }
 0x452   : > { %1969 = vadd.xlane.f32.xlu0 %v1968_v47 }
 0x453   : > { %v12920_v44 = vpop.eup %11199 }
 0x454   : > { %v1971_v11 = vsel %vm1694_vm2, %v12920_v44, 0.0 }
 0x455   : > { %v12924_v47 = vpop.eup %11201 }
 0x456   : > { %v1977_v58 = vsel %vm1694_vm2, %v12924_v47, 0.0 }
 0x459   : > { %v12928_v9 = vpop.eup %11203 }
 0x45a   : > { %v1980_v19 = vsel %vm1694_vm2, %v12928_v9, 0.0 }
 0x45d   : > { %v12932_v51 = vpop.eup %11205 }
 0x45e   : > { %v1974_v60 = vsel %vm1694_vm2, %v12932_v51, 0.0 }
 0x45f   : > { %2421 = vrot.lane.b32.xlu1 %v12461_v21, %s11856_s25 }
 0x468   : > { %2643 = vrot.lane.b32.xlu0 %v12493_v15, %s11855_s23 }
 0x483   : > { %1972 = vadd.xlane.f32.xlu1 %v1971_v11 }
 0x487   : > { %1978 = vadd.xlane.f32.xlu0 %v1977_v58 }
 0x48b   : > { %1981 = vadd.xlane.f32.xlu0 %v1980_v19 }
 0x48f   : > { %1975 = vadd.xlane.f32.xlu0 %v1974_v60 }
 0x494   : > { %2641 = vrot.lane.b32.xlu1 %v12497_v32, %s11855_s23 }
 0x498   : > { %2639 = vrot.lane.b32.xlu1 %v12485_v45, %s11855_s23 }
 0x49b   : > { %v1895_v17 = vpop.xlane.xlu0 %1894 }
 0x49c   : > { %2526 = vrot.lane.b32.xlu1 %v12465_v56, %s11856_s25 }
 0x49f   : > { %v1889_v31 = vpop.xlane.xlu0 %1888 }
 0x4a0   : > { %2425 = vrot.lane.b32.xlu1 %v12453_v41, %s11856_s25 }
 0x4a3   : > { %v1898_v33 = vpop.xlane.xlu1 %1897 }
 0x4a4   : > { %2746 = vrot.lane.b32.xlu1 %v12511_v20, %s11855_s23  ;;  %11207 = vrcp.f32 %v1898_v33 }
 0x4a5   : > { %11209 = vrcp.f32 %v1889_v31  ;;  %2532 = vrot.lane.b32.xlu0 %v12469_v59, %s11855_s23 }
 0x4a6   : > { %11211 = vrcp.f32 %v1895_v17 }
 0x4a7   : > { %v1892_v46 = vpop.xlane.xlu1 %1891  ;;  %v1907_v54 = vpop.xlane.xlu0 %1906 }
 0x4a8   : > { %11213 = vrcp.f32 %v1892_v46  ;;  %2631 = vrot.lane.b32.xlu1 %v12485_v45, %s11856_s25 }
 0x4a9   : > { %2524 = vrot.lane.b32.xlu0 %v12469_v59, %s11856_s25 }
 0x4ab   : > { %v1910_v48 = vpop.xlane.xlu1 %1909  ;;  %v1901_v10 = vpop.xlane.xlu0 %1900 }
 0x4ac   : > { %2528 = vrot.lane.b32.xlu1 %v12481_v63, %s11856_s25  ;;  %11215 = vrcp.f32 %v1910_v48 }
 0x4ad   : > { %11217 = vrcp.f32 %v1901_v10  ;;  %2748 = vrot.lane.b32.xlu0 %v12506_v39, %s11855_s23 }
 0x4ae   : > { %11219 = vrcp.f32 %v1907_v54 }
 0x4af   : > { %v1904_v18 = vpop.xlane.xlu1 %1903 }
 0x4b0   : > { %11221 = vrcp.f32 %v1904_v18  ;;  %2742 = vrot.lane.b32.xlu1 %v12516_v5, %s11855_s23 }
 0x4b1   : > { %v11208_v28 = vpop.eup %11207  ;;  %2423 = vrot.lane.b32.xlu0 %v12455_v35, %s11856_s25 }
 0x4b2   : > { %v11210_v6 = vpop.eup %11209  ;;  %v2018_v60 = vmul.f32 %v11208_v28, %v12791_v38 }
 0x4b3   : > { %v1919_v11 = vpop.xlane.xlu1 %1918  ;;  %v11212_v58 = vpop.eup %11211  ;;  %v2015_v17 = vmul.f32 %v11210_v6, %v12785_v57 }
 0x4b4   : > { %2736 = vrot.lane.b32.xlu1 %v12501_v34, %s11856_s25  ;;  %v2017_v33 = vmul.f32 %v11212_v58, %v12780_v62 }
 0x4b5   : > { %v11214_v19 = vpop.eup %11213  ;;  %2637 = vrot.lane.b32.xlu0 %v12489_v25, %s11855_s23 }
 0x4b6   : > { %v2016_v31 = vmul.f32 %v11214_v19, %v12795_v36  ;;  %v2048_v10 = vpack.c.bf16 %v2018_v60, %v2017_v33 }
 0x4b7   : > { %v1913_v46 = vpop.xlane.xlu1 %1912  ;;  %v1931_v54 = vpop.xlane.xlu0 %1930 }
 0x4b8   : > { %2635 = vrot.lane.b32.xlu1 %v12493_v15, %s11856_s25  ;;  %v2047_v48 = vpack.c.bf16 %v2016_v31, %v2015_v17 }
 0x4b9   : > { %v11216_v18 = vpop.eup %11215  ;;  %2629 = vrot.lane.b32.xlu0 %v12489_v25, %s11856_s25 }
 0x4ba   : > { %10109 = vmatprep.mubr.msk.bf16.mxu0 %vm1694_vm2, %v2047_v48  ;;  %v11218_v38 = vpop.eup %11217  ;;  %v2022_v6 = vmul.f32 %v11216_v18, %v12804_v8 }
 0x4bb   : > { %v1922_v28 = vpop.xlane.xlu1 %1921  ;;  %10110 = vmatmul.mubr.msk.bf16.vlgmr.msra.gmra.mxu0 %vm1694_vm2, %v2048_v10  ;;  %v11220_v57 = vpop.eup %11219  ;;  %v2019_v58 = vmul.f32 %v11218_v38, %v12809_v24  ;;  %v18454_v24 = vld [vmem:[#allocation4_spill] sm:$0xff] }
 0x4bc   : > { %10118 = vmatpush3.bf16.msra.mxu0 %v12600_v0  ;;  %v1934_v62 = vpop.xlane.xlu0 %1933  ;;  %2740 = vrot.lane.b32.xlu1 %v12506_v39, %s11856_s25  ;;  %11223 = vrcp.f32 %v1922_v28  ;;  %v2021_v60 = vmul.f32 %v11220_v57, %v12799_v12  ;;  %v18455_v12 = vld [vmem:[#allocation9_spill] sm:$0xff] }
 0x4bd   : > { %v11222_v36 = vpop.eup %11221  ;;  %10119 = vmatprep.subr.bf16.mxu0 %v12746_v2  ;;  %11225 = vrcp.f32 %v1913_v46  ;;  %2744 = vrot.lane.b32.xlu0 %v12501_v34, %s11855_s23  ;;  %v18456_v46 = vld [vmem:[#allocation7_spill] sm:$0xff] }
 0x4be   : > { %v2020_v19 = vmul.f32 %v11222_v36, %v12814_v14  ;;  %11227 = vrcp.f32 %v1919_v11  ;;  %v2050_v31 = vpack.c.bf16 %v2022_v6, %v2021_v60 }
 0x4bf   : > { %v1916_v0 = vpop.xlane.xlu1 %1915 }
 0x4c0   : > { %11229 = vrcp.f32 %v1916_v0  ;;  %10120 = vmatpush3.bf16.msra.mxu0 %v12746_v2  ;;  %v1928_v17 = vpop.xlane.xlu0 %1927  ;;  %3211 = vrot.lane.b32.xlu1 %v12455_v35, %s11857_s26  ;;  %v2049_v8 = vpack.c.bf16 %v2020_v19, %v2019_v58 }
 0x4c1   : > { %10121 = vmatprep.subr.bf16.mxu0 %v12748_v30  ;;  %11231 = vrcp.f32 %v1928_v17  ;;  %2530 = vrot.lane.b32.xlu0 %v18454_v24, %s11856_s25 }
 0x4c2   : > { %10113 = vmatprep.mubr.msk.bf16.mxu0 %vm1694_vm2, %v2049_v8 }
 0x4c3   : > { %v1925_v14 = vpop.xlane.xlu1 %1924  ;;  %10114 = vmatmul.mubr.msk.bf16.gmra.mxu0 %vm1694_vm2, %v2050_v31 }
 0x4c4   : > { %11233 = vrcp.f32 %v1925_v14  ;;  %10122 = vmatpush3.bf16.msra.mxu0 %v12748_v30  ;;  %v1943_v2 = vpop.xlane.xlu0 %1942  ;;  %3209 = vrot.lane.b32.xlu1 %v12461_v21, %s11857_s26 }
 0x4c5   : > { %11235 = vrcp.f32 %v1934_v62  ;;  %10123 = vmatprep.subr.bf16.mxu0 %v18455_v12  ;;  %2734 = vrot.lane.b32.xlu0 %v12516_v5, %s11856_s25 }
 0x4c6   : > { %11237 = vrcp.f32 %v1931_v54 }
 0x4c7   : > { %v1937_v11 = vpop.xlane.xlu1 %1936 }
 0x4c8   : > { %10124 = vmatpush3.bf16.msra.mxu0 %v18455_v12  ;;  %v1955_v33 = vpop.xlane.xlu0 %1954  ;;  %3302 = vrot.lane.b32.xlu1 %v18454_v24, %s11857_s26 }
 0x4c9   : > { %10149 = vmatprep.subr.bf16.mxu0 %v18456_v46  ;;  %v11224_v30 = vpop.eup %11223  ;;  %2633 = vrot.lane.b32.xlu0 %v12497_v32, %s11856_s25 }
 0x4ca   : > { %v11226_v48 = vpop.eup %11225  ;;  %v2026_v28 = vmul.f32 %v11224_v30, %v12830_v26  ;;  %v18459_v30 = vld [vmem:[#allocation10_spill] sm:$0xff] }
 0x4cb   : > { %v1946_v10 = vpop.xlane.xlu1 %1945  ;;  %v11228_v18 = vpop.eup %11227  ;;  %v2023_v57 = vmul.f32 %v11226_v48, %v12827_v22 }
 0x4cc   : > { %v1949_v38 = vpop.xlane.xlu0 %1948  ;;  %3389 = vrot.lane.b32.xlu1 %v12497_v32, %s11857_s26  ;;  %11239 = vrcp.f32 %v1946_v10  ;;  %v2025_v6 = vmul.f32 %v11228_v18, %v12821_v23 }
 0x4cd   : > { %v11230_v54 = vpop.eup %11229  ;;  %11241 = vrcp.f32 %v1937_v11  ;;  %2738 = vrot.lane.b32.xlu0 %v12511_v20, %s11856_s25  ;;  %s18100_s25 = scalar_lea.vmem %s18247_s15, %s9665_s21 }
 0x4ce   : > { %v2024_v62 = vmul.f32 %v11230_v54, %v12846_v52  ;;  %v11232_v36 = vpop.eup %11231  ;;  %11243 = vrcp.f32 %v1943_v2  ;;  %v2052_v60 = vpack.c.bf16 %v2026_v28, %v2025_v6  ;;  %v18457_v2 = vld [vmem:[#allocation17_spill] sm:$0xff]  ;;  %v18460_v54 = vld [vmem:[#allocation12_spill] sm:$0xff] }
 0x4cf   : > { %v1940_v58 = vpop.xlane.xlu1 %1939  ;;  %v2028_v23 = vmul.f32 %v11232_v36, %v12850_v16 }
 0x4d0   : > { %11245 = vrcp.f32 %v1940_v58  ;;  %v1958_v19 = vpop.xlane.xlu0 %1957  ;;  %3387 = vrot.lane.b32.xlu1 %v12485_v45, %s11857_s26  ;;  %v2051_v26 = vpack.c.bf16 %v2024_v62, %v2023_v57  ;;  %v18461_v58 = vld [vmem:[#allocation14_spill] sm:$0xff] }
 0x4d1   : > { %v11234_v0 = vpop.eup %11233  ;;  %11247 = vrcp.f32 %v1949_v38  ;;  %3213 = vrot.lane.b32.xlu0 %v12453_v41, %s11857_s26 }
 0x4d2   : > { %v11236_v17 = vpop.eup %11235  ;;  %10125 = vmatprep.mubr.msk.bf16.mxu0 %vm1694_vm2, %v2051_v26  ;;  %v2027_v22 = vmul.f32 %v11234_v0, %v12855_v37  ;;  %v18458_v37 = vld [vmem:[#allocation2_spill] sm:$0xff] }
 0x4d3   : > { %v1952_v52 = vpop.xlane.xlu1 %1951  ;;  %10126 = vmatmul.mubr.msk.bf16.vlgmr.msra.gmra.mxu0 %vm1694_vm2, %v2052_v60  ;;  %v11238_v8 = vpop.eup %11237  ;;  %v2030_v12 = vmul.f32 %v11236_v17, %v12840_v61 }
 0x4d4   : > { %11249 = vrcp.f32 %v1952_v52  ;;  %10150 = vmatpush3.bf16.msra.mxu0 %v18456_v46  ;;  %v1967_v31 = vpop.xlane.xlu0 %1966  ;;  %3385 = vrot.lane.b32.xlu1 %v12489_v25, %s11857_s26  ;;  %v2053_v14 = vpack.c.bf16 %v2028_v23, %v2027_v22  ;;  %v2029_v11 = vmul.f32 %v11238_v8, %v12832_v50  ;;  %v18463_v23 = vld [vmem:[#allocation11_spill] sm:$0xff] }
 0x4d5   : > { %11251 = vrcp.f32 %v1958_v19  ;;  %10151 = vmatprep.subr.bf16.mxu0 %v18457_v2  ;;  %3207 = vrot.lane.b32.xlu0 %v18458_v37, %s11857_s26 }
 0x4d6   : > { %10129 = vmatprep.mubr.msk.bf16.mxu0 %vm1694_vm2, %v2053_v14  ;;  %11253 = vrcp.f32 %v1955_v33  ;;  %v2054_v61 = vpack.c.bf16 %v2030_v12, %v2029_v11 }
 0x4d7   : > { %v1964_v16 = vpop.xlane.xlu1 %1963 }
 0x4d8   : > { %11255 = vrcp.f32 %v1964_v16  ;;  %10152 = vmatpush3.bf16.msra.mxu0 %v18457_v2  ;;  %v1961_v46 = vpop.xlane.xlu0 %1960  ;;  %3480 = vrot.lane.b32.xlu1 %v12506_v39, %s11857_s26 }
 0x4d9   : > { %11257 = vrcp.f32 %v1961_v46  ;;  %10153 = vmatprep.subr.bf16.mxu0 %v18459_v30  ;;  %v11240_v48 = vpop.eup %11239  ;;  %3391 = vrot.lane.b32.xlu0 %v12493_v15, %s11857_s26  ;;  %v18466_v46 = vld [vmem:[#allocation18_spill] sm:$0xff] }
 0x4da   : > { %v11242_v10 = vpop.eup %11241  ;;  %11259 = vrcp.f32 %v1967_v31  ;;  %v2034_v38 = vmul.f32 %v11240_v48, %v12876_v43  ;;  %v2559_v48 = vsel %vm1301_vm1, %v18466_v46, 0 }
 0x4db   : > { %10130 = vmatmul.mubr.msk.bf16.gmra.mxu0 %vm1694_vm2, %v2054_v61  ;;  %v11244_v50 = vpop.eup %11243  ;;  %v2031_v28 = vmul.f32 %v11242_v10, %v12866_v1  ;;  %v18467_v61 = vld [vmem:[#allocation16_spill] sm:$0xff] }
 0x4dc   : > { %10154 = vmatpush3.bf16.msra.mxu0 %v18459_v30  ;;  %v1970_v33 = vpop.xlane.xlu0 %1969  ;;  %3577 = vrot.lane.b32.xlu1 %v12453_v41, %s11858_s27  ;;  %v2033_v36 = vmul.f32 %v11244_v50, %v12859_v7  ;;  %v2448_v10 = vsel %vm1301_vm1, %v18467_v61, 0 }
 0x4dd   : > { %v11246_v18 = vpop.eup %11245  ;;  %11261 = vrcp.f32 %v1970_v33  ;;  %10155 = vmatprep.subr.bf16.mxu0 %v18460_v54  ;;  %3300 = vrot.lane.b32.xlu0 %v12481_v63, %s11857_s26  ;;  %v2556_v33 = vsel %vm1301_vm1, %v12771_v29, 0 }
 0x4de   : > { %v2032_v57 = vmul.f32 %v11246_v18, %v12884_v53  ;;  %v11248_v62 = vpop.eup %11247  ;;  %v2056_v19 = vpack.c.bf16 %v2034_v38, %v2033_v36  ;;  %v18462_v53 = vld [vmem:[#allocation8_spill] sm:$0xff]  ;;  %v2422_v18 = vpop.permute.xlu1 %2421 }
 0x4df   : > { %v2035_v1 = vmul.f32 %v11248_v62, %v12878_v13  ;;  %v2457_v0 = vsel %vm1301_vm1, %v18462_v53, 0 }
 0x4e0   : > { %10156 = vmatpush3.bf16.msra.mxu0 %v18460_v54  ;;  %3476 = vrot.lane.b32.xlu1 %v12501_v34, %s11857_s26  ;;  %v2055_v6 = vpack.c.bf16 %v2032_v57, %v2031_v28  ;;  %v2644_v50 = vpop.permute.xlu0 %2643 }
 0x4e1   : > { %v11250_v43 = vpop.eup %11249  ;;  %10689 = vmatprep.subr.msk.bf16.mxu0 %vm1301_vm1, %v18461_v58  ;;  %3298 = vrot.lane.b32.xlu0 %v12465_v56, %s11857_s26  ;;  %v2667_v38 = vsel %vm1301_vm1, %v2644_v50, 0 }
 0x4e2   : > { %v11252_v26 = vpop.eup %11251  ;;  %10141 = vmatprep.mubr.msk.bf16.mxu1 %vm1694_vm2, %v2055_v6  ;;  %v2036_v7 = vmul.f32 %v11250_v43, %v12890_v4 }
 0x4e3   : > { %10142 = vmatmul.mubr.msk.bf16.vlgmr.msra.gmra.mxu1 %vm1694_vm2, %v2056_v19  ;;  %v11254_v60 = vpop.eup %11253  ;;  %v2038_v52 = vmul.f32 %v11252_v26, %v12886_v3 }
 0x4e4   : > { %10166 = vmatpush3.bf16.xpose.msra.mxu1 %v2457_v0  ;;  %3474 = vrot.lane.b32.xlu1 %v12516_v5, %s11857_s26  ;;  %v2057_v17 = vpack.c.bf16 %v2036_v7, %v2035_v1  ;;  %v2037_v31 = vmul.f32 %v11254_v60, %v12870_v40  ;;  %v2454_v40 = vsel %vm1301_vm1, %v18463_v23, 0 }
 0x4e5   : > { %v11256_v22 = vpop.eup %11255  ;;  %10686 = vmatprep.subr.msk.bf16.mxu1 %vm1301_vm1, %v18463_v23  ;;  %3296 = vrot.lane.b32.xlu0 %v12469_v59, %s11857_s26 }
 0x4e6   : > { %v11258_v13 = vpop.eup %11257  ;;  %10145 = vmatprep.mubr.msk.bf16.mxu1 %vm1694_vm2, %v2057_v17  ;;  %v2040_v4 = vmul.f32 %v11256_v22, %v12898_v55  ;;  %v2058_v12 = vpack.c.bf16 %v2038_v52, %v2037_v31  ;;  %v18464_v55 = vld [vmem:[#allocation13_spill] sm:$0xff] }
 0x4e7   : > { %v2039_v8 = vmul.f32 %v11258_v13, %v12902_v42  ;;  %v11260_v14 = vpop.eup %11259  ;;  %v18465_v42 = vld [vmem:[#allocation15_spill] sm:$0xff]  ;;  %v2451_v30 = vsel %vm1301_vm1, %v18464_v55, 0 }
 0x4e8   : > { %3682 = vrot.lane.b32.xlu1 %v18454_v24, %s11858_s27  ;;  %v2041_v3 = vmul.f32 %v11260_v14, %v12894_v49 }
 0x4e9   : > { %v2059_v2 = vpack.c.bf16 %v2040_v4, %v2039_v8  ;;  %3478 = vrot.lane.b32.xlu0 %v12511_v20, %s11857_s26 }
 0x4ea   : > { %v11262_v16 = vpop.eup %11261 }
 0x4eb   : > { %v2042_v11 = vmul.f32 %v11262_v16, %v12908_v27  ;;  %10157 = vmatprep.mubr.msk.bf16.mxu0 %vm1694_vm2, %v2059_v2  ;;  %10146 = vmatmul.mubr.msk.bf16.gmra.mxu1 %vm1694_vm2, %v2058_v12  ;;  %v2562_v27 = vsel %vm1301_vm1, %v18461_v58, 0 }
 0x4ec   : > { %10168 = vmatpush3.bf16.xpose.msra.mxu1 %v2454_v40  ;;  %3571 = vrot.lane.b32.xlu1 %v18458_v37, %s11858_s27 }
 0x4ed   : > { %10687 = vmatprep.subr.msk.bf16.mxu1 %vm1301_vm1, %v18464_v55  ;;  %10173 = vmatprep.mubr.msk.bf16.mxu1 %vm1301_vm1, %v18465_v42  ;;  %v2060_v49 = vpack.c.bf16 %v2042_v11, %v2041_v3 }
 0x4ee   : > { %3575 = vrot.lane.b32.xlu0 %v12455_v35, %s11858_s27 }
 0x4ef   : > { %10158 = vmatmul.mubr.msk.bf16.vlgmr.msra.gmra.mxu0 %vm1694_vm2, %v2060_v49 }
 0x4f0   : > { %10182 = vmatpush3.bf16.xpose.msra.mxu0 %v2562_v27  ;;  %3680 = vrot.lane.b32.xlu1 %v12481_v63, %s11858_s27 }
 0x4f1   : > { %10690 = vmatprep.subr.msk.bf16.mxu0 %vm1301_vm1, %v18466_v46 }
 0x4f2   : > { %3573 = vrot.lane.b32.xlu0 %v12461_v21, %s11858_s27 }
 0x4f4   : > { %10170 = vmatpush3.bf16.xpose.msra.mxu1 %v2451_v30  ;;  %3678 = vrot.lane.b32.xlu1 %v12465_v56, %s11858_s27 }
 0x4f5   : > { %10688 = vmatprep.subr.msk.bf16.mxu1 %vm1301_vm1, %v18467_v61 }
 0x4f6   : > { %3563 = vrot.lane.b32.xlu0 %v18458_v37, %s11859_s28 }
 0x4f8   : > { %10184 = vmatpush3.bf16.xpose.msra.mxu0 %v2559_v48 }
 0x4f9   : > { %10691 = vmatprep.subr.msk.bf16.mxu0 %vm1301_vm1, %v12771_v29 }
 0x4fc   : > { %10172 = vmatpush3.bf16.xpose.msra.mxu1 %v2448_v10 }
 0x4fd   : > { %10693 = vmatprep.subr.msk.bf16.mxu1 %vm1301_vm1, %v2644_v50 }
 0x500   : > { %10186 = vmatpush3.bf16.xpose.msra.mxu0 %v2556_v33 }
 0x503   : > { %10174 = vmatmul.mubr.msk.bf16.vlgmr.msra.gmra.mxu1 %vm1301_vm1, %v2422_v18 }
 0x504   : > { %10198 = vmatpush3.bf16.xpose.msra.mxu1 %v2667_v38 }
 0x50c   : > { %v1973_v54 = vpop.xlane.xlu1 %1972 }
 0x510   : > { %v2642_v28 = vpop.permute.xlu1 %2641  ;;  %v1979_v57 = vpop.xlane.xlu0 %1978 }
 0x511   : > { %10694 = vmatprep.subr.msk.bf16.mxu1 %vm1301_vm1, %v2642_v28  ;;  %v2664_v62 = vsel %vm1301_vm1, %v2642_v28, 0 }
 0x512   : > { %10200 = vmatpush3.bf16.xpose.msra.mxu1 %v2664_v62 }
 0x514   : > { %v2640_v36 = vpop.permute.xlu1 %2639  ;;  %v1982_v6 = vpop.xlane.xlu0 %1981 }
 0x515   : > { %10695 = vmatprep.subr.msk.bf16.mxu1 %vm1301_vm1, %v2640_v36  ;;  %11263 = vrcp.f32 %v1982_v6  ;;  %v2661_v58 = vsel %vm1301_vm1, %v2640_v36, 0 }
 0x516   : > { %11265 = vrcp.f32 %v1973_v54 }
 0x517   : > { %11267 = vrcp.f32 %v1979_v57 }
 0x518   : > { %v2527_v29 = vpop.permute.xlu1 %2526  ;;  %v1976_v43 = vpop.xlane.xlu0 %1975 }
 0x519   : > { %11269 = vrcp.f32 %v1976_v43 }
 0x51a   : > { %10202 = vmatpush3.bf16.xpose.msra.mxu1 %v2661_v58 }
 0x51c   : > { %v2426_v19 = vpop.permute.xlu1 %2425  ;;  %v2533_v26 = vpop.permute.xlu0 %2532 }
 0x51d   : > { %10692 = vmatprep.subr.msk.bf16.mxu0 %vm1301_vm1, %v2533_v26  ;;  %v2553_v1 = vsel %vm1301_vm1, %v2533_v26, 0 }
 0x51e   : > { %10188 = vmatpush3.bf16.xpose.msra.mxu0 %v2553_v1 }
 0x520   : > { %v2747_v7 = vpop.permute.xlu1 %2746  ;;  %v2525_v53 = vpop.permute.xlu0 %2524 }
 0x521   : > { %v2769_v27 = vsel %vm1301_vm1, %v2747_v7, 0 }
 0x522   : > { %v11264_v0 = vpop.eup %11263 }
 0x523   : > { %v11266_v17 = vpop.eup %11265  ;;  %v2046_v13 = vmul.f32 %v11264_v0, %v12928_v9 }
 0x524   : > { %v2632_v60 = vpop.permute.xlu1 %2631  ;;  %v2749_v22 = vpop.permute.xlu0 %2748  ;;  %v2043_v8 = vmul.f32 %v11266_v17, %v12920_v44 }
 0x525   : > { %v11268_v23 = vpop.eup %11267  ;;  %10697 = vmatprep.subr.msk.bf16.mxu0 %vm1301_vm1, %v2749_v22  ;;  %v2772_v40 = vsel %vm1301_vm1, %v2749_v22, 0 }
 0x526   : > { %v11270_v52 = vpop.eup %11269  ;;  %v2045_v2 = vmul.f32 %v11268_v23, %v12924_v47 }
 0x527   : > { %v2044_v31 = vmul.f32 %v11270_v52, %v12932_v51 }
 0x528   : > { %v2529_v4 = vpop.permute.xlu1 %2528  ;;  %v2424_v14 = vpop.permute.xlu0 %2423  ;;  %v2062_v16 = vpack.c.bf16 %v2046_v13, %v2045_v2 }
 0x529   : > { %10177 = vmatprep.mubr.msk.bf16.mxu1 %vm1301_vm1, %v2424_v14  ;;  %v2061_v12 = vpack.c.bf16 %v2044_v31, %v2043_v8 }
 0x52a   : > { %10178 = vmatmul.mubr.msk.bf16.gmra.mxu1 %vm1301_vm1, %v2426_v19 }
 0x52b   : > { %10161 = vmatprep.mubr.msk.bf16.mxu0 %vm1694_vm2, %v2061_v12 }
 0x52c   : > { %v2743_v3 = vpop.permute.xlu1 %2742  ;;  %10162 = vmatmul.mubr.msk.bf16.gmra.mxu0 %vm1694_vm2, %v2062_v16  ;;  %v2638_v9 = vpop.permute.xlu0 %2637 }
 0x52d   : > { %10189 = vmatprep.mubr.msk.bf16.mxu0 %vm1301_vm1, %v2525_v53  ;;  %10696 = vmatprep.subr.msk.bf16.mxu1 %vm1301_vm1, %v2638_v9  ;;  %v2658_v44 = vsel %vm1301_vm1, %v2638_v9, 0  ;;  %v2763_v38 = vsel %vm1301_vm1, %v2743_v3, 0 }
 0x52e   : > { %10204 = vmatpush3.bf16.xpose.msra.mxu1 %v2658_v44 }
 0x530   : > { %v2737_v47 = vpop.permute.xlu1 %2736  ;;  %v2630_v51 = vpop.permute.xlu0 %2629 }
 0x531   : > { %10205 = vmatprep.mubr.msk.bf16.mxu1 %vm1301_vm1, %v2630_v51 }
 0x534   : > { %v2636_v11 = vpop.permute.xlu1 %2635  ;;  %10190 = vmatmul.mubr.msk.bf16.vlgmr.msra.gmra.mxu0 %vm1301_vm1, %v2527_v29  ;;  %v2745_v55 = vpop.permute.xlu0 %2744 }
 0x535   : > { %10214 = vmatpush3.bf16.xpose.msra.mxu0 %v2772_v40  ;;  %10193 = vmatprep.mubr.msk.bf16.mxu0 %vm1301_vm1, %v2529_v4  ;;  %v2766_v10 = vsel %vm1301_vm1, %v2745_v55, 0 }
 0x536   : > { %10206 = vmatmul.mubr.msk.bf16.vlgmr.msra.gmra.mxu1 %vm1301_vm1, %v2632_v60  ;;  %10698 = vmatprep.subr.msk.bf16.mxu0 %vm1301_vm1, %v2747_v7 }
 0x538   : > { %v2741_v42 = vpop.permute.xlu1 %2740  ;;  %v2531_v49 = vpop.permute.xlu0 %2530 }
 0x53c   : > { %10194 = vmatmul.mubr.msk.bf16.gmra.mxu0 %vm1301_vm1, %v2531_v49  ;;  %v2735_v46 = vpop.permute.xlu0 %2734  ;;  %v3212_v30 = vpop.permute.xlu1 %3211 }
 0x53d   : > { %10216 = vmatpush3.bf16.xpose.msra.mxu0 %v2769_v27  ;;  %10221 = vmatprep.mubr.msk.bf16.mxu0 %vm1301_vm1, %v2735_v46 }
 0x53e   : > { %10699 = vmatprep.subr.msk.bf16.mxu0 %vm1301_vm1, %v2745_v55 }
 0x540   : > { %v2634_v61 = vpop.permute.xlu0 %2633  ;;  %v3210_v48 = vpop.permute.xlu1 %3209 }
 0x541   : > { %10209 = vmatprep.mubr.msk.bf16.mxu1 %vm1301_vm1, %v2634_v61 }
 0x542   : > { %10210 = vmatmul.mubr.msk.bf16.gmra.mxu1 %vm1301_vm1, %v2636_v11 }
 0x544   : > { %v2739_v50 = vpop.permute.xlu0 %2738  ;;  %v3303_v18 = vpop.permute.xlu1 %3302 }
 0x545   : > { %10218 = vmatpush3.bf16.xpose.msra.mxu0 %v2766_v10 }
 0x546   : > { %10700 = vmatprep.subr.msk.bf16.mxu0 %vm1301_vm1, %v2743_v3 }
 0x548   : > { %v3214_v33 = vpop.permute.xlu0 %3213  ;;  %v13149_v28 = vpop.permute.xlu1 %3389 }
 0x549   : > { %10229 = vmatprep.subr.bf16.mxu1 %v3214_v33 }
 0x54a   : > { %10230 = vmatpush3.bf16.msra.mxu1 %v3214_v33 }
 0x54b   : > { %10231 = vmatprep.subr.bf16.mxu1 %v3212_v30 }
 0x54c   : > { %v3208_v54 = vpop.permute.xlu0 %3207  ;;  %v13154_v36 = vpop.permute.xlu1 %3387 }
 0x54d   : > { %10220 = vmatpush3.bf16.xpose.msra.mxu0 %v2763_v38 }
 0x54e   : > { %10245 = vmatprep.subr.bf16.mxu0 %v3303_v18  ;;  %10232 = vmatpush3.bf16.msra.mxu1 %v3212_v30 }
 0x54f   : > { %10233 = vmatprep.subr.bf16.mxu1 %v3210_v48 }
 0x550   : > { %v13151_v57 = vpop.permute.xlu0 %3391  ;;  %v13158_v29 = vpop.permute.xlu1 %3385 }
 0x552   : > { %10234 = vmatpush3.bf16.msra.mxu1 %v3210_v48 }
 0x553   : > { %10235 = vmatprep.subr.bf16.mxu1 %v3208_v54 }
 0x554   : > { %10222 = vmatmul.mubr.msk.bf16.vlgmr.msra.gmra.mxu0 %vm1301_vm1, %v2737_v47  ;;  %v3301_v62 = vpop.permute.xlu0 %3300  ;;  %v13161_v58 = vpop.permute.xlu1 %3480 }
 0x555   : > { %10225 = vmatprep.mubr.msk.bf16.mxu0 %vm1301_vm1, %v2739_v50  ;;  %10246 = vmatpush3.bf16.msra.mxu0 %v3303_v18  ;;  %18468 = vst [vmem:[#allocation9_spill] sm:$0xff] %v13161_v58 }
 0x556   : > { %10247 = vmatprep.subr.bf16.mxu0 %v3301_v62  ;;  %10236 = vmatpush3.bf16.msra.mxu1 %v3208_v54 }
 0x557   : > { %10261 = vmatprep.subr.bf16.mxu1 %v13151_v57 }
 0x558   : > { %v3299_v6 = vpop.permute.xlu0 %3298 }
 0x559   : > { %10248 = vmatpush3.bf16.msra.mxu0 %v3301_v62 }
 0x55a   : > { %10249 = vmatprep.subr.bf16.mxu0 %v3299_v6 }
 0x55c   : > { %10226 = vmatmul.mubr.msk.bf16.gmra.mxu0 %vm1301_vm1, %v2741_v42  ;;  %v3297_v43 = vpop.permute.xlu0 %3296 }
 0x55d   : > { %10250 = vmatpush3.bf16.msra.mxu0 %v3299_v6 }
 0x55e   : > { %10251 = vmatprep.subr.bf16.mxu0 %v3297_v43 }
 0x561   : > { %10252 = vmatpush3.bf16.msra.mxu0 %v3297_v43 }
 0x562   : > { %10277 = vmatprep.subr.bf16.mxu0 %v13161_v58 }
 0x57b   : > { %v13164_v19 = vpop.f32.mrf.mxu0 }
 0x57c   : > { %18469 = vst [vmem:[#allocation7_spill] sm:$0xff] %v13164_v19 }
 0x57d   : > { %v13168_v1 = vpop.f32.mrf.mxu0 }
 0x57e   : > { %18471 = vst [vmem:[#allocation10_spill] sm:$0xff] %v13168_v1 }
 0x57f   : > { %v13172_v53 = vpop.f32.mrf.mxu0 }
 0x580   : > { %18473 = vst [vmem:[#allocation14_spill] sm:$0xff] %v13172_v53 }
 0x581   : > { %v13176_v60 = vpop.f32.mrf.mxu0 }
 0x582   : > { %18475 = vst [vmem:[#allocation11_spill] sm:$0xff] %v13176_v60 }
 0x583   : > { %v13180_v22 = vpop.f32.mrf.mxu0 }
 0x584   : > { %18477 = vst [vmem:[#allocation15_spill] sm:$0xff] %v13180_v22  ;;  %v13356_v22 = vpop.permute.xlu1 %3577 }
 0x585   : > { %v13184_v52 = vpop.f32.mrf.mxu0 }
 0x586   : > { %18479 = vst [vmem:[#allocation16_spill] sm:$0xff] %v13184_v52 }
 0x587   : > { %v13188_v4 = vpop.f32.mrf.mxu0 }
 0x588   : > { %18481 = vst [vmem:[#allocation20_spill] sm:$0xff] %v13188_v4  ;;  %v13362_v4 = vpop.permute.xlu0 %3478 }
 0x589   : > { %v13192_v31 = vpop.f32.mrf.mxu0  ;;  %18503 = vst [vmem:[#allocation42_spill] sm:$0xff] %v13362_v4 }
 0x58a   : > { %18483 = vst [vmem:[#allocation22_spill] sm:$0xff] %v13192_v31 }
 0x58c   : > { %v13366_v60 = vpop.permute.xlu0 %3575 }
 0x58d   : > { %18505 = vst [vmem:[#allocation44_spill] sm:$0xff] %v13366_v60 }
 0x593   : > { %v13194_v14 = vpop.f32.mrf.mxu0 }
 0x594   : > { %18484 = vst [vmem:[#allocation23_spill] sm:$0xff] %v13194_v14 }
 0x595   : > { %v13202_v3 = vpop.f32.mrf.mxu0 }
 0x596   : > { %18486 = vst [vmem:[#allocation25_spill] sm:$0xff] %v13202_v3 }
 0x597   : > { %v13210_v51 = vpop.f32.mrf.mxu0 }
 0x598   : > { %18487 = vst [vmem:[#allocation26_spill] sm:$0xff] %v13210_v51 }
 0x599   : > { %v13218_v42 = vpop.f32.mrf.mxu0 }
 0x59a   : > { %18488 = vst [vmem:[#allocation27_spill] sm:$0xff] %v13218_v42 }
 0x59b   : > { %v13220_v49 = vpop.f32.mrf.mxu0 }
 0x59c   : > { %18489 = vst [vmem:[#allocation28_spill] sm:$0xff] %v13220_v49 }
 0x59d   : > { %v13222_v27 = vpop.f32.mrf.mxu0 }
 0x59e   : > { %18490 = vst [vmem:[#allocation29_spill] sm:$0xff] %v13222_v27 }
 0x59f   : > { %v13224_v46 = vpop.f32.mrf.mxu0 }
 0x5a0   : > { %18491 = vst [vmem:[#allocation30_spill] sm:$0xff] %v13224_v46 }
 0x5a1   : > { %v13226_v30 = vpop.f32.mrf.mxu0 }
 0x5a2   : > { %18492 = vst [vmem:[#allocation31_spill] sm:$0xff] %v13226_v30 }
 0x5a3   : > { %v13166_v26 = vpop.f32.mrf.mxu1 }
 0x5a4   : > { %18470 = vst [vmem:[#allocation17_spill] sm:$0xff] %v13166_v26 }
 0x5a5   : > { %v13170_v7 = vpop.f32.mrf.mxu1 }
 0x5a6   : > { %18472 = vst [vmem:[#allocation12_spill] sm:$0xff] %v13170_v7 }
 0x5a7   : > { %v13174_v0 = vpop.f32.mrf.mxu1 }
 0x5a8   : > { %18474 = vst [vmem:[#allocation8_spill] sm:$0xff] %v13174_v0 }
 0x5a9   : > { %v13178_v17 = vpop.f32.mrf.mxu1 }
 0x5aa   : > { %18476 = vst [vmem:[#allocation13_spill] sm:$0xff] %v13178_v17 }
 0x5ab   : > { %v13182_v23 = vpop.f32.mrf.mxu1 }
 0x5ac   : > { %18478 = vst [vmem:[#allocation18_spill] sm:$0xff] %v13182_v23 }
 0x5ad   : > { %v13186_v13 = vpop.f32.mrf.mxu1 }
 0x5ae   : > { %18480 = vst [vmem:[#allocation19_spill] sm:$0xff] %v13186_v13 }
 0x5af   : > { %v13190_v8 = vpop.f32.mrf.mxu1  ;;  %v13228_v61 = vpop.f32.mrf.mxu0 }
 0x5b0   : > { %18482 = vst [vmem:[#allocation21_spill] sm:$0xff] %v13190_v8  ;;  %18493 = vst [vmem:[#allocation32_spill] sm:$0xff] %v13228_v61 }
 0x5b1   : > { %v13196_v2 = vpop.f32.mrf.mxu1  ;;  %v13230_v48 = vpop.f32.mrf.mxu0 }
 0x5b2   : > { %18485 = vst [vmem:[#allocation24_spill] sm:$0xff] %v13196_v2  ;;  %18494 = vst [vmem:[#allocation33_spill] sm:$0xff] %v13230_v48 }
 0x5b3   : > { %v13232_v10 = vpop.f32.mrf.mxu0 }
 0x5b4   : > { %18495 = vst [vmem:[#allocation34_spill] sm:$0xff] %v13232_v10 }
 0x5b5   : > { %v13234_v50 = vpop.f32.mrf.mxu0 }
 0x5b6   : > { %18496 = vst [vmem:[#allocation35_spill] sm:$0xff] %v13234_v50 }
 0x5c3   : > { %v13198_v12 = vpop.f32.mrf.mxu1 }
 0x5c4   : > { %v2845_v16 = vsel %vm1694_vm2, %v13198_v12, -inf }
 0x5c5   : > { %2846 = vmax.xlane.f32.xlu0 %v2845_v16  ;;  %v13204_v9 = vpop.f32.mrf.mxu1 }
 0x5c6   : > { %v2839_v47 = vsel %vm1694_vm2, %v13204_v9, -inf }
 0x5c7   : > { %v13206_v44 = vpop.f32.mrf.mxu1 }
 0x5c8   : > { %v2848_v55 = vsel %vm1694_vm2, %v13206_v44, -inf }
 0x5c9   : > { %2840 = vmax.xlane.f32.xlu0 %v2839_v47  ;;  %v13212_v11 = vpop.f32.mrf.mxu1 }
 0x5ca   : > { %v2842_v40 = vsel %vm1694_vm2, %v13212_v11, -inf }
 0x5cb   : > { %2843 = vmax.xlane.f32.xlu1 %v2842_v40 }
 0x5cd   : > { %2849 = vmax.xlane.f32.xlu0 %v2848_v55 }
 0x5ea   : > { %v13236_v33 = vpop.f32.mrf.mxu1 }
 0x5eb   : > { %v2857_v18 = vsel %vm1694_vm2, %v13236_v33, -inf }
 0x5ec   : > { %v13240_v38 = vpop.f32.mrf.mxu0  ;;  %2858 = vmax.xlane.f32.xlu0 %v2857_v18  ;;  %v13242_v54 = vpop.f32.mrf.mxu1 }
 0x5ed   : > { %18497 = vst [vmem:[#allocation36_spill] sm:$0xff] %v13240_v38  ;;  %v2851_v43 = vsel %vm1694_vm2, %v13242_v54, -inf }
 0x5ee   : > { %v13244_v62 = vpop.f32.mrf.mxu0  ;;  %v13246_v6 = vpop.f32.mrf.mxu1 }
 0x5ef   : > { %18498 = vst [vmem:[#allocation37_spill] sm:$0xff] %v13244_v62  ;;  %v2860_v16 = vsel %vm1694_vm2, %v13246_v6, -inf }
 0x5f0   : > { %v13252_v47 = vpop.f32.mrf.mxu0  ;;  %2852 = vmax.xlane.f32.xlu0 %v2851_v43  ;;  %2861 = vmax.xlane.f32.xlu1 %v2860_v16  ;;  %v13254_v40 = vpop.f32.mrf.mxu1 }
 0x5f1   : > { %18499 = vst [vmem:[#allocation38_spill] sm:$0xff] %v13252_v47  ;;  %v2854_v18 = vsel %vm1694_vm2, %v13254_v40, -inf }
 0x5f2   : > { %v13256_v55 = vpop.f32.mrf.mxu0 }
 0x5f3   : > { %18500 = vst [vmem:[#allocation39_spill] sm:$0xff] %v13256_v55 }
 0x5f4   : > { %v13260_v62 = vpop.f32.mrf.mxu0  ;;  %2855 = vmax.xlane.f32.xlu1 %v2854_v18 }
 0x5f5   : > { %v2869_v38 = vsel %vm1694_vm2, %v13260_v62, -inf }
 0x5f6   : > { %v13264_v48 = vpop.f32.mrf.mxu0  ;;  %2870 = vmax.xlane.f32.xlu0 %v2869_v38  ;;  %v13266_v50 = vpop.f32.mrf.mxu1 }
 0x5f7   : > { %v2863_v16 = vsel %vm1694_vm2, %v13264_v48, -inf }
 0x5f8   : > { %v13268_v43 = vpop.f32.mrf.mxu0  ;;  %v13276_v18 = vpop.f32.mrf.mxu1 }
 0x5f9   : > { %v2872_v55 = vsel %vm1694_vm2, %v13268_v43, -inf  ;;  %v2887_v26 = vsel %vm1694_vm2, %v13276_v18, -inf }
 0x5fa   : > { %v13274_v47 = vpop.f32.mrf.mxu0  ;;  %2864 = vmax.xlane.f32.xlu0 %v2863_v16  ;;  %2873 = vmax.xlane.f32.xlu1 %v2872_v55  ;;  %v13286_v2 = vpop.f32.mrf.mxu1 }
 0x5fb   : > { %v2866_v38 = vsel %vm1694_vm2, %v13274_v47, -inf }
 0x5fc   : > { %v13278_v61 = vpop.f32.mrf.mxu0  ;;  %v13296_v7 = vpop.f32.mrf.mxu1 }
 0x5fd   : > { %v2881_v10 = vsel %vm1694_vm2, %v13278_v61, -inf  ;;  %v2890_v0 = vsel %vm1694_vm2, %v13296_v7, -inf }
 0x5fe   : > { %2867 = vmax.xlane.f32.xlu1 %v2866_v38  ;;  %2882 = vmax.xlane.f32.xlu0 %v2881_v10  ;;  %v13284_v13 = vpop.f32.mrf.mxu0  ;;  %v2893_v10 = vsel %vm1694_vm2, %v13266_v50, -inf }
 0x5ff   : > { %v2875_v55 = vsel %vm1694_vm2, %v13284_v13, -inf }
 0x600   : > { %v13288_v23 = vpop.f32.mrf.mxu0 }
 0x601   : > { %v2884_v16 = vsel %vm1694_vm2, %v13288_v23, -inf }
 0x602   : > { %2876 = vmax.xlane.f32.xlu0 %v2875_v55  ;;  %2885 = vmax.xlane.f32.xlu1 %v2884_v16  ;;  %v13294_v8 = vpop.f32.mrf.mxu0  ;;  %v13302_v17 = vpop.f32.mrf.mxu1  ;;  %v2896_v55 = vsel %vm1694_vm2, %v13286_v2, -inf }
 0x603   : > { %v2878_v38 = vsel %vm1694_vm2, %v13294_v8, -inf  ;;  %v2905_v27 = vsel %vm1694_vm2, %v13302_v17, -inf }
 0x604   : > { %v13308_v16 = vpop.f32.mrf.mxu1 }
 0x606   : > { %2894 = vmax.xlane.f32.xlu0 %v2893_v10  ;;  %2879 = vmax.xlane.f32.xlu1 %v2878_v38  ;;  %v13314_v30 = vpop.f32.mrf.mxu1  ;;  %v2899_v10 = vsel %vm1694_vm2, %v13308_v16, -inf }
 0x607   : > { %v2908_v38 = vsel %vm1694_vm2, %v13314_v30, -inf }
 0x608   : > { %v13320_v49 = vpop.f32.mrf.mxu1 }
 0x609   : > { %v2902_v46 = vsel %vm1694_vm2, %v13320_v49, -inf }
 0x60a   : > { %2888 = vmax.xlane.f32.xlu0 %v2887_v26  ;;  %2897 = vmax.xlane.f32.xlu1 %v2896_v55 }
 0x60e   : > { %2891 = vmax.xlane.f32.xlu1 %v2890_v0  ;;  %2906 = vmax.xlane.f32.xlu0 %v2905_v27 }
 0x612   : > { %2900 = vmax.xlane.f32.xlu0 %v2899_v10  ;;  %2909 = vmax.xlane.f32.xlu1 %v2908_v38 }
 0x614   : > { %v13322_v26 = vpop.f32.mrf.mxu0 }
 0x615   : > { %v2917_v55 = vsel %vm1694_vm2, %v13322_v26, -inf }
 0x616   : > { %v13328_v0 = vpop.f32.mrf.mxu0  ;;  %2918 = vmax.xlane.f32.xlu0 %v2917_v55  ;;  %2903 = vmax.xlane.f32.xlu1 %v2902_v46 }
 0x617   : > { %v2911_v3 = vsel %vm1694_vm2, %v13328_v0, -inf }
 0x618   : > { %v13330_v27 = vpop.f32.mrf.mxu0 }
 0x619   : > { %v2920_v10 = vsel %vm1694_vm2, %v13330_v27, -inf }
 0x61a   : > { %v13336_v38 = vpop.f32.mrf.mxu0  ;;  %2912 = vmax.xlane.f32.xlu0 %v2911_v3  ;;  %2921 = vmax.xlane.f32.xlu1 %v2920_v10 }
 0x61b   : > { %v2914_v14 = vsel %vm1694_vm2, %v13336_v38, -inf }
 0x61c   : > { %v13338_v42 = vpop.f32.mrf.mxu0 }
 0x61d   : > { %v2929_v46 = vsel %vm1694_vm2, %v13338_v42, -inf }
 0x61e   : > { %v13344_v55 = vpop.f32.mrf.mxu0  ;;  %2915 = vmax.xlane.f32.xlu1 %v2914_v14  ;;  %2930 = vmax.xlane.f32.xlu0 %v2929_v46  ;;  %v13358_v14 = vpop.permute.xlu1 %3476 }
 0x61f   : > { %v2923_v52 = vsel %vm1694_vm2, %v13344_v55, -inf  ;;  %18501 = vst [vmem:[#allocation40_spill] sm:$0xff] %v13358_v14 }
 0x620   : > { %v13346_v51 = vpop.f32.mrf.mxu0 }
 0x621   : > { %v2932_v3 = vsel %vm1694_vm2, %v13346_v51, -inf }
 0x622   : > { %v13352_v10 = vpop.f32.mrf.mxu0  ;;  %2924 = vmax.xlane.f32.xlu0 %v2923_v52  ;;  %2933 = vmax.xlane.f32.xlu1 %v2932_v3  ;;  %v13360_v46 = vpop.permute.xlu1 %3474 }
 0x623   : > { %v2926_v31 = vsel %vm1694_vm2, %v13352_v10, -inf  ;;  %18502 = vst [vmem:[#allocation41_spill] sm:$0xff] %v13360_v46  ;;  %v13370_v52 = vpop.permute.xlu0 %3573 }
 0x624   : > { %18507 = vst [vmem:[#allocation46_spill] sm:$0xff] %v13370_v52 }
 0x626   : > { %2927 = vmax.xlane.f32.xlu1 %v2926_v31  ;;  %v13364_v1 = vpop.permute.xlu1 %3682 }
 0x627   : > { %18504 = vst [vmem:[#allocation43_spill] sm:$0xff] %v13364_v1  ;;  %v13374_v53 = vpop.permute.xlu0 %3563 }
 0x628   : > { %18509 = vst [vmem:[#allocation48_spill] sm:$0xff] %v13374_v53 }
 0x62a   : > { %v13368_v19 = vpop.permute.xlu1 %3571 }
 0x62b   : > { %18506 = vst [vmem:[#allocation45_spill] sm:$0xff] %v13368_v19 }
 0x62e   : > { %v13372_v3 = vpop.permute.xlu1 %3680 }
 0x62f   : > { %18508 = vst [vmem:[#allocation47_spill] sm:$0xff] %v13372_v3 }
 0x632   : > { %v13377_v14 = vpop.permute.xlu1 %3678 }
 0x633   : > { %18510 = vst [vmem:[#allocation49_spill] sm:$0xff] %v13377_v14 }
 0x64e   : > { %v2847_v31 = vpop.xlane.xlu0 %2846 }
 0x64f   : > { %v2937_v37 = vsub.f32 %v13198_v12, %v2847_v31 }
 0x651   : > { %v2971_v46 = vmul.f32 1.442695, %v2937_v37 }
 0x652   : > { %v2841_v58 = vpop.xlane.xlu0 %2840 }
 0x653   : > { %11271 = vpow2.f32 %v2971_v46  ;;  %v2935_v1 = vsub.f32 %v13204_v9, %v2841_v58 }
 0x654   : > { %v2844_v4 = vpop.xlane.xlu1 %2843 }
 0x655   : > { %v2967_v60 = vmul.f32 1.442695, %v2935_v1  ;;  %v2936_v19 = vsub.f32 %v13212_v11, %v2844_v4 }
 0x656   : > { %v2850_v24 = vpop.xlane.xlu0 %2849 }
 0x657   : > { %11273 = vpow2.f32 %v2967_v60  ;;  %v2938_v3 = vsub.f32 %v13206_v44, %v2850_v24  ;;  %v2969_v52 = vmul.f32 1.442695, %v2936_v19 }
 0x659   : > { %v2973_v53 = vmul.f32 1.442695, %v2938_v3 }
 0x65b   : > { %11275 = vpow2.f32 %v2973_v53 }
 0x65c   : > { %11277 = vpow2.f32 %v2969_v52 }
 0x660   : > { %v13382_v12 = vpop.eup %11271 }
 0x661   : > { %v3037_v37 = vsel %vm1694_vm2, %v13382_v12, 0.0 }
 0x662   : > { %3038 = vadd.xlane.f32.xlu0 %v3037_v37 }
 0x664   : > { %v13386_v46 = vpop.eup %11273 }
 0x665   : > { %v3031_v58 = vsel %vm1694_vm2, %v13386_v46, 0.0 }
 0x666   : > { %3032 = vadd.xlane.f32.xlu0 %v3031_v58 }
 0x668   : > { %v13390_v1 = vpop.eup %11275 }
 0x669   : > { %v3040_v24 = vsel %vm1694_vm2, %v13390_v1, 0.0  ;;  %v13394_v19 = vpop.eup %11277 }
 0x66a   : > { %3041 = vadd.xlane.f32.xlu1 %v3040_v24  ;;  %v3034_v53 = vsel %vm1694_vm2, %v13394_v19, 0.0 }
 0x66e   : > { %3035 = vadd.xlane.f32.xlu1 %v3034_v53 }
 0x675   : > { %v2859_v60 = vpop.xlane.xlu0 %2858 }
 0x676   : > { %v2941_v4 = vsub.f32 %v13236_v33, %v2859_v60 }
 0x678   : > { %v2979_v9 = vmul.f32 1.442695, %v2941_v4 }
 0x679   : > { %v2862_v44 = vpop.xlane.xlu1 %2861  ;;  %v2853_v11 = vpop.xlane.xlu0 %2852 }
 0x67a   : > { %11279 = vpow2.f32 %v2979_v9  ;;  %v2942_v52 = vsub.f32 %v13246_v6, %v2862_v44  ;;  %v2939_v3 = vsub.f32 %v13242_v54, %v2853_v11 }
 0x67c   : > { %v2981_v31 = vmul.f32 1.442695, %v2942_v52  ;;  %v2975_v37 = vmul.f32 1.442695, %v2939_v3 }
 0x67d   : > { %v2856_v58 = vpop.xlane.xlu1 %2855 }
 0x67e   : > { %11281 = vpow2.f32 %v2981_v31  ;;  %v2940_v24 = vsub.f32 %v13254_v40, %v2856_v58 }
 0x67f   : > { %11283 = vpow2.f32 %v2975_v37  ;;  %v2871_v14 = vpop.xlane.xlu0 %2870 }
 0x680   : > { %v2977_v53 = vmul.f32 1.442695, %v2940_v24  ;;  %v2945_v25 = vsub.f32 %v13260_v62, %v2871_v14 }
 0x682   : > { %11285 = vpow2.f32 %v2977_v53  ;;  %v2987_v33 = vmul.f32 1.442695, %v2945_v25 }
 0x683   : > { %v2874_v60 = vpop.xlane.xlu1 %2873  ;;  %v2865_v4 = vpop.xlane.xlu0 %2864 }
 0x684   : > { %11287 = vpow2.f32 %v2987_v33  ;;  %v2946_v6 = vsub.f32 %v13268_v43, %v2874_v60  ;;  %v2943_v54 = vsub.f32 %v13264_v48, %v2865_v4 }
 0x686   : > { %v2983_v9 = vmul.f32 1.442695, %v2943_v54  ;;  %v2989_v11 = vmul.f32 1.442695, %v2946_v6 }
 0x687   : > { %v13405_v44 = vpop.eup %11279  ;;  %v2868_v52 = vpop.xlane.xlu1 %2867 }
 0x688   : > { %v2883_v40 = vpop.xlane.xlu0 %2882  ;;  %v2944_v3 = vsub.f32 %v13274_v47, %v2868_v52  ;;  %v3049_v25 = vsel %vm1694_vm2, %v13405_v44, 0.0  ;;  %11289 = vpow2.f32 %v2983_v9 }
 0x689   : > { %v2949_v31 = vsub.f32 %v13278_v61, %v2883_v40  ;;  %3050 = vadd.xlane.f32.xlu0 %v3049_v25  ;;  %11291 = vpow2.f32 %v2989_v11 }
 0x68a   : > { %v2985_v48 = vmul.f32 1.442695, %v2944_v3 }
 0x68b   : > { %v2995_v62 = vmul.f32 1.442695, %v2949_v31  ;;  %v13411_v14 = vpop.eup %11281  ;;  %v2886_v43 = vpop.xlane.xlu1 %2885 }
 0x68c   : > { %v2877_v37 = vpop.xlane.xlu0 %2876  ;;  %v13413_v58 = vpop.eup %11283  ;;  %v2950_v24 = vsub.f32 %v13288_v23, %v2886_v43  ;;  %v3052_v61 = vsel %vm1694_vm2, %v13411_v14, 0.0 }
 0x68d   : > { %v2947_v47 = vsub.f32 %v13284_v13, %v2877_v37  ;;  %11293 = vpow2.f32 %v2995_v62  ;;  %3053 = vadd.xlane.f32.xlu1 %v3052_v61  ;;  %v3043_v53 = vsel %vm1694_vm2, %v13413_v58, 0.0 }
 0x68e   : > { %v2997_v33 = vmul.f32 1.442695, %v2950_v24  ;;  %3044 = vadd.xlane.f32.xlu0 %v3043_v53  ;;  %11295 = vpow2.f32 %v2985_v48 }
 0x68f   : > { %v13421_v60 = vpop.eup %11285  ;;  %v2991_v4 = vmul.f32 1.442695, %v2947_v47  ;;  %v2880_v6 = vpop.xlane.xlu1 %2879 }
 0x690   : > { %v2895_v54 = vpop.xlane.xlu0 %2894  ;;  %11297 = vpow2.f32 %v2997_v33  ;;  %v2948_v23 = vsub.f32 %v13294_v8, %v2880_v6  ;;  %v3046_v9 = vsel %vm1694_vm2, %v13421_v60, 0.0 }
 0x691   : > { %v2953_v13 = vsub.f32 %v13266_v50, %v2895_v54  ;;  %v13427_v11 = vpop.eup %11287  ;;  %3047 = vadd.xlane.f32.xlu1 %v3046_v9  ;;  %11299 = vpow2.f32 %v2991_v4 }
 0x692   : > { %v2993_v52 = vmul.f32 1.442695, %v2948_v23  ;;  %v3061_v8 = vsel %vm1694_vm2, %v13427_v11, 0.0 }
 0x693   : > { %v3003_v40 = vmul.f32 1.442695, %v2953_v13  ;;  %v2898_v3 = vpop.xlane.xlu1 %2897 }
 0x694   : > { %v2889_v31 = vpop.xlane.xlu0 %2888  ;;  %11301 = vpow2.f32 %v2993_v52  ;;  %v2954_v25 = vsub.f32 %v13286_v2, %v2898_v3 }
 0x695   : > { %v2951_v62 = vsub.f32 %v13276_v18, %v2889_v31  ;;  %3062 = vadd.xlane.f32.xlu1 %v3061_v8  ;;  %v13433_v50 = vpop.eup %11289  ;;  %11303 = vpow2.f32 %v3003_v40 }
 0x696   : > { %v13435_v24 = vpop.eup %11291  ;;  %v3005_v47 = vmul.f32 1.442695, %v2954_v25  ;;  %v3055_v2 = vsel %vm1694_vm2, %v13433_v50, 0.0 }
 0x697   : > { %v2999_v48 = vmul.f32 1.442695, %v2951_v62  ;;  %v2892_v43 = vpop.xlane.xlu1 %2891  ;;  %v3064_v23 = vsel %vm1694_vm2, %v13435_v24, 0.0 }
 0x698   : > { %v2907_v37 = vpop.xlane.xlu0 %2906  ;;  %v2952_v61 = vsub.f32 %v13296_v7, %v2892_v43 }
 0x699   : > { %v2957_v53 = vsub.f32 %v13302_v17, %v2907_v37  ;;  %11305 = vpow2.f32 %v2999_v48  ;;  %3056 = vadd.xlane.f32.xlu1 %v3055_v2 }
 0x69a   : > { %v13441_v18 = vpop.eup %11293  ;;  %11307 = vpow2.f32 %v3005_v47  ;;  %v3001_v7 = vmul.f32 1.442695, %v2952_v61 }
 0x69b   : > { %v3011_v33 = vmul.f32 1.442695, %v2957_v53  ;;  %v2910_v4 = vpop.xlane.xlu1 %2909  ;;  %v3073_v6 = vsel %vm1694_vm2, %v13441_v18, 0.0  ;;  %v13447_v13 = vpop.eup %11295 }
 0x69c   : > { %v2901_v54 = vpop.xlane.xlu0 %2900  ;;  %v2958_v17 = vsub.f32 %v13314_v30, %v2910_v4  ;;  %3074 = vadd.xlane.f32.xlu0 %v3073_v6 }
 0x69d   : > { %v2955_v9 = vsub.f32 %v13308_v16, %v2901_v54  ;;  %v13451_v52 = vpop.eup %11297  ;;  %11309 = vpow2.f32 %v3011_v33  ;;  %3065 = vadd.xlane.f32.xlu1 %v3064_v23  ;;  %v3058_v16 = vsel %vm1694_vm2, %v13447_v13, 0.0 }
 0x69e   : > { %v3076_v3 = vsel %vm1694_vm2, %v13451_v52, 0.0  ;;  %v3013_v31 = vmul.f32 1.442695, %v2958_v17  ;;  %v13455_v8 = vpop.eup %11299  ;;  %11311 = vpow2.f32 %v3001_v7 }
 0x69f   : > { %v3007_v40 = vmul.f32 1.442695, %v2955_v9  ;;  %v2904_v25 = vpop.xlane.xlu1 %2903 }
 0x6a0   : > { %v2919_v62 = vpop.xlane.xlu0 %2918  ;;  %v2956_v48 = vsub.f32 %v13320_v49, %v2904_v25  ;;  %3077 = vadd.xlane.f32.xlu0 %v3076_v3 }
 0x6a1   : > { %v2961_v30 = vsub.f32 %v13322_v26, %v2919_v62  ;;  %v13461_v43 = vpop.eup %11301  ;;  %11313 = vpow2.f32 %v3007_v40  ;;  %3059 = vadd.xlane.f32.xlu1 %v3058_v16  ;;  %v3067_v26 = vsel %vm1694_vm2, %v13455_v8, 0.0 }
 0x6a2   : > { %v3009_v37 = vmul.f32 1.442695, %v2956_v48  ;;  %v3070_v47 = vsel %vm1694_vm2, %v13461_v43, 0.0  ;;  %11315 = vpow2.f32 %v3013_v31  ;;  %v13465_v33 = vpop.eup %11303 }
 0x6a3   : > { %v3019_v61 = vmul.f32 1.442695, %v2961_v30  ;;  %v2922_v53 = vpop.xlane.xlu1 %2921  ;;  %v3085_v7 = vsel %vm1694_vm2, %v13465_v33, 0.0 }
 0x6a4   : > { %v2913_v2 = vpop.xlane.xlu0 %2912  ;;  %11317 = vpow2.f32 %v3009_v37  ;;  %3071 = vadd.xlane.f32.xlu0 %v3070_v47  ;;  %v2962_v6 = vsub.f32 %v13330_v27, %v2922_v53 }
 0x6a5   : > { %v2959_v49 = vsub.f32 %v13328_v0, %v2913_v2  ;;  %3068 = vadd.xlane.f32.xlu1 %v3067_v26  ;;  %11319 = vpow2.f32 %v3019_v61 }
 0x6a6   : > { %v13470_v4 = vpop.eup %11305  ;;  %v3021_v31 = vmul.f32 1.442695, %v2962_v6 }
 0x6a7   : > { %v3015_v54 = vmul.f32 1.442695, %v2959_v49  ;;  %v2916_v23 = vpop.xlane.xlu1 %2915  ;;  %v3079_v0 = vsel %vm1694_vm2, %v13470_v4, 0.0  ;;  %v13478_v9 = vpop.eup %11307 }
 0x6a8   : > { %v2960_v17 = vsub.f32 %v13336_v38, %v2916_v23  ;;  %3086 = vadd.xlane.f32.xlu0 %v3085_v7  ;;  %v3088_v38 = vsel %vm1694_vm2, %v13478_v9, 0.0 }
 0x6a9   : > { %3080 = vadd.xlane.f32.xlu1 %v3079_v0  ;;  %11321 = vpow2.f32 %v3015_v54 }
 0x6aa   : > { %v13480_v40 = vpop.eup %11309  ;;  %v3017_v3 = vmul.f32 1.442695, %v2960_v17  ;;  %v2931_v17 = vpop.xlane.xlu0 %2930 }
 0x6ab   : > { %v3097_v27 = vsel %vm1694_vm2, %v13480_v40, 0.0  ;;  %v13486_v25 = vpop.eup %11311 }
 0x6ac   : > { %11323 = vpow2.f32 %v3017_v3  ;;  %3098 = vadd.xlane.f32.xlu0 %v3097_v27  ;;  %v3082_v16 = vsel %vm1694_vm2, %v13486_v25, 0.0 }
 0x6ad   : > { %3089 = vadd.xlane.f32.xlu1 %v3088_v38  ;;  %11325 = vpow2.f32 %v3021_v31  ;;  %v2934_v31 = vpop.xlane.xlu1 %2933  ;;  %v2965_v38 = vsub.f32 %v13338_v42, %v2931_v17 }
 0x6ae   : > { %v13488_v62 = vpop.eup %11313  ;;  %v2925_v0 = vpop.xlane.xlu0 %2924 }
 0x6af   : > { %v3091_v48 = vsel %vm1694_vm2, %v13488_v62, 0.0  ;;  %v13492_v30 = vpop.eup %11315  ;;  %v2963_v3 = vsub.f32 %v13344_v55, %v2925_v0 }
 0x6b0   : > { %3092 = vadd.xlane.f32.xlu0 %v3091_v48  ;;  %v3100_v47 = vsel %vm1694_vm2, %v13492_v30, 0.0  ;;  %v3027_v48 = vmul.f32 1.442695, %v2965_v38 }
 0x6b1   : > { %v13496_v37 = vpop.eup %11317  ;;  %3083 = vadd.xlane.f32.xlu1 %v3082_v16  ;;  %v3023_v27 = vmul.f32 1.442695, %v2963_v3  ;;  %v2966_v16 = vsub.f32 %v13346_v51, %v2934_v31 }
 0x6b2   : > { %v13500_v61 = vpop.eup %11319  ;;  %v3094_v53 = vsel %vm1694_vm2, %v13496_v37, 0.0 }
 0x6b3   : > { %v3109_v2 = vsel %vm1694_vm2, %v13500_v61, 0.0  ;;  %11327 = vpow2.f32 %v3023_v27 }
 0x6b4   : > { %3101 = vadd.xlane.f32.xlu0 %v3100_v47  ;;  %v2928_v47 = vpop.xlane.xlu1 %2927  ;;  %11329 = vpow2.f32 %v3027_v48 }
 0x6b5   : > { %3095 = vadd.xlane.f32.xlu1 %v3094_v53  ;;  %v3029_v53 = vmul.f32 1.442695, %v2966_v16 }
 0x6b6   : > { %v13506_v49 = vpop.eup %11321 }
 0x6b7   : > { %v3103_v54 = vsel %vm1694_vm2, %v13506_v49, 0.0  ;;  %11331 = vpow2.f32 %v3029_v53 }
 0x6b8   : > { %3110 = vadd.xlane.f32.xlu0 %v3109_v2  ;;  %v2964_v2 = vsub.f32 %v13352_v10, %v2928_v47 }
 0x6b9   : > { %v13508_v26 = vpop.eup %11323 }
 0x6ba   : > { %v3106_v6 = vsel %vm1694_vm2, %v13508_v26, 0.0  ;;  %v13514_v23 = vpop.eup %11325 }
 0x6bb   : > { %3107 = vadd.xlane.f32.xlu1 %v3106_v6  ;;  %v3112_v7 = vsel %vm1694_vm2, %v13514_v23, 0.0  ;;  %v3025_v6 = vmul.f32 1.442695, %v2964_v2 }
 0x6bc   : > { %3104 = vadd.xlane.f32.xlu0 %v3103_v54 }
 0x6bd   : > { %11333 = vpow2.f32 %v3025_v6 }
 0x6c0   : > { %3113 = vadd.xlane.f32.xlu0 %v3112_v7  ;;  %v13526_v54 = vpop.eup %11327 }
 0x6c1   : > { %v3115_v55 = vsel %vm1694_vm2, %v13526_v54, 0.0  ;;  %v13530_v42 = vpop.eup %11329 }
 0x6c2   : > { %v3121_v51 = vsel %vm1694_vm2, %v13530_v42, 0.0 }
 0x6c4   : > { %v13534_v3 = vpop.eup %11331 }
 0x6c5   : > { %v3124_v31 = vsel %vm1694_vm2, %v13534_v3, 0.0 }
 0x6ca   : > { %v13538_v27 = vpop.eup %11333 }
 0x6cb   : > { %v3118_v38 = vsel %vm1694_vm2, %v13538_v27, 0.0 }
 0x6cc   : > { %3565 = vrot.lane.b32.xlu1 %v12461_v21, %s11859_s28 }
 0x6d6   : > { %3787 = vrot.lane.b32.xlu0 %v12493_v15, %s11858_s27 }
 0x6eb   : > { %v3039_v7 = vpop.xlane.xlu0 %3038 }
 0x6ef   : > { %v3033_v17 = vpop.xlane.xlu0 %3032 }
 0x6f0   : > { %3116 = vadd.xlane.f32.xlu1 %v3115_v55 }
 0x6f3   : > { %v3042_v0 = vpop.xlane.xlu1 %3041 }
 0x6f4   : > { %11335 = vrcp.f32 %v3042_v0 }
 0x6f5   : > { %11337 = vrcp.f32 %v3033_v17  ;;  %3122 = vadd.xlane.f32.xlu0 %v3121_v51 }
 0x6f6   : > { %11339 = vrcp.f32 %v3039_v7 }
 0x6f7   : > { %v3036_v10 = vpop.xlane.xlu1 %3035 }
 0x6f8   : > { %11341 = vrcp.f32 %v3036_v10 }
 0x6f9   : > { %3125 = vadd.xlane.f32.xlu0 %v3124_v31 }
 0x6fd   : > { %3119 = vadd.xlane.f32.xlu0 %v3118_v38 }
 0x701   : > { %v11336_v48 = vpop.eup %11335  ;;  %3785 = vrot.lane.b32.xlu1 %v12497_v32, %s11858_s27 }
 0x702   : > { %v11338_v16 = vpop.eup %11337  ;;  %v3162_v2 = vmul.f32 %v11336_v48, %v13390_v1  ;;  %v18511_v1 = vld [vmem:[#allocation5_spill] sm:$0xff] }
 0x703   : > { %v11340_v47 = vpop.eup %11339  ;;  %v3159_v6 = vmul.f32 %v11338_v16, %v13386_v46 }
 0x704   : > { %v3161_v55 = vmul.f32 %v11340_v47, %v13382_v12 }
 0x705   : > { %v11342_v53 = vpop.eup %11341  ;;  %3783 = vrot.lane.b32.xlu1 %v12485_v45, %s11858_s27 }
 0x706   : > { %v3160_v7 = vmul.f32 %v11342_v53, %v13394_v19  ;;  %v3192_v0 = vpack.c.bf16 %v3162_v2, %v3161_v55 }
 0x708   : > { %v3191_v17 = vpack.c.bf16 %v3160_v7, %v3159_v6 }
 0x709   : > { %3670 = vrot.lane.b32.xlu1 %v12465_v56, %s11859_s28 }
 0x70a   : > { %10237 = vmatprep.mubr.msk.bf16.mxu1 %vm1694_vm2, %v3191_v17 }
 0x70b   : > { %10238 = vmatmul.mubr.msk.bf16.vlgmr.msra.gmra.mxu1 %vm1694_vm2, %v3192_v0 }
 0x70c   : > { %10262 = vmatpush3.bf16.msra.mxu1 %v13151_v57 }
 0x70d   : > { %10263 = vmatprep.subr.bf16.mxu1 %v13149_v28  ;;  %3569 = vrot.lane.b32.xlu1 %v12453_v41, %s11859_s28 }
 0x710   : > { %10264 = vmatpush3.bf16.msra.mxu1 %v13149_v28 }
 0x711   : > { %10265 = vmatprep.subr.bf16.mxu1 %v13154_v36  ;;  %3890 = vrot.lane.b32.xlu1 %v12511_v20, %s11858_s27 }
 0x712   : > { %v3051_v12 = vpop.xlane.xlu0 %3050 }
 0x713   : > { %3676 = vrot.lane.b32.xlu0 %v12469_v59, %s11858_s27 }
 0x714   : > { %10266 = vmatpush3.bf16.msra.mxu1 %v13154_v36 }
 0x715   : > { %10267 = vmatprep.subr.bf16.mxu1 %v13158_v29  ;;  %3775 = vrot.lane.b32.xlu1 %v12485_v45, %s11859_s28 }
 0x716   : > { %v3054_v57 = vpop.xlane.xlu1 %3053 }
 0x717   : > { %3668 = vrot.lane.b32.xlu0 %v12469_v59, %s11859_s28  ;;  %v3045_v28 = vpop.xlane.xlu0 %3044  ;;  %11343 = vrcp.f32 %v3054_v57 }
 0x718   : > { %10268 = vmatpush3.bf16.msra.mxu1 %v13158_v29  ;;  %11345 = vrcp.f32 %v3045_v28 }
 0x719   : > { %10701 = vmatprep.subr.msk.bf16.mxu1 %vm1301_vm1, %v13356_v22  ;;  %3672 = vrot.lane.b32.xlu1 %v12481_v63, %s11859_s28  ;;  %11347 = vrcp.f32 %v3051_v12 }
 0x71a   : > { %v3048_v36 = vpop.xlane.xlu1 %3047 }
 0x71b   : > { %11349 = vrcp.f32 %v3048_v36  ;;  %3892 = vrot.lane.b32.xlu0 %v12506_v39, %s11858_s27 }
 0x71d   : > { %3886 = vrot.lane.b32.xlu1 %v12516_v5, %s11858_s27 }
 0x71e   : > { %v3063_v46 = vpop.xlane.xlu1 %3062 }
 0x71f   : > { %3567 = vrot.lane.b32.xlu0 %v12455_v35, %s11859_s28 }
 0x721   : > { %3880 = vrot.lane.b32.xlu1 %v12501_v34, %s11859_s28 }
 0x722   : > { %v3057_v29 = vpop.xlane.xlu1 %3056 }
 0x723   : > { %3781 = vrot.lane.b32.xlu0 %v18511_v1, %s11858_s27 }
 0x724   : > { %v11344_v19 = vpop.eup %11343 }
 0x725   : > { %v3075_v51 = vpop.xlane.xlu0 %3074  ;;  %3779 = vrot.lane.b32.xlu1 %v12493_v15, %s11859_s28  ;;  %v11346_v10 = vpop.eup %11345  ;;  %v3166_v16 = vmul.f32 %v11344_v19, %v13411_v14 }
 0x726   : > { %v3066_v31 = vpop.xlane.xlu1 %3065  ;;  %v11348_v38 = vpop.eup %11347  ;;  %v3163_v53 = vmul.f32 %v11346_v10, %v13413_v58 }
 0x727   : > { %3773 = vrot.lane.b32.xlu0 %v18511_v1, %s11859_s28  ;;  %11351 = vrcp.f32 %v3066_v31  ;;  %v3165_v7 = vmul.f32 %v11348_v38, %v13405_v44  ;;  %v18512_v44 = vld [vmem:[#allocation4_spill] sm:$0xff] }
 0x728   : > { %v11350_v48 = vpop.eup %11349  ;;  %11353 = vrcp.f32 %v3057_v29 }
 0x729   : > { %v3078_v47 = vpop.xlane.xlu0 %3077  ;;  %3884 = vrot.lane.b32.xlu1 %v12506_v39, %s11859_s28  ;;  %v3164_v2 = vmul.f32 %v11350_v48, %v13421_v60  ;;  %11355 = vrcp.f32 %v3063_v46  ;;  %v3194_v17 = vpack.c.bf16 %v3166_v16, %v3165_v7 }
 0x72a   : > { %v3060_v6 = vpop.xlane.xlu1 %3059 }
 0x72b   : > { %11357 = vrcp.f32 %v3060_v6  ;;  %3888 = vrot.lane.b32.xlu0 %v12501_v34, %s11858_s27  ;;  %v3193_v55 = vpack.c.bf16 %v3164_v2, %v3163_v53 }
 0x72d   : > { %v3072_v14 = vpop.xlane.xlu0 %3071  ;;  %4355 = vrot.lane.b32.xlu1 %v12455_v35, %s11860_s29  ;;  %10241 = vmatprep.mubr.msk.bf16.mxu1 %vm1694_vm2, %v3193_v55  ;;  %v18513_v55 = vld [vmem:[#allocation9_spill] sm:$0xff] }
 0x72e   : > { %11359 = vrcp.f32 %v3072_v14  ;;  %v3069_v58 = vpop.xlane.xlu1 %3068  ;;  %10242 = vmatmul.mubr.msk.bf16.gmra.mxu1 %vm1694_vm2, %v3194_v17  ;;  %v18514_v14 = vld [vmem:[#allocation42_spill] sm:$0xff] }
 0x72f   : > { %11361 = vrcp.f32 %v3069_v58  ;;  %3674 = vrot.lane.b32.xlu0 %v18512_v44, %s11859_s28 }
 0x730   : > { %11363 = vrcp.f32 %v3078_v47 }
 0x731   : > { %v3087_v60 = vpop.xlane.xlu0 %3086  ;;  %4353 = vrot.lane.b32.xlu1 %v12461_v21, %s11860_s29  ;;  %11365 = vrcp.f32 %v3075_v51 }
 0x732   : > { %v3081_v0 = vpop.xlane.xlu1 %3080 }
 0x733   : > { %3878 = vrot.lane.b32.xlu0 %v12516_v5, %s11859_s28 }
 0x734   : > { %v11352_v12 = vpop.eup %11351 }
 0x735   : > { %v3099_v57 = vpop.xlane.xlu0 %3098  ;;  %4446 = vrot.lane.b32.xlu1 %v18512_v44, %s11860_s29  ;;  %v11354_v28 = vpop.eup %11353  ;;  %v3170_v19 = vmul.f32 %v11352_v12, %v13435_v24 }
 0x736   : > { %v3090_v36 = vpop.xlane.xlu1 %3089  ;;  %v11356_v46 = vpop.eup %11355  ;;  %v3167_v10 = vmul.f32 %v11354_v28, %v13433_v50 }
 0x737   : > { %3777 = vrot.lane.b32.xlu0 %v12497_v32, %s11859_s28  ;;  %11367 = vrcp.f32 %v3090_v36  ;;  %v3169_v38 = vmul.f32 %v11356_v46, %v13427_v11 }
 0x738   : > { %v11358_v29 = vpop.eup %11357  ;;  %11369 = vrcp.f32 %v3081_v0  ;;  %v18516_v0 = vld [vmem:[#allocation40_spill] sm:$0xff] }
 0x739   : > { %v3093_v51 = vpop.xlane.xlu0 %3092  ;;  %4533 = vrot.lane.b32.xlu1 %v12497_v32, %s11860_s29  ;;  %v3168_v31 = vmul.f32 %v11358_v29, %v13447_v13  ;;  %11371 = vrcp.f32 %v3087_v60  ;;  %v3196_v53 = vpack.c.bf16 %v3170_v19, %v3169_v38  ;;  %v18517_v19 = vld [vmem:[#allocation41_spill] sm:$0xff] }
 0x73a   : > { %v3084_v48 = vpop.xlane.xlu1 %3083 }
 0x73b   : > { %v11360_v16 = vpop.eup %11359  ;;  %11373 = vrcp.f32 %v3084_v48  ;;  %3882 = vrot.lane.b32.xlu0 %v12511_v20, %s11859_s28  ;;  %v3195_v24 = vpack.c.bf16 %v3168_v31, %v3167_v10  ;;  %s11866_s28 = smov 24  }
 0x73c   : > { %v11362_v47 = vpop.eup %11361  ;;  %11375 = vrcp.f32 %v3093_v51  ;;  %v3172_v50 = vmul.f32 %v11360_v16, %v13461_v43  ;;  %v18515_v43 = vld [vmem:[#allocation2_spill] sm:$0xff] }
 0x73d   : > { %v11364_v2 = vpop.eup %11363  ;;  %v3102_v6 = vpop.xlane.xlu0 %3101  ;;  %10253 = vmatprep.mubr.msk.bf16.mxu0 %vm1694_vm2, %v3195_v24  ;;  %4531 = vrot.lane.b32.xlu1 %v12485_v45, %s11860_s29  ;;  %v3171_v11 = vmul.f32 %v11362_v47, %v13455_v8  ;;  %v18518_v24 = vld [vmem:[#allocation43_spill] sm:$0xff] }
 0x73e   : > { %10254 = vmatmul.mubr.msk.bf16.vlgmr.msra.gmra.mxu0 %vm1694_vm2, %v3196_v53  ;;  %v3096_v13 = vpop.xlane.xlu1 %3095  ;;  %v11366_v7 = vpop.eup %11365  ;;  %v3174_v58 = vmul.f32 %v11364_v2, %v13451_v52 }
 0x73f   : > { %10278 = vmatpush3.bf16.msra.mxu0 %v18513_v55  ;;  %11377 = vrcp.f32 %v3096_v13  ;;  %4357 = vrot.lane.b32.xlu0 %v12453_v41, %s11860_s29  ;;  %v3197_v17 = vpack.c.bf16 %v3172_v50, %v3171_v11  ;;  %v3173_v8 = vmul.f32 %v11366_v7, %v13441_v18  ;;  %v18519_v11 = vld [vmem:[#allocation44_spill] sm:$0xff] }
 0x740   : > { %11379 = vrcp.f32 %v3102_v6  ;;  %10279 = vmatprep.subr.bf16.mxu0 %v18514_v14 }
 0x741   : > { %v3111_v60 = vpop.xlane.xlu0 %3110  ;;  %4529 = vrot.lane.b32.xlu1 %v18511_v1, %s11860_s29  ;;  %10257 = vmatprep.mubr.msk.bf16.mxu0 %vm1694_vm2, %v3197_v17  ;;  %11381 = vrcp.f32 %v3099_v57  ;;  %v3198_v28 = vpack.c.bf16 %v3174_v58, %v3173_v8 }
 0x743   : > { %10280 = vmatpush3.bf16.msra.mxu0 %v18514_v14  ;;  %4351 = vrot.lane.b32.xlu0 %v18515_v43, %s11860_s29 }
 0x744   : > { %10281 = vmatprep.subr.bf16.mxu0 %v18516_v0  ;;  %v3108_v12 = vpop.xlane.xlu1 %3107  ;;  %v11368_v36 = vpop.eup %11367 }
 0x745   : > { %11383 = vrcp.f32 %v3108_v12  ;;  %v3105_v52 = vpop.xlane.xlu0 %3104  ;;  %4624 = vrot.lane.b32.xlu1 %v12506_v39, %s11860_s29  ;;  %v11370_v46 = vpop.eup %11369  ;;  %v3178_v29 = vmul.f32 %v11368_v36, %v13478_v9  ;;  %v18523_v12 = vld [vmem:[#allocation45_spill] sm:$0xff] }
 0x746   : > { %11385 = vrcp.f32 %v3105_v52  ;;  %10258 = vmatmul.mubr.msk.bf16.gmra.mxu0 %vm1694_vm2, %v3198_v28  ;;  %v11372_v18 = vpop.eup %11371  ;;  %v3175_v10 = vmul.f32 %v11370_v46, %v13470_v4  ;;  %v18524_v36 = vld [vmem:[#allocation49_spill] sm:$0xff]  ;;  %v3592_v52 = vsel %vm1301_vm1, %v18523_v12, 0 }
 0x747   : > { %10282 = vmatpush3.bf16.msra.mxu0 %v18516_v0  ;;  %4535 = vrot.lane.b32.xlu0 %v12493_v15, %s11860_s29  ;;  %11387 = vrcp.f32 %v3111_v60  ;;  %v3177_v48 = vmul.f32 %v11372_v18, %v13465_v33  ;;  %v18521_v60 = vld [vmem:[#allocation48_spill] sm:$0xff]  ;;  %v3700_v18 = vsel %vm1301_vm1, %v18524_v36, 0 }
 0x748   : > { %v11374_v57 = vpop.eup %11373  ;;  %10283 = vmatprep.subr.bf16.mxu0 %v18517_v19 }
 0x749   : > { %v3114_v51 = vpop.xlane.xlu0 %3113  ;;  %4721 = vrot.lane.b32.xlu1 %v12453_v41, %s11861_s30  ;;  %v3176_v31 = vmul.f32 %v11374_v57, %v13486_v25  ;;  %v11376_v38 = vpop.eup %11375  ;;  %v3200_v47 = vpack.c.bf16 %v3178_v29, %v3177_v48  ;;  %v3601_v25 = vsel %vm1301_vm1, %v13356_v22, 0 }
 0x74a   : > { %11389 = vrcp.f32 %v3114_v51  ;;  %v3179_v33 = vmul.f32 %v11376_v38, %v13488_v62  ;;  %v3566_v57 = vpop.permute.xlu1 %3565 }
 0x74b   : > { %10284 = vmatpush3.bf16.msra.mxu0 %v18517_v19  ;;  %4444 = vrot.lane.b32.xlu0 %v12481_v63, %s11860_s29  ;;  %v3199_v9 = vpack.c.bf16 %v3176_v31, %v3175_v10 }
 0x74c   : > { %v11378_v16 = vpop.eup %11377  ;;  %10705 = vmatprep.subr.msk.bf16.mxu0 %vm1301_vm1, %v18518_v24 }
 0x74d   : > { %v11380_v53 = vpop.eup %11379  ;;  %4620 = vrot.lane.b32.xlu1 %v12501_v34, %s11860_s29  ;;  %10269 = vmatprep.mubr.msk.bf16.mxu1 %vm1694_vm2, %v3199_v9  ;;  %v3180_v4 = vmul.f32 %v11378_v16, %v13496_v37  ;;  %v3788_v46 = vpop.permute.xlu0 %3787 }
 0x74e   : > { %10270 = vmatmul.mubr.msk.bf16.vlgmr.msra.gmra.mxu1 %vm1694_vm2, %v3200_v47  ;;  %v11382_v2 = vpop.eup %11381  ;;  %v3182_v50 = vmul.f32 %v11380_v53, %v13492_v30  ;;  %v3598_v30 = vsel %vm1301_vm1, %v18519_v11, 0  ;;  %v3811_v29 = vsel %vm1301_vm1, %v3788_v46, 0 }
 0x74f   : > { %4442 = vrot.lane.b32.xlu0 %v12465_v56, %s11860_s29  ;;  %10294 = vmatpush3.bf16.xpose.msra.mxu1 %v3601_v25  ;;  %v3201_v6 = vpack.c.bf16 %v3180_v4, %v3179_v33  ;;  %v3181_v37 = vmul.f32 %v11382_v2, %v13480_v40 }
 0x750   : > { %10702 = vmatprep.subr.msk.bf16.mxu1 %vm1301_vm1, %v18519_v11 }
 0x751   : > { %4618 = vrot.lane.b32.xlu1 %v12516_v5, %s11860_s29  ;;  %10273 = vmatprep.mubr.msk.bf16.mxu1 %vm1694_vm2, %v3201_v6  ;;  %v3202_v7 = vpack.c.bf16 %v3182_v50, %v3181_v37 }
 0x752   : > { %v11384_v62 = vpop.eup %11383 }
 0x753   : > { %v11386_v22 = vpop.eup %11385  ;;  %4440 = vrot.lane.b32.xlu0 %v12469_v59, %s11860_s29  ;;  %v3184_v13 = vmul.f32 %v11384_v62, %v13508_v26 }
 0x754   : > { %v3183_v55 = vmul.f32 %v11386_v22, %v13506_v49  ;;  %v11388_v17 = vpop.eup %11387  ;;  %v18520_v49 = vld [vmem:[#allocation46_spill] sm:$0xff] }
 0x755   : > { %4826 = vrot.lane.b32.xlu1 %v18512_v44, %s11861_s30  ;;  %v3185_v26 = vmul.f32 %v11388_v17, %v13500_v61  ;;  %v3706_v61 = vsel %vm1301_vm1, %v18518_v24, 0  ;;  %v3595_v0 = vsel %vm1301_vm1, %v18520_v49, 0 }
 0x756   : > { %10274 = vmatmul.mubr.msk.bf16.gmra.mxu1 %vm1694_vm2, %v3202_v7  ;;  %v3203_v14 = vpack.c.bf16 %v3184_v13, %v3183_v55 }
 0x757   : > { %v11390_v40 = vpop.eup %11389  ;;  %4622 = vrot.lane.b32.xlu0 %v12511_v20, %s11860_s29  ;;  %10296 = vmatpush3.bf16.xpose.msra.mxu1 %v3598_v30 }
 0x758   : > { %v3186_v58 = vmul.f32 %v11390_v40, %v13514_v23  ;;  %10285 = vmatprep.mubr.msk.bf16.mxu0 %vm1694_vm2, %v3203_v14  ;;  %10703 = vmatprep.subr.msk.bf16.mxu1 %vm1301_vm1, %v18520_v49  ;;  %v18522_v23 = vld [vmem:[#allocation47_spill] sm:$0xff] }
 0x759   : > { %10301 = vmatprep.mubr.msk.bf16.mxu1 %vm1301_vm1, %v18521_v60  ;;  %4715 = vrot.lane.b32.xlu1 %v18515_v43, %s11861_s30  ;;  %v3703_v28 = vsel %vm1301_vm1, %v18522_v23, 0 }
 0x75a   : > { %v3204_v8 = vpack.c.bf16 %v3186_v58, %v3185_v26 }
 0x75b   : > { %4719 = vrot.lane.b32.xlu0 %v12455_v35, %s11861_s30 }
 0x75c   : > { %10286 = vmatmul.mubr.msk.bf16.vlgmr.msra.gmra.mxu0 %vm1694_vm2, %v3204_v8 }
 0x75d   : > { %10310 = vmatpush3.bf16.xpose.msra.mxu0 %v3706_v61  ;;  %4824 = vrot.lane.b32.xlu1 %v12481_v63, %s11861_s30 }
 0x75e   : > { %10706 = vmatprep.subr.msk.bf16.mxu0 %vm1301_vm1, %v18522_v23 }
 0x75f   : > { %4717 = vrot.lane.b32.xlu0 %v12461_v21, %s11861_s30  ;;  %10298 = vmatpush3.bf16.xpose.msra.mxu1 %v3595_v0 }
 0x760   : > { %10704 = vmatprep.subr.msk.bf16.mxu1 %vm1301_vm1, %v18523_v12 }
 0x761   : > { %4709 = vrot.lane.b32.xlu1 %v12461_v21, %s11862_s16 }
 0x763   : > { %4707 = vrot.lane.b32.xlu0 %v18515_v43, %s11862_s16 }
 0x765   : > { %10312 = vmatpush3.bf16.xpose.msra.mxu0 %v3703_v28  ;;  %4931 = vrot.lane.b32.xlu1 %v12493_v15, %s11861_s30 }
 0x766   : > { %10707 = vmatprep.subr.msk.bf16.mxu0 %vm1301_vm1, %v18524_v36 }
 0x767   : > { %4822 = vrot.lane.b32.xlu0 %v12465_v56, %s11861_s30  ;;  %10300 = vmatpush3.bf16.xpose.msra.mxu1 %v3592_v52 }
 0x768   : > { %10709 = vmatprep.subr.msk.bf16.mxu1 %vm1301_vm1, %v3788_v46 }
 0x76d   : > { %10314 = vmatpush3.bf16.xpose.msra.mxu0 %v3700_v18 }
 0x76e   : > { %10302 = vmatmul.mubr.msk.bf16.vlgmr.msra.gmra.mxu1 %vm1301_vm1, %v3566_v57 }
 0x76f   : > { %10326 = vmatpush3.bf16.xpose.msra.mxu1 %v3811_v29 }
 0x779   : > { %v3117_v19 = vpop.xlane.xlu1 %3116 }
 0x77d   : > { %v3786_v51 = vpop.permute.xlu1 %3785 }
 0x77e   : > { %v3123_v10 = vpop.xlane.xlu0 %3122  ;;  %10710 = vmatprep.subr.msk.bf16.mxu1 %vm1301_vm1, %v3786_v51  ;;  %v3808_v31 = vsel %vm1301_vm1, %v3786_v51, 0 }
 0x77f   : > { %10328 = vmatpush3.bf16.xpose.msra.mxu1 %v3808_v31 }
 0x781   : > { %v3784_v38 = vpop.permute.xlu1 %3783 }
 0x782   : > { %v3126_v48 = vpop.xlane.xlu0 %3125  ;;  %10711 = vmatprep.subr.msk.bf16.mxu1 %vm1301_vm1, %v3784_v38  ;;  %v3805_v24 = vsel %vm1301_vm1, %v3784_v38, 0 }
 0x783   : > { %11391 = vrcp.f32 %v3126_v48 }
 0x784   : > { %11393 = vrcp.f32 %v3117_v19 }
 0x785   : > { %v3671_v9 = vpop.permute.xlu1 %3670  ;;  %11395 = vrcp.f32 %v3123_v10 }
 0x786   : > { %v3120_v16 = vpop.xlane.xlu0 %3119 }
 0x787   : > { %11397 = vrcp.f32 %v3120_v16  ;;  %10330 = vmatpush3.bf16.xpose.msra.mxu1 %v3805_v24 }
 0x789   : > { %v3570_v47 = vpop.permute.xlu1 %3569 }
 0x78a   : > { %v3677_v53 = vpop.permute.xlu0 %3676 }
 0x78b   : > { %10708 = vmatprep.subr.msk.bf16.mxu0 %vm1301_vm1, %v3677_v53  ;;  %v3697_v33 = vsel %vm1301_vm1, %v3677_v53, 0 }
 0x78c   : > { %10316 = vmatpush3.bf16.xpose.msra.mxu0 %v3697_v33 }
 0x78d   : > { %v3891_v4 = vpop.permute.xlu1 %3890 }
 0x78e   : > { %v3669_v25 = vpop.permute.xlu0 %3668  ;;  %v3913_v23 = vsel %vm1301_vm1, %v3891_v4, 0 }
 0x790   : > { %v11392_v2 = vpop.eup %11391 }
 0x791   : > { %v3776_v6 = vpop.permute.xlu1 %3775  ;;  %v11394_v11 = vpop.eup %11393  ;;  %v3190_v22 = vmul.f32 %v11392_v2, %v13534_v3 }
 0x792   : > { %v3893_v50 = vpop.permute.xlu0 %3892  ;;  %v11396_v62 = vpop.eup %11395  ;;  %v3187_v7 = vmul.f32 %v11394_v11, %v13526_v54 }
 0x793   : > { %10713 = vmatprep.subr.msk.bf16.mxu0 %vm1301_vm1, %v3893_v50  ;;  %v3189_v30 = vmul.f32 %v11396_v62, %v13530_v42  ;;  %v3916_v49 = vsel %vm1301_vm1, %v3893_v50, 0 }
 0x794   : > { %v11398_v37 = vpop.eup %11397 }
 0x795   : > { %v3673_v13 = vpop.permute.xlu1 %3672  ;;  %v3188_v55 = vmul.f32 %v11398_v37, %v13538_v27  ;;  %v3206_v40 = vpack.c.bf16 %v3190_v22, %v3189_v30 }
 0x796   : > { %v3568_v17 = vpop.permute.xlu0 %3567 }
 0x797   : > { %10305 = vmatprep.mubr.msk.bf16.mxu1 %vm1301_vm1, %v3568_v17  ;;  %v3205_v14 = vpack.c.bf16 %v3188_v55, %v3187_v7 }
 0x798   : > { %10306 = vmatmul.mubr.msk.bf16.gmra.mxu1 %vm1301_vm1, %v3570_v47 }
 0x799   : > { %10289 = vmatprep.mubr.msk.bf16.mxu0 %vm1694_vm2, %v3205_v14  ;;  %v3887_v26 = vpop.permute.xlu1 %3886 }
 0x79a   : > { %10290 = vmatmul.mubr.msk.bf16.gmra.mxu0 %vm1694_vm2, %v3206_v40  ;;  %v3782_v3 = vpop.permute.xlu0 %3781  ;;  %v3907_v29 = vsel %vm1301_vm1, %v3887_v26, 0 }
 0x79b   : > { %10317 = vmatprep.mubr.msk.bf16.mxu0 %vm1301_vm1, %v3669_v25  ;;  %10712 = vmatprep.subr.msk.bf16.mxu1 %vm1301_vm1, %v3782_v3  ;;  %v3802_v54 = vsel %vm1301_vm1, %v3782_v3, 0 }
 0x79c   : > { %10332 = vmatpush3.bf16.xpose.msra.mxu1 %v3802_v54 }
 0x79d   : > { %v3881_v42 = vpop.permute.xlu1 %3880 }
 0x79e   : > { %v3774_v27 = vpop.permute.xlu0 %3773 }
 0x79f   : > { %10333 = vmatprep.mubr.msk.bf16.mxu1 %vm1301_vm1, %v3774_v27 }
 0x7a1   : > { %v3780_v58 = vpop.permute.xlu1 %3779 }
 0x7a2   : > { %10318 = vmatmul.mubr.msk.bf16.vlgmr.msra.gmra.mxu0 %vm1301_vm1, %v3671_v9  ;;  %v3889_v60 = vpop.permute.xlu0 %3888 }
 0x7a3   : > { %10342 = vmatpush3.bf16.xpose.msra.mxu0 %v3916_v49  ;;  %10321 = vmatprep.mubr.msk.bf16.mxu0 %vm1301_vm1, %v3673_v13  ;;  %v3910_v52 = vsel %vm1301_vm1, %v3889_v60, 0 }
 0x7a4   : > { %10334 = vmatmul.mubr.msk.bf16.vlgmr.msra.gmra.mxu1 %vm1301_vm1, %v3776_v6  ;;  %10714 = vmatprep.subr.msk.bf16.mxu0 %vm1301_vm1, %v3891_v4 }
 0x7a5   : > { %v3885_v8 = vpop.permute.xlu1 %3884 }
 0x7a6   : > { %v3675_v61 = vpop.permute.xlu0 %3674 }
 0x7a9   : > { %v4356_v12 = vpop.permute.xlu1 %4355 }
 0x7aa   : > { %10322 = vmatmul.mubr.msk.bf16.gmra.mxu0 %vm1301_vm1, %v3675_v61  ;;  %v3879_v0 = vpop.permute.xlu0 %3878 }
 0x7ab   : > { %10344 = vmatpush3.bf16.xpose.msra.mxu0 %v3913_v23  ;;  %10349 = vmatprep.mubr.msk.bf16.mxu0 %vm1301_vm1, %v3879_v0 }
 0x7ac   : > { %10715 = vmatprep.subr.msk.bf16.mxu0 %vm1301_vm1, %v3889_v60 }
 0x7ad   : > { %v4354_v36 = vpop.permute.xlu1 %4353 }
 0x7ae   : > { %v3778_v28 = vpop.permute.xlu0 %3777 }
 0x7af   : > { %10337 = vmatprep.mubr.msk.bf16.mxu1 %vm1301_vm1, %v3778_v28 }
 0x7b0   : > { %10338 = vmatmul.mubr.msk.bf16.gmra.mxu1 %vm1301_vm1, %v3780_v58 }
 0x7b1   : > { %v4447_v57 = vpop.permute.xlu1 %4446 }
 0x7b2   : > { %v3883_v46 = vpop.permute.xlu0 %3882 }
 0x7b3   : > { %10346 = vmatpush3.bf16.xpose.msra.mxu0 %v3910_v52 }
 0x7b4   : > { %10716 = vmatprep.subr.msk.bf16.mxu0 %vm1301_vm1, %v3887_v26 }
 0x7b5   : > { %v13760_v51 = vpop.permute.xlu1 %4533 }
 0x7b6   : > { %v4358_v18 = vpop.permute.xlu0 %4357 }
 0x7b7   : > { %10357 = vmatprep.subr.bf16.mxu1 %v4358_v18 }
 0x7b8   : > { %10358 = vmatpush3.bf16.msra.mxu1 %v4358_v18 }
 0x7b9   : > { %10359 = vmatprep.subr.bf16.mxu1 %v4356_v12  ;;  %v13765_v38 = vpop.permute.xlu1 %4531 }
 0x7ba   : > { %v4352_v19 = vpop.permute.xlu0 %4351 }
 0x7bb   : > { %10348 = vmatpush3.bf16.xpose.msra.mxu0 %v3907_v29 }
 0x7bc   : > { %10373 = vmatprep.subr.bf16.mxu0 %v4447_v57  ;;  %10360 = vmatpush3.bf16.msra.mxu1 %v4356_v12 }
 0x7bd   : > { %10361 = vmatprep.subr.bf16.mxu1 %v4354_v36  ;;  %v13769_v9 = vpop.permute.xlu1 %4529 }
 0x7be   : > { %v13762_v10 = vpop.permute.xlu0 %4535 }
 0x7c0   : > { %10362 = vmatpush3.bf16.msra.mxu1 %v4354_v36 }
 0x7c1   : > { %10363 = vmatprep.subr.bf16.mxu1 %v4352_v19  ;;  %v13778_v33 = vpop.permute.xlu1 %4624 }
 0x7c2   : > { %10350 = vmatmul.mubr.msk.bf16.vlgmr.msra.gmra.mxu0 %vm1301_vm1, %v3881_v42  ;;  %v4445_v31 = vpop.permute.xlu0 %4444  ;;  %18528 = vst [vmem:[#allocation42_spill] sm:$0xff] %v13778_v33 }
 0x7c3   : > { %10353 = vmatprep.mubr.msk.bf16.mxu0 %vm1301_vm1, %v3883_v46  ;;  %10374 = vmatpush3.bf16.msra.mxu0 %v4447_v57 }
 0x7c4   : > { %10375 = vmatprep.subr.bf16.mxu0 %v4445_v31  ;;  %10364 = vmatpush3.bf16.msra.mxu1 %v4352_v19 }
 0x7c5   : > { %10389 = vmatprep.subr.bf16.mxu1 %v13762_v10 }
 0x7c6   : > { %v4443_v48 = vpop.permute.xlu0 %4442 }
 0x7c7   : > { %10376 = vmatpush3.bf16.msra.mxu0 %v4445_v31 }
 0x7c8   : > { %10377 = vmatprep.subr.bf16.mxu0 %v4443_v48 }
 0x7ca   : > { %10354 = vmatmul.mubr.msk.bf16.gmra.mxu0 %vm1301_vm1, %v3885_v8  ;;  %v4441_v16 = vpop.permute.xlu0 %4440 }
 0x7cb   : > { %v13772_v24 = vpop.f32.mrf.mxu1  ;;  %10378 = vmatpush3.bf16.msra.mxu0 %v4443_v48 }
 0x7cc   : > { %18525 = vst [vmem:[#allocation5_spill] sm:$0xff] %v13772_v24  ;;  %10379 = vmatprep.subr.bf16.mxu0 %v4441_v16 }
 0x7cd   : > { %v13774_v47 = vpop.f32.mrf.mxu1 }
 0x7ce   : > { %18526 = vst [vmem:[#allocation4_spill] sm:$0xff] %v13774_v47 }
 0x7cf   : > { %v13776_v53 = vpop.f32.mrf.mxu1  ;;  %10380 = vmatpush3.bf16.msra.mxu0 %v4441_v16 }
 0x7d0   : > { %18527 = vst [vmem:[#allocation9_spill] sm:$0xff] %v13776_v53  ;;  %10405 = vmatprep.subr.bf16.mxu0 %v13778_v33 }
 0x7d1   : > { %v13783_v25 = vpop.f32.mrf.mxu1 }
 0x7d2   : > { %18529 = vst [vmem:[#allocation40_spill] sm:$0xff] %v13783_v25 }
 0x7ee   : > { %v13785_v2 = vpop.f32.mrf.mxu1 }
 0x7ef   : > { %18530 = vst [vmem:[#allocation41_spill] sm:$0xff] %v13785_v2 }
 0x7f0   : > { %v13787_v6 = vpop.f32.mrf.mxu1 }
 0x7f1   : > { %18531 = vst [vmem:[#allocation43_spill] sm:$0xff] %v13787_v6 }
 0x7f2   : > { %v13789_v11 = vpop.f32.mrf.mxu1 }
 0x7f3   : > { %18532 = vst [vmem:[#allocation44_spill] sm:$0xff] %v13789_v11 }
 0x7f4   : > { %v13813_v26 = vpop.f32.mrf.mxu1 }
 0x7f5   : > { %18540 = vst [vmem:[#allocation52_spill] sm:$0xff] %v13813_v26 }
 0x7fe   : > { %v13793_v62 = vpop.f32.mrf.mxu0 }
 0x7ff   : > { %18533 = vst [vmem:[#allocation46_spill] sm:$0xff] %v13793_v62 }
 0x800   : > { %v13795_v37 = vpop.f32.mrf.mxu0 }
 0x801   : > { %18534 = vst [vmem:[#allocation48_spill] sm:$0xff] %v13795_v37 }
 0x802   : > { %v13797_v22 = vpop.f32.mrf.mxu0 }
 0x803   : > { %18535 = vst [vmem:[#allocation47_spill] sm:$0xff] %v13797_v22  ;;  %v13997_v22 = vpop.permute.xlu0 %4622 }
 0x804   : > { %v13801_v7 = vpop.f32.mrf.mxu0  ;;  %18560 = vst [vmem:[#allocation72_spill] sm:$0xff] %v13997_v22 }
 0x805   : > { %18536 = vst [vmem:[#allocation45_spill] sm:$0xff] %v13801_v7 }
 0x806   : > { %v13805_v17 = vpop.f32.mrf.mxu0 }
 0x807   : > { %18537 = vst [vmem:[#allocation49_spill] sm:$0xff] %v13805_v17  ;;  %v14001_v11 = vpop.permute.xlu0 %4719 }
 0x808   : > { %v13807_v30 = vpop.f32.mrf.mxu0  ;;  %18562 = vst [vmem:[#allocation74_spill] sm:$0xff] %v14001_v11 }
 0x809   : > { %18538 = vst [vmem:[#allocation50_spill] sm:$0xff] %v13807_v30 }
 0x80a   : > { %v13809_v14 = vpop.f32.mrf.mxu0 }
 0x80b   : > { %18539 = vst [vmem:[#allocation51_spill] sm:$0xff] %v13809_v14  ;;  %v13989_v14 = vpop.permute.xlu1 %4721 }
 0x80c   : > { %v13815_v3 = vpop.f32.mrf.mxu0 }
 0x80d   : > { %18541 = vst [vmem:[#allocation53_spill] sm:$0xff] %v13815_v3 }
 0x80e   : > { %v13819_v42 = vpop.f32.mrf.mxu1 }
 0x80f   : > { %18542 = vst [vmem:[#allocation54_spill] sm:$0xff] %v13819_v42 }
 0x810   : > { %v13821_v27 = vpop.f32.mrf.mxu1 }
 0x811   : > { %18543 = vst [vmem:[#allocation55_spill] sm:$0xff] %v13821_v27 }
 0x812   : > { %v13823_v58 = vpop.f32.mrf.mxu1 }
 0x813   : > { %18544 = vst [vmem:[#allocation56_spill] sm:$0xff] %v13823_v58 }
 0x814   : > { %v13827_v60 = vpop.f32.mrf.mxu1 }
 0x815   : > { %18545 = vst [vmem:[#allocation57_spill] sm:$0xff] %v13827_v60 }
 0x816   : > { %v13829_v8 = vpop.f32.mrf.mxu1 }
 0x817   : > { %18546 = vst [vmem:[#allocation58_spill] sm:$0xff] %v13829_v8 }
 0x818   : > { %v13831_v61 = vpop.f32.mrf.mxu1 }
 0x819   : > { %18547 = vst [vmem:[#allocation59_spill] sm:$0xff] %v13831_v61 }
 0x81a   : > { %v13833_v23 = vpop.f32.mrf.mxu1 }
 0x81b   : > { %18548 = vst [vmem:[#allocation60_spill] sm:$0xff] %v13833_v23 }
 0x81c   : > { %v13837_v12 = vpop.f32.mrf.mxu0  ;;  %v13849_v57 = vpop.f32.mrf.mxu1 }
 0x81d   : > { %18549 = vst [vmem:[#allocation61_spill] sm:$0xff] %v13837_v12  ;;  %18553 = vst [vmem:[#allocation65_spill] sm:$0xff] %v13849_v57 }
 0x81e   : > { %v13839_v28 = vpop.f32.mrf.mxu0 }
 0x81f   : > { %18550 = vst [vmem:[#allocation62_spill] sm:$0xff] %v13839_v28 }
 0x820   : > { %v13841_v36 = vpop.f32.mrf.mxu0 }
 0x821   : > { %18551 = vst [vmem:[#allocation63_spill] sm:$0xff] %v13841_v36 }
 0x822   : > { %v13845_v46 = vpop.f32.mrf.mxu0 }
 0x823   : > { %18552 = vst [vmem:[#allocation64_spill] sm:$0xff] %v13845_v46 }
 0x82e   : > { %v13851_v29 = vpop.f32.mrf.mxu1 }
 0x82f   : > { %v3989_v19 = vsel %vm1694_vm2, %v13851_v29, -inf }
 0x830   : > { %3990 = vmax.xlane.f32.xlu0 %v3989_v19  ;;  %v13855_v31 = vpop.f32.mrf.mxu1 }
 0x831   : > { %v3983_v16 = vsel %vm1694_vm2, %v13855_v31, -inf }
 0x832   : > { %v13857_v48 = vpop.f32.mrf.mxu1 }
 0x833   : > { %v3992_v0 = vsel %vm1694_vm2, %v13857_v48, -inf }
 0x834   : > { %3984 = vmax.xlane.f32.xlu0 %v3983_v16  ;;  %v13861_v52 = vpop.f32.mrf.mxu1 }
 0x835   : > { %v3986_v18 = vsel %vm1694_vm2, %v13861_v52, -inf }
 0x836   : > { %3987 = vmax.xlane.f32.xlu1 %v3986_v18 }
 0x838   : > { %3993 = vmax.xlane.f32.xlu0 %v3992_v0 }
 0x858   : > { %v13867_v54 = vpop.f32.mrf.mxu1 }
 0x859   : > { %v4001_v19 = vsel %vm1694_vm2, %v13867_v54, -inf }
 0x85a   : > { %v13871_v55 = vpop.f32.mrf.mxu0  ;;  %4002 = vmax.xlane.f32.xlu0 %v4001_v19  ;;  %v13873_v49 = vpop.f32.mrf.mxu1 }
 0x85b   : > { %18554 = vst [vmem:[#allocation66_spill] sm:$0xff] %v13871_v55  ;;  %v3995_v18 = vsel %vm1694_vm2, %v13873_v49, -inf }
 0x85c   : > { %v13875_v16 = vpop.f32.mrf.mxu0  ;;  %v13877_v40 = vpop.f32.mrf.mxu1 }
 0x85d   : > { %18555 = vst [vmem:[#allocation67_spill] sm:$0xff] %v13875_v16  ;;  %v4004_v0 = vsel %vm1694_vm2, %v13877_v40, -inf }
 0x85e   : > { %v13883_v13 = vpop.f32.mrf.mxu0  ;;  %3996 = vmax.xlane.f32.xlu0 %v3995_v18  ;;  %4005 = vmax.xlane.f32.xlu1 %v4004_v0  ;;  %v13885_v50 = vpop.f32.mrf.mxu1 }
 0x85f   : > { %18556 = vst [vmem:[#allocation68_spill] sm:$0xff] %v13883_v13  ;;  %v3998_v46 = vsel %vm1694_vm2, %v13885_v50, -inf }
 0x860   : > { %v13889_v4 = vpop.f32.mrf.mxu0 }
 0x861   : > { %18557 = vst [vmem:[#allocation69_spill] sm:$0xff] %v13889_v4 }
 0x862   : > { %v13895_v12 = vpop.f32.mrf.mxu0  ;;  %3999 = vmax.xlane.f32.xlu1 %v3998_v46 }
 0x863   : > { %v4013_v18 = vsel %vm1694_vm2, %v13895_v12, -inf }
 0x864   : > { %v13899_v0 = vpop.f32.mrf.mxu0  ;;  %4014 = vmax.xlane.f32.xlu0 %v4013_v18  ;;  %v13901_v36 = vpop.f32.mrf.mxu1 }
 0x865   : > { %v4007_v55 = vsel %vm1694_vm2, %v13899_v0, -inf }
 0x866   : > { %v13903_v19 = vpop.f32.mrf.mxu0  ;;  %v13911_v46 = vpop.f32.mrf.mxu1 }
 0x867   : > { %v4016_v28 = vsel %vm1694_vm2, %v13903_v19, -inf  ;;  %v4031_v30 = vsel %vm1694_vm2, %v13911_v46, -inf }
 0x868   : > { %v13909_v16 = vpop.f32.mrf.mxu0  ;;  %4008 = vmax.xlane.f32.xlu0 %v4007_v55  ;;  %4017 = vmax.xlane.f32.xlu1 %v4016_v28  ;;  %v13921_v23 = vpop.f32.mrf.mxu1 }
 0x869   : > { %v4010_v18 = vsel %vm1694_vm2, %v13909_v16, -inf }
 0x86a   : > { %v13913_v4 = vpop.f32.mrf.mxu0  ;;  %v13931_v60 = vpop.f32.mrf.mxu1 }
 0x86b   : > { %v4025_v13 = vsel %vm1694_vm2, %v13913_v4, -inf  ;;  %v4034_v3 = vsel %vm1694_vm2, %v13931_v60, -inf }
 0x86c   : > { %4011 = vmax.xlane.f32.xlu1 %v4010_v18  ;;  %4026 = vmax.xlane.f32.xlu0 %v4025_v13  ;;  %v13919_v8 = vpop.f32.mrf.mxu0  ;;  %v4037_v13 = vsel %vm1694_vm2, %v13901_v36, -inf }
 0x86d   : > { %v4019_v55 = vsel %vm1694_vm2, %v13919_v8, -inf }
 0x86e   : > { %v13923_v57 = vpop.f32.mrf.mxu0 }
 0x86f   : > { %v4028_v28 = vsel %vm1694_vm2, %v13923_v57, -inf }
 0x870   : > { %4020 = vmax.xlane.f32.xlu0 %v4019_v55  ;;  %4029 = vmax.xlane.f32.xlu1 %v4028_v28  ;;  %v13929_v61 = vpop.f32.mrf.mxu0  ;;  %v13937_v27 = vpop.f32.mrf.mxu1  ;;  %v4040_v55 = vsel %vm1694_vm2, %v13921_v23, -inf }
 0x871   : > { %v4022_v18 = vsel %vm1694_vm2, %v13929_v61, -inf  ;;  %v4049_v37 = vsel %vm1694_vm2, %v13937_v27, -inf }
 0x872   : > { %v13943_v28 = vpop.f32.mrf.mxu1 }
 0x874   : > { %4038 = vmax.xlane.f32.xlu0 %v4037_v13  ;;  %4023 = vmax.xlane.f32.xlu1 %v4022_v18  ;;  %v13949_v7 = vpop.f32.mrf.mxu1  ;;  %v4043_v13 = vsel %vm1694_vm2, %v13943_v28, -inf }
 0x875   : > { %v4052_v18 = vsel %vm1694_vm2, %v13949_v7, -inf }
 0x876   : > { %v13955_v26 = vpop.f32.mrf.mxu1 }
 0x877   : > { %v4046_v6 = vsel %vm1694_vm2, %v13955_v26, -inf }
 0x878   : > { %4032 = vmax.xlane.f32.xlu0 %v4031_v30  ;;  %4041 = vmax.xlane.f32.xlu1 %v4040_v55 }
 0x87c   : > { %4035 = vmax.xlane.f32.xlu1 %v4034_v3  ;;  %4050 = vmax.xlane.f32.xlu0 %v4049_v37 }
 0x880   : > { %4044 = vmax.xlane.f32.xlu0 %v4043_v13  ;;  %4053 = vmax.xlane.f32.xlu1 %v4052_v18 }
 0x882   : > { %v13957_v30 = vpop.f32.mrf.mxu0 }
 0x883   : > { %v4061_v55 = vsel %vm1694_vm2, %v13957_v30, -inf }
 0x884   : > { %v13963_v3 = vpop.f32.mrf.mxu0  ;;  %4062 = vmax.xlane.f32.xlu0 %v4061_v55  ;;  %4047 = vmax.xlane.f32.xlu1 %v4046_v6 }
 0x885   : > { %v4055_v25 = vsel %vm1694_vm2, %v13963_v3, -inf }
 0x886   : > { %v13965_v37 = vpop.f32.mrf.mxu0 }
 0x887   : > { %v4064_v13 = vsel %vm1694_vm2, %v13965_v37, -inf }
 0x888   : > { %v13971_v18 = vpop.f32.mrf.mxu0  ;;  %4056 = vmax.xlane.f32.xlu0 %v4055_v25  ;;  %4065 = vmax.xlane.f32.xlu1 %v4064_v13 }
 0x889   : > { %v4058_v42 = vsel %vm1694_vm2, %v13971_v18, -inf }
 0x88a   : > { %v13973_v47 = vpop.f32.mrf.mxu0 }
 0x88b   : > { %v4073_v6 = vsel %vm1694_vm2, %v13973_v47, -inf }
 0x88c   : > { %v13979_v55 = vpop.f32.mrf.mxu0  ;;  %4059 = vmax.xlane.f32.xlu1 %v4058_v42  ;;  %4074 = vmax.xlane.f32.xlu0 %v4073_v6  ;;  %v13993_v42 = vpop.permute.xlu1 %4620 }
 0x88d   : > { %v4067_v17 = vsel %vm1694_vm2, %v13979_v55, -inf  ;;  %18558 = vst [vmem:[#allocation70_spill] sm:$0xff] %v13993_v42 }
 0x88e   : > { %v13981_v58 = vpop.f32.mrf.mxu0 }
 0x88f   : > { %v4076_v25 = vsel %vm1694_vm2, %v13981_v58, -inf }
 0x890   : > { %v13987_v13 = vpop.f32.mrf.mxu0  ;;  %4068 = vmax.xlane.f32.xlu0 %v4067_v17  ;;  %4077 = vmax.xlane.f32.xlu1 %v4076_v25  ;;  %v13995_v6 = vpop.permute.xlu1 %4618 }
 0x891   : > { %v4070_v62 = vsel %vm1694_vm2, %v13987_v13, -inf  ;;  %18559 = vst [vmem:[#allocation71_spill] sm:$0xff] %v13995_v6  ;;  %v14005_v17 = vpop.permute.xlu0 %4717 }
 0x892   : > { %18564 = vst [vmem:[#allocation76_spill] sm:$0xff] %v14005_v17 }
 0x894   : > { %4071 = vmax.xlane.f32.xlu1 %v4070_v62  ;;  %v13999_v2 = vpop.permute.xlu1 %4826 }
 0x895   : > { %18561 = vst [vmem:[#allocation73_spill] sm:$0xff] %v13999_v2  ;;  %v14009_v53 = vpop.permute.xlu0 %4707 }
 0x896   : > { %18566 = vst [vmem:[#allocation78_spill] sm:$0xff] %v14009_v53 }
 0x898   : > { %v14003_v24 = vpop.permute.xlu1 %4715 }
 0x899   : > { %18563 = vst [vmem:[#allocation75_spill] sm:$0xff] %v14003_v24  ;;  %v14013_v62 = vpop.permute.xlu0 %4822 }
 0x89a   : > { %18568 = vst [vmem:[#allocation80_spill] sm:$0xff] %v14013_v62 }
 0x89c   : > { %v14007_v25 = vpop.permute.xlu1 %4824 }
 0x89d   : > { %18565 = vst [vmem:[#allocation77_spill] sm:$0xff] %v14007_v25 }
 0x8a0   : > { %v14011_v43 = vpop.permute.xlu1 %4709 }
 0x8a1   : > { %18567 = vst [vmem:[#allocation79_spill] sm:$0xff] %v14011_v43 }
 0x8a4   : > { %v14016_v22 = vpop.permute.xlu1 %4931 }
 0x8a5   : > { %18569 = vst [vmem:[#allocation81_spill] sm:$0xff] %v14016_v22 }
 0x8b9   : > { %v3991_v42 = vpop.xlane.xlu0 %3990 }
 0x8ba   : > { %v4081_v6 = vsub.f32 %v13851_v29, %v3991_v42 }
 0x8bc   : > { %v4115_v2 = vmul.f32 1.442695, %v4081_v6 }
 0x8bd   : > { %v3985_v21 = vpop.xlane.xlu0 %3984 }
 0x8be   : > { %11399 = vpow2.f32 %v4115_v2  ;;  %v4079_v24 = vsub.f32 %v13855_v31, %v3985_v21 }
 0x8bf   : > { %v3988_v11 = vpop.xlane.xlu1 %3987 }
 0x8c0   : > { %v4111_v17 = vmul.f32 1.442695, %v4079_v24  ;;  %v4080_v25 = vsub.f32 %v13861_v52, %v3988_v11 }
 0x8c1   : > { %v3994_v33 = vpop.xlane.xlu0 %3993 }
 0x8c2   : > { %11401 = vpow2.f32 %v4111_v17  ;;  %v4082_v43 = vsub.f32 %v13857_v48, %v3994_v33  ;;  %v4113_v53 = vmul.f32 1.442695, %v4080_v25 }
 0x8c4   : > { %v4117_v62 = vmul.f32 1.442695, %v4082_v43 }
 0x8c6   : > { %11403 = vpow2.f32 %v4117_v62 }
 0x8c7   : > { %11405 = vpow2.f32 %v4113_v53 }
 0x8cb   : > { %v14021_v29 = vpop.eup %11399 }
 0x8cc   : > { %v4181_v42 = vsel %vm1694_vm2, %v14021_v29, 0.0 }
 0x8cd   : > { %4182 = vadd.xlane.f32.xlu0 %v4181_v42 }
 0x8cf   : > { %v14025_v2 = vpop.eup %11401 }
 0x8d0   : > { %v4175_v21 = vsel %vm1694_vm2, %v14025_v2, 0.0 }
 0x8d1   : > { %4176 = vadd.xlane.f32.xlu0 %v4175_v21 }
 0x8d3   : > { %v14029_v24 = vpop.eup %11403 }
 0x8d4   : > { %v4184_v33 = vsel %vm1694_vm2, %v14029_v24, 0.0  ;;  %v14033_v43 = vpop.eup %11405 }
 0x8d5   : > { %4185 = vadd.xlane.f32.xlu1 %v4184_v33  ;;  %v4178_v53 = vsel %vm1694_vm2, %v14033_v43, 0.0 }
 0x8d9   : > { %4179 = vadd.xlane.f32.xlu1 %v4178_v53 }
 0x8e3   : > { %v4003_v11 = vpop.xlane.xlu0 %4002 }
 0x8e4   : > { %v4085_v52 = vsub.f32 %v13867_v54, %v4003_v11 }
 0x8e6   : > { %v4123_v31 = vmul.f32 1.442695, %v4085_v52 }
 0x8e7   : > { %v4006_v48 = vpop.xlane.xlu1 %4005  ;;  %v3997_v6 = vpop.xlane.xlu0 %3996 }
 0x8e8   : > { %11407 = vpow2.f32 %v4123_v31  ;;  %v4086_v17 = vsub.f32 %v13877_v40, %v4006_v48  ;;  %v4083_v25 = vsub.f32 %v13873_v49, %v3997_v6 }
 0x8ea   : > { %v4125_v62 = vmul.f32 1.442695, %v4086_v17  ;;  %v4119_v42 = vmul.f32 1.442695, %v4083_v25 }
 0x8eb   : > { %v4000_v21 = vpop.xlane.xlu1 %3999 }
 0x8ec   : > { %11409 = vpow2.f32 %v4125_v62  ;;  %v4084_v33 = vsub.f32 %v13885_v50, %v4000_v21 }
 0x8ed   : > { %11411 = vpow2.f32 %v4119_v42  ;;  %v4015_v22 = vpop.xlane.xlu0 %4014 }
 0x8ee   : > { %v4121_v53 = vmul.f32 1.442695, %v4084_v33  ;;  %v4089_v15 = vsub.f32 %v13895_v12, %v4015_v22 }
 0x8f0   : > { %11413 = vpow2.f32 %v4121_v53  ;;  %v4131_v54 = vmul.f32 1.442695, %v4089_v15 }
 0x8f1   : > { %v4018_v11 = vpop.xlane.xlu1 %4017  ;;  %v4009_v52 = vpop.xlane.xlu0 %4008 }
 0x8f2   : > { %11415 = vpow2.f32 %v4131_v54  ;;  %v4090_v40 = vsub.f32 %v13903_v19, %v4018_v11  ;;  %v4087_v49 = vsub.f32 %v13899_v0, %v4009_v52 }
 0x8f4   : > { %v4127_v31 = vmul.f32 1.442695, %v4087_v49  ;;  %v4133_v6 = vmul.f32 1.442695, %v4090_v40 }
 0x8f5   : > { %v14044_v48 = vpop.eup %11407  ;;  %v4012_v17 = vpop.xlane.xlu1 %4011 }
 0x8f6   : > { %v4027_v50 = vpop.xlane.xlu0 %4026  ;;  %v4088_v25 = vsub.f32 %v13909_v16, %v4012_v17  ;;  %v4193_v15 = vsel %vm1694_vm2, %v14044_v48, 0.0  ;;  %11417 = vpow2.f32 %v4127_v31 }
 0x8f7   : > { %v4093_v62 = vsub.f32 %v13913_v4, %v4027_v50  ;;  %4194 = vadd.xlane.f32.xlu0 %v4193_v15  ;;  %11419 = vpow2.f32 %v4133_v6 }
 0x8f8   : > { %v4129_v19 = vmul.f32 1.442695, %v4088_v25 }
 0x8f9   : > { %v4139_v22 = vmul.f32 1.442695, %v4093_v62  ;;  %v14050_v12 = vpop.eup %11409  ;;  %v4030_v0 = vpop.xlane.xlu1 %4029 }
 0x8fa   : > { %v4021_v42 = vpop.xlane.xlu0 %4020  ;;  %v14052_v21 = vpop.eup %11411  ;;  %v4094_v33 = vsub.f32 %v13923_v57, %v4030_v0  ;;  %v4196_v4 = vsel %vm1694_vm2, %v14050_v12, 0.0 }
 0x8fb   : > { %v4091_v16 = vsub.f32 %v13919_v8, %v4021_v42  ;;  %11421 = vpow2.f32 %v4139_v22  ;;  %4197 = vadd.xlane.f32.xlu1 %v4196_v4  ;;  %v4187_v53 = vsel %vm1694_vm2, %v14052_v21, 0.0 }
 0x8fc   : > { %v4141_v54 = vmul.f32 1.442695, %v4094_v33  ;;  %4188 = vadd.xlane.f32.xlu0 %v4187_v53  ;;  %11423 = vpow2.f32 %v4129_v19 }
 0x8fd   : > { %v14060_v11 = vpop.eup %11413  ;;  %v4135_v52 = vmul.f32 1.442695, %v4091_v16  ;;  %v4024_v40 = vpop.xlane.xlu1 %4023 }
 0x8fe   : > { %v4039_v49 = vpop.xlane.xlu0 %4038  ;;  %11425 = vpow2.f32 %v4141_v54  ;;  %v4092_v57 = vsub.f32 %v13929_v61, %v4024_v40  ;;  %v4190_v31 = vsel %vm1694_vm2, %v14060_v11, 0.0 }
 0x8ff   : > { %v4097_v8 = vsub.f32 %v13901_v36, %v4039_v49  ;;  %v14066_v6 = vpop.eup %11415  ;;  %4191 = vadd.xlane.f32.xlu1 %v4190_v31  ;;  %11427 = vpow2.f32 %v4135_v52 }
 0x900   : > { %v4137_v17 = vmul.f32 1.442695, %v4092_v57  ;;  %v4205_v61 = vsel %vm1694_vm2, %v14066_v6, 0.0 }
 0x901   : > { %v4147_v50 = vmul.f32 1.442695, %v4097_v8  ;;  %v4042_v25 = vpop.xlane.xlu1 %4041 }
 0x902   : > { %v4033_v62 = vpop.xlane.xlu0 %4032  ;;  %11429 = vpow2.f32 %v4137_v17  ;;  %v4098_v15 = vsub.f32 %v13921_v23, %v4042_v25 }
 0x903   : > { %v4095_v22 = vsub.f32 %v13911_v46, %v4033_v62  ;;  %4206 = vadd.xlane.f32.xlu1 %v4205_v61  ;;  %v14072_v36 = vpop.eup %11417  ;;  %11431 = vpow2.f32 %v4147_v50 }
 0x904   : > { %v14074_v33 = vpop.eup %11419  ;;  %v4149_v16 = vmul.f32 1.442695, %v4098_v15  ;;  %v4199_v23 = vsel %vm1694_vm2, %v14072_v36, 0.0 }
 0x905   : > { %v4143_v19 = vmul.f32 1.442695, %v4095_v22  ;;  %v4036_v0 = vpop.xlane.xlu1 %4035  ;;  %v4208_v57 = vsel %vm1694_vm2, %v14074_v33, 0.0 }
 0x906   : > { %v4051_v42 = vpop.xlane.xlu0 %4050  ;;  %v4096_v4 = vsub.f32 %v13931_v60, %v4036_v0 }
 0x907   : > { %v4101_v53 = vsub.f32 %v13937_v27, %v4051_v42  ;;  %11433 = vpow2.f32 %v4143_v19  ;;  %4200 = vadd.xlane.f32.xlu1 %v4199_v23 }
 0x908   : > { %v14080_v46 = vpop.eup %11421  ;;  %11435 = vpow2.f32 %v4149_v16  ;;  %v4145_v27 = vmul.f32 1.442695, %v4096_v4 }
 0x909   : > { %v4155_v54 = vmul.f32 1.442695, %v4101_v53  ;;  %v4054_v52 = vpop.xlane.xlu1 %4053  ;;  %v4217_v40 = vsel %vm1694_vm2, %v14080_v46, 0.0  ;;  %v14086_v8 = vpop.eup %11423 }
 0x90a   : > { %v4045_v49 = vpop.xlane.xlu0 %4044  ;;  %v4102_v60 = vsub.f32 %v13949_v7, %v4054_v52  ;;  %4218 = vadd.xlane.f32.xlu0 %v4217_v40 }
 0x90b   : > { %v4099_v31 = vsub.f32 %v13943_v28, %v4045_v49  ;;  %v14090_v17 = vpop.eup %11425  ;;  %11437 = vpow2.f32 %v4155_v54  ;;  %4209 = vadd.xlane.f32.xlu1 %v4208_v57  ;;  %v4202_v28 = vsel %vm1694_vm2, %v14086_v8, 0.0 }
 0x90c   : > { %v4220_v25 = vsel %vm1694_vm2, %v14090_v17, 0.0  ;;  %v4157_v62 = vmul.f32 1.442695, %v4102_v60  ;;  %v14094_v61 = vpop.eup %11427  ;;  %11439 = vpow2.f32 %v4145_v27 }
 0x90d   : > { %v4151_v50 = vmul.f32 1.442695, %v4099_v31  ;;  %v4048_v15 = vpop.xlane.xlu1 %4047 }
 0x90e   : > { %v4063_v22 = vpop.xlane.xlu0 %4062  ;;  %v4100_v19 = vsub.f32 %v13955_v26, %v4048_v15  ;;  %4221 = vadd.xlane.f32.xlu0 %v4220_v25 }
 0x90f   : > { %v4105_v7 = vsub.f32 %v13957_v30, %v4063_v22  ;;  %v14100_v0 = vpop.eup %11429  ;;  %11441 = vpow2.f32 %v4151_v50  ;;  %4203 = vadd.xlane.f32.xlu1 %v4202_v28  ;;  %v4211_v30 = vsel %vm1694_vm2, %v14094_v61, 0.0 }
 0x910   : > { %v4153_v42 = vmul.f32 1.442695, %v4100_v19  ;;  %v4214_v16 = vsel %vm1694_vm2, %v14100_v0, 0.0  ;;  %11443 = vpow2.f32 %v4157_v62  ;;  %v14104_v54 = vpop.eup %11431 }
 0x911   : > { %v4163_v4 = vmul.f32 1.442695, %v4105_v7  ;;  %v4066_v53 = vpop.xlane.xlu1 %4065  ;;  %v4229_v27 = vsel %vm1694_vm2, %v14104_v54, 0.0 }
 0x912   : > { %v4057_v23 = vpop.xlane.xlu0 %4056  ;;  %11445 = vpow2.f32 %v4153_v42  ;;  %4215 = vadd.xlane.f32.xlu0 %v4214_v16  ;;  %v4106_v40 = vsub.f32 %v13965_v37, %v4066_v53 }
 0x913   : > { %v4103_v26 = vsub.f32 %v13963_v3, %v4057_v23  ;;  %4212 = vadd.xlane.f32.xlu1 %v4211_v30  ;;  %11447 = vpow2.f32 %v4163_v4 }
 0x914   : > { %v14109_v52 = vpop.eup %11433  ;;  %v4165_v62 = vmul.f32 1.442695, %v4106_v40 }
 0x915   : > { %v4159_v49 = vmul.f32 1.442695, %v4103_v26  ;;  %v4060_v57 = vpop.xlane.xlu1 %4059  ;;  %v4223_v3 = vsel %vm1694_vm2, %v14109_v52, 0.0  ;;  %v14117_v31 = vpop.eup %11435 }
 0x916   : > { %v4104_v60 = vsub.f32 %v13971_v18, %v4060_v57  ;;  %4230 = vadd.xlane.f32.xlu0 %v4229_v27  ;;  %v4232_v18 = vsel %vm1694_vm2, %v14117_v31, 0.0 }
 0x917   : > { %4224 = vadd.xlane.f32.xlu1 %v4223_v3  ;;  %11449 = vpow2.f32 %v4159_v49 }
 0x918   : > { %v14119_v50 = vpop.eup %11437  ;;  %v4161_v25 = vmul.f32 1.442695, %v4104_v60  ;;  %v4075_v60 = vpop.xlane.xlu0 %4074 }
 0x919   : > { %v4241_v37 = vsel %vm1694_vm2, %v14119_v50, 0.0  ;;  %v14125_v15 = vpop.eup %11439 }
 0x91a   : > { %11451 = vpow2.f32 %v4161_v25  ;;  %4242 = vadd.xlane.f32.xlu0 %v4241_v37  ;;  %v4226_v28 = vsel %vm1694_vm2, %v14125_v15, 0.0 }
 0x91b   : > { %4233 = vadd.xlane.f32.xlu1 %v4232_v18  ;;  %11453 = vpow2.f32 %v4165_v62  ;;  %v4078_v62 = vpop.xlane.xlu1 %4077  ;;  %v4109_v18 = vsub.f32 %v13973_v47, %v4075_v60 }
 0x91c   : > { %v14127_v22 = vpop.eup %11441  ;;  %v4069_v3 = vpop.xlane.xlu0 %4068 }
 0x91d   : > { %v4235_v19 = vsel %vm1694_vm2, %v14127_v22, 0.0  ;;  %v14131_v7 = vpop.eup %11443  ;;  %v4107_v25 = vsub.f32 %v13979_v55, %v4069_v3 }
 0x91e   : > { %4236 = vadd.xlane.f32.xlu0 %v4235_v19  ;;  %v4244_v16 = vsel %vm1694_vm2, %v14131_v7, 0.0  ;;  %v4171_v19 = vmul.f32 1.442695, %v4109_v18 }
 0x91f   : > { %v14135_v42 = vpop.eup %11445  ;;  %4227 = vadd.xlane.f32.xlu1 %v4226_v28  ;;  %v4167_v37 = vmul.f32 1.442695, %v4107_v25  ;;  %v4110_v28 = vsub.f32 %v13981_v58, %v4078_v62 }
 0x920   : > { %v14139_v4 = vpop.eup %11447  ;;  %v4238_v53 = vsel %vm1694_vm2, %v14135_v42, 0.0 }
 0x921   : > { %v4253_v23 = vsel %vm1694_vm2, %v14139_v4, 0.0  ;;  %11455 = vpow2.f32 %v4167_v37 }
 0x922   : > { %4245 = vadd.xlane.f32.xlu0 %v4244_v16  ;;  %v4072_v16 = vpop.xlane.xlu1 %4071  ;;  %11457 = vpow2.f32 %v4171_v19 }
 0x923   : > { %4239 = vadd.xlane.f32.xlu1 %v4238_v53  ;;  %v4173_v53 = vmul.f32 1.442695, %v4110_v28 }
 0x924   : > { %v14145_v26 = vpop.eup %11449 }
 0x925   : > { %v4247_v49 = vsel %vm1694_vm2, %v14145_v26, 0.0  ;;  %11459 = vpow2.f32 %v4173_v53 }
 0x926   : > { %4254 = vadd.xlane.f32.xlu0 %v4253_v23  ;;  %v4108_v23 = vsub.f32 %v13987_v13, %v4072_v16 }
 0x927   : > { %v14147_v30 = vpop.eup %11451 }
 0x928   : > { %v4250_v40 = vsel %vm1694_vm2, %v14147_v30, 0.0  ;;  %v14153_v57 = vpop.eup %11453 }
 0x929   : > { %4251 = vadd.xlane.f32.xlu1 %v4250_v40  ;;  %v4256_v27 = vsel %vm1694_vm2, %v14153_v57, 0.0  ;;  %v4169_v40 = vmul.f32 1.442695, %v4108_v23 }
 0x92a   : > { %4248 = vadd.xlane.f32.xlu0 %v4247_v49 }
 0x92b   : > { %11461 = vpow2.f32 %v4169_v40 }
 0x92e   : > { %4257 = vadd.xlane.f32.xlu0 %v4256_v27  ;;  %v14165_v27 = vpop.eup %11455 }
 0x92f   : > { %v4259_v55 = vsel %vm1694_vm2, %v14165_v27, 0.0  ;;  %v14169_v60 = vpop.eup %11457 }
 0x930   : > { %v4265_v13 = vsel %vm1694_vm2, %v14169_v60, 0.0 }
 0x932   : > { %v14173_v25 = vpop.eup %11459 }
 0x933   : > { %v4268_v62 = vsel %vm1694_vm2, %v14173_v25, 0.0 }
 0x938   : > { %v14177_v37 = vpop.eup %11461 }
 0x939   : > { %v4262_v18 = vsel %vm1694_vm2, %v14177_v37, 0.0 }
 0x93a   : > { %4713 = vrot.lane.b32.xlu1 %v12453_v41, %s11862_s16 }
 0x944   : > { %4711 = vrot.lane.b32.xlu0 %v12455_v35, %s11862_s16 }
 0x956   : > { %v4183_v49 = vpop.xlane.xlu0 %4182 }
 0x95a   : > { %v4177_v3 = vpop.xlane.xlu0 %4176 }
 0x95e   : > { %v4186_v47 = vpop.xlane.xlu1 %4185  ;;  %4260 = vadd.xlane.f32.xlu1 %v4259_v55 }
 0x95f   : > { %11463 = vrcp.f32 %v4186_v47 }
 0x960   : > { %11465 = vrcp.f32 %v4177_v3 }
 0x961   : > { %11467 = vrcp.f32 %v4183_v49 }
 0x962   : > { %v4180_v58 = vpop.xlane.xlu1 %4179 }
 0x963   : > { %11469 = vrcp.f32 %v4180_v58  ;;  %4266 = vadd.xlane.f32.xlu0 %v4265_v13 }
 0x967   : > { %4269 = vadd.xlane.f32.xlu0 %v4268_v62 }
 0x96b   : > { %4263 = vadd.xlane.f32.xlu0 %v4262_v18 }
 0x96c   : > { %v11464_v19 = vpop.eup %11463 }
 0x96d   : > { %v11466_v28 = vpop.eup %11465  ;;  %v4306_v23 = vmul.f32 %v11464_v19, %v14029_v24 }
 0x96e   : > { %v11468_v16 = vpop.eup %11467  ;;  %v4303_v40 = vmul.f32 %v11466_v28, %v14025_v2 }
 0x96f   : > { %4929 = vrot.lane.b32.xlu1 %v12497_v32, %s11861_s30  ;;  %v4305_v55 = vmul.f32 %v11468_v16, %v14021_v29 }
 0x970   : > { %v11470_v53 = vpop.eup %11469 }
 0x971   : > { %v4304_v49 = vmul.f32 %v11470_v53, %v14033_v43  ;;  %v4336_v47 = vpack.c.bf16 %v4306_v23, %v4305_v55 }
 0x973   : > { %4814 = vrot.lane.b32.xlu1 %v12465_v56, %s11862_s16  ;;  %v4335_v3 = vpack.c.bf16 %v4304_v49, %v4303_v40 }
 0x975   : > { %10365 = vmatprep.mubr.msk.bf16.mxu1 %vm1694_vm2, %v4335_v3 }
 0x976   : > { %10366 = vmatmul.mubr.msk.bf16.vlgmr.msra.gmra.mxu1 %vm1694_vm2, %v4336_v47 }
 0x977   : > { %10390 = vmatpush3.bf16.msra.mxu1 %v13762_v10  ;;  %5036 = vrot.lane.b32.xlu1 %v12506_v39, %s11861_s30 }
 0x978   : > { %10391 = vmatprep.subr.bf16.mxu1 %v13760_v51 }
 0x97b   : > { %10392 = vmatpush3.bf16.msra.mxu1 %v13760_v51  ;;  %4818 = vrot.lane.b32.xlu1 %v18512_v44, %s11862_s16 }
 0x97c   : > { %10393 = vmatprep.subr.bf16.mxu1 %v13765_v38 }
 0x97f   : > { %10394 = vmatpush3.bf16.msra.mxu1 %v13765_v38  ;;  %5034 = vrot.lane.b32.xlu1 %v12511_v20, %s11861_s30 }
 0x980   : > { %10395 = vmatprep.subr.bf16.mxu1 %v13769_v9  ;;  %v4195_v10 = vpop.xlane.xlu0 %4194 }
 0x981   : > { %4820 = vrot.lane.b32.xlu0 %v12469_v59, %s11861_s30 }
 0x983   : > { %10396 = vmatpush3.bf16.msra.mxu1 %v13769_v9  ;;  %4919 = vrot.lane.b32.xlu1 %v12485_v45, %s11862_s16 }
 0x984   : > { %10717 = vmatprep.subr.msk.bf16.mxu1 %vm1301_vm1, %v13989_v14  ;;  %v4198_v51 = vpop.xlane.xlu1 %4197 }
 0x985   : > { %4812 = vrot.lane.b32.xlu0 %v12469_v59, %s11862_s16  ;;  %v4189_v38 = vpop.xlane.xlu0 %4188  ;;  %11471 = vrcp.f32 %v4198_v51 }
 0x986   : > { %11473 = vrcp.f32 %v4189_v38 }
 0x987   : > { %4921 = vrot.lane.b32.xlu1 %v12497_v32, %s11862_s16  ;;  %11475 = vrcp.f32 %v4195_v10 }
 0x988   : > { %v4192_v29 = vpop.xlane.xlu1 %4191 }
 0x989   : > { %11477 = vrcp.f32 %v4192_v29  ;;  %4927 = vrot.lane.b32.xlu0 %v12485_v45, %s11861_s30 }
 0x98b   : > { %5030 = vrot.lane.b32.xlu1 %v12516_v5, %s11861_s30 }
 0x98c   : > { %v4207_v9 = vpop.xlane.xlu1 %4206 }
 0x98d   : > { %4816 = vrot.lane.b32.xlu0 %v12481_v63, %s11862_s16 }
 0x98f   : > { %5024 = vrot.lane.b32.xlu1 %v12501_v34, %s11862_s16 }
 0x990   : > { %v4201_v2 = vpop.xlane.xlu1 %4200 }
 0x991   : > { %4925 = vrot.lane.b32.xlu0 %v18511_v1, %s11861_s30 }
 0x992   : > { %v11472_v24 = vpop.eup %11471 }
 0x993   : > { %v4219_v43 = vpop.xlane.xlu0 %4218  ;;  %5028 = vrot.lane.b32.xlu1 %v12506_v39, %s11862_s16  ;;  %v11474_v58 = vpop.eup %11473  ;;  %v4310_v19 = vmul.f32 %v11472_v24, %v14050_v12 }
 0x994   : > { %v4210_v13 = vpop.xlane.xlu1 %4209  ;;  %v11476_v62 = vpop.eup %11475  ;;  %v4307_v16 = vmul.f32 %v11474_v58, %v14052_v21  ;;  %v18570_v21 = vld [vmem:[#allocation6_spill] sm:$0xff] }
 0x995   : > { %4917 = vrot.lane.b32.xlu0 %v18511_v1, %s11862_s16  ;;  %11479 = vrcp.f32 %v4210_v13  ;;  %v4309_v40 = vmul.f32 %v11476_v62, %v14044_v48 }
 0x996   : > { %v11478_v18 = vpop.eup %11477  ;;  %11481 = vrcp.f32 %v4201_v2 }
 0x997   : > { %v4222_v28 = vpop.xlane.xlu0 %4221  ;;  %5499 = vrot.lane.b32.xlu1 %v12455_v35, %s11863_s17  ;;  %v4308_v53 = vmul.f32 %v11478_v18, %v14060_v11  ;;  %11483 = vrcp.f32 %v4207_v9  ;;  %v4338_v12 = vpack.c.bf16 %v4310_v19, %v4309_v40  ;;  %v18571_v19 = vld [vmem:[#allocation42_spill] sm:$0xff] }
 0x998   : > { %v4204_v23 = vpop.xlane.xlu1 %4203  ;;  %v18575_v40 = vld [vmem:[#allocation70_spill] sm:$0xff] }
 0x999   : > { %11485 = vrcp.f32 %v4204_v23  ;;  %5032 = vrot.lane.b32.xlu0 %v12501_v34, %s11861_s30  ;;  %v4337_v49 = vpack.c.bf16 %v4308_v53, %v4307_v16  ;;  %v18573_v16 = vld [vmem:[#allocation72_spill] sm:$0xff] }
 0x99b   : > { %v4216_v55 = vpop.xlane.xlu0 %4215  ;;  %5590 = vrot.lane.b32.xlu1 %v18512_v44, %s11863_s17  ;;  %10369 = vmatprep.mubr.msk.bf16.mxu1 %vm1694_vm2, %v4337_v49 }
 0x99c   : > { %11487 = vrcp.f32 %v4216_v55  ;;  %v4213_v35 = vpop.xlane.xlu1 %4212  ;;  %10370 = vmatmul.mubr.msk.bf16.gmra.mxu1 %vm1694_vm2, %v4338_v12 }
 0x99d   : > { %11489 = vrcp.f32 %v4213_v35  ;;  %4923 = vrot.lane.b32.xlu0 %v18570_v21, %s11862_s16 }
 0x99e   : > { %11491 = vrcp.f32 %v4222_v28 }
 0x99f   : > { %v4231_v48 = vpop.xlane.xlu0 %4230  ;;  %5588 = vrot.lane.b32.xlu1 %v12481_v63, %s11863_s17  ;;  %11493 = vrcp.f32 %v4219_v43 }
 0x9a0   : > { %v4225_v11 = vpop.xlane.xlu1 %4224 }
 0x9a1   : > { %5022 = vrot.lane.b32.xlu0 %v12516_v5, %s11862_s16 }
 0x9a2   : > { %v11480_v44 = vpop.eup %11479 }
 0x9a3   : > { %v4243_v3 = vpop.xlane.xlu0 %4242  ;;  %5584 = vrot.lane.b32.xlu1 %v12469_v59, %s11863_s17  ;;  %v11482_v47 = vpop.eup %11481  ;;  %v4314_v29 = vmul.f32 %v11480_v44, %v14074_v33  ;;  %v18576_v44 = vld [vmem:[#allocation71_spill] sm:$0xff] }
 0x9a4   : > { %v4234_v10 = vpop.xlane.xlu1 %4233  ;;  %v11484_v51 = vpop.eup %11483  ;;  %v4311_v9 = vmul.f32 %v11482_v47, %v14072_v36 }
 0x9a5   : > { %5026 = vrot.lane.b32.xlu0 %v12511_v20, %s11862_s16  ;;  %11495 = vrcp.f32 %v4234_v10  ;;  %v4313_v59 = vmul.f32 %v11484_v51, %v14066_v6 }
 0x9a6   : > { %v11486_v38 = vpop.eup %11485  ;;  %11497 = vrcp.f32 %v4225_v11 }
 0x9a7   : > { %v4237_v63 = vpop.xlane.xlu0 %4236  ;;  %5677 = vrot.lane.b32.xlu1 %v12497_v32, %s11863_s17  ;;  %v4312_v2 = vmul.f32 %v11486_v38, %v14086_v8  ;;  %11499 = vrcp.f32 %v4231_v48  ;;  %v4340_v13 = vpack.c.bf16 %v4314_v29, %v4313_v59  ;;  %v18578_v59 = vld [vmem:[#allocation74_spill] sm:$0xff] }
 0x9a8   : > { %v4228_v24 = vpop.xlane.xlu1 %4227 }
 0x9a9   : > { %v11488_v43 = vpop.eup %11487  ;;  %11501 = vrcp.f32 %v4228_v24  ;;  %5501 = vrot.lane.b32.xlu0 %v12453_v41, %s11863_s17  ;;  %v4339_v33 = vpack.c.bf16 %v4312_v2, %v4311_v9  ;;  %v18572_v41 = vld [vmem:[#allocation3_spill] sm:$0xff] }
 0x9aa   : > { %v11490_v58 = vpop.eup %11489  ;;  %11503 = vrcp.f32 %v4237_v63  ;;  %v4316_v36 = vmul.f32 %v11488_v43, %v14100_v0  ;;  %v18574_v0 = vld [vmem:[#allocation2_spill] sm:$0xff] }
 0x9ab   : > { %v11492_v62 = vpop.eup %11491  ;;  %v4246_v18 = vpop.xlane.xlu0 %4245  ;;  %10381 = vmatprep.mubr.msk.bf16.mxu0 %vm1694_vm2, %v4339_v33  ;;  %v4315_v32 = vmul.f32 %v11490_v58, %v14094_v61 }
 0x9ac   : > { %10382 = vmatmul.mubr.msk.bf16.vlgmr.msra.gmra.mxu0 %vm1694_vm2, %v4340_v13  ;;  %v4240_v6 = vpop.xlane.xlu1 %4239  ;;  %v11494_v8 = vpop.eup %11493  ;;  %v4318_v53 = vmul.f32 %v11492_v62, %v14090_v17  ;;  %v4742_v62 = vsel %vm1301_vm1, %v18578_v59, 0 }
 0x9ad   : > { %10406 = vmatpush3.bf16.msra.mxu0 %v18571_v19  ;;  %11505 = vrcp.f32 %v4240_v6  ;;  %5497 = vrot.lane.b32.xlu0 %v18572_v41, %s11863_s17  ;;  %v4341_v28 = vpack.c.bf16 %v4316_v36, %v4315_v32  ;;  %v4317_v61 = vmul.f32 %v11494_v8, %v14080_v46  ;;  %v18581_v8 = vld [vmem:[#allocation77_spill] sm:$0xff]  ;;  %v18583_v41 = vld [vmem:[#allocation80_spill] sm:$0xff] }
 0x9ae   : > { %11507 = vrcp.f32 %v4246_v18  ;;  %10407 = vmatprep.subr.bf16.mxu0 %v18573_v16  ;;  %v4847_v19 = vsel %vm1301_vm1, %v18581_v8, 0 }
 0x9af   : > { %v4255_v23 = vpop.xlane.xlu0 %4254  ;;  %10385 = vmatprep.mubr.msk.bf16.mxu0 %vm1694_vm2, %v4341_v28  ;;  %11509 = vrcp.f32 %v4243_v3  ;;  %v4342_v12 = vpack.c.bf16 %v4318_v53, %v4317_v61  ;;  %v4844_v53 = vsel %vm1301_vm1, %v18583_v41, 0  ;;  %v18585_v61 = vld [vmem:[#allocation79_spill] sm:$0xff] }
 0x9b1   : > { %10408 = vmatpush3.bf16.msra.mxu0 %v18573_v16  ;;  %5495 = vrot.lane.b32.xlu0 %v18574_v0, %s11863_s17  ;;  %v18584_v16 = vld [vmem:[#allocation81_spill] sm:$0xff] }
 0x9b2   : > { %10409 = vmatprep.subr.bf16.mxu0 %v18575_v40  ;;  %v4252_v49 = vpop.xlane.xlu1 %4251  ;;  %v11496_v55 = vpop.eup %11495  ;;  %v4955_v0 = vsel %vm1301_vm1, %v18584_v16, 0 }
 0x9b3   : > { %11511 = vrcp.f32 %v4252_v49  ;;  %v4249_v35 = vpop.xlane.xlu0 %4248  ;;  %v11498_v48 = vpop.eup %11497  ;;  %v4322_v11 = vmul.f32 %v11496_v55, %v14117_v31  ;;  %v18577_v31 = vld [vmem:[#allocation73_spill] sm:$0xff] }
 0x9b4   : > { %11513 = vrcp.f32 %v4249_v35  ;;  %10386 = vmatmul.mubr.msk.bf16.gmra.mxu0 %vm1694_vm2, %v4342_v12  ;;  %v11500_v17 = vpop.eup %11499  ;;  %v4319_v47 = vmul.f32 %v11498_v48, %v14109_v52  ;;  %v4850_v6 = vsel %vm1301_vm1, %v18577_v31, 0 }
 0x9b5   : > { %10410 = vmatpush3.bf16.msra.mxu0 %v18575_v40  ;;  %5586 = vrot.lane.b32.xlu0 %v12465_v56, %s11863_s17  ;;  %11515 = vrcp.f32 %v4255_v23  ;;  %v4321_v38 = vmul.f32 %v11500_v17, %v14104_v54  ;;  %v4745_v54 = vsel %vm1301_vm1, %v13989_v14, 0 }
 0x9b6   : > { %v11502_v46 = vpop.eup %11501  ;;  %10411 = vmatprep.subr.bf16.mxu0 %v18576_v44  ;;  %v4714_v40 = vpop.permute.xlu1 %4713 }
 0x9b7   : > { %v4258_v3 = vpop.xlane.xlu0 %4257  ;;  %v4320_v10 = vmul.f32 %v11502_v46, %v14125_v15  ;;  %v11504_v51 = vpop.eup %11503  ;;  %v4344_v63 = vpack.c.bf16 %v4322_v11, %v4321_v38 }
 0x9b8   : > { %11517 = vrcp.f32 %v4258_v3  ;;  %v4323_v52 = vmul.f32 %v11504_v51, %v14127_v22 }
 0x9b9   : > { %10412 = vmatpush3.bf16.msra.mxu0 %v18576_v44  ;;  %5679 = vrot.lane.b32.xlu0 %v18570_v21, %s11863_s17  ;;  %v4343_v56 = vpack.c.bf16 %v4320_v10, %v4319_v47 }
 0x9ba   : > { %v11506_v29 = vpop.eup %11505  ;;  %10721 = vmatprep.subr.msk.bf16.mxu0 %vm1301_vm1, %v18577_v31 }
 0x9bb   : > { %v11508_v9 = vpop.eup %11507  ;;  %10397 = vmatprep.mubr.msk.bf16.mxu1 %vm1694_vm2, %v4343_v56  ;;  %v4324_v15 = vmul.f32 %v11506_v29, %v14135_v42  ;;  %v4712_v23 = vpop.permute.xlu0 %4711 }
 0x9bc   : > { %10398 = vmatmul.mubr.msk.bf16.vlgmr.msra.gmra.mxu1 %vm1694_vm2, %v4344_v63  ;;  %v11510_v2 = vpop.eup %11509  ;;  %v4326_v24 = vmul.f32 %v11508_v9, %v14131_v7  ;;  %v18579_v7 = vld [vmem:[#allocation78_spill] sm:$0xff] }
 0x9bd   : > { %10422 = vmatpush3.bf16.xpose.msra.mxu1 %v4745_v54  ;;  %v4345_v21 = vpack.c.bf16 %v4324_v15, %v4323_v52  ;;  %v4325_v22 = vmul.f32 %v11510_v2, %v14119_v50 }
 0x9be   : > { %10718 = vmatprep.subr.msk.bf16.mxu1 %vm1301_vm1, %v18578_v59 }
 0x9bf   : > { %10401 = vmatprep.mubr.msk.bf16.mxu1 %vm1694_vm2, %v4345_v21  ;;  %v4346_v58 = vpack.c.bf16 %v4326_v24, %v4325_v22 }
 0x9c0   : > { %v11512_v43 = vpop.eup %11511 }
 0x9c1   : > { %v11514_v33 = vpop.eup %11513  ;;  %v4328_v42 = vmul.f32 %v11512_v43, %v14147_v30  ;;  %v18580_v30 = vld [vmem:[#allocation76_spill] sm:$0xff] }
 0x9c2   : > { %v4327_v13 = vmul.f32 %v11514_v33, %v14145_v26  ;;  %v11516_v14 = vpop.eup %11515 }
 0x9c3   : > { %v4329_v50 = vmul.f32 %v11516_v14, %v14139_v4  ;;  %v4739_v4 = vsel %vm1301_vm1, %v18580_v30, 0 }
 0x9c4   : > { %10402 = vmatmul.mubr.msk.bf16.gmra.mxu1 %vm1694_vm2, %v4346_v58  ;;  %v4347_v18 = vpack.c.bf16 %v4328_v42, %v4327_v13 }
 0x9c5   : > { %v11518_v32 = vpop.eup %11517  ;;  %10424 = vmatpush3.bf16.xpose.msra.mxu1 %v4742_v62  ;;  %10429 = vmatprep.mubr.msk.bf16.mxu1 %vm1301_vm1, %v18579_v7 }
 0x9c6   : > { %v4330_v36 = vmul.f32 %v11518_v32, %v14153_v57  ;;  %10413 = vmatprep.mubr.msk.bf16.mxu0 %vm1694_vm2, %v4347_v18  ;;  %10719 = vmatprep.subr.msk.bf16.mxu1 %vm1301_vm1, %v18580_v30  ;;  %v18582_v57 = vld [vmem:[#allocation75_spill] sm:$0xff] }
 0x9c7   : > { %v4736_v28 = vsel %vm1301_vm1, %v18582_v57, 0 }
 0x9c8   : > { %v4348_v26 = vpack.c.bf16 %v4330_v36, %v4329_v50 }
 0x9ca   : > { %10414 = vmatmul.mubr.msk.bf16.vlgmr.msra.gmra.mxu0 %vm1694_vm2, %v4348_v26 }
 0x9cb   : > { %10438 = vmatpush3.bf16.xpose.msra.mxu0 %v4850_v6 }
 0x9cc   : > { %10722 = vmatprep.subr.msk.bf16.mxu0 %vm1301_vm1, %v18581_v8 }
 0x9cd   : > { %10426 = vmatpush3.bf16.xpose.msra.mxu1 %v4739_v4 }
 0x9ce   : > { %10720 = vmatprep.subr.msk.bf16.mxu1 %vm1301_vm1, %v18582_v57 }
 0x9d3   : > { %10440 = vmatpush3.bf16.xpose.msra.mxu0 %v4847_v19 }
 0x9d4   : > { %10723 = vmatprep.subr.msk.bf16.mxu0 %vm1301_vm1, %v18583_v41 }
 0x9d5   : > { %10428 = vmatpush3.bf16.xpose.msra.mxu1 %v4736_v28 }
 0x9d6   : > { %10725 = vmatprep.subr.msk.bf16.mxu1 %vm1301_vm1, %v18584_v16 }
 0x9db   : > { %10442 = vmatpush3.bf16.xpose.msra.mxu0 %v4844_v53 }
 0x9dc   : > { %10430 = vmatmul.mubr.msk.bf16.vlgmr.msra.gmra.mxu1 %vm1301_vm1, %v18585_v61 }
 0x9dd   : > { %10433 = vmatprep.mubr.msk.bf16.mxu1 %vm1301_vm1, %v4712_v23  ;;  %10454 = vmatpush3.bf16.xpose.msra.mxu1 %v4955_v0 }
 0x9e4   : > { %10434 = vmatmul.mubr.msk.bf16.gmra.mxu1 %vm1301_vm1, %v4714_v40 }
 0x9e7   : > { %v4261_v49 = vpop.xlane.xlu1 %4260 }
 0x9eb   : > { %v4930_v12 = vpop.permute.xlu1 %4929 }
 0x9ec   : > { %v4267_v55 = vpop.xlane.xlu0 %4266  ;;  %10726 = vmatprep.subr.msk.bf16.mxu1 %vm1301_vm1, %v4930_v12  ;;  %v4952_v35 = vsel %vm1301_vm1, %v4930_v12, 0 }
 0x9ed   : > { %10456 = vmatpush3.bf16.xpose.msra.mxu1 %v4952_v35 }
 0x9ef   : > { %v4815_v48 = vpop.permute.xlu1 %4814 }
 0x9f0   : > { %v4270_v17 = vpop.xlane.xlu0 %4269 }
 0x9f1   : > { %11519 = vrcp.f32 %v4270_v17 }
 0x9f2   : > { %11521 = vrcp.f32 %v4261_v49 }
 0x9f3   : > { %v5037_v46 = vpop.permute.xlu1 %5036  ;;  %11523 = vrcp.f32 %v4267_v55 }
 0x9f4   : > { %v4264_v11 = vpop.xlane.xlu0 %4263 }
 0x9f5   : > { %11525 = vrcp.f32 %v4264_v11 }
 0x9f7   : > { %v4819_v44 = vpop.permute.xlu1 %4818 }
 0x9f8   : > { %v4821_v3 = vpop.permute.xlu0 %4820 }
 0x9f9   : > { %10724 = vmatprep.subr.msk.bf16.mxu0 %vm1301_vm1, %v4821_v3  ;;  %v4841_v47 = vsel %vm1301_vm1, %v4821_v3, 0 }
 0x9fa   : > { %10444 = vmatpush3.bf16.xpose.msra.mxu0 %v4841_v47 }
 0x9fb   : > { %10729 = vmatprep.subr.msk.bf16.mxu0 %vm1301_vm1, %v5037_v46  ;;  %v5035_v51 = vpop.permute.xlu1 %5034 }
 0x9fc   : > { %v4813_v10 = vpop.permute.xlu0 %4812  ;;  %v5057_v14 = vsel %vm1301_vm1, %v5035_v51, 0 }
 0x9fe   : > { %v11520_v38 = vpop.eup %11519 }
 0x9ff   : > { %v11522_v56 = vpop.eup %11521  ;;  %v4334_v52 = vmul.f32 %v11520_v38, %v14173_v25  ;;  %v4920_v2 = vpop.permute.xlu1 %4919 }
 0xa00   : > { %v4928_v29 = vpop.permute.xlu0 %4927  ;;  %v11524_v31 = vpop.eup %11523  ;;  %v4331_v15 = vmul.f32 %v11522_v56, %v14165_v27 }
 0xa01   : > { %10727 = vmatprep.subr.msk.bf16.mxu1 %vm1301_vm1, %v4928_v29  ;;  %v4949_v63 = vsel %vm1301_vm1, %v4928_v29, 0  ;;  %v4333_v59 = vmul.f32 %v11524_v31, %v14169_v60  ;;  %v5060_v60 = vsel %vm1301_vm1, %v5037_v46, 0 }
 0xa02   : > { %v11526_v9 = vpop.eup %11525  ;;  %10458 = vmatpush3.bf16.xpose.msra.mxu1 %v4949_v63 }
 0xa03   : > { %v4332_v54 = vmul.f32 %v11526_v9, %v14177_v37  ;;  %v4350_v43 = vpack.c.bf16 %v4334_v52, %v4333_v59  ;;  %v4922_v27 = vpop.permute.xlu1 %4921 }
 0xa04   : > { %v4817_v21 = vpop.permute.xlu0 %4816 }
 0xa05   : > { %v4349_v24 = vpack.c.bf16 %v4332_v54, %v4331_v15 }
 0xa07   : > { %10417 = vmatprep.mubr.msk.bf16.mxu0 %vm1694_vm2, %v4349_v24  ;;  %v5031_v33 = vpop.permute.xlu1 %5030 }
 0xa08   : > { %10418 = vmatmul.mubr.msk.bf16.gmra.mxu0 %vm1694_vm2, %v4350_v43  ;;  %v4926_v22 = vpop.permute.xlu0 %4925  ;;  %v5051_v26 = vsel %vm1301_vm1, %v5031_v33, 0 }
 0xa09   : > { %10445 = vmatprep.mubr.msk.bf16.mxu0 %vm1301_vm1, %v4813_v10  ;;  %10728 = vmatprep.subr.msk.bf16.mxu1 %vm1301_vm1, %v4926_v22  ;;  %v4946_v25 = vsel %vm1301_vm1, %v4926_v22, 0 }
 0xa0a   : > { %10460 = vmatpush3.bf16.xpose.msra.mxu1 %v4946_v25 }
 0xa0b   : > { %v5025_v13 = vpop.permute.xlu1 %5024 }
 0xa0c   : > { %v4918_v37 = vpop.permute.xlu0 %4917 }
 0xa0d   : > { %10461 = vmatprep.mubr.msk.bf16.mxu1 %vm1301_vm1, %v4918_v37 }
 0xa0f   : > { %v5029_v18 = vpop.permute.xlu1 %5028 }
 0xa10   : > { %10446 = vmatmul.mubr.msk.bf16.vlgmr.msra.gmra.mxu0 %vm1301_vm1, %v4815_v48  ;;  %v5033_v42 = vpop.permute.xlu0 %5032 }
 0xa11   : > { %10470 = vmatpush3.bf16.xpose.msra.mxu0 %v5060_v60  ;;  %10449 = vmatprep.mubr.msk.bf16.mxu0 %vm1301_vm1, %v4817_v21  ;;  %v5054_v7 = vsel %vm1301_vm1, %v5033_v42, 0 }
 0xa12   : > { %10462 = vmatmul.mubr.msk.bf16.vlgmr.msra.gmra.mxu1 %vm1301_vm1, %v4920_v2  ;;  %10730 = vmatprep.subr.msk.bf16.mxu0 %vm1301_vm1, %v5035_v51 }
 0xa13   : > { %10465 = vmatprep.mubr.msk.bf16.mxu1 %vm1301_vm1, %v4922_v27  ;;  %v5500_v36 = vpop.permute.xlu1 %5499 }
 0xa14   : > { %v4924_v58 = vpop.permute.xlu0 %4923 }
 0xa17   : > { %v5591_v8 = vpop.permute.xlu1 %5590 }
 0xa18   : > { %10450 = vmatmul.mubr.msk.bf16.gmra.mxu0 %vm1301_vm1, %v4819_v44  ;;  %v5023_v62 = vpop.permute.xlu0 %5022 }
 0xa19   : > { %10472 = vmatpush3.bf16.xpose.msra.mxu0 %v5057_v14  ;;  %10477 = vmatprep.mubr.msk.bf16.mxu0 %vm1301_vm1, %v5023_v62 }
 0xa1a   : > { %10466 = vmatmul.mubr.msk.bf16.gmra.mxu1 %vm1301_vm1, %v4924_v58  ;;  %10731 = vmatprep.subr.msk.bf16.mxu0 %vm1301_vm1, %v5033_v42 }
 0xa1b   : > { %v5589_v19 = vpop.permute.xlu1 %5588 }
 0xa1c   : > { %v5027_v32 = vpop.permute.xlu0 %5026 }
 0xa1f   : > { %v5585_v16 = vpop.permute.xlu1 %5584 }
 0xa20   : > { %v5502_v50 = vpop.permute.xlu0 %5501 }
 0xa21   : > { %10474 = vmatpush3.bf16.xpose.msra.mxu0 %v5054_v7  ;;  %10485 = vmatprep.subr.bf16.mxu1 %v5502_v50 }
 0xa22   : > { %10732 = vmatprep.subr.msk.bf16.mxu0 %vm1301_vm1, %v5031_v33  ;;  %10486 = vmatpush3.bf16.msra.mxu1 %v5502_v50 }
 0xa23   : > { %10487 = vmatprep.subr.bf16.mxu1 %v5500_v36 }
 0xa24   : > { %v5498_v30 = vpop.permute.xlu0 %5497 }
 0xa26   : > { %10488 = vmatpush3.bf16.msra.mxu1 %v5500_v36 }
 0xa27   : > { %10489 = vmatprep.subr.bf16.mxu1 %v5498_v30 }
 0xa28   : > { %v5496_v6 = vpop.permute.xlu0 %5495 }
 0xa29   : > { %10476 = vmatpush3.bf16.xpose.msra.mxu0 %v5051_v26 }
 0xa2a   : > { %10501 = vmatprep.subr.bf16.mxu0 %v5591_v8  ;;  %10490 = vmatpush3.bf16.msra.mxu1 %v5498_v30 }
 0xa2b   : > { %10491 = vmatprep.subr.bf16.mxu1 %v5496_v6 }
 0xa2c   : > { %v5587_v4 = vpop.permute.xlu0 %5586 }
 0xa2e   : > { %10492 = vmatpush3.bf16.msra.mxu1 %v5496_v6 }
 0xa30   : > { %10478 = vmatmul.mubr.msk.bf16.vlgmr.msra.gmra.mxu0 %vm1301_vm1, %v5025_v13  ;;  %v14367_v57 = vpop.permute.xlu0 %5679 }
 0xa31   : > { %10481 = vmatprep.mubr.msk.bf16.mxu0 %vm1301_vm1, %v5027_v32  ;;  %10502 = vmatpush3.bf16.msra.mxu0 %v5591_v8 }
 0xa32   : > { %10503 = vmatprep.subr.bf16.mxu0 %v5589_v19  ;;  %10517 = vmatprep.subr.bf16.mxu1 %v14367_v57 }
 0xa35   : > { %10504 = vmatpush3.bf16.msra.mxu0 %v5589_v19 }
 0xa36   : > { %10505 = vmatprep.subr.bf16.mxu0 %v5587_v4  ;;  %v14371_v41 = vpop.f32.mrf.mxu1 }
 0xa38   : > { %10482 = vmatmul.mubr.msk.bf16.gmra.mxu0 %vm1301_vm1, %v5029_v18  ;;  %v14374_v28 = vpop.f32.mrf.mxu1 }
 0xa39   : > { %10506 = vmatpush3.bf16.msra.mxu0 %v5587_v4 }
 0xa3a   : > { %10507 = vmatprep.subr.bf16.mxu0 %v5585_v16  ;;  %v14376_v53 = vpop.f32.mrf.mxu1 }
 0xa3c   : > { %v14380_v61 = vpop.f32.mrf.mxu1 }
 0xa3d   : > { %10508 = vmatpush3.bf16.msra.mxu0 %v5585_v16 }
 0xa5c   : > { %v14384_v40 = vpop.f32.mrf.mxu1 }
 0xa5e   : > { %v14386_v49 = vpop.f32.mrf.mxu1 }
 0xa60   : > { %v14388_v12 = vpop.f32.mrf.mxu1 }
 0xa62   : > { %v14392_v35 = vpop.f32.mrf.mxu1 }
 0xa6c   : > { %v14396_v17 = vpop.f32.mrf.mxu0 }
 0xa6e   : > { %v14398_v46 = vpop.f32.mrf.mxu0 }
 0xa6f   : > { %18586 = vst [vmem:[#allocation6_spill] sm:$0xff] %v14398_v46 }
 0xa70   : > { %v14400_v11 = vpop.f32.mrf.mxu0 }
 0xa72   : > { %v14404_v3 = vpop.f32.mrf.mxu0 }
 0xa73   : > { %18587 = vst [vmem:[#allocation42_spill] sm:$0xff] %v14404_v3 }
 0xa74   : > { %v14408_v10 = vpop.f32.mrf.mxu0 }
 0xa76   : > { %v14410_v51 = vpop.f32.mrf.mxu0 }
 0xa77   : > { %18588 = vst [vmem:[#allocation3_spill] sm:$0xff] %v14410_v51 }
 0xa78   : > { %v14412_v38 = vpop.f32.mrf.mxu0 }
 0xa7a   : > { %v14416_v29 = vpop.f32.mrf.mxu0 }
 0xa7b   : > { %18589 = vst [vmem:[#allocation72_spill] sm:$0xff] %v14416_v29 }
 0xa7c   : > { %v14420_v63 = vpop.f32.mrf.mxu1 }
 0xa7d   : > { %18590 = vst [vmem:[#allocation2_spill] sm:$0xff] %v14420_v63 }
 0xa7e   : > { %v14422_v9 = vpop.f32.mrf.mxu1 }
 0xa7f   : > { %18591 = vst [vmem:[#allocation70_spill] sm:$0xff] %v14422_v9 }
 0xa80   : > { %v14424_v52 = vpop.f32.mrf.mxu1 }
 0xa81   : > { %18592 = vst [vmem:[#allocation71_spill] sm:$0xff] %v14424_v52 }
 0xa82   : > { %v14428_v54 = vpop.f32.mrf.mxu1 }
 0xa83   : > { %18593 = vst [vmem:[#allocation73_spill] sm:$0xff] %v14428_v54 }
 0xa84   : > { %v14432_v21 = vpop.f32.mrf.mxu1 }
 0xa85   : > { %18594 = vst [vmem:[#allocation74_spill] sm:$0xff] %v14432_v21  ;;  %v14593_v21 = vpop.permute.xlu1 %5677 }
 0xa86   : > { %v14434_v59 = vpop.f32.mrf.mxu1 }
 0xa87   : > { %18595 = vst [vmem:[#allocation78_spill] sm:$0xff] %v14434_v59 }
 0xa88   : > { %v14436_v24 = vpop.f32.mrf.mxu1 }
 0xa89   : > { %18596 = vst [vmem:[#allocation76_spill] sm:$0xff] %v14436_v24 }
 0xa8a   : > { %v14440_v22 = vpop.f32.mrf.mxu0  ;;  %v14442_v25 = vpop.f32.mrf.mxu1 }
 0xa8b   : > { %18597 = vst [vmem:[#allocation77_spill] sm:$0xff] %v14440_v22  ;;  %18598 = vst [vmem:[#allocation75_spill] sm:$0xff] %v14442_v25 }
 0xa8c   : > { %v14446_v37 = vpop.f32.mrf.mxu0 }
 0xa8d   : > { %18599 = vst [vmem:[#allocation80_spill] sm:$0xff] %v14446_v37 }
 0xa8e   : > { %v14448_v33 = vpop.f32.mrf.mxu0 }
 0xa8f   : > { %18600 = vst [vmem:[#allocation81_spill] sm:$0xff] %v14448_v33 }
 0xa90   : > { %v14452_v42 = vpop.f32.mrf.mxu0 }
 0xa91   : > { %18601 = vst [vmem:[#allocation79_spill] sm:$0xff] %v14452_v42 }
 0xa9c   : > { %v14456_v13 = vpop.f32.mrf.mxu1 }
 0xa9d   : > { %v5133_v14 = vsel %vm1694_vm2, %v14456_v13, -inf }
 0xa9e   : > { %5134 = vmax.xlane.f32.xlu0 %v5133_v14  ;;  %v14460_v62 = vpop.f32.mrf.mxu1 }
 0xa9f   : > { %v5127_v32 = vsel %vm1694_vm2, %v14460_v62, -inf }
 0xaa0   : > { %v14462_v18 = vpop.f32.mrf.mxu1 }
 0xaa1   : > { %v5136_v30 = vsel %vm1694_vm2, %v14462_v18, -inf }
 0xaa2   : > { %5128 = vmax.xlane.f32.xlu0 %v5127_v32  ;;  %v14466_v7 = vpop.f32.mrf.mxu1 }
 0xaa3   : > { %v5130_v50 = vsel %vm1694_vm2, %v14466_v7, -inf }
 0xaa4   : > { %5131 = vmax.xlane.f32.xlu1 %v5130_v50  ;;  %v14470_v36 = vpop.f32.mrf.mxu1 }
 0xaa5   : > { %v5145_v8 = vsel %vm1694_vm2, %v14470_v36, -inf }
 0xaa6   : > { %5137 = vmax.xlane.f32.xlu0 %v5136_v30  ;;  %v14474_v26 = vpop.f32.mrf.mxu1 }
 0xaa7   : > { %v5139_v16 = vsel %vm1694_vm2, %v14474_v26, -inf }
 0xaa8   : > { %v14476_v6 = vpop.f32.mrf.mxu1 }
 0xaa9   : > { %v5148_v4 = vsel %vm1694_vm2, %v14476_v6, -inf }
 0xaaa   : > { %5146 = vmax.xlane.f32.xlu0 %v5145_v8  ;;  %5149 = vmax.xlane.f32.xlu1 %v5148_v4  ;;  %v14482_v19 = vpop.f32.mrf.mxu1 }
 0xaab   : > { %v5142_v14 = vsel %vm1694_vm2, %v14482_v19, -inf }
 0xaae   : > { %5140 = vmax.xlane.f32.xlu0 %v5139_v16  ;;  %5143 = vmax.xlane.f32.xlu1 %v5142_v14 }
 0xac8   : > { %v14488_v32 = vpop.f32.mrf.mxu0 }
 0xac9   : > { %18602 = vst [vmem:[#allocation82_spill] sm:$0xff] %v14488_v32 }
 0xaca   : > { %v14490_v50 = vpop.f32.mrf.mxu0 }
 0xacb   : > { %18603 = vst [vmem:[#allocation83_spill] sm:$0xff] %v14490_v50 }
 0xacc   : > { %v14492_v30 = vpop.f32.mrf.mxu0 }
 0xacd   : > { %18604 = vst [vmem:[#allocation84_spill] sm:$0xff] %v14492_v30 }
 0xace   : > { %v14496_v4 = vpop.f32.mrf.mxu0 }
 0xacf   : > { %18605 = vst [vmem:[#allocation85_spill] sm:$0xff] %v14496_v4 }
 0xad0   : > { %v14500_v60 = vpop.f32.mrf.mxu0 }
 0xad1   : > { %v5157_v16 = vsel %vm1694_vm2, %v14500_v60, -inf }
 0xad2   : > { %v14504_v14 = vpop.f32.mrf.mxu1  ;;  %5158 = vmax.xlane.f32.xlu0 %v5157_v16  ;;  %v14506_v27 = vpop.f32.mrf.mxu0 }
 0xad3   : > { %v5151_v8 = vsel %vm1694_vm2, %v14506_v27, -inf }
 0xad4   : > { %v14508_v43 = vpop.f32.mrf.mxu0  ;;  %v14514_v15 = vpop.f32.mrf.mxu1 }
 0xad5   : > { %v5160_v2 = vsel %vm1694_vm2, %v14508_v43, -inf  ;;  %v5175_v50 = vsel %vm1694_vm2, %v14514_v15, -inf }
 0xad6   : > { %5152 = vmax.xlane.f32.xlu0 %v5151_v8  ;;  %5161 = vmax.xlane.f32.xlu1 %v5160_v2  ;;  %v14516_v58 = vpop.f32.mrf.mxu0  ;;  %v14524_v48 = vpop.f32.mrf.mxu1 }
 0xad7   : > { %v5154_v16 = vsel %vm1694_vm2, %v14516_v58, -inf  ;;  %v5184_v4 = vsel %vm1694_vm2, %v14524_v48, -inf }
 0xad8   : > { %v14518_v31 = vpop.f32.mrf.mxu0  ;;  %v14534_v44 = vpop.f32.mrf.mxu1 }
 0xad9   : > { %v5169_v47 = vsel %vm1694_vm2, %v14518_v31, -inf }
 0xada   : > { %5155 = vmax.xlane.f32.xlu1 %v5154_v16  ;;  %5170 = vmax.xlane.f32.xlu0 %v5169_v47  ;;  %v14526_v0 = vpop.f32.mrf.mxu0  ;;  %v5181_v47 = vsel %vm1694_vm2, %v14504_v14, -inf  ;;  %v14542_v23 = vpop.f32.mrf.mxu1 }
 0xadb   : > { %v5163_v2 = vsel %vm1694_vm2, %v14526_v0, -inf  ;;  %v5193_v32 = vsel %vm1694_vm2, %v14542_v23, -inf }
 0xadc   : > { %v14528_v56 = vpop.f32.mrf.mxu0 }
 0xadd   : > { %v5172_v8 = vsel %vm1694_vm2, %v14528_v56, -inf }
 0xade   : > { %5164 = vmax.xlane.f32.xlu0 %v5163_v2  ;;  %5173 = vmax.xlane.f32.xlu1 %v5172_v8  ;;  %v14536_v55 = vpop.f32.mrf.mxu0  ;;  %v14548_v2 = vpop.f32.mrf.mxu1  ;;  %v5178_v8 = vsel %vm1694_vm2, %v14534_v44, -inf }
 0xadf   : > { %v5166_v16 = vsel %vm1694_vm2, %v14536_v55, -inf }
 0xae0   : > { %v14554_v30 = vpop.f32.mrf.mxu1 }
 0xae2   : > { %5167 = vmax.xlane.f32.xlu1 %v5166_v16  ;;  %5182 = vmax.xlane.f32.xlu0 %v5181_v47  ;;  %v5187_v16 = vsel %vm1694_vm2, %v14548_v2, -inf  ;;  %v5196_v47 = vsel %vm1694_vm2, %v14554_v30, -inf  ;;  %v14560_v37 = vpop.f32.mrf.mxu1 }
 0xae6   : > { %5176 = vmax.xlane.f32.xlu0 %v5175_v50  ;;  %5185 = vmax.xlane.f32.xlu1 %v5184_v4  ;;  %v5190_v4 = vsel %vm1694_vm2, %v14560_v37, -inf }
 0xaea   : > { %5179 = vmax.xlane.f32.xlu1 %v5178_v8  ;;  %5194 = vmax.xlane.f32.xlu0 %v5193_v32 }
 0xaee   : > { %5188 = vmax.xlane.f32.xlu0 %v5187_v16  ;;  %5197 = vmax.xlane.f32.xlu1 %v5196_v47 }
 0xaf0   : > { %v14562_v50 = vpop.f32.mrf.mxu0 }
 0xaf1   : > { %v5205_v42 = vsel %vm1694_vm2, %v14562_v50, -inf }
 0xaf2   : > { %v14568_v8 = vpop.f32.mrf.mxu0  ;;  %5191 = vmax.xlane.f32.xlu1 %v5190_v4  ;;  %5206 = vmax.xlane.f32.xlu0 %v5205_v42 }
 0xaf3   : > { %v5199_v22 = vsel %vm1694_vm2, %v14568_v8, -inf }
 0xaf4   : > { %v14570_v32 = vpop.f32.mrf.mxu0 }
 0xaf5   : > { %v5208_v16 = vsel %vm1694_vm2, %v14570_v32, -inf }
 0xaf6   : > { %v14576_v47 = vpop.f32.mrf.mxu0  ;;  %5200 = vmax.xlane.f32.xlu0 %v5199_v22  ;;  %5209 = vmax.xlane.f32.xlu1 %v5208_v16 }
 0xaf7   : > { %v5202_v59 = vsel %vm1694_vm2, %v14576_v47, -inf }
 0xaf8   : > { %v14578_v33 = vpop.f32.mrf.mxu0 }
 0xaf9   : > { %v5217_v42 = vsel %vm1694_vm2, %v14578_v33, -inf }
 0xafa   : > { %v14584_v4 = vpop.f32.mrf.mxu0  ;;  %5203 = vmax.xlane.f32.xlu1 %v5202_v59  ;;  %5218 = vmax.xlane.f32.xlu0 %v5217_v42 }
 0xafb   : > { %v5211_v25 = vsel %vm1694_vm2, %v14584_v4, -inf }
 0xafc   : > { %v14595_v9 = vpop.f32.mrf.mxu0 }
 0xafe   : > { %5212 = vmax.xlane.f32.xlu0 %v5211_v25 }
 0xb0b   : > { %5673 = vrot.lane.b32.xlu1 %v18511_v1, %s11863_s17  ;;  %v5220_v1 = vsel %vm1694_vm2, %v14595_v9, -inf }
 0xb14   : > { %5675 = vrot.lane.b32.xlu0 %v12485_v45, %s11863_s17  ;;  %v14601_v45 = vpop.f32.mrf.mxu0 }
 0xb27   : > { %v5135_v22 = vpop.xlane.xlu0 %5134 }
 0xb28   : > { %v5225_v16 = vsub.f32 %v14456_v13, %v5135_v22 }
 0xb2a   : > { %v5259_v24 = vmul.f32 1.442695, %v5225_v16 }
 0xb2b   : > { %v5129_v59 = vpop.xlane.xlu0 %5128 }
 0xb2c   : > { %11527 = vpow2.f32 %v5259_v24  ;;  %v5223_v42 = vsub.f32 %v14460_v62, %v5129_v59  ;;  %v5214_v24 = vsel %vm1694_vm2, %v14601_v45, -inf }
 0xb2d   : > { %v5132_v54 = vpop.xlane.xlu1 %5131 }
 0xb2e   : > { %v5255_v25 = vmul.f32 1.442695, %v5223_v42  ;;  %v5224_v63 = vsub.f32 %v14466_v7, %v5132_v54 }
 0xb2f   : > { %5221 = vmax.xlane.f32.xlu1 %v5220_v1  ;;  %v5138_v13 = vpop.xlane.xlu0 %5137 }
 0xb30   : > { %11529 = vpow2.f32 %v5255_v25  ;;  %v5226_v22 = vsub.f32 %v14462_v18, %v5138_v13  ;;  %v5257_v16 = vmul.f32 1.442695, %v5224_v63 }
 0xb32   : > { %v5261_v52 = vmul.f32 1.442695, %v5226_v22 }
 0xb33   : > { %v5150_v62 = vpop.xlane.xlu1 %5149  ;;  %5215 = vmax.xlane.f32.xlu1 %v5214_v24  ;;  %v5147_v59 = vpop.xlane.xlu0 %5146 }
 0xb34   : > { %11531 = vpow2.f32 %v5261_v52  ;;  %v5230_v54 = vsub.f32 %v14476_v6, %v5150_v62  ;;  %v5229_v7 = vsub.f32 %v14470_v36, %v5147_v59 }
 0xb35   : > { %11533 = vpow2.f32 %v5257_v16 }
 0xb36   : > { %v5269_v42 = vmul.f32 1.442695, %v5230_v54  ;;  %v5267_v1 = vmul.f32 1.442695, %v5229_v7 }
 0xb37   : > { %v5144_v51 = vpop.xlane.xlu1 %5143  ;;  %v5141_v25 = vpop.xlane.xlu0 %5140 }
 0xb38   : > { %v5228_v18 = vsub.f32 %v14482_v19, %v5144_v51  ;;  %v5227_v63 = vsub.f32 %v14474_v26, %v5141_v25  ;;  %11535 = vpow2.f32 %v5267_v1 }
 0xb39   : > { %v14610_v13 = vpop.eup %11527  ;;  %11537 = vpow2.f32 %v5269_v42 }
 0xb3a   : > { %v5265_v22 = vmul.f32 1.442695, %v5228_v18  ;;  %v5263_v24 = vmul.f32 1.442695, %v5227_v63  ;;  %v5325_v52 = vsel %vm1694_vm2, %v14610_v13, 0.0 }
 0xb3b   : > { %5326 = vadd.xlane.f32.xlu0 %v5325_v52 }
 0xb3c   : > { %11539 = vpow2.f32 %v5263_v24 }
 0xb3d   : > { %v14614_v36 = vpop.eup %11529  ;;  %11541 = vpow2.f32 %v5265_v22 }
 0xb3e   : > { %v5319_v6 = vsel %vm1694_vm2, %v14614_v36, 0.0 }
 0xb3f   : > { %5320 = vadd.xlane.f32.xlu0 %v5319_v6 }
 0xb41   : > { %v14618_v51 = vpop.eup %11531 }
 0xb42   : > { %v5328_v26 = vsel %vm1694_vm2, %v14618_v51, 0.0  ;;  %v14622_v19 = vpop.eup %11533 }
 0xb43   : > { %5329 = vadd.xlane.f32.xlu1 %v5328_v26  ;;  %v5322_v62 = vsel %vm1694_vm2, %v14622_v19, 0.0 }
 0xb45   : > { %v14624_v16 = vpop.eup %11535 }
 0xb46   : > { %v14628_v59 = vpop.eup %11537  ;;  %v5337_v54 = vsel %vm1694_vm2, %v14624_v16, 0.0 }
 0xb47   : > { %5323 = vadd.xlane.f32.xlu1 %v5322_v62  ;;  %5338 = vadd.xlane.f32.xlu0 %v5337_v54  ;;  %v5340_v42 = vsel %vm1694_vm2, %v14628_v59, 0.0 }
 0xb49   : > { %v14632_v7 = vpop.eup %11539 }
 0xb4a   : > { %v14636_v1 = vpop.eup %11541  ;;  %v5331_v25 = vsel %vm1694_vm2, %v14632_v7, 0.0 }
 0xb4b   : > { %5341 = vadd.xlane.f32.xlu1 %v5340_v42  ;;  %5332 = vadd.xlane.f32.xlu0 %v5331_v25  ;;  %v5334_v18 = vsel %vm1694_vm2, %v14636_v1, 0.0 }
 0xb4f   : > { %5335 = vadd.xlane.f32.xlu1 %v5334_v18 }
 0xb5b   : > { %v5159_v63 = vpop.xlane.xlu0 %5158 }
 0xb5c   : > { %v5233_v22 = vsub.f32 %v14500_v60, %v5159_v63 }
 0xb5e   : > { %v5275_v24 = vmul.f32 1.442695, %v5233_v22 }
 0xb5f   : > { %v5162_v52 = vpop.xlane.xlu1 %5161  ;;  %v5153_v6 = vpop.xlane.xlu0 %5152 }
 0xb60   : > { %11543 = vpow2.f32 %v5275_v24  ;;  %v5234_v26 = vsub.f32 %v14508_v43, %v5162_v52  ;;  %v5231_v62 = vsub.f32 %v14506_v27, %v5153_v6 }
 0xb62   : > { %v5271_v54 = vmul.f32 1.442695, %v5231_v62  ;;  %v5277_v42 = vmul.f32 1.442695, %v5234_v26 }
 0xb63   : > { %v5156_v29 = vpop.xlane.xlu1 %5155  ;;  %v5171_v46 = vpop.xlane.xlu0 %5170 }
 0xb64   : > { %v5232_v25 = vsub.f32 %v14516_v58, %v5156_v29  ;;  %v5237_v3 = vsub.f32 %v14518_v31, %v5171_v46  ;;  %11545 = vpow2.f32 %v5271_v54 }
 0xb65   : > { %11547 = vpow2.f32 %v5277_v42 }
 0xb66   : > { %v5283_v18 = vmul.f32 1.442695, %v5237_v3  ;;  %v5273_v60 = vmul.f32 1.442695, %v5232_v25 }
 0xb67   : > { %v5174_v63 = vpop.xlane.xlu1 %5173  ;;  %v5165_v22 = vpop.xlane.xlu0 %5164 }
 0xb68   : > { %v5238_v24 = vsub.f32 %v14528_v56, %v5174_v63  ;;  %v5235_v43 = vsub.f32 %v14526_v0, %v5165_v22  ;;  %11549 = vpow2.f32 %v5283_v18 }
 0xb69   : > { %11551 = vpow2.f32 %v5273_v60 }
 0xb6a   : > { %v5279_v27 = vmul.f32 1.442695, %v5235_v43  ;;  %v5285_v52 = vmul.f32 1.442695, %v5238_v24 }
 0xb6b   : > { %v5168_v6 = vpop.xlane.xlu1 %5167  ;;  %v5183_v26 = vpop.xlane.xlu0 %5182 }
 0xb6c   : > { %v5236_v29 = vsub.f32 %v14536_v55, %v5168_v6  ;;  %v5241_v46 = vsub.f32 %v14504_v14, %v5183_v26  ;;  %11553 = vpow2.f32 %v5279_v27 }
 0xb6d   : > { %v14651_v31 = vpop.eup %11543  ;;  %11555 = vpow2.f32 %v5285_v52 }
 0xb6e   : > { %v5281_v3 = vmul.f32 1.442695, %v5236_v29  ;;  %v5349_v58 = vsel %vm1694_vm2, %v14651_v31, 0.0  ;;  %v5291_v56 = vmul.f32 1.442695, %v5241_v46 }
 0xb6f   : > { %v5186_v0 = vpop.xlane.xlu1 %5185  ;;  %5350 = vadd.xlane.f32.xlu1 %v5349_v58  ;;  %v5177_v62 = vpop.xlane.xlu0 %5176 }
 0xb70   : > { %11557 = vpow2.f32 %v5281_v3  ;;  %v5242_v54 = vsub.f32 %v14524_v48, %v5186_v0  ;;  %v5239_v42 = vsub.f32 %v14514_v15, %v5177_v62 }
 0xb71   : > { %v14657_v55 = vpop.eup %11545  ;;  %11559 = vpow2.f32 %v5291_v56 }
 0xb72   : > { %v5287_v14 = vmul.f32 1.442695, %v5239_v42  ;;  %v5293_v25 = vmul.f32 1.442695, %v5242_v54  ;;  %v5343_v60 = vsel %vm1694_vm2, %v14657_v55, 0.0  ;;  %v14661_v22 = vpop.eup %11547 }
 0xb73   : > { %v5180_v18 = vpop.xlane.xlu1 %5179  ;;  %v5195_v63 = vpop.xlane.xlu0 %5194  ;;  %5344 = vadd.xlane.f32.xlu1 %v5343_v60  ;;  %v5352_v6 = vsel %vm1694_vm2, %v14661_v22, 0.0 }
 0xb74   : > { %v5240_v24 = vsub.f32 %v14534_v44, %v5180_v18  ;;  %v5245_v43 = vsub.f32 %v14542_v23, %v5195_v63  ;;  %11561 = vpow2.f32 %v5287_v14 }
 0xb75   : > { %v14665_v48 = vpop.eup %11549  ;;  %11563 = vpow2.f32 %v5293_v25 }
 0xb76   : > { %v5299_v15 = vmul.f32 1.442695, %v5245_v43  ;;  %v5289_v27 = vmul.f32 1.442695, %v5240_v24  ;;  %v5361_v26 = vsel %vm1694_vm2, %v14665_v48, 0.0  ;;  %v14671_v46 = vpop.eup %11551 }
 0xb77   : > { %v5198_v52 = vpop.xlane.xlu1 %5197  ;;  %v5189_v29 = vpop.xlane.xlu0 %5188  ;;  %5353 = vadd.xlane.f32.xlu1 %v5352_v6  ;;  %5362 = vadd.xlane.f32.xlu0 %v5361_v26  ;;  %v5346_v62 = vsel %vm1694_vm2, %v14671_v46, 0.0 }
 0xb78   : > { %v5246_v44 = vsub.f32 %v14554_v30, %v5198_v52  ;;  %v5243_v23 = vsub.f32 %v14548_v2, %v5189_v29  ;;  %11565 = vpow2.f32 %v5299_v15 }
 0xb79   : > { %v14675_v3 = vpop.eup %11553  ;;  %11567 = vpow2.f32 %v5289_v27 }
 0xb7a   : > { %v5295_v58 = vmul.f32 1.442695, %v5243_v23  ;;  %v5301_v56 = vmul.f32 1.442695, %v5246_v44  ;;  %v5355_v54 = vsel %vm1694_vm2, %v14675_v3, 0.0  ;;  %v14681_v14 = vpop.eup %11555 }
 0xb7b   : > { %v5192_v0 = vpop.xlane.xlu1 %5191  ;;  %v5207_v42 = vpop.xlane.xlu0 %5206  ;;  %5347 = vadd.xlane.f32.xlu1 %v5346_v62  ;;  %5356 = vadd.xlane.f32.xlu0 %v5355_v54  ;;  %v5364_v43 = vsel %vm1694_vm2, %v14681_v14, 0.0 }
 0xb7c   : > { %v5244_v30 = vsub.f32 %v14560_v37, %v5192_v0  ;;  %v5249_v2 = vsub.f32 %v14562_v50, %v5207_v42  ;;  %11569 = vpow2.f32 %v5295_v58 }
 0xb7d   : > { %v14685_v25 = vpop.eup %11557  ;;  %11571 = vpow2.f32 %v5301_v56 }
 0xb7e   : > { %v5307_v18 = vmul.f32 1.442695, %v5249_v2  ;;  %v5358_v60 = vsel %vm1694_vm2, %v14685_v25, 0.0  ;;  %v5297_v63 = vmul.f32 1.442695, %v5244_v30  ;;  %v14691_v27 = vpop.eup %11559 }
 0xb7f   : > { %v5210_v24 = vpop.xlane.xlu1 %5209  ;;  %v5201_v15 = vpop.xlane.xlu0 %5200  ;;  %5359 = vadd.xlane.f32.xlu1 %v5358_v60  ;;  %5365 = vadd.xlane.f32.xlu0 %v5364_v43  ;;  %v5373_v44 = vsel %vm1694_vm2, %v14691_v27, 0.0 }
 0xb80   : > { %v5250_v37 = vsub.f32 %v14570_v32, %v5210_v24  ;;  %v5247_v50 = vsub.f32 %v14568_v8, %v5201_v15  ;;  %11573 = vpow2.f32 %v5307_v18 }
 0xb81   : > { %v14695_v52 = vpop.eup %11561  ;;  %11575 = vpow2.f32 %v5297_v63 }
 0xb82   : > { %v5303_v6 = vmul.f32 1.442695, %v5247_v50  ;;  %v5309_v26 = vmul.f32 1.442695, %v5250_v37  ;;  %v5367_v23 = vsel %vm1694_vm2, %v14695_v52, 0.0  ;;  %v14701_v56 = vpop.eup %11563 }
 0xb83   : > { %v5204_v29 = vpop.xlane.xlu1 %5203  ;;  %v5219_v58 = vpop.xlane.xlu0 %5218  ;;  %5374 = vadd.xlane.f32.xlu0 %v5373_v44  ;;  %5368 = vadd.xlane.f32.xlu1 %v5367_v23  ;;  %v5376_v42 = vsel %vm1694_vm2, %v14701_v56, 0.0 }
 0xb84   : > { %v5248_v32 = vsub.f32 %v14576_v47, %v5204_v29  ;;  %v5253_v8 = vsub.f32 %v14578_v33, %v5219_v58  ;;  %11577 = vpow2.f32 %v5303_v6 }
 0xb85   : > { %v14705_v0 = vpop.eup %11565  ;;  %11579 = vpow2.f32 %v5309_v26 }
 0xb86   : > { %v5315_v62 = vmul.f32 1.442695, %v5253_v8  ;;  %v5305_v54 = vmul.f32 1.442695, %v5248_v32  ;;  %v5385_v30 = vsel %vm1694_vm2, %v14705_v0, 0.0  ;;  %v14711_v18 = vpop.eup %11567 }
 0xb87   : > { %v5213_v2 = vpop.xlane.xlu0 %5212  ;;  %5377 = vadd.xlane.f32.xlu0 %v5376_v42  ;;  %5386 = vadd.xlane.f32.xlu1 %v5385_v30  ;;  %v5370_v63 = vsel %vm1694_vm2, %v14711_v18, 0.0  ;;  %v14756_v30 = vpop.permute.xlu1 %5673 }
 0xb88   : > { %v5251_v47 = vsub.f32 %v14584_v4, %v5213_v2  ;;  %11581 = vpow2.f32 %v5315_v62 }
 0xb89   : > { %v14714_v33 = vpop.eup %11569  ;;  %11583 = vpow2.f32 %v5305_v54 }
 0xb8a   : > { %v5311_v60 = vmul.f32 1.442695, %v5251_v47  ;;  %v5379_v24 = vsel %vm1694_vm2, %v14714_v33, 0.0  ;;  %v14720_v43 = vpop.eup %11571 }
 0xb8b   : > { %5371 = vadd.xlane.f32.xlu0 %v5370_v63  ;;  %5380 = vadd.xlane.f32.xlu1 %v5379_v24  ;;  %v5388_v4 = vsel %vm1694_vm2, %v14720_v43, 0.0  ;;  %v18607_v63 = vld [vmem:[#allocation5_spill] sm:$0xff] }
 0xb8c   : > { %11585 = vpow2.f32 %v5311_v60  ;;  %v18606_v60 = vld [vmem:[#allocation9_spill] sm:$0xff] }
 0xb8d   : > { %v14722_v15 = vpop.eup %11573  ;;  %v18608_v24 = vpack.i.bf16 %v18606_v60, %v18607_v63  ;;  %v18617_v63 = vpack.i.bf16 %v14400_v11, %v14396_v17  ;;  %v18621_v17 = vpack.i.bf16 %v14412_v38, %v14408_v10 }
 0xb8e   : > { %v5397_v37 = vsel %vm1694_vm2, %v14722_v15, 0.0  ;;  %v14728_v50 = vpop.eup %11575 }
 0xb8f   : > { %5389 = vadd.xlane.f32.xlu0 %v5388_v4  ;;  %5398 = vadd.xlane.f32.xlu1 %v5397_v37  ;;  %v5382_v26 = vsel %vm1694_vm2, %v14728_v50, 0.0 }
 0xb91   : > { %v14730_v6 = vpop.eup %11577 }
 0xb92   : > { %v5391_v29 = vsel %vm1694_vm2, %v14730_v6, 0.0  ;;  %v14736_v44 = vpop.eup %11579 }
 0xb93   : > { %5383 = vadd.xlane.f32.xlu0 %v5382_v26  ;;  %5392 = vadd.xlane.f32.xlu1 %v5391_v29  ;;  %v5400_v58 = vsel %vm1694_vm2, %v14736_v44, 0.0  ;;  %v18611_v26 = vld [vmem:[#allocation41_spill] sm:$0xff] }
 0xb95   : > { %v14738_v23 = vpop.eup %11581 }
 0xb96   : > { %v5409_v32 = vsel %vm1694_vm2, %v14738_v23, 0.0  ;;  %v14744_v8 = vpop.eup %11583 }
 0xb97   : > { %5401 = vadd.xlane.f32.xlu0 %v5400_v58  ;;  %5410 = vadd.xlane.f32.xlu1 %v5409_v32  ;;  %v5394_v42 = vsel %vm1694_vm2, %v14744_v8, 0.0  ;;  %v5676_v58 = vpop.permute.xlu0 %5675  ;;  %v18613_v32 = vpack.i.bf16 %v14388_v12, %v14384_v40 }
 0xb99   : > { %v14746_v62 = vpop.eup %11585 }
 0xb9a   : > { %v5403_v54 = vsel %vm1694_vm2, %v14746_v62, 0.0 }
 0xb9b   : > { %5395 = vadd.xlane.f32.xlu0 %v5394_v42  ;;  %5404 = vadd.xlane.f32.xlu1 %v5403_v54  ;;  %v18614_v54 = vld [vmem:[#allocation47_spill] sm:$0xff]  ;;  %v18615_v42 = vld [vmem:[#allocation46_spill] sm:$0xff] }
 0xbac   : > { %5766 = vrot.lane.b32.xlu1 %v12511_v20, %s11863_s17 }
 0xbb0   : > { %5764 = vrot.lane.b32.xlu1 %v12501_v34, %s11863_s17  ;;  %v18609_v34 = vpack.i.bf16 %v14376_v53, %v14371_v41 }
 0xbb4   : > { %5762 = vrot.lane.b32.xlu1 %v12516_v5, %s11863_s17 }
 0xbb8   : > { %v5222_v2 = vpop.xlane.xlu1 %5221  ;;  %10765 = vrot.lane.b32.xlu1 %v18608_v24, %s11864_s19 }
 0xbb9   : > { %v5254_v47 = vsub.f32 %v14595_v9, %v5222_v2  ;;  %v18610_v9 = vld [vmem:[#allocation44_spill] sm:$0xff]  ;;  %v18616_v2 = vpack.i.bf16 %v18614_v54, %v18615_v42 }
 0xbba   : > { %v18612_v29 = vpack.i.bf16 %v18610_v9, %v18611_v26  ;;  %v18622_v26 = vld [vmem:[#allocation56_spill] sm:$0xff] }
 0xbbb   : > { %v5317_v4 = vmul.f32 1.442695, %v5254_v47 }
 0xbbc   : > { %v5216_v37 = vpop.xlane.xlu1 %5215  ;;  %10775 = vrot.lane.b32.xlu1 %v18609_v34, %s11865_s22 }
 0xbbd   : > { %11587 = vpow2.f32 %v5317_v4  ;;  %v5252_v20 = vsub.f32 %v14601_v45, %v5216_v37  ;;  %v18618_v4 = vld [vmem:[#allocation51_spill] sm:$0xff]  ;;  %v18619_v37 = vld [vmem:[#allocation49_spill] sm:$0xff] }
 0xbbf   : > { %v5313_v5 = vmul.f32 1.442695, %v5252_v20  ;;  %v18620_v20 = vpack.i.bf16 %v18618_v4, %v18619_v37 }
 0xbc0   : > { %10785 = vrot.lane.b32.xlu1 %v18612_v29, %s11864_s19  ;;  %v18623_v29 = vld [vmem:[#allocation54_spill] sm:$0xff] }
 0xbc1   : > { %11589 = vpow2.f32 %v5313_v5 }
 0xbc4   : > { %10795 = vrot.lane.b32.xlu1 %v18613_v32, %s11865_s22  ;;  %v5327_v45 = vpop.xlane.xlu0 %5326  ;;  %v18624_v32 = vpack.i.bf16 %v18622_v26, %v18623_v29  ;;  %v18635_v26 = vld [vmem:[#allocation6_spill] sm:$0xff] }
 0xbc8   : > { %10805 = vrot.lane.b32.xlu1 %v18616_v2, %s11864_s19  ;;  %v5321_v47 = vpop.xlane.xlu0 %5320 }
 0xbca   : > { %v14782_v41 = vpop.eup %11587 }
 0xbcb   : > { %v5412_v53 = vsel %vm1694_vm2, %v14782_v41, 0.0 }
 0xbcc   : > { %v5330_v60 = vpop.xlane.xlu1 %5329  ;;  %5413 = vadd.xlane.f32.xlu0 %v5412_v53  ;;  %10815 = vrot.lane.b32.xlu1 %v18617_v63, %s11865_s22 }
 0xbcd   : > { %11591 = vrcp.f32 %v5330_v60 }
 0xbce   : > { %v14790_v40 = vpop.eup %11589  ;;  %11593 = vrcp.f32 %v5321_v47 }
 0xbcf   : > { %v5406_v12 = vsel %vm1694_vm2, %v14790_v40, 0.0  ;;  %11595 = vrcp.f32 %v5327_v45 }
 0xbd0   : > { %v5324_v24 = vpop.xlane.xlu1 %5323  ;;  %5407 = vadd.xlane.f32.xlu0 %v5406_v12  ;;  %10825 = vrot.lane.b32.xlu1 %v18620_v20, %s11864_s19  ;;  %v5339_v34 = vpop.xlane.xlu0 %5338  ;;  %v18626_v20 = vld [vmem:[#allocation40_spill] sm:$0xff] }
 0xbd1   : > { %11597 = vrcp.f32 %v5324_v24 }
 0xbd4   : > { %v5342_v5 = vpop.xlane.xlu1 %5341  ;;  %10835 = vrot.lane.b32.xlu1 %v18621_v17, %s11865_s22  ;;  %v5333_v11 = vpop.xlane.xlu0 %5332 }
 0xbd5   : > { %11599 = vrcp.f32 %v5342_v5 }
 0xbd6   : > { %11601 = vrcp.f32 %v5333_v11  ;;  %v18632_v11 = vld [vmem:[#allocation48_spill] sm:$0xff] }
 0xbd7   : > { %11603 = vrcp.f32 %v5339_v34 }
 0xbd8   : > { %v5336_v9 = vpop.xlane.xlu1 %5335  ;;  %10845 = vrot.lane.b32.xlu1 %v18624_v32, %s11864_s19 }
 0xbd9   : > { %11605 = vrcp.f32 %v5336_v9 }
 0xbda   : > { %v11592_v45 = vpop.eup %11591 }
 0xbdb   : > { %v11594_v54 = vpop.eup %11593  ;;  %v5450_v53 = vmul.f32 %v11592_v45, %v14618_v51  ;;  %v18637_v45 = vld [vmem:[#allocation53_spill] sm:$0xff] }
 0xbdc   : > { %v11596_v42 = vpop.eup %11595  ;;  %v5447_v10 = vmul.f32 %v11594_v54, %v14614_v36  ;;  %v18638_v54 = vld [vmem:[#allocation50_spill] sm:$0xff] }
 0xbdd   : > { %v5449_v47 = vmul.f32 %v11596_v42, %v14610_v13  ;;  %v18639_v42 = vpack.i.bf16 %v18637_v45, %v18638_v54 }
 0xbde   : > { %v11598_v2 = vpop.eup %11597 }
 0xbdf   : > { %v5448_v38 = vmul.f32 %v11598_v2, %v14622_v19  ;;  %v5480_v63 = vpack.c.bf16 %v5450_v53, %v5449_v47  ;;  %v18625_v19 = vld [vmem:[#allocation4_spill] sm:$0xff]  ;;  %v18641_v53 = vld [vmem:[#allocation3_spill] sm:$0xff]  ;;  %v18644_v47 = vld [vmem:[#allocation57_spill] sm:$0xff] }
 0xbe0   : > { %v10759_v34 = vpack.i.bf16 %v18626_v20, %v18625_v19  ;;  %v18640_v2 = vld [vmem:[#allocation72_spill] sm:$0xff] }
 0xbe1   : > { %v5479_v60 = vpack.c.bf16 %v5448_v38, %v5447_v10  ;;  %v18642_v10 = vpack.i.bf16 %v18640_v2, %v18641_v53  ;;  %v18643_v38 = vld [vmem:[#allocation55_spill] sm:$0xff] }
 0xbe2   : > { %v11600_v12 = vpop.eup %11599 }
 0xbe3   : > { %10493 = vmatprep.mubr.msk.bf16.mxu1 %vm1694_vm2, %v5479_v60  ;;  %v11602_v24 = vpop.eup %11601  ;;  %v5454_v36 = vmul.f32 %v11600_v12, %v14628_v59  ;;  %v18629_v59 = vld [vmem:[#allocation52_spill] sm:$0xff]  ;;  %v10839_v60 = vpack.i.bf16 %v18644_v47, %v18643_v38 }
 0xbe4   : > { %10494 = vmatmul.mubr.msk.bf16.vlgmr.msra.gmra.mxu1 %vm1694_vm2, %v5480_v63  ;;  %v11604_v4 = vpop.eup %11603  ;;  %v5451_v13 = vmul.f32 %v11602_v24, %v14632_v7  ;;  %v18630_v7 = vpack.i.bf16 %v14392_v35, %v14386_v49 }
 0xbe5   : > { %10518 = vmatpush3.bf16.msra.mxu1 %v14367_v57  ;;  %v5453_v5 = vmul.f32 %v11604_v4, %v14624_v16  ;;  %v18628_v16 = vld [vmem:[#allocation43_spill] sm:$0xff] }
 0xbe6   : > { %v11606_v37 = vpop.eup %11605  ;;  %10519 = vmatprep.subr.bf16.mxu1 %v14593_v21  ;;  %5768 = vrot.lane.b32.xlu0 %v12506_v39, %s11863_s17  ;;  %v18627_v39 = vpack.i.bf16 %v14380_v61, %v14374_v28  ;;  %v18634_v61 = vld [vmem:[#allocation42_spill] sm:$0xff] }
 0xbe7   : > { %v5452_v51 = vmul.f32 %v11606_v37, %v14636_v1  ;;  %v5482_v17 = vpack.c.bf16 %v5454_v36, %v5453_v5  ;;  %v18636_v29 = vpack.i.bf16 %v18634_v61, %v18635_v26 }
 0xbe9   : > { %10520 = vmatpush3.bf16.msra.mxu1 %v14593_v21  ;;  %v5481_v57 = vpack.c.bf16 %v5452_v51, %v5451_v13  ;;  %v10779_v21 = vpack.i.bf16 %v18629_v59, %v18628_v16 }
 0xbea   : > { %10521 = vmatprep.subr.bf16.mxu1 %v5676_v58  ;;  %10760 = vrot.lane.b32.xlu0 %v10759_v34, %s11864_s19 }
 0xbeb   : > { %10497 = vmatprep.mubr.msk.bf16.mxu1 %vm1694_vm2, %v5481_v57 }
 0xbec   : > { %10498 = vmatmul.mubr.msk.bf16.gmra.mxu1 %vm1694_vm2, %v5482_v17 }
 0xbed   : > { %10522 = vmatpush3.bf16.msra.mxu1 %v5676_v58  ;;  %v18631_v58 = vld [vmem:[#allocation45_spill] sm:$0xff] }
 0xbee   : > { %10523 = vmatprep.subr.bf16.mxu1 %v14756_v30  ;;  %10770 = vrot.lane.b32.xlu0 %v18627_v39, %s11865_s22  ;;  %v18633_v9 = vpack.i.bf16 %v18631_v58, %v18632_v11 }
 0xbf1   : > { %10524 = vmatpush3.bf16.msra.mxu1 %v14756_v30 }
 0xbf2   : > { %10780 = vrot.lane.b32.xlu0 %v10779_v21, %s11864_s19 }
 0xbf6   : > { %10790 = vrot.lane.b32.xlu0 %v18630_v7, %s11865_s22 }
 0xbf8   : > { %v5351_v1 = vpop.xlane.xlu1 %5350 }
 0xbfa   : > { %10800 = vrot.lane.b32.xlu0 %v18633_v9, %s11864_s19 }
 0xbfc   : > { %v5345_v28 = vpop.xlane.xlu1 %5344 }
 0xbfe   : > { %10810 = vrot.lane.b32.xlu0 %v18636_v29, %s11865_s22 }
 0xc00   : > { %v5354_v30 = vpop.xlane.xlu1 %5353  ;;  %v5363_v32 = vpop.xlane.xlu0 %5362 }
 0xc01   : > { %11607 = vrcp.f32 %v5354_v30 }
 0xc02   : > { %10820 = vrot.lane.b32.xlu0 %v18639_v42, %s11864_s19  ;;  %11609 = vrcp.f32 %v5345_v28 }
 0xc03   : > { %11611 = vrcp.f32 %v5351_v1 }
 0xc04   : > { %v5348_v49 = vpop.xlane.xlu1 %5347  ;;  %v5357_v35 = vpop.xlane.xlu0 %5356 }
 0xc05   : > { %11613 = vrcp.f32 %v5348_v49 }
 0xc06   : > { %10830 = vrot.lane.b32.xlu0 %v18642_v10, %s11865_s22  ;;  %11615 = vrcp.f32 %v5357_v35 }
 0xc08   : > { %v5360_v63 = vpop.xlane.xlu1 %5359  ;;  %v5366_v12 = vpop.xlane.xlu0 %5365 }
 0xc09   : > { %11617 = vrcp.f32 %v5360_v63 }
 0xc0a   : > { %10840 = vrot.lane.b32.xlu0 %v10839_v60, %s11864_s19  ;;  %11619 = vrcp.f32 %v5366_v12 }
 0xc0b   : > { %11621 = vrcp.f32 %v5363_v32 }
 0xc0c   : > { %v5369_v24 = vpop.xlane.xlu1 %5368  ;;  %v5375_v4 = vpop.xlane.xlu0 %5374 }
 0xc0e   : > { %v11608_v37 = vpop.eup %11607 }
 0xc0f   : > { %v11610_v36 = vpop.eup %11609  ;;  %v5458_v34 = vmul.f32 %v11608_v37, %v14661_v22 }
 0xc10   : > { %v5387_v13 = vpop.xlane.xlu1 %5386  ;;  %v5378_v51 = vpop.xlane.xlu0 %5377  ;;  %v5455_v5 = vmul.f32 %v11610_v36, %v14657_v55 }
 0xc11   : > { %v11612_v19 = vpop.eup %11611  ;;  %11623 = vrcp.f32 %v5378_v51 }
 0xc12   : > { %v11614_v20 = vpop.eup %11613  ;;  %v5457_v39 = vmul.f32 %v11612_v19, %v14651_v31  ;;  %11625 = vrcp.f32 %v5369_v24 }
 0xc13   : > { %v5456_v57 = vmul.f32 %v11614_v20, %v14671_v46  ;;  %v11616_v17 = vpop.eup %11615  ;;  %11627 = vrcp.f32 %v5375_v4 }
 0xc14   : > { %v5372_v16 = vpop.xlane.xlu0 %5371  ;;  %v5381_v59 = vpop.xlane.xlu1 %5380  ;;  %v5484_v1 = vpack.c.bf16 %v5458_v34, %v5457_v39  ;;  %v5459_v22 = vmul.f32 %v11616_v17, %v14675_v3 }
 0xc15   : > { %v5483_v21 = vpack.c.bf16 %v5456_v57, %v5455_v5  ;;  %11629 = vrcp.f32 %v5372_v16 }
 0xc16   : > { %v11618_v7 = vpop.eup %11617 }
 0xc17   : > { %v11620_v58 = vpop.eup %11619  ;;  %10509 = vmatprep.mubr.msk.bf16.mxu0 %vm1694_vm2, %v5483_v21  ;;  %v5460_v55 = vmul.f32 %v11618_v7, %v14685_v25 }
 0xc18   : > { %10510 = vmatmul.mubr.msk.bf16.vlgmr.msra.gmra.mxu0 %vm1694_vm2, %v5484_v1  ;;  %v5390_v46 = vpop.xlane.xlu0 %5389  ;;  %v11622_v11 = vpop.eup %11621  ;;  %v5462_v9 = vmul.f32 %v11620_v58, %v14681_v14 }
 0xc19   : > { %v5485_v31 = vpack.c.bf16 %v5460_v55, %v5459_v22  ;;  %v5399_v28 = vpop.xlane.xlu1 %5398  ;;  %11631 = vrcp.f32 %v5390_v46  ;;  %v5461_v26 = vmul.f32 %v11622_v11, %v14665_v48 }
 0xc1a   : > { %11633 = vrcp.f32 %v5381_v59 }
 0xc1b   : > { %10513 = vmatprep.mubr.msk.bf16.mxu0 %vm1694_vm2, %v5485_v31  ;;  %11635 = vrcp.f32 %v5387_v13  ;;  %v5486_v3 = vpack.c.bf16 %v5462_v9, %v5461_v26  ;;  %v18646_v26 = vld [vmem:[#allocation2_spill] sm:$0xff] }
 0xc1c   : > { %v5384_v61 = vpop.xlane.xlu0 %5383 }
 0xc1d   : > { %11637 = vrcp.f32 %v5384_v61  ;;  %v5393_v32 = vpop.xlane.xlu1 %5392  ;;  %v18645_v61 = vld [vmem:[#allocation71_spill] sm:$0xff] }
 0xc1e   : > { %v11624_v29 = vpop.eup %11623  ;;  %11639 = vrcp.f32 %v5393_v32  ;;  %v18649_v32 = vld [vmem:[#allocation70_spill] sm:$0xff] }
 0xc1f   : > { %v11626_v30 = vpop.eup %11625  ;;  %v5466_v14 = vmul.f32 %v11624_v29, %v14701_v56 }
 0xc20   : > { %10514 = vmatmul.mubr.msk.bf16.gmra.mxu0 %vm1694_vm2, %v5486_v3  ;;  %v5402_v25 = vpop.xlane.xlu0 %5401  ;;  %v11628_v45 = vpop.eup %11627  ;;  %v5463_v49 = vmul.f32 %v11626_v30, %v14695_v52  ;;  %v18647_v3 = vpack.i.bf16 %v18645_v61, %v18646_v26  ;;  %v18648_v30 = vld [vmem:[#allocation73_spill] sm:$0xff] }
 0xc21   : > { %v5465_v48 = vmul.f32 %v11628_v45, %v14691_v27  ;;  %v18650_v45 = vpack.i.bf16 %v18648_v30, %v18649_v32  ;;  %v18677_v30 = vld [vmem:[#allocation69_spill] sm:$0xff]  ;;  %v18678_v32 = vld [vmem:[#allocation67_spill] sm:$0xff] }
 0xc22   : > { %v11630_v54 = vpop.eup %11629 }
 0xc23   : > { %v5464_v35 = vmul.f32 %v11630_v54, %v14711_v18  ;;  %v5488_v53 = vpack.c.bf16 %v5466_v14, %v5465_v48  ;;  %v18653_v48 = vld [vmem:[#allocation60_spill] sm:$0xff] }
 0xc24   : > { %v5396_v42 = vpop.xlane.xlu0 %5395 }
 0xc25   : > { %11641 = vrcp.f32 %v5396_v42  ;;  %v5487_v2 = vpack.c.bf16 %v5464_v35, %v5463_v49  ;;  %v18651_v42 = vld [vmem:[#allocation59_spill] sm:$0xff]  ;;  %v18652_v49 = vld [vmem:[#allocation65_spill] sm:$0xff] }
 0xc26   : > { %v11632_v10 = vpop.eup %11631  ;;  %11643 = vrcp.f32 %v5402_v25  ;;  %v10879_v35 = vpack.i.bf16 %v18652_v49, %v18651_v42 }
 0xc27   : > { %10525 = vmatprep.mubr.msk.bf16.mxu1 %vm1694_vm2, %v5487_v2  ;;  %v11634_v38 = vpop.eup %11633  ;;  %v5470_v56 = vmul.f32 %v11632_v10, %v14720_v43  ;;  %11645 = vrcp.f32 %v5399_v28  ;;  %v18654_v2 = vld [vmem:[#allocation58_spill] sm:$0xff] }
 0xc28   : > { %10526 = vmatmul.mubr.msk.bf16.vlgmr.msra.gmra.mxu1 %vm1694_vm2, %v5488_v53  ;;  %v11636_v47 = vpop.eup %11635  ;;  %v5467_v63 = vmul.f32 %v11634_v38, %v14714_v33  ;;  %v5411_v33 = vpop.xlane.xlu1 %5410  ;;  %v18655_v53 = vpack.i.bf16 %v18653_v48, %v18654_v2 }
 0xc29   : > { %v5469_v18 = vmul.f32 %v11636_v47, %v14705_v0 }
 0xc2a   : > { %v11638_v60 = vpop.eup %11637 }
 0xc2b   : > { %v5468_v52 = vmul.f32 %v11638_v60, %v14728_v50  ;;  %v5490_v12 = vpack.c.bf16 %v5470_v56, %v5469_v18  ;;  %v11640_v24 = vpop.eup %11639 }
 0xc2c   : > { %v5471_v37 = vmul.f32 %v11640_v24, %v14730_v6  ;;  %v5405_v43 = vpop.xlane.xlu1 %5404 }
 0xc2d   : > { %v5489_v27 = vpack.c.bf16 %v5468_v52, %v5467_v63 }
 0xc2f   : > { %10529 = vmatprep.mubr.msk.bf16.mxu1 %vm1694_vm2, %v5489_v27  ;;  %v18656_v27 = vld [vmem:[#allocation76_spill] sm:$0xff] }
 0xc30   : > { %10530 = vmatmul.mubr.msk.bf16.gmra.mxu1 %vm1694_vm2, %v5490_v12  ;;  %v5767_v51 = vpop.permute.xlu1 %5766  ;;  %v18657_v12 = vld [vmem:[#allocation74_spill] sm:$0xff] }
 0xc31   : > { %v18658_v24 = vpack.i.bf16 %v18656_v27, %v18657_v12  ;;  %v18680_v27 = vld [vmem:[#allocation14_spill] sm:$0xff] }
 0xc32   : > { %v11642_v4 = vpop.eup %11641 }
 0xc33   : > { %v5472_v36 = vmul.f32 %v11642_v4, %v14744_v8  ;;  %v11644_v8 = vpop.eup %11643 }
 0xc34   : > { %v5765_v6 = vpop.permute.xlu1 %5764  ;;  %v11646_v20 = vpop.eup %11645  ;;  %v5474_v17 = vmul.f32 %v11644_v8, %v14736_v44  ;;  %v18662_v8 = vld [vmem:[#allocation63_spill] sm:$0xff] }
 0xc35   : > { %v5491_v13 = vpack.c.bf16 %v5472_v36, %v5471_v37  ;;  %v5473_v16 = vmul.f32 %v11646_v20, %v14722_v15  ;;  %v11067_v15 = vld [vmem:[%s18236_s4 + $0x8] sm:$0xff]   ;;  %v18663_v20 = vld [vmem:[#allocation61_spill] sm:$0xff] }
 0xc36   : > { %10549 = vmatprep.subr.bf16.mxu1 %v11067_v15  ;;  %v18659_v36 = vld [vmem:[#allocation75_spill] sm:$0xff] }
 0xc37   : > { %10541 = vmatprep.mubr.msk.bf16.mxu0 %vm1694_vm2, %v5491_v13  ;;  %v5492_v21 = vpack.c.bf16 %v5474_v17, %v5473_v16  ;;  %10550 = vmatpush3.bf16.msra.mxu1 %v11067_v15  ;;  %v18660_v13 = vld [vmem:[#allocation78_spill] sm:$0xff]  ;;  %v18669_v15 = vld [vmem:[#allocation77_spill] sm:$0xff] }
 0xc38   : > { %v5763_v5 = vpop.permute.xlu1 %5762  ;;  %v18666_v17 = vld [vmem:[#allocation62_spill] sm:$0xff] }
 0xc55   : > { %v5414_v50 = vpop.xlane.xlu0 %5413 }
 0xc59   : > { %v5408_v0 = vpop.xlane.xlu0 %5407 }
 0xc5a   : > { %11647 = vrcp.f32 %v5408_v0  ;;  %v10766_v0 = vpop.permute.xlu1 %10765 }
 0xc5b   : > { %11649 = vrcp.f32 %v5405_v43 }
 0xc5c   : > { %11651 = vrcp.f32 %v5414_v50 }
 0xc5d   : > { %v5769_v19 = vpop.permute.xlu0 %5768  ;;  %11653 = vrcp.f32 %v5411_v33  ;;  %v18661_v33 = vpack.i.bf16 %v18659_v36, %v18660_v13  ;;  %v18681_v36 = vld [vmem:[#allocation7_spill] sm:$0xff] }
 0xc5e   : > { %10533 = vmatprep.subr.bf16.mxu0 %v5769_v19  ;;  %v10776_v16 = vpop.permute.xlu1 %10775 }
 0xc5f   : > { %10534 = vmatpush3.bf16.msra.mxu0 %v5769_v19 }
 0xc60   : > { %10535 = vmatprep.subr.bf16.mxu0 %v5767_v51 }
 0xc61   : > { %v10761_v19 = vpop.permute.xlu0 %10760 }
 0xc63   : > { %10536 = vmatpush3.bf16.msra.mxu0 %v5767_v51 }
 0xc64   : > { %10537 = vmatprep.subr.bf16.mxu0 %v5765_v6 }
 0xc67   : > { %v11648_v34 = vpop.eup %11647  ;;  %10538 = vmatpush3.bf16.msra.mxu0 %v5765_v6 }
 0xc68   : > { %v11650_v57 = vpop.eup %11649  ;;  %10539 = vmatprep.subr.bf16.mxu0 %v5763_v5  ;;  %v5476_v39 = vmul.f32 %v11648_v34, %v14790_v40  ;;  %v18664_v34 = vpack.i.bf16 %v18662_v8, %v18663_v20  ;;  %v18683_v8 = vld [vmem:[#allocation10_spill] sm:$0xff] }
 0xc69   : > { %v5475_v59 = vmul.f32 %v11650_v57, %v14746_v62  ;;  %v11652_v7 = vpop.eup %11651  ;;  %v11068_v62 = vld [vmem:[%s18236_s4] sm:$0xff]   ;;  %v18665_v57 = vld [vmem:[#allocation64_spill] sm:$0xff] }
 0xc6a   : > { %v11654_v58 = vpop.eup %11653  ;;  %v5478_v22 = vmul.f32 %v11652_v7, %v14782_v41  ;;  %10551 = vmatprep.subr.bf16.mxu1 %v11068_v62  ;;  %v10771_v7 = vpop.permute.xlu0 %10770 }
 0xc6b   : > { %10540 = vmatpush3.bf16.msra.mxu0 %v5763_v5  ;;  %v5493_v1 = vpack.c.bf16 %v5476_v39, %v5475_v59  ;;  %v5477_v44 = vmul.f32 %v11654_v58, %v14738_v23  ;;  %10552 = vmatpush3.bf16.msra.mxu1 %v11068_v62  ;;  %v18667_v39 = vpack.i.bf16 %v18665_v57, %v18666_v17 }
 0xc6d   : > { %v5494_v55 = vpack.c.bf16 %v5478_v22, %v5477_v44  ;;  %v14941_v44 = vpop.permute.xlu1 %10785 }
 0xc6e   : > { %10542 = vmatmul.mubr.msk.bf16.vlgmr.msra.gmra.mxu0 %vm1694_vm2, %v5492_v21 }
 0xc6f   : > { %10545 = vmatprep.mubr.msk.bf16.mxu0 %vm1694_vm2, %v5493_v1 }
 0xc71   : > { %v14954_v61 = vpop.permute.xlu1 %10795 }
 0xc76   : > { %10546 = vmatmul.mubr.msk.bf16.gmra.mxu0 %vm1694_vm2, %v5494_v55  ;;  %v18668_v55 = vld [vmem:[#allocation81_spill] sm:$0xff] }
 0xc77   : > { %v18670_v62 = vpack.i.bf16 %v18668_v55, %v18669_v15  ;;  %v10797_v55 = vunpack.i.l.bf16 %v14954_v61 }
 0xca4   : > { %v10495_v40 = vpop.f32.mrf.mxu1 }
 0xca6   : > { %v5553_v46 = vpop.f32.mrf.mxu1 }
 0xca8   : > { %v10496_v41 = vpop.f32.mrf.mxu1 }
 0xca9   : > { %v10849_v11 = vpack.i.bf16 %v10496_v41, %v10495_v40 }
 0xcaa   : > { %v5556_v23 = vpop.f32.mrf.mxu1 }
 0xcab   : > { %v10854_v31 = vpack.i.bf16 %v5556_v23, %v5553_v46  ;;  %10850 = vrot.lane.b32.xlu1 %v10849_v11, %s11866_s28  ;;  %v14947_v46 = vpop.permute.xlu0 %10780  ;;  %v18671_v11 = vld [vmem:[#allocation79_spill] sm:$0xff]  ;;  %v18672_v23 = vld [vmem:[#allocation80_spill] sm:$0xff] }
 0xcac   : > { %v10499_v9 = vpop.f32.mrf.mxu1 }
 0xcad   : > { %10855 = vrot.lane.b32.xlu0 %v10854_v31, %s11866_s28  ;;  %v18673_v31 = vpack.i.bf16 %v18671_v11, %v18672_v23 }
 0xcae   : > { %v5569_v28 = vpop.f32.mrf.mxu1 }
 0xcaf   : > { %10865 = vrot.lane.b32.xlu1 %v18647_v3, %s11865_s22  ;;  %v14957_v26 = vpop.permute.xlu0 %10790  ;;  %v18674_v3 = vld [vmem:[#allocation68_spill] sm:$0xff] }
 0xcb0   : > { %v10500_v29 = vpop.f32.mrf.mxu1  ;;  %v10793_v23 = vunpack.i.h.bf16 %v14957_v26 }
 0xcb1   : > { %v10869_v25 = vpack.i.bf16 %v10500_v29, %v10499_v9  ;;  %10860 = vrot.lane.b32.xlu0 %v18650_v45, %s11865_s22  ;;  %v18675_v29 = vld [vmem:[#allocation66_spill] sm:$0xff]  ;;  %v18679_v45 = vpack.i.bf16 %v18677_v30, %v18678_v32 }
 0xcb2   : > { %v5572_v54 = vpop.f32.mrf.mxu1 }
 0xcb3   : > { %v10874_v14 = vpack.i.bf16 %v5572_v54, %v5569_v28  ;;  %10870 = vrot.lane.b32.xlu1 %v10869_v25, %s11866_s28  ;;  %v18676_v25 = vpack.i.bf16 %v18674_v3, %v18675_v29  ;;  %v14967_v54 = vpop.permute.xlu1 %10805  ;;  %v18685_v3 = vld [vmem:[#allocation15_spill] sm:$0xff] }
 0xcb5   : > { %10875 = vrot.lane.b32.xlu0 %v10874_v14, %s11866_s28  ;;  %v14969_v14 = vpop.permute.xlu0 %10800 }
 0xcb7   : > { %10885 = vrot.lane.b32.xlu1 %v18655_v53, %s11864_s19  ;;  %v14971_v42 = vpop.permute.xlu1 %10815 }
 0xcb9   : > { %10880 = vrot.lane.b32.xlu0 %v10879_v35, %s11864_s19  ;;  %v14973_v49 = vpop.permute.xlu0 %10810 }
 0xcbb   : > { %v14975_v35 = vpop.permute.xlu1 %10825 }
 0xcbd   : > { %v14977_v48 = vpop.permute.xlu0 %10820 }
 0xcbf   : > { %v14979_v2 = vpop.permute.xlu1 %10835 }
 0xcc1   : > { %v14981_v53 = vpop.permute.xlu0 %10830 }
 0xcd8   : > { %v10511_v10 = vpop.f32.mrf.mxu0 }
 0xcda   : > { %v5642_v38 = vpop.f32.mrf.mxu0 }
 0xcdc   : > { %v10512_v47 = vpop.f32.mrf.mxu0 }
 0xcdd   : > { %v10889_v60 = vpack.i.bf16 %v10512_v47, %v10511_v10  ;;  %v10768_v10 = vunpack.i.h.bf16 %v10766_v0  ;;  %v10767_v47 = vunpack.i.l.bf16 %v10766_v0 }
 0xcde   : > { %v5645_v56 = vpop.f32.mrf.mxu0 }
 0xcdf   : > { %v10894_v63 = vpack.i.bf16 %v5645_v56, %v5642_v38  ;;  %10890 = vrot.lane.b32.xlu1 %v10889_v60, %s11866_s28  ;;  %v14983_v38 = vpop.permute.xlu1 %10845  ;;  %v10778_v60 = vunpack.i.h.bf16 %v10776_v16  ;;  %v10777_v56 = vunpack.i.l.bf16 %v10776_v16  ;;  %v6238_v12 = vsel %vm1301_vm1, %v18680_v27, %v10768_v10  ;;  %v18687_v10 = vld [vmem:[#allocation16_spill] sm:$0xff] }
 0xce0   : > { %v10515_v52 = vpop.f32.mrf.mxu0  ;;  %v6237_v13 = vsel %vm1301_vm1, %v18681_v36, %v10767_v47 }
 0xce1   : > { %10895 = vrot.lane.b32.xlu0 %v10894_v63, %s11866_s28  ;;  %v14985_v63 = vpop.permute.xlu0 %10840  ;;  %v6271_v0 = vsel %vm6267_vm3, %v6238_v12, %v10778_v60 }
 0xce2   : > { %v5658_v18 = vpop.f32.mrf.mxu0 }
 0xce3   : > { %10905 = vrot.lane.b32.xlu1 %v18658_v24, %s11865_s22  ;;  %v10773_v24 = vunpack.i.h.bf16 %v10771_v7 }
 0xce4   : > { %v10516_v4 = vpop.f32.mrf.mxu0 }
 0xce5   : > { %v10909_v37 = vpack.i.bf16 %v10516_v4, %v10515_v52  ;;  %10900 = vrot.lane.b32.xlu0 %v18661_v33, %s11865_s22  ;;  %v10763_v52 = vunpack.i.h.bf16 %v10761_v19  ;;  %v10772_v4 = vunpack.i.l.bf16 %v10771_v7  ;;  %v10787_v7 = vunpack.i.l.bf16 %v14941_v44 }
 0xce6   : > { %v5661_v43 = vpop.f32.mrf.mxu0 }
 0xce7   : > { %v10914_v50 = vpack.i.bf16 %v5661_v43, %v5658_v18  ;;  %10910 = vrot.lane.b32.xlu1 %v10909_v37, %s11866_s28  ;;  %v10762_v18 = vunpack.i.l.bf16 %v10761_v19 }
 0xce8   : > { %v10527_v51 = vpop.f32.mrf.mxu1 }
 0xce9   : > { %10915 = vrot.lane.b32.xlu0 %v10914_v50, %s11866_s28  ;;  %v6270_v50 = vsel %vm6267_vm3, %v6237_v13, %v10777_v56  ;;  %v6235_v20 = vsel %vm1301_vm1, %v18683_v8, %v10762_v18  ;;  %v18688_v8 = vld [vmem:[#allocation84_spill] sm:$0xff] }
 0xcea   : > { %v5731_v6 = vpop.f32.mrf.mxu1  ;;  %v6268_v57 = vsel %vm6267_vm3, %v6235_v20, %v10772_v4  ;;  %v18689_v20 = vld [vmem:[#allocation82_spill] sm:$0xff] }
 0xceb   : > { %10925 = vrot.lane.b32.xlu1 %v18664_v34, %s11864_s19 }
 0xcec   : > { %v10528_v5 = vpop.f32.mrf.mxu1 }
 0xced   : > { %10920 = vrot.lane.b32.xlu0 %v18667_v39, %s11864_s19  ;;  %v10929_v59 = vpack.i.bf16 %v10528_v5, %v10527_v51 }
 0xcee   : > { %v5734_v21 = vpop.f32.mrf.mxu1 }
 0xcef   : > { %v10934_v1 = vpack.i.bf16 %v5734_v21, %v5731_v6  ;;  %10930 = vrot.lane.b32.xlu1 %v10929_v59, %s11866_s28  ;;  %v18682_v6 = vld [vmem:[#allocation11_spill] sm:$0xff]  ;;  %v10788_v21 = vunpack.i.h.bf16 %v14941_v44  ;;  %v10792_v44 = vunpack.i.l.bf16 %v14957_v26 }
 0xcf0   : > { %v10531_v58 = vpop.f32.mrf.mxu1  ;;  %v6236_v19 = vsel %vm1301_vm1, %v18682_v6, %v10763_v52 }
 0xcf1   : > { %10935 = vrot.lane.b32.xlu0 %v10934_v1, %s11866_s28  ;;  %v6269_v17 = vsel %vm6267_vm3, %v6236_v19, %v10773_v24 }
 0xcf2   : > { %v5747_v22 = vpop.f32.mrf.mxu1 }
 0xcf3   : > { %10945 = vrot.lane.b32.xlu1 %v18670_v62, %s11865_s22 }
 0xcf4   : > { %v10532_v40 = vpop.f32.mrf.mxu1 }
 0xcf5   : > { %v10949_v41 = vpack.i.bf16 %v10532_v40, %v10531_v58  ;;  %10940 = vrot.lane.b32.xlu0 %v18673_v31, %s11865_s22  ;;  %v10783_v40 = vunpack.i.h.bf16 %v14947_v46 }
 0xcf6   : > { %v5750_v9 = vpop.f32.mrf.mxu1 }
 0xcf7   : > { %v10954_v28 = vpack.i.bf16 %v5750_v9, %v5747_v22  ;;  %10950 = vrot.lane.b32.xlu1 %v10949_v41, %s11866_s28  ;;  %v10798_v22 = vunpack.i.h.bf16 %v14954_v61  ;;  %v10782_v41 = vunpack.i.l.bf16 %v14947_v46  ;;  %v18684_v9 = vld [vmem:[#allocation20_spill] sm:$0xff]  ;;  %v6241_v61 = vsel %vm1301_vm1, %v18685_v3, %v10787_v7  ;;  %v18695_v3 = vld [vmem:[#allocation23_spill] sm:$0xff] }
 0xcf8   : > { %v6274_v46 = vsel %vm6267_vm3, %v6241_v61, %v10797_v55  ;;  %v10818_v55 = vunpack.i.h.bf16 %v14971_v42 }
 0xcf9   : > { %10955 = vrot.lane.b32.xlu0 %v10954_v28, %s11866_s28  ;;  %v6242_v28 = vsel %vm1301_vm1, %v18684_v9, %v10788_v21  ;;  %v6239_v47 = vsel %vm1301_vm1, %v18687_v10, %v10782_v41  ;;  %v10803_v41 = vunpack.i.h.bf16 %v14969_v14  ;;  %v18694_v9 = vld [vmem:[#allocation26_spill] sm:$0xff] }
 0xcfa   : > { %v6275_v30 = vsel %vm6267_vm3, %v6242_v28, %v10798_v22  ;;  %v6272_v52 = vsel %vm6267_vm3, %v6239_v47, %v10792_v44  ;;  %v10807_v22 = vunpack.i.l.bf16 %v14967_v54  ;;  %v10812_v44 = vunpack.i.l.bf16 %v14973_v49 }
 0xcfb   : > { %10965 = vrot.lane.b32.xlu1 %v18676_v25, %s11864_s19 }
 0xcfd   : > { %10960 = vrot.lane.b32.xlu0 %v18679_v45, %s11864_s19  ;;  %v18686_v45 = vld [vmem:[#allocation22_spill] sm:$0xff] }
 0xcfe   : > { %v6240_v26 = vsel %vm1301_vm1, %v18686_v45, %v10783_v40 }
 0xcff   : > { %v6273_v18 = vsel %vm6267_vm3, %v6240_v26, %v10793_v23  ;;  %v10813_v23 = vunpack.i.h.bf16 %v14973_v49 }
 0xd1d   : > { %v10851_v37 = vpop.permute.xlu1 %10850 }
 0xd1e   : > { %v10853_v33 = vunpack.i.h.bf16 %v10851_v37  ;;  %v10852_v43 = vunpack.i.l.bf16 %v10851_v37 }
 0xd1f   : > { %v10856_v51 = vpop.permute.xlu0 %10855 }
 0xd20   : > { %v10858_v34 = vunpack.i.h.bf16 %v10856_v51  ;;  %v10857_v5 = vunpack.i.l.bf16 %v10856_v51  ;;  %v6304_v39 = vsel %vm6300_vm4, %v6271_v0, %v10853_v33  ;;  %v6303_v16 = vsel %vm6300_vm4, %v6270_v50, %v10852_v43 }
 0xd21   : > { %v15001_v59 = vpop.permute.xlu1 %10865  ;;  %v6334_v11 = vpack.c.bf16 %v6304_v39, %v6303_v16  ;;  %v18692_v39 = vld [vmem:[#allocation83_spill] sm:$0xff] }
 0xd22   : > { %v6301_v1 = vsel %vm6300_vm4, %v6268_v57, %v10857_v5  ;;  %v6302_v58 = vsel %vm6300_vm4, %v6269_v17, %v10858_v34  ;;  %v18690_v34 = vpack.i.bf16 %v18688_v8, %v18689_v20  ;;  %v18691_v17 = vld [vmem:[#allocation85_spill] sm:$0xff]  ;;  %v18699_v8 = vld [vmem:[#allocation28_spill] sm:$0xff] }
 0xd23   : > { %v15009_v15 = vpop.permute.xlu0 %10860  ;;  %v6333_v62 = vpack.c.bf16 %v6302_v58, %v6301_v1  ;;  %v18693_v16 = vpack.i.bf16 %v18691_v17, %v18692_v39  ;;  %v10808_v58 = vunpack.i.h.bf16 %v14967_v54  ;;  %v6245_v54 = vsel %vm1301_vm1, %v18695_v3, %v10807_v22  ;;  %v18700_v17 = vld [vmem:[#allocation31_spill] sm:$0xff]  ;;  %v18701_v39 = vld [vmem:[#allocation29_spill] sm:$0xff] }
 0xd24   : > { %v10843_v3 = vunpack.i.h.bf16 %v14985_v63 }
 0xd25   : > { %v10871_v31 = vpop.permute.xlu1 %10870  ;;  %10553 = vmatprep.mubr.msk.bf16.mxu1 %vm538_vm0, %v6333_v62  ;;  %v10817_v62 = vunpack.i.l.bf16 %v14971_v42  ;;  %v6246_v28 = vsel %vm1301_vm1, %v18694_v9, %v10808_v58 }
 0xd26   : > { %v10873_v29 = vunpack.i.h.bf16 %v10871_v31  ;;  %v10872_v25 = vunpack.i.l.bf16 %v10871_v31  ;;  %10554 = vmatmul.mubr.msk.bf16.vlgmr.msra.gmra.mxu1 %vm538_vm0, %v6334_v11  ;;  %v10802_v11 = vunpack.i.l.bf16 %v14969_v14 }
 0xd27   : > { %v10876_v32 = vpop.permute.xlu0 %10875  ;;  %v6278_v42 = vsel %vm6267_vm3, %v6245_v54, %v10817_v62  ;;  %v10842_v54 = vunpack.i.l.bf16 %v14985_v63  ;;  %v18703_v63 = vld [vmem:[#allocation17_spill] sm:$0xff] }
 0xd28   : > { %v10878_v60 = vunpack.i.h.bf16 %v10876_v32  ;;  %v10877_v56 = vunpack.i.l.bf16 %v10876_v32  ;;  %v6308_v27 = vsel %vm6300_vm4, %v6275_v30, %v10873_v29  ;;  %v6307_v12 = vsel %vm6300_vm4, %v6274_v46, %v10872_v25  ;;  %v18696_v30 = vld [vmem:[#allocation27_spill] sm:$0xff]  ;;  %v18697_v32 = vld [vmem:[#allocation25_spill] sm:$0xff] }
 0xd29   : > { %v6336_v36 = vpack.c.bf16 %v6308_v27, %v6307_v12  ;;  %v15047_v1 = vpop.permute.xlu1 %10885  ;;  %v6279_v25 = vsel %vm6267_vm3, %v6246_v28, %v10818_v55  ;;  %v6244_v14 = vsel %vm1301_vm1, %v18696_v30, %v10803_v41  ;;  %v6243_v49 = vsel %vm1301_vm1, %v18697_v32, %v10802_v11  ;;  %v18702_v32 = vld [vmem:[#allocation8_spill] sm:$0xff] }
 0xd2a   : > { %v6305_v24 = vsel %vm6300_vm4, %v6272_v52, %v10877_v56  ;;  %v6306_v4 = vsel %vm6300_vm4, %v6273_v18, %v10878_v60  ;;  %v6276_v10 = vsel %vm6267_vm3, %v6243_v49, %v10812_v44  ;;  %v6277_v47 = vsel %vm6267_vm3, %v6244_v14, %v10813_v23 }
 0xd2b   : > { %v6335_v37 = vpack.c.bf16 %v6306_v4, %v6305_v24  ;;  %v15053_v40 = vpop.permute.xlu0 %10880  ;;  %v10828_v18 = vunpack.i.h.bf16 %v14975_v35  ;;  %v10827_v27 = vunpack.i.l.bf16 %v14975_v35  ;;  %v10838_v4 = vunpack.i.h.bf16 %v14979_v2 }
 0xd2c   : > { %v10832_v35 = vunpack.i.l.bf16 %v14981_v53  ;;  %v10848_v44 = vunpack.i.h.bf16 %v14983_v38  ;;  %v10847_v28 = vunpack.i.l.bf16 %v14983_v38 }
 0xd2d   : > { %10557 = vmatprep.mubr.msk.bf16.mxu1 %vm538_vm0, %v6335_v37  ;;  %v10837_v37 = vunpack.i.l.bf16 %v14979_v2  ;;  %v6249_v2 = vsel %vm1301_vm1, %v18699_v8, %v10827_v27 }
 0xd2e   : > { %v10543_v13 = vpop.f32.mrf.mxu0  ;;  %10558 = vmatmul.mubr.msk.bf16.gmra.mxu1 %vm538_vm0, %v6336_v36  ;;  %v6254_v49 = vsel %vm1301_vm1, %v18702_v32, %v10848_v44 }
 0xd30   : > { %v5820_v33 = vpop.f32.mrf.mxu0 }
 0xd32   : > { %v10544_v43 = vpop.f32.mrf.mxu0 }
 0xd33   : > { %v10969_v50 = vpack.i.bf16 %v10544_v43, %v10543_v13  ;;  %v10822_v43 = vunpack.i.l.bf16 %v14977_v48 }
 0xd34   : > { %v5823_v0 = vpop.f32.mrf.mxu0 }
 0xd35   : > { %v10974_v51 = vpack.i.bf16 %v5823_v0, %v5820_v33  ;;  %10970 = vrot.lane.b32.xlu1 %v10969_v50, %s11866_s28  ;;  %v10823_v33 = vunpack.i.h.bf16 %v14977_v48  ;;  %v10833_v0 = vunpack.i.h.bf16 %v14981_v53  ;;  %v6282_v48 = vsel %vm6267_vm3, %v6249_v2, %v10837_v37 }
 0xd36   : > { %v10547_v6 = vpop.f32.mrf.mxu0 }
 0xd37   : > { %10975 = vrot.lane.b32.xlu0 %v10974_v51, %s11866_s28  ;;  %v6248_v53 = vsel %vm1301_vm1, %v18700_v17, %v10823_v33  ;;  %v10888_v33 = vunpack.i.h.bf16 %v15047_v1  ;;  %v18706_v17 = vld [vmem:[#allocation21_spill] sm:$0xff] }
 0xd38   : > { %v5836_v19 = vpop.f32.mrf.mxu0  ;;  %v6281_v22 = vsel %vm6267_vm3, %v6248_v53, %v10833_v0  ;;  %v10887_v0 = vunpack.i.l.bf16 %v15047_v1  ;;  %v18707_v53 = vld [vmem:[#allocation18_spill] sm:$0xff] }
 0xd39   : > { %10985 = vrot.lane.b32.xlu1 %v18690_v34, %s11865_s22 }
 0xd3a   : > { %v10548_v5 = vpop.f32.mrf.mxu0 }
 0xd3b   : > { %v10994_v57 = vpack.i.bf16 %v10548_v5, %v10547_v6  ;;  %10980 = vrot.lane.b32.xlu0 %v18693_v16, %s11865_s22  ;;  %v18698_v6 = vld [vmem:[#allocation30_spill] sm:$0xff]  ;;  %v6247_v16 = vsel %vm1301_vm1, %v18701_v39, %v10822_v43  ;;  %v6257_v39 = vsel %vm1301_vm1, %v18707_v53, %v10887_v0 }
 0xd3c   : > { %v5839_v21 = vpop.f32.mrf.mxu0  ;;  %v6280_v58 = vsel %vm6267_vm3, %v6247_v16, %v10832_v35  ;;  %v10883_v35 = vunpack.i.h.bf16 %v15053_v40  ;;  %v18708_v16 = vld [vmem:[#allocation24_spill] sm:$0xff] }
 0xd3d   : > { %v10989_v7 = vpack.i.bf16 %v5839_v21, %v5836_v19  ;;  %10995 = vrot.lane.b32.xlu1 %v10994_v57, %s11866_s28  ;;  %v6250_v19 = vsel %vm1301_vm1, %v18698_v6, %v10828_v18 }
 0xd3e   : > { %v6283_v5 = vsel %vm6267_vm3, %v6250_v19, %v10838_v4 }
 0xd3f   : > { %10990 = vrot.lane.b32.xlu0 %v10989_v7, %s11866_s28 }
 0xd51   : > { %v10891_v31 = vpop.permute.xlu1 %10890 }
 0xd52   : > { %v10893_v61 = vunpack.i.h.bf16 %v10891_v31  ;;  %v10892_v29 = vunpack.i.l.bf16 %v10891_v31 }
 0xd53   : > { %v10896_v46 = vpop.permute.xlu0 %10895 }
 0xd54   : > { %v10898_v45 = vunpack.i.h.bf16 %v10896_v46  ;;  %v10897_v26 = vunpack.i.l.bf16 %v10896_v46  ;;  %v6312_v60 = vsel %vm6300_vm4, %v6279_v25, %v10893_v61  ;;  %v6311_v56 = vsel %vm6300_vm4, %v6278_v42, %v10892_v29 }
 0xd55   : > { %v15073_v52 = vpop.permute.xlu1 %10905  ;;  %v6338_v50 = vpack.c.bf16 %v6312_v60, %v6311_v56  ;;  %v10868_v29 = vunpack.i.h.bf16 %v15001_v59  ;;  %v10867_v42 = vunpack.i.l.bf16 %v15001_v59  ;;  %v10863_v25 = vunpack.i.h.bf16 %v15009_v15 }
 0xd56   : > { %v6309_v12 = vsel %vm6300_vm4, %v6276_v10, %v10897_v26  ;;  %v6310_v24 = vsel %vm6300_vm4, %v6277_v47, %v10898_v45  ;;  %v10862_v46 = vunpack.i.l.bf16 %v15009_v15  ;;  %v6253_v45 = vsel %vm1301_vm1, %v18703_v63, %v10847_v28  ;;  %v18704_v26 = vld [vmem:[#allocation13_spill] sm:$0xff]  ;;  %v18705_v10 = vld [vmem:[#allocation12_spill] sm:$0xff] }
 0xd57   : > { %v15081_v36 = vpop.permute.xlu0 %10900  ;;  %v6337_v13 = vpack.c.bf16 %v6310_v24, %v6309_v12  ;;  %v6252_v59 = vsel %vm1301_vm1, %v18704_v26, %v10843_v3  ;;  %v6251_v47 = vsel %vm1301_vm1, %v18705_v10, %v10842_v54  ;;  %v6287_v15 = vsel %vm6267_vm3, %v6254_v49, %v10868_v29  ;;  %v18710_v10 = vld [vmem:[#allocation34_spill] sm:$0xff] }
 0xd58   : > { %v6286_v56 = vsel %vm6267_vm3, %v6253_v45, %v10867_v42  ;;  %v6284_v12 = vsel %vm6267_vm3, %v6251_v47, %v10862_v46  ;;  %v6285_v24 = vsel %vm6267_vm3, %v6252_v59, %v10863_v25  ;;  %v10908_v8 = vunpack.i.h.bf16 %v15073_v52 }
 0xd59   : > { %v10911_v51 = vpop.permute.xlu1 %10910  ;;  %10561 = vmatprep.mubr.msk.bf16.mxu1 %vm538_vm0, %v6337_v13  ;;  %v10907_v2 = vunpack.i.l.bf16 %v15073_v52  ;;  %v6256_v52 = vsel %vm1301_vm1, %v18708_v16, %v10883_v35  ;;  %v18714_v16 = vld [vmem:[#allocation38_spill] sm:$0xff] }
 0xd5a   : > { %v10913_v20 = vunpack.i.h.bf16 %v10911_v51  ;;  %v10912_v34 = vunpack.i.l.bf16 %v10911_v51  ;;  %10562 = vmatmul.mubr.msk.bf16.gmra.mxu1 %vm538_vm0, %v6338_v50  ;;  %v10882_v51 = vunpack.i.l.bf16 %v15053_v40  ;;  %v6258_v40 = vsel %vm1301_vm1, %v18706_v17, %v10888_v33 }
 0xd5b   : > { %v10916_v57 = vpop.permute.xlu0 %10915 }
 0xd5c   : > { %v10918_v21 = vunpack.i.h.bf16 %v10916_v57  ;;  %v10917_v7 = vunpack.i.l.bf16 %v10916_v57  ;;  %v6316_v55 = vsel %vm6300_vm4, %v6283_v5, %v10913_v20  ;;  %v6315_v62 = vsel %vm6300_vm4, %v6282_v48, %v10912_v34 }
 0xd5d   : > { %v15103_v41 = vpop.permute.xlu1 %10925  ;;  %v6340_v61 = vpack.c.bf16 %v6316_v55, %v6315_v62  ;;  %v10903_v34 = vunpack.i.h.bf16 %v15081_v36  ;;  %v10902_v48 = vunpack.i.l.bf16 %v15081_v36 }
 0xd5e   : > { %v6313_v11 = vsel %vm6300_vm4, %v6280_v58, %v10917_v7  ;;  %v6314_v23 = vsel %vm6300_vm4, %v6281_v22, %v10918_v21  ;;  %v18709_v21 = vld [vmem:[#allocation19_spill] sm:$0xff]  ;;  %v6290_v58 = vsel %vm6267_vm3, %v6257_v39, %v10907_v2  ;;  %v6291_v22 = vsel %vm6267_vm3, %v6258_v40, %v10908_v8 }
 0xd5f   : > { %v15108_v31 = vpop.permute.xlu0 %10920  ;;  %v6339_v9 = vpack.c.bf16 %v6314_v23, %v6313_v11  ;;  %v6255_v7 = vsel %vm1301_vm1, %v18709_v21, %v10882_v51  ;;  %v6289_v23 = vsel %vm6267_vm3, %v6256_v52, %v10903_v34  ;;  %v10928_v42 = vunpack.i.h.bf16 %v15103_v41  ;;  %v18715_v21 = vld [vmem:[#allocation36_spill] sm:$0xff] }
 0xd60   : > { %v6288_v11 = vsel %vm6267_vm3, %v6255_v7, %v10902_v48  ;;  %v10927_v25 = vunpack.i.l.bf16 %v15103_v41  ;;  %v10923_v46 = vunpack.i.h.bf16 %v15108_v31 }
 0xd61   : > { %10565 = vmatprep.mubr.msk.bf16.mxu1 %vm538_vm0, %v6339_v9  ;;  %v10931_v30 = vpop.permute.xlu1 %10930  ;;  %v6262_v47 = vsel %vm1301_vm1, %v18710_v10, %v10928_v42 }
 0xd62   : > { %10566 = vmatmul.mubr.msk.bf16.gmra.mxu1 %vm538_vm0, %v6340_v61  ;;  %v10933_v14 = vunpack.i.h.bf16 %v10931_v30  ;;  %v10932_v38 = vunpack.i.l.bf16 %v10931_v30  ;;  %v10922_v30 = vunpack.i.l.bf16 %v15108_v31 }
 0xd63   : > { %v10936_v60 = vpop.permute.xlu0 %10935 }
 0xd64   : > { %v10938_v18 = vunpack.i.h.bf16 %v10936_v60  ;;  %v10937_v27 = vunpack.i.l.bf16 %v10936_v60  ;;  %v6320_v4 = vsel %vm6300_vm4, %v6287_v15, %v10933_v14  ;;  %v6319_v37 = vsel %vm6300_vm4, %v6286_v56, %v10932_v38  ;;  %v18711_v60 = vld [vmem:[#allocation32_spill] sm:$0xff]  ;;  %v18712_v56 = vld [vmem:[#allocation35_spill] sm:$0xff] }
 0xd65   : > { %v10946_v13 = vpop.permute.xlu1 %10945  ;;  %v6342_v20 = vpack.c.bf16 %v6320_v4, %v6319_v37  ;;  %v6261_v15 = vsel %vm1301_vm1, %v18711_v60, %v10927_v25  ;;  %v6260_v41 = vsel %vm1301_vm1, %v18712_v56, %v10923_v46 }
 0xd66   : > { %v6317_v43 = vsel %vm6300_vm4, %v6284_v12, %v10937_v27  ;;  %v6318_v50 = vsel %vm6300_vm4, %v6285_v24, %v10938_v18  ;;  %v10948_v38 = vunpack.i.h.bf16 %v10946_v13  ;;  %v10947_v32 = vunpack.i.l.bf16 %v10946_v13  ;;  %v18713_v18 = vld [vmem:[#allocation33_spill] sm:$0xff] }
 0xd67   : > { %v10941_v6 = vpop.permute.xlu0 %10940  ;;  %v6341_v19 = vpack.c.bf16 %v6318_v50, %v6317_v43  ;;  %v6259_v31 = vsel %vm1301_vm1, %v18713_v18, %v10922_v30  ;;  %v15206_v30 = vld [vmem:[%s18237_s5] ss:$0 sm:$0xff]  ;;  %v11785_v18 = vld [vmem:[%s11967_s24 + $0x18] sm:$0xff] }
 0xd68   : > { %v10943_v49 = vunpack.i.h.bf16 %v10941_v6  ;;  %v10942_v63 = vunpack.i.l.bf16 %v10941_v6  ;;  %v6295_v12 = vsel %vm6267_vm3, %v6262_v47, %v10948_v38  ;;  %v6294_v24 = vsel %vm6267_vm3, %v6261_v15, %v10947_v32 }
 0xd69   : > { %v10951_v5 = vpop.permute.xlu1 %10950  ;;  %10569 = vmatprep.mubr.msk.bf16.mxu1 %vm538_vm0, %v6341_v19 }
 0xd6a   : > { %v10953_v57 = vunpack.i.h.bf16 %v10951_v5  ;;  %v10952_v1 = vunpack.i.l.bf16 %v10951_v5  ;;  %10570 = vmatmul.mubr.msk.bf16.gmra.mxu1 %vm538_vm0, %v6342_v20  ;;  %v6292_v13 = vsel %vm6267_vm3, %v6259_v31, %v10942_v63  ;;  %v6293_v33 = vsel %vm6267_vm3, %v6260_v41, %v10943_v49  ;;  %v11783_v49 = vld [vmem:[%s11967_s24 + $0x10] sm:$0xff] }
 0xd6b   : > { %v10956_v36 = vpop.permute.xlu0 %10955 }
 0xd6c   : > { %v10958_v55 = vunpack.i.h.bf16 %v10956_v36  ;;  %v10957_v62 = vunpack.i.l.bf16 %v10956_v36  ;;  %v6324_v44 = vsel %vm6300_vm4, %v6291_v22, %v10953_v57  ;;  %v6323_v9 = vsel %vm6300_vm4, %v6290_v58, %v10952_v1  ;;  %v18716_v36 = vld [vmem:[#allocation39_spill] sm:$0xff]  ;;  %v18717_v22 = vld [vmem:[#allocation37_spill] sm:$0xff] }
 0xd6d   : > { %v6344_v61 = vpack.c.bf16 %v6324_v44, %v6323_v9  ;;  %v10966_v29 = vpop.permute.xlu1 %10965 }
 0xd6e   : > { %v6321_v28 = vsel %vm6300_vm4, %v6288_v11, %v10957_v62  ;;  %v6322_v3 = vsel %vm6300_vm4, %v6289_v23, %v10958_v55  ;;  %v10968_v35 = vunpack.i.h.bf16 %v10966_v29  ;;  %v10967_v19 = vunpack.i.l.bf16 %v10966_v29 }
 0xd6f   : > { %v6343_v54 = vpack.c.bf16 %v6322_v3, %v6321_v28  ;;  %v10961_v14 = vpop.permute.xlu0 %10960 }
 0xd70   : > { %v10963_v8 = vunpack.i.h.bf16 %v10961_v14  ;;  %v10962_v2 = vunpack.i.l.bf16 %v10961_v14  ;;  %v6266_v52 = vsel %vm1301_vm1, %v18714_v16, %v10968_v35  ;;  %v6265_v7 = vsel %vm1301_vm1, %v18715_v21, %v10967_v19  ;;  %v11788_v19 = vld [vmem:[%s11967_s24 + $0x38] sm:$0xff] }
 0xd71   : > { %10573 = vmatprep.mubr.msk.bf16.mxu1 %vm538_vm0, %v6343_v54 }
 0xd72   : > { %10574 = vmatmul.mubr.msk.bf16.gmra.mxu1 %vm538_vm0, %v6344_v61  ;;  %v6264_v58 = vsel %vm1301_vm1, %v18716_v36, %v10963_v8  ;;  %v6263_v55 = vsel %vm1301_vm1, %v18717_v22, %v10962_v2 }
 0xda7   : > { %v10971_v45 = vpop.permute.xlu1 %10970 }
 0xda8   : > { %v10973_v26 = vunpack.i.h.bf16 %v10971_v45  ;;  %v10972_v59 = vunpack.i.l.bf16 %v10971_v45 }
 0xda9   : > { %v10976_v27 = vpop.permute.xlu0 %10975 }
 0xdaa   : > { %v10978_v4 = vunpack.i.h.bf16 %v10976_v27  ;;  %v10977_v37 = vunpack.i.l.bf16 %v10976_v27  ;;  %v6328_v43 = vsel %vm6300_vm4, %v6295_v12, %v10973_v26  ;;  %v6327_v50 = vsel %vm6300_vm4, %v6294_v24, %v10972_v59  ;;  %v11784_v59 = vld [vmem:[%s11967_s24] sm:$0xff]  ;;  %v11786_v27 = vld [vmem:[%s11967_s24 + $0x8] sm:$0xff] }
 0xdab   : > { %v10986_v0 = vpop.permute.xlu1 %10985  ;;  %v6346_v48 = vpack.c.bf16 %v6328_v43, %v6327_v50  ;;  %v11787_v50 = vld [vmem:[%s11967_s24 + $0x20] sm:$0xff] }
 0xdac   : > { %v6325_v51 = vsel %vm6300_vm4, %v6292_v13, %v10977_v37  ;;  %v6326_v6 = vsel %vm6300_vm4, %v6293_v33, %v10978_v4  ;;  %v10988_v5 = vunpack.i.h.bf16 %v10986_v0  ;;  %v10987_v57 = vunpack.i.l.bf16 %v10986_v0 }
 0xdad   : > { %v10981_v20 = vpop.permute.xlu0 %10980  ;;  %v6345_v34 = vpack.c.bf16 %v6326_v6, %v6325_v51 }
 0xdae   : > { %v10983_v1 = vunpack.i.h.bf16 %v10981_v20  ;;  %v10982_v17 = vunpack.i.l.bf16 %v10981_v20  ;;  %v6299_v11 = vsel %vm6267_vm3, %v6266_v52, %v10988_v5  ;;  %v6298_v23 = vsel %vm6267_vm3, %v6265_v7, %v10987_v57  ;;  %v11789_v20 = vld [vmem:[%s11967_s24 + $0x30] sm:$0xff]  ;;  %v11791_v7 = vld [vmem:[%s11967_s24 + $0x40] sm:$0xff] }
 0xdaf   : > { %v10996_v40 = vpop.permute.xlu1 %10995  ;;  %10577 = vmatprep.mubr.msk.bf16.mxu1 %vm538_vm0, %v6345_v34 }
 0xdb0   : > { %v10998_v53 = vunpack.i.h.bf16 %v10996_v40  ;;  %v10997_v39 = vunpack.i.l.bf16 %v10996_v40  ;;  %10578 = vmatmul.mubr.msk.bf16.gmra.mxu1 %vm538_vm0, %v6346_v48  ;;  %v6296_v28 = vsel %vm6267_vm3, %v6263_v55, %v10982_v17  ;;  %v6297_v3 = vsel %vm6267_vm3, %v6264_v58, %v10983_v1  ;;  %v11790_v48 = vld [vmem:[%s11967_s24 + $0x28] sm:$0xff]  ;;  %v11792_v55 = vld [vmem:[%s11967_s24 + $0x50] sm:$0xff] }
 0xdb1   : > { %v10991_v62 = vpop.permute.xlu0 %10990 }
 0xdb2   : > { %v10993_v44 = vunpack.i.h.bf16 %v10991_v62  ;;  %v10992_v9 = vunpack.i.l.bf16 %v10991_v62  ;;  %v6332_v54 = vsel %vm6300_vm4, %v6299_v11, %v10998_v53  ;;  %v6331_v61 = vsel %vm6300_vm4, %v6298_v23, %v10997_v39  ;;  %v11793_v11 = vld [vmem:[%s11967_s24 + $0x58] sm:$0xff] }
 0xdb3   : > { %v6348_v46 = vpack.c.bf16 %v6332_v54, %v6331_v61 }
 0xdb4   : > { %v6329_v29 = vsel %vm6300_vm4, %v6296_v28, %v10992_v9  ;;  %v6330_v42 = vsel %vm6300_vm4, %v6297_v3, %v10993_v44  ;;  %v11794_v3 = vld [vmem:[%s11967_s24 + $0x48] sm:$0xff] }
 0xdb5   : > { %v6347_v25 = vpack.c.bf16 %v6330_v42, %v6329_v29 }
 0xdb7   : > { %10581 = vmatprep.mubr.msk.bf16.mxu1 %vm538_vm0, %v6347_v25 }
 0xdb8   : > { %10582 = vmatmul.mubr.msk.bf16.gmra.mxu1 %vm538_vm0, %v6348_v46 }
 0xde6   : > { %v10555_v14 = vpop.f32.mrf.mxu1 }
 0xde7   : > { %v6463_v38 = vadd.f32 %v10555_v14, %v15206_v30 }
 0xde8   : > { %v6454_v32 = vpop.f32.mrf.mxu1 }
 0xde9   : > { %v15210_v63 = vadd.f32 %v11783_v49, %v6463_v38  ;;  %v6455_v45 = vadd.f32 %v15206_v30, %v6454_v32  ;;  %v11795_v38 = vld [vmem:[%s11967_s24 + $0x60] sm:$0xff] }
 0xdea   : > { %v10556_v26 = vpop.f32.mrf.mxu1 }
 0xdeb   : > { %18718 = vst [vmem:[#allocation9_spill] sm:$0xff] %v15210_v63  ;;  %v15214_v10 = vadd.f32 %v11784_v59, %v6455_v45  ;;  %v6466_v47 = vadd.f32 %v10556_v26, %v15206_v30  ;;  %v6621_v60 = vsel %vm538_vm0, %v15210_v63, 0.0  ;;  %v11796_v59 = vld [vmem:[%s11967_s24 + $0x70] sm:$0xff] }
 0xdec   : > { %6622 = vadd.xlane.f32.xlu0 %v6621_v60  ;;  %v6457_v15 = vpop.f32.mrf.mxu1  ;;  %v11797_v60 = vld [vmem:[%s11967_s24 + $0x78] sm:$0xff] }
 0xded   : > { %18719 = vst [vmem:[#allocation5_spill] sm:$0xff] %v15214_v10  ;;  %v6458_v56 = vadd.f32 %v15206_v30, %v6457_v15  ;;  %v15221_v31 = vadd.f32 %v11785_v18, %v6466_v47  ;;  %v6615_v24 = vsel %vm538_vm0, %v15214_v10, 0.0  ;;  %v11798_v18 = vld [vmem:[%s11967_s24 + $0x68] sm:$0xff] }
 0xdee   : > { %v10559_v41 = vpop.f32.mrf.mxu1 }
 0xdef   : > { %18720 = vst [vmem:[#allocation44_spill] sm:$0xff] %v15221_v31  ;;  %v15224_v12 = vadd.f32 %v11786_v27, %v6458_v56  ;;  %v6479_v43 = vadd.f32 %v10559_v41, %v15206_v30  ;;  %v6624_v51 = vsel %vm538_vm0, %v15221_v31, 0.0 }
 0xdf0   : > { %v6470_v4 = vpop.f32.mrf.mxu1  ;;  %6616 = vadd.xlane.f32.xlu0 %v6615_v24 }
 0xdf1   : > { %18721 = vst [vmem:[#allocation41_spill] sm:$0xff] %v15224_v12  ;;  %v6471_v37 = vadd.f32 %v15206_v30, %v6470_v4  ;;  %v6618_v13 = vsel %vm538_vm0, %v15224_v12, 0.0  ;;  %v15243_v34 = vadd.f32 %v11789_v20, %v6479_v43  ;;  %v11800_v20 = vld [vmem:[%s11967_s24 + $0x90] sm:$0xff] }
 0xdf2   : > { %v10560_v33 = vpop.f32.mrf.mxu1  ;;  %6619 = vadd.xlane.f32.xlu1 %v6618_v13 }
 0xdf3   : > { %v15233_v0 = vadd.f32 %v11787_v50, %v6471_v37  ;;  %v6482_v35 = vadd.f32 %v10560_v33, %v15206_v30  ;;  %18724 = vst [vmem:[#allocation51_spill] sm:$0xff] %v15243_v34  ;;  %v6633_v40 = vsel %vm538_vm0, %v15243_v34, 0.0 }
 0xdf4   : > { %v6473_v6 = vpop.f32.mrf.mxu1  ;;  %6625 = vadd.xlane.f32.xlu0 %v6624_v51  ;;  %v11799_v51 = vld [vmem:[%s11967_s24 + $0x80] sm:$0xff] }
 0xdf5   : > { %18722 = vst [vmem:[#allocation47_spill] sm:$0xff] %v15233_v0  ;;  %v15239_v8 = vadd.f32 %v11788_v19, %v6482_v35  ;;  %v6474_v2 = vadd.f32 %v15206_v30, %v6473_v6  ;;  %v6627_v1 = vsel %vm538_vm0, %v15233_v0, 0.0 }
 0xdf7   : > { %18723 = vst [vmem:[#allocation46_spill] sm:$0xff] %v15239_v8  ;;  %v15246_v5 = vadd.f32 %v11790_v48, %v6474_v2  ;;  %v6636_v57 = vsel %vm538_vm0, %v15239_v8, 0.0 }
 0xdf8   : > { %6637 = vadd.xlane.f32.xlu1 %v6636_v57  ;;  %6628 = vadd.xlane.f32.xlu0 %v6627_v1  ;;  %v11801_v57 = vld [vmem:[%s11967_s24 + $0x98] sm:$0xff] }
 0xdf9   : > { %18725 = vst [vmem:[#allocation49_spill] sm:$0xff] %v15246_v5  ;;  %v6630_v17 = vsel %vm538_vm0, %v15246_v5, 0.0 }
 0xdfc   : > { %6631 = vadd.xlane.f32.xlu1 %v6630_v17  ;;  %6634 = vadd.xlane.f32.xlu0 %v6633_v40 }
 0xe1a   : > { %v10563_v53 = vpop.f32.mrf.mxu1 }
 0xe1b   : > { %v6495_v16 = vadd.f32 %v10563_v53, %v15206_v30 }
 0xe1c   : > { %v6486_v39 = vpop.f32.mrf.mxu1 }
 0xe1d   : > { %v6487_v52 = vadd.f32 %v15206_v30, %v6486_v39  ;;  %v15263_v62 = vadd.f32 %v11792_v55, %v6495_v16  ;;  %v11802_v39 = vld [vmem:[%s11967_s24 + $0x88] sm:$0xff] }
 0xe1e   : > { %v10564_v21 = vpop.f32.mrf.mxu1 }
 0xe1f   : > { %v15259_v36 = vadd.f32 %v11791_v7, %v6487_v52  ;;  %v6498_v58 = vadd.f32 %v10564_v21, %v15206_v30  ;;  %18727 = vst [vmem:[#allocation54_spill] sm:$0xff] %v15263_v62  ;;  %v6645_v46 = vsel %vm538_vm0, %v15263_v62, 0.0 }
 0xe20   : > { %v6489_v22 = vpop.f32.mrf.mxu1 }
 0xe21   : > { %18726 = vst [vmem:[#allocation56_spill] sm:$0xff] %v15259_v36  ;;  %v15266_v23 = vadd.f32 %v11793_v11, %v6498_v58  ;;  %v6490_v44 = vadd.f32 %v15206_v30, %v6489_v22  ;;  %v6639_v9 = vsel %vm538_vm0, %v15259_v36, 0.0  ;;  %v11803_v11 = vld [vmem:[%s11967_s24 + $0xa0] sm:$0xff] }
 0xe22   : > { %v10567_v28 = vpop.f32.mrf.mxu1  ;;  %6640 = vadd.xlane.f32.xlu0 %v6639_v9 }
 0xe23   : > { %18728 = vst [vmem:[#allocation4_spill] sm:$0xff] %v15266_v23  ;;  %v15272_v54 = vadd.f32 %v11794_v3, %v6490_v44  ;;  %v6648_v61 = vsel %vm538_vm0, %v15266_v23, 0.0  ;;  %v6511_v42 = vadd.f32 %v10567_v28, %v15206_v30 }
 0xe24   : > { %v6502_v29 = vpop.f32.mrf.mxu1  ;;  %6649 = vadd.xlane.f32.xlu1 %v6648_v61  ;;  %v11804_v61 = vld [vmem:[%s11967_s24 + $0xb0] sm:$0xff] }
 0xe25   : > { %18729 = vst [vmem:[#allocation40_spill] sm:$0xff] %v15272_v54  ;;  %v6503_v25 = vadd.f32 %v15206_v30, %v6502_v29  ;;  %v6642_v45 = vsel %vm538_vm0, %v15272_v54, 0.0  ;;  %v15287_v47 = vadd.f32 %v11796_v59, %v6511_v42  ;;  %v11805_v42 = vld [vmem:[%s11967_s24 + $0xb8] sm:$0xff] }
 0xe26   : > { %v10568_v14 = vpop.f32.mrf.mxu1  ;;  %6646 = vadd.xlane.f32.xlu0 %v6645_v46 }
 0xe27   : > { %v15281_v32 = vadd.f32 %v11795_v38, %v6503_v25  ;;  %v6514_v49 = vadd.f32 %v10568_v14, %v15206_v30  ;;  %18731 = vst [vmem:[#allocation52_spill] sm:$0xff] %v15287_v47  ;;  %v6657_v13 = vsel %vm538_vm0, %v15287_v47, 0.0  ;;  %v11806_v38 = vld [vmem:[%s11967_s24 + $0xa8] sm:$0xff] }
 0xe28   : > { %v6505_v26 = vpop.f32.mrf.mxu1  ;;  %6643 = vadd.xlane.f32.xlu1 %v6642_v45 }
 0xe29   : > { %18730 = vst [vmem:[#allocation43_spill] sm:$0xff] %v15281_v32  ;;  %v15290_v15 = vadd.f32 %v11797_v60, %v6514_v49  ;;  %v6506_v56 = vadd.f32 %v15206_v30, %v6505_v26  ;;  %v6651_v41 = vsel %vm538_vm0, %v15281_v32, 0.0 }
 0xe2a   : > { %6652 = vadd.xlane.f32.xlu0 %v6651_v41  ;;  %v10571_v24 = vpop.f32.mrf.mxu1 }
 0xe2b   : > { %18732 = vst [vmem:[#allocation45_spill] sm:$0xff] %v15290_v15  ;;  %v15296_v27 = vadd.f32 %v11798_v18, %v6506_v56  ;;  %v6660_v4 = vsel %vm538_vm0, %v15290_v15, 0.0  ;;  %v6527_v33 = vadd.f32 %v10571_v24, %v15206_v30 }
 0xe2c   : > { %6661 = vadd.xlane.f32.xlu1 %v6660_v4  ;;  %v6518_v37 = vpop.f32.mrf.mxu1  ;;  %v11807_v4 = vld [vmem:[%s11967_s24 + $0xc0] sm:$0xff] }
 0xe2d   : > { %18733 = vst [vmem:[#allocation48_spill] sm:$0xff] %v15296_v27  ;;  %v6519_v43 = vadd.f32 %v15206_v30, %v6518_v37  ;;  %v6654_v35 = vsel %vm538_vm0, %v15296_v27, 0.0  ;;  %v15311_v48 = vadd.f32 %v11800_v20, %v6527_v33 }
 0xe2e   : > { %6658 = vadd.xlane.f32.xlu0 %v6657_v13  ;;  %v10572_v50 = vpop.f32.mrf.mxu1 }
 0xe2f   : > { %v15307_v6 = vadd.f32 %v11799_v51, %v6519_v43  ;;  %v6530_v19 = vadd.f32 %v10572_v50, %v15206_v30  ;;  %18735 = vst [vmem:[#allocation6_spill] sm:$0xff] %v15311_v48  ;;  %v6669_v22 = vsel %vm538_vm0, %v15311_v48, 0.0  ;;  %v11808_v50 = vld [vmem:[%s11967_s24 + $0xd0] sm:$0xff]  ;;  %v11809_v51 = vld [vmem:[%s11967_s24 + $0xd8] sm:$0xff] }
 0xe30   : > { %6655 = vadd.xlane.f32.xlu1 %v6654_v35  ;;  %v6521_v2 = vpop.f32.mrf.mxu1 }
 0xe31   : > { %18734 = vst [vmem:[#allocation42_spill] sm:$0xff] %v15307_v6  ;;  %v15314_v1 = vadd.f32 %v11801_v57, %v6530_v19  ;;  %v6522_v17 = vadd.f32 %v15206_v30, %v6521_v2  ;;  %v6663_v40 = vsel %vm538_vm0, %v15307_v6, 0.0 }
 0xe32   : > { %v10575_v53 = vpop.f32.mrf.mxu1  ;;  %6664 = vadd.xlane.f32.xlu0 %v6663_v40 }
 0xe33   : > { %18736 = vst [vmem:[#allocation53_spill] sm:$0xff] %v15314_v1  ;;  %v15320_v16 = vadd.f32 %v11802_v39, %v6522_v17  ;;  %v6672_v52 = vsel %vm538_vm0, %v15314_v1, 0.0  ;;  %v6543_v7 = vadd.f32 %v10575_v53, %v15206_v30  ;;  %v11810_v17 = vld [vmem:[%s11967_s24 + $0xc8] sm:$0xff] }
 0xe34   : > { %v6534_v21 = vpop.f32.mrf.mxu1  ;;  %6673 = vadd.xlane.f32.xlu1 %v6672_v52 }
 0xe35   : > { %18737 = vst [vmem:[#allocation50_spill] sm:$0xff] %v15320_v16  ;;  %v6535_v58 = vadd.f32 %v15206_v30, %v6534_v21  ;;  %v6666_v28 = vsel %vm538_vm0, %v15320_v16, 0.0  ;;  %v15335_v29 = vadd.f32 %v11804_v61, %v6543_v7 }
 0xe36   : > { %v10576_v55 = vpop.f32.mrf.mxu1  ;;  %6670 = vadd.xlane.f32.xlu0 %v6669_v22 }
 0xe37   : > { %v15329_v44 = vadd.f32 %v11803_v11, %v6535_v58  ;;  %v6546_v9 = vadd.f32 %v10576_v55, %v15206_v30  ;;  %18739 = vst [vmem:[#allocation3_spill] sm:$0xff] %v15335_v29  ;;  %v6681_v26 = vsel %vm538_vm0, %v15335_v29, 0.0  ;;  %v11811_v11 = vld [vmem:[%s11967_s24 + $0xe0] sm:$0xff] }
 0xe38   : > { %v6537_v3 = vpop.f32.mrf.mxu1  ;;  %6667 = vadd.xlane.f32.xlu1 %v6666_v28 }
 0xe39   : > { %18738 = vst [vmem:[#allocation72_spill] sm:$0xff] %v15329_v44  ;;  %v15338_v25 = vadd.f32 %v11805_v42, %v6546_v9  ;;  %v6538_v46 = vadd.f32 %v15206_v30, %v6537_v3  ;;  %v6675_v14 = vsel %vm538_vm0, %v15329_v44, 0.0 }
 0xe3a   : > { %6676 = vadd.xlane.f32.xlu0 %v6675_v14  ;;  %v11812_v14 = vld [vmem:[%s11967_s24 + $0xf0] sm:$0xff] }
 0xe3b   : > { %18740 = vst [vmem:[#allocation55_spill] sm:$0xff] %v15338_v25  ;;  %v15344_v49 = vadd.f32 %v11806_v38, %v6538_v46  ;;  %v6684_v45 = vsel %vm538_vm0, %v15338_v25, 0.0 }
 0xe3c   : > { %6685 = vadd.xlane.f32.xlu1 %v6684_v45 }
 0xe3d   : > { %18741 = vst [vmem:[#allocation57_spill] sm:$0xff] %v15344_v49  ;;  %v6678_v59 = vsel %vm538_vm0, %v15344_v49, 0.0 }
 0xe3e   : > { %6682 = vadd.xlane.f32.xlu0 %v6681_v26 }
 0xe40   : > { %6679 = vadd.xlane.f32.xlu1 %v6678_v59 }
 0xe70   : > { %v10579_v60 = vpop.f32.mrf.mxu1 }
 0xe71   : > { %v6559_v41 = vadd.f32 %v10579_v60, %v15206_v30  ;;  %v11813_v60 = vld [vmem:[%s11967_s24 + $0xf8] sm:$0xff] }
 0xe72   : > { %v6550_v56 = vpop.f32.mrf.mxu1 }
 0xe73   : > { %v6551_v18 = vadd.f32 %v15206_v30, %v6550_v56  ;;  %v15359_v35 = vadd.f32 %v11808_v50, %v6559_v41 }
 0xe74   : > { %v10580_v24 = vpop.f32.mrf.mxu1 }
 0xe75   : > { %v15355_v37 = vadd.f32 %v11807_v4, %v6551_v18  ;;  %v6562_v13 = vadd.f32 %v10580_v24, %v15206_v30  ;;  %v6623_v33 = vpop.xlane.xlu0 %6622  ;;  %18743 = vst [vmem:[#allocation2_spill] sm:$0xff] %v15359_v35  ;;  %v6693_v22 = vsel %vm538_vm0, %v15359_v35, 0.0 }
 0xe76   : > { %v6553_v43 = vpop.f32.mrf.mxu1  ;;  %v6713_v46 = vmul.f32 0.03125, %v6623_v33 }
 0xe77   : > { %18742 = vst [vmem:[#allocation71_spill] sm:$0xff] %v15355_v37  ;;  %v15362_v19 = vadd.f32 %v11809_v51, %v6562_v13  ;;  %v6554_v2 = vadd.f32 %v15206_v30, %v6553_v43  ;;  %v6687_v20 = vsel %vm538_vm0, %v15355_v37, 0.0  ;;  %v11814_v13 = vld [vmem:[%s11967_s24 + $0xe8] sm:$0xff] }
 0xe78   : > { %v10583_v57 = vpop.f32.mrf.mxu1  ;;  %6688 = vadd.xlane.f32.xlu0 %v6687_v20 }
 0xe79   : > { %18744 = vst [vmem:[#allocation73_spill] sm:$0xff] %v15362_v19  ;;  %v15368_v40 = vadd.f32 %v11810_v17, %v6554_v2  ;;  %v6617_v53 = vpop.xlane.xlu0 %6616  ;;  %v6696_v39 = vsel %vm538_vm0, %v15362_v19, 0.0  ;;  %v6575_v52 = vadd.f32 %v10583_v57, %v15206_v30  ;;  %v15403_v2 = vsub.f32 %v15210_v63, %v6713_v46 }
 0xe7a   : > { %v6566_v21 = vpop.f32.mrf.mxu1  ;;  %6697 = vadd.xlane.f32.xlu1 %v6696_v39  ;;  %v6711_v7 = vmul.f32 0.03125, %v6617_v53 }
 0xe7b   : > { %18745 = vst [vmem:[#allocation70_spill] sm:$0xff] %v15368_v40  ;;  %v6567_v58 = vadd.f32 %v15206_v30, %v6566_v21  ;;  %v6620_v28 = vpop.xlane.xlu1 %6619  ;;  %v6690_v42 = vsel %vm538_vm0, %v15368_v40, 0.0  ;;  %v15383_v38 = vadd.f32 %v11812_v14, %v6575_v52 }
 0xe7c   : > { %v10584_v55 = vpop.f32.mrf.mxu1  ;;  %6694 = vadd.xlane.f32.xlu0 %v6693_v22  ;;  %v15386_v59 = vsub.f32 %v15214_v10, %v6711_v7  ;;  %v6712_v24 = vmul.f32 0.03125, %v6620_v28 }
 0xe7d   : > { %v15377_v9 = vadd.f32 %v11811_v11, %v6567_v58  ;;  %v6578_v3 = vadd.f32 %v10584_v55, %v15206_v30  ;;  %v6626_v61 = vpop.xlane.xlu0 %6625  ;;  %18747 = vst [vmem:[#allocation65_spill] sm:$0xff] %v15383_v38  ;;  %v6705_v20 = vsel %vm538_vm0, %v15383_v38, 0.0  ;;  %v6777_v11 = vmul.f32 %v15403_v2, %v15403_v2 }
 0xe7e   : > { %v6714_v45 = vmul.f32 0.03125, %v6626_v61  ;;  %v6569_v26 = vpop.f32.mrf.mxu1  ;;  %6691 = vadd.xlane.f32.xlu1 %v6690_v42  ;;  %v6775_v57 = vmul.f32 %v15386_v59, %v15386_v59  ;;  %v15410_v17 = vsub.f32 %v15224_v12, %v6712_v24 }
 0xe7f   : > { %18746 = vst [vmem:[#allocation59_spill] sm:$0xff] %v15377_v9  ;;  %v15389_v56 = vadd.f32 %v11813_v60, %v6578_v3  ;;  %v6570_v41 = vadd.f32 %v15206_v30, %v6569_v26  ;;  %v6699_v18 = vsel %vm538_vm0, %v15377_v9, 0.0  ;;  %v6813_v14 = vsel %vm538_vm0, %v6777_v11, 0.0 }
 0xe80   : > { %6700 = vadd.xlane.f32.xlu0 %v6699_v18  ;;  %v15395_v4 = vsub.f32 %v15221_v31, %v6714_v45  ;;  %v6807_v55 = vsel %vm538_vm0, %v6775_v57, 0.0  ;;  %v6776_v42 = vmul.f32 %v15410_v17, %v15410_v17 }
 0xe81   : > { %18748 = vst [vmem:[#allocation60_spill] sm:$0xff] %v15389_v56  ;;  %v15398_v33 = vadd.f32 %v11814_v13, %v6570_v41  ;;  %v6638_v43 = vpop.xlane.xlu1 %6637  ;;  %v6629_v50 = vpop.xlane.xlu0 %6628  ;;  %v6708_v51 = vsel %vm538_vm0, %v15389_v56, 0.0 }
 0xe82   : > { %6709 = vadd.xlane.f32.xlu1 %v6708_v51  ;;  %v6715_v30 = vmul.f32 0.03125, %v6629_v50  ;;  %v6718_v53 = vmul.f32 0.03125, %v6638_v43  ;;  %v6778_v21 = vmul.f32 %v15395_v4, %v15395_v4  ;;  %v6810_v60 = vsel %vm538_vm0, %v6776_v42, 0.0 }
 0xe83   : > { %18749 = vst [vmem:[#allocation58_spill] sm:$0xff] %v15398_v33  ;;  %v6702_v52 = vsel %vm538_vm0, %v15398_v33, 0.0 }
 0xe84   : > { %6706 = vadd.xlane.f32.xlu0 %v6705_v20  ;;  %v15417_v58 = vsub.f32 %v15233_v0, %v6715_v30  ;;  %v15423_v28 = vsub.f32 %v15239_v8, %v6718_v53  ;;  %v6816_v61 = vsel %vm538_vm0, %v6778_v21, 0.0  ;;  %v18338_v30 = vmov 2   ;;  %v11069_v20 = vld [vmem:[%s18240_s8 + $0x8] sm:$0xff]  }
 0xe85   : > { %v6635_v39 = vpop.xlane.xlu0 %6634  ;;  %v6632_v7 = vpop.xlane.xlu1 %6631  ;;  %10999 = vset.pattern.permute.xlu1 %v18338_v30  ;;  %v18336_v53 = vmov 0   ;;  %10585 = vmatprep.subr.bf16.mxu0 %v11069_v20 }
 0xe86   : > { %6703 = vadd.xlane.f32.xlu1 %v6702_v52  ;;  %v6717_v22 = vmul.f32 0.03125, %v6635_v39  ;;  %v6716_v3 = vmul.f32 0.03125, %v6632_v7  ;;  %v6779_v45 = vmul.f32 %v15417_v58, %v15417_v58  ;;  %v6782_v41 = vmul.f32 %v15423_v28, %v15423_v28  ;;  %11003 = vset.pattern.permute.xlu0 %v18336_v53 }
 0xe87   : > { %10586 = vmatpush3.bf16.msra.mxu0 %v11069_v20 }
 0xe88   : > { %6808 = vadd.xlane.f32.xlu0 %v6807_v55  ;;  %v15429_v46 = vsub.f32 %v15243_v34, %v6717_v22  ;;  %v15435_v26 = vsub.f32 %v15246_v5, %v6716_v3  ;;  %v6819_v18 = vsel %vm538_vm0, %v6779_v45, 0.0  ;;  %v6828_v13 = vsel %vm538_vm0, %v6782_v41, 0.0  ;;  %v11070_v22 = vld [vmem:[%s18240_s8] sm:$0xff]  }
 0xe89   : > { %10587 = vmatprep.subr.bf16.mxu0 %v11070_v22 }
 0xe8a   : > { %6817 = vadd.xlane.f32.xlu1 %v6816_v61  ;;  %v6781_v24 = vmul.f32 %v15429_v46, %v15429_v46  ;;  %v6780_v43 = vmul.f32 %v15435_v26, %v15435_v26 }
 0xe8b   : > { %10588 = vmatpush3.bf16.msra.mxu0 %v11070_v22 }
 0xe8c   : > { %6814 = vadd.xlane.f32.xlu0 %v6813_v14  ;;  %v6825_v50 = vsel %vm538_vm0, %v6781_v24, 0.0  ;;  %v6822_v51 = vsel %vm538_vm0, %v6780_v43, 0.0 }
 0xe8e   : > { %6811 = vadd.xlane.f32.xlu1 %v6810_v60 }
 0xe90   : > { %6820 = vadd.xlane.f32.xlu0 %v6819_v18 }
 0xe92   : > { %6829 = vadd.xlane.f32.xlu1 %v6828_v13 }
 0xe94   : > { %6826 = vadd.xlane.f32.xlu0 %v6825_v50 }
 0xe96   : > { %6823 = vadd.xlane.f32.xlu1 %v6822_v51 }
 0xeab   : > { %v6641_v57 = vpop.xlane.xlu0 %6640 }
 0xeac   : > { %v6719_v39 = vmul.f32 0.03125, %v6641_v57 }
 0xead   : > { %v6650_v52 = vpop.xlane.xlu1 %6649 }
 0xeae   : > { %v15454_v21 = vsub.f32 %v15259_v36, %v6719_v39  ;;  %v6722_v7 = vmul.f32 0.03125, %v6650_v52 }
 0xeaf   : > { %v6647_v55 = vpop.xlane.xlu0 %6646 }
 0xeb0   : > { %v15460_v11 = vsub.f32 %v15266_v23, %v6722_v7  ;;  %v6721_v3 = vmul.f32 0.03125, %v6647_v55  ;;  %v6783_v61 = vmul.f32 %v15454_v21, %v15454_v21 }
 0xeb1   : > { %v6644_v42 = vpop.xlane.xlu1 %6643 }
 0xeb2   : > { %v15465_v14 = vsub.f32 %v15263_v62, %v6721_v3  ;;  %v6720_v45 = vmul.f32 0.03125, %v6644_v42  ;;  %v6831_v60 = vsel %vm538_vm0, %v6783_v61, 0.0  ;;  %v6786_v41 = vmul.f32 %v15460_v11, %v15460_v11 }
 0xeb3   : > { %6832 = vadd.xlane.f32.xlu0 %v6831_v60  ;;  %v6653_v18 = vpop.xlane.xlu0 %6652 }
 0xeb4   : > { %v15471_v24 = vsub.f32 %v15272_v54, %v6720_v45  ;;  %v6723_v13 = vmul.f32 0.03125, %v6653_v18  ;;  %v6840_v43 = vsel %vm538_vm0, %v6786_v41, 0.0  ;;  %v6785_v50 = vmul.f32 %v15465_v14, %v15465_v14 }
 0xeb5   : > { %v6662_v51 = vpop.xlane.xlu1 %6661  ;;  %6841 = vadd.xlane.f32.xlu1 %v6840_v43 }
 0xeb6   : > { %v15477_v20 = vsub.f32 %v15281_v32, %v6723_v13  ;;  %v6726_v57 = vmul.f32 0.03125, %v6662_v51  ;;  %v6837_v39 = vsel %vm538_vm0, %v6785_v50, 0.0  ;;  %v6784_v52 = vmul.f32 %v15471_v24, %v15471_v24 }
 0xeb7   : > { %6838 = vadd.xlane.f32.xlu0 %v6837_v39  ;;  %v6659_v7 = vpop.xlane.xlu0 %6658 }
 0xeb8   : > { %v15483_v22 = vsub.f32 %v15290_v15, %v6726_v57  ;;  %v6725_v55 = vmul.f32 0.03125, %v6659_v7  ;;  %v6834_v3 = vsel %vm538_vm0, %v6784_v52, 0.0  ;;  %v6787_v61 = vmul.f32 %v15477_v20, %v15477_v20 }
 0xeb9   : > { %v6656_v42 = vpop.xlane.xlu1 %6655  ;;  %6835 = vadd.xlane.f32.xlu1 %v6834_v3 }
 0xeba   : > { %v15489_v45 = vsub.f32 %v15287_v47, %v6725_v55  ;;  %v6724_v60 = vmul.f32 0.03125, %v6656_v42  ;;  %v6843_v41 = vsel %vm538_vm0, %v6787_v61, 0.0  ;;  %v6790_v18 = vmul.f32 %v15483_v22, %v15483_v22 }
 0xebb   : > { %6844 = vadd.xlane.f32.xlu0 %v6843_v41  ;;  %v6665_v43 = vpop.xlane.xlu0 %6664 }
 0xebc   : > { %v15495_v13 = vsub.f32 %v15296_v27, %v6724_v60  ;;  %v6852_v50 = vsel %vm538_vm0, %v6790_v18, 0.0  ;;  %v6789_v51 = vmul.f32 %v15489_v45, %v15489_v45  ;;  %v6727_v57 = vmul.f32 0.03125, %v6665_v43 }
 0xebd   : > { %6853 = vadd.xlane.f32.xlu1 %v6852_v50  ;;  %v6674_v39 = vpop.xlane.xlu1 %6673 }
 0xebe   : > { %v6849_v52 = vsel %vm538_vm0, %v6789_v51, 0.0  ;;  %v6788_v7 = vmul.f32 %v15495_v13, %v15495_v13  ;;  %v15504_v55 = vsub.f32 %v15307_v6, %v6727_v57  ;;  %v6730_v3 = vmul.f32 0.03125, %v6674_v39 }
 0xebf   : > { %6850 = vadd.xlane.f32.xlu0 %v6849_v52  ;;  %v6671_v61 = vpop.xlane.xlu0 %6670 }
 0xec0   : > { %v6846_v42 = vsel %vm538_vm0, %v6788_v7, 0.0  ;;  %v15508_v60 = vsub.f32 %v15314_v1, %v6730_v3  ;;  %v6729_v41 = vmul.f32 0.03125, %v6671_v61  ;;  %v6791_v18 = vmul.f32 %v15504_v55, %v15504_v55 }
 0xec1   : > { %6847 = vadd.xlane.f32.xlu1 %v6846_v42  ;;  %v6668_v43 = vpop.xlane.xlu1 %6667 }
 0xec2   : > { %v15513_v50 = vsub.f32 %v15311_v48, %v6729_v41  ;;  %v6728_v51 = vmul.f32 0.03125, %v6668_v43  ;;  %v6855_v57 = vsel %vm538_vm0, %v6791_v18, 0.0  ;;  %v6794_v39 = vmul.f32 %v15508_v60, %v15508_v60 }
 0xec3   : > { %6856 = vadd.xlane.f32.xlu0 %v6855_v57  ;;  %v6677_v52 = vpop.xlane.xlu0 %6676 }
 0xec4   : > { %v15519_v7 = vsub.f32 %v15320_v16, %v6728_v51  ;;  %v6731_v3 = vmul.f32 0.03125, %v6677_v52  ;;  %v6864_v61 = vsel %vm538_vm0, %v6794_v39, 0.0  ;;  %v6793_v42 = vmul.f32 %v15513_v50, %v15513_v50 }
 0xec5   : > { %v6686_v53 = vpop.xlane.xlu1 %6685  ;;  %6865 = vadd.xlane.f32.xlu1 %v6864_v61 }
 0xec6   : > { %v15525_v41 = vsub.f32 %v15329_v44, %v6731_v3  ;;  %v6734_v18 = vmul.f32 0.03125, %v6686_v53  ;;  %v6861_v43 = vsel %vm538_vm0, %v6793_v42, 0.0  ;;  %v6792_v57 = vmul.f32 %v15519_v7, %v15519_v7 }
 0xec7   : > { %6862 = vadd.xlane.f32.xlu0 %v6861_v43  ;;  %v6683_v51 = vpop.xlane.xlu0 %6682 }
 0xec8   : > { %v15531_v52 = vsub.f32 %v15338_v25, %v6734_v18  ;;  %v6733_v39 = vmul.f32 0.03125, %v6683_v51  ;;  %v6858_v30 = vsel %vm538_vm0, %v6792_v57, 0.0  ;;  %v6795_v61 = vmul.f32 %v15525_v41, %v15525_v41 }
 0xec9   : > { %v6680_v16 = vpop.xlane.xlu1 %6679  ;;  %6859 = vadd.xlane.f32.xlu1 %v6858_v30 }
 0xeca   : > { %v15537_v53 = vsub.f32 %v15335_v29, %v6733_v39  ;;  %v6732_v3 = vmul.f32 0.03125, %v6680_v16  ;;  %v6867_v42 = vsel %vm538_vm0, %v6795_v61, 0.0  ;;  %v6798_v43 = vmul.f32 %v15531_v52, %v15531_v52 }
 0xecb   : > { %6868 = vadd.xlane.f32.xlu0 %v6867_v42 }
 0xecc   : > { %v15543_v18 = vsub.f32 %v15344_v49, %v6732_v3  ;;  %v6876_v57 = vsel %vm538_vm0, %v6798_v43, 0.0  ;;  %v6797_v51 = vmul.f32 %v15537_v53, %v15537_v53 }
 0xecd   : > { %6877 = vadd.xlane.f32.xlu1 %v6876_v57 }
 0xece   : > { %v6873_v30 = vsel %vm538_vm0, %v6797_v51, 0.0  ;;  %v6796_v16 = vmul.f32 %v15543_v18, %v15543_v18 }
 0xecf   : > { %6874 = vadd.xlane.f32.xlu0 %v6873_v30 }
 0xed0   : > { %v6870_v39 = vsel %vm538_vm0, %v6796_v16, 0.0 }
 0xed1   : > { %6871 = vadd.xlane.f32.xlu1 %v6870_v39 }
 0xf01   : > { %v6689_v61 = vpop.xlane.xlu0 %6688 }
 0xf02   : > { %v6735_v42 = vmul.f32 0.03125, %v6689_v61 }
 0xf03   : > { %v6698_v25 = vpop.xlane.xlu1 %6697 }
 0xf04   : > { %v15553_v3 = vsub.f32 %v15355_v37, %v6735_v42  ;;  %v6738_v43 = vmul.f32 0.03125, %v6698_v25 }
 0xf05   : > { %v6695_v49 = vpop.xlane.xlu0 %6694 }
 0xf06   : > { %v15556_v44 = vsub.f32 %v15362_v19, %v6738_v43  ;;  %v6737_v57 = vmul.f32 0.03125, %v6695_v49  ;;  %v6799_v51 = vmul.f32 %v15553_v3, %v15553_v3 }
 0xf07   : > { %v6692_v29 = vpop.xlane.xlu1 %6691 }
 0xf08   : > { %v15561_v30 = vsub.f32 %v15359_v35, %v6737_v57  ;;  %v6736_v16 = vmul.f32 0.03125, %v6692_v29  ;;  %v6879_v39 = vsel %vm538_vm0, %v6799_v51, 0.0  ;;  %v6802_v61 = vmul.f32 %v15556_v44, %v15556_v44 }
 0xf09   : > { %6880 = vadd.xlane.f32.xlu0 %v6879_v39  ;;  %v6701_v25 = vpop.xlane.xlu0 %6700 }
 0xf0a   : > { %v15567_v42 = vsub.f32 %v15368_v40, %v6736_v16  ;;  %v6739_v43 = vmul.f32 0.03125, %v6701_v25  ;;  %v6888_v49 = vsel %vm538_vm0, %v6802_v61, 0.0  ;;  %v6801_v19 = vmul.f32 %v15561_v30, %v15561_v30 }
 0xf0b   : > { %v15572_v37 = vpop.xlane.xlu1 %6709  ;;  %6889 = vadd.xlane.f32.xlu1 %v6888_v49 }
 0xf0c   : > { %v15575_v29 = vsub.f32 %v15377_v9, %v6739_v43  ;;  %v6885_v57 = vsel %vm538_vm0, %v6801_v19, 0.0  ;;  %v6800_v51 = vmul.f32 %v15567_v42, %v15567_v42 }
 0xf0d   : > { %6886 = vadd.xlane.f32.xlu0 %v6885_v57  ;;  %v6707_v16 = vpop.xlane.xlu0 %6706 }
 0xf0e   : > { %v6741_v39 = vmul.f32 0.03125, %v6707_v16  ;;  %v6882_v25 = vsel %vm538_vm0, %v6800_v51, 0.0  ;;  %v6803_v61 = vmul.f32 %v15575_v29, %v15575_v29 }
 0xf0f   : > { %v15583_v40 = vpop.xlane.xlu1 %6703  ;;  %6883 = vadd.xlane.f32.xlu1 %v6882_v25 }
 0xf10   : > { %v15586_v49 = vsub.f32 %v15383_v38, %v6741_v39  ;;  %v6891_v43 = vsel %vm538_vm0, %v6803_v61, 0.0 }
 0xf11   : > { %6892 = vadd.xlane.f32.xlu0 %v6891_v43  ;;  %v6809_v19 = vpop.xlane.xlu0 %6808 }
 0xf12   : > { %18750 = vst [vmem:[#allocation76_spill] sm:$0xff] %v15586_v49  ;;  %v6903_v9 = vmul.f32 0.03125, %v6809_v19  ;;  %v6805_v57 = vmul.f32 %v15586_v49, %v15586_v49 }
 0xf13   : > { %v6818_v16 = vpop.xlane.xlu1 %6817 }
 0xf14   : > { %v6935_v35 = vadd.f32 1e-05, %v6903_v9  ;;  %v6906_v51 = vmul.f32 0.03125, %v6818_v16  ;;  %v6897_v1 = vsel %vm538_vm0, %v6805_v57, 0.0 }
 0xf15   : > { %6898 = vadd.xlane.f32.xlu0 %v6897_v1  ;;  %v6815_v6 = vpop.xlane.xlu0 %6814  ;;  %v15595_v1 = vld [vmem:[%s18246_s14 + $0xf8] sm:$0xff] }
 0xf16   : > { %11655 = vrsqrt.f32 %v6935_v35  ;;  %v6938_v25 = vadd.f32 1e-05, %v6906_v51  ;;  %v6905_v48 = vmul.f32 0.03125, %v6815_v6 }
 0xf17   : > { %v6812_v39 = vpop.xlane.xlu1 %6811 }
 0xf18   : > { %11657 = vrsqrt.f32 %v6938_v25  ;;  %v6937_v38 = vadd.f32 1e-05, %v6905_v48  ;;  %v6904_v61 = vmul.f32 0.03125, %v6812_v39  ;;  %v15607_v25 = vld [vmem:[%s18246_s14 + $0x10] sm:$0xff] }
 0xf19   : > { %v6821_v43 = vpop.xlane.xlu0 %6820 }
 0xf1a   : > { %11659 = vrsqrt.f32 %v6937_v38  ;;  %v6936_v19 = vadd.f32 1e-05, %v6904_v61  ;;  %v6907_v27 = vmul.f32 0.03125, %v6821_v43  ;;  %v15613_v43 = vld [vmem:[%s18238_s6] ss:$0 sm:$0xff] }
 0xf1b   : > { %v6830_v15 = vpop.xlane.xlu1 %6829 }
 0xf1c   : > { %11661 = vrsqrt.f32 %v6936_v19  ;;  %v6939_v32 = vadd.f32 1e-05, %v6907_v27  ;;  %v6910_v9 = vmul.f32 0.03125, %v6830_v15  ;;  %v15601_v27 = vld [vmem:[%s18246_s14 + $0x8] sm:$0xff] }
 0xf1d   : > { %v6827_v16 = vpop.xlane.xlu0 %6826 }
 0xf1e   : > { %11663 = vrsqrt.f32 %v6939_v32  ;;  %v6942_v6 = vadd.f32 1e-05, %v6910_v9  ;;  %v6909_v35 = vmul.f32 0.03125, %v6827_v16  ;;  %v15621_v16 = vld [vmem:[%s18246_s14] sm:$0xff] }
 0xf1f   : > { %v6824_v57 = vpop.xlane.xlu1 %6823 }
 0xf20   : > { %11665 = vrsqrt.f32 %v6942_v6  ;;  %v6941_v48 = vadd.f32 1e-05, %v6909_v35  ;;  %v6908_v51 = vmul.f32 0.03125, %v6824_v57  ;;  %7674 = vperm.xlu1 %10999, %v15595_v1  }
 0xf22   : > { %11667 = vrsqrt.f32 %v6941_v48  ;;  %v6940_v15 = vadd.f32 1e-05, %v6908_v51  ;;  %v18357_v51 = vmov 3  }
 0xf23   : > { %v11656_v38 = vpop.eup %11655 }
 0xf24   : > { %11669 = vrsqrt.f32 %v6940_v15  ;;  %7524 = vperm.xlu1 %10999, %v15601_v27   ;;  %v6999_v39 = vmul.f32 %v11656_v38, %v15386_v59  ;;  %v15637_v15 = vld [vmem:[%s18246_s14 + $0x38] sm:$0xff] }
 0xf25   : > { %v11658_v32 = vpop.eup %11657 }
 0xf26   : > { %v7002_v19 = vmul.f32 %v11658_v32, %v15395_v4  ;;  %v7037_v57 = vmul.f32 %v15613_v43, %v6999_v39  ;;  %v15629_v4 = vld [vmem:[%s18239_s7] ss:$0 sm:$0xff] }
 0xf27   : > { %v11660_v61 = vpop.eup %11659 }
 0xf28   : > { %v7001_v9 = vmul.f32 %v11660_v61, %v15403_v2  ;;  %7529 = vperm.xlu1 %10999, %v15607_v25   ;;  %v7040_v2 = vmul.f32 %v15613_v43, %v7002_v19  ;;  %v7075_v39 = vadd.f32 %v15629_v4, %v7037_v57 }
 0xf29   : > { %v11662_v6 = vpop.eup %11661 }
 0xf2a   : > { %v7039_v59 = vmul.f32 %v15613_v43, %v7001_v9  ;;  %v7000_v35 = vmul.f32 %v11662_v6, %v15410_v17  ;;  %v7078_v6 = vadd.f32 %v15629_v4, %v7040_v2 }
 0xf2b   : > { %v11664_v48 = vpop.eup %11663  ;;  %8143 = vperm.xlu0 %11003, %v15621_v16  }
 0xf2c   : > { %11000 = vset.pattern.permute.xlu1 %v18357_v51  ;;  %v7038_v17 = vmul.f32 %v15613_v43, %v7000_v35  ;;  %v7077_v32 = vadd.f32 %v15629_v4, %v7039_v59  ;;  %v7003_v19 = vmul.f32 %v11664_v48, %v15417_v58  ;;  %v15652_v59 = vld [vmem:[%s18246_s14 + $0x40] sm:$0xff] }
 0xf2d   : > { %v11666_v38 = vpop.eup %11665  ;;  %7808 = vperm.xlu1 %11000, %v15621_v16  }
 0xf2e   : > { %v7076_v61 = vadd.f32 %v15629_v4, %v7038_v17  ;;  %v7006_v51 = vmul.f32 %v11666_v38, %v15423_v28  ;;  %v7108_v54 = vpack.c.bf16 %v7078_v6, %v7077_v32  ;;  %v7041_v28 = vmul.f32 %v15613_v43, %v7003_v19  ;;  %v15688_v19 = vld [vmem:[%s18246_s14 + $0x80] sm:$0xff] }
 0xf2f   : > { %v11668_v9 = vpop.eup %11667  ;;  %8171 = vperm.xlu0 %11003, %v15637_v15   ;;  %v18751_v17 = vmov 2  }
 0xf30   : > { %v7005_v35 = vmul.f32 %v11668_v9, %v15429_v46  ;;  %v7107_v47 = vpack.c.bf16 %v7076_v61, %v7075_v39  ;;  %v15664_v46 = vld [vmem:[%s18246_s14 + $0x18] sm:$0xff]  ;;  %v7044_v2 = vmul.f32 %v15613_v43, %v7006_v51  ;;  %v15682_v51 = vld [vmem:[%s18246_s14 + $0x20] sm:$0xff] }
 0xf31   : > { %v11670_v57 = vpop.eup %11669  ;;  %7932 = vperm.xlu1 %11000, %v15595_v1  }
 0xf32   : > { %10589 = vmatprep.mubr.msk.bf16.mxu0 %vm538_vm0, %v7107_v47  ;;  %v7004_v58 = vmul.f32 %v11670_v57, %v15435_v26  ;;  %v7043_v48 = vmul.f32 %v15613_v43, %v7005_v35  ;;  %v15670_v47 = vld [vmem:[%s18246_s14 + $0x78] sm:$0xff]  ;;  %v7082_v39 = vadd.f32 %v15629_v4, %v7044_v2  ;;  %v18752_v57 = vmov 3  }
 0xf33   : > { %8175 = vperm.xlu0 %11003, %v15652_v59   ;;  %10590 = vmatmul.mubr.msk.bf16.vlgmr.msra.gmra.mxu0 %vm538_vm0, %v7108_v54  ;;  %v7079_v54 = vadd.f32 %v15629_v4, %v7041_v28 }
 0xf34   : > { %v7042_v26 = vmul.f32 %v15613_v43, %v7004_v58  ;;  %v7081_v38 = vadd.f32 %v15629_v4, %v7043_v48 }
 0xf35   : > { %11001 = vset.pattern.permute.xlu1 %v18751_v17 }
 0xf36   : > { %7534 = vperm.xlu1 %11001, %v15664_v46   ;;  %v7080_v32 = vadd.f32 %v15629_v4, %v7042_v26  ;;  %v7110_v9 = vpack.c.bf16 %v7082_v39, %v7081_v38  ;;  %v15701_v26 = vld [vmem:[%s18246_s14 + $0x30] sm:$0xff] }
 0xf37   : > { %8203 = vperm.xlu0 %11003, %v15670_v47  }
 0xf38   : > { %v7109_v61 = vpack.c.bf16 %v7080_v32, %v7079_v54 }
 0xf3a   : > { %7539 = vperm.xlu1 %11001, %v15682_v51   ;;  %10593 = vmatprep.mubr.msk.bf16.mxu0 %vm538_vm0, %v7109_v61 }
 0xf3b   : > { %8207 = vperm.xlu0 %11003, %v15688_v19   ;;  %10594 = vmatmul.mubr.msk.bf16.gmra.mxu0 %vm538_vm0, %v7110_v9 }
 0xf3c   : > { %v6833_v6 = vpop.xlane.xlu0 %6832 }
 0xf3d   : > { %v6911_v35 = vmul.f32 0.03125, %v6833_v6 }
 0xf3e   : > { %11002 = vset.pattern.permute.xlu1 %v18752_v57  ;;  %v6842_v58 = vpop.xlane.xlu1 %6841 }
 0xf3f   : > { %7812 = vperm.xlu1 %11002, %v15601_v27   ;;  %11036 = vset.pattern.permute.xlu0 %v18751_v17  ;;  %v6943_v28 = vadd.f32 1e-05, %v6911_v35  ;;  %v6914_v48 = vmul.f32 0.03125, %v6842_v58 }
 0xf40   : > { %7519 = vperm.xlu0 %11036, %v15621_v16   ;;  %v6839_v2 = vpop.xlane.xlu0 %6838 }
 0xf41   : > { %11671 = vrsqrt.f32 %v6943_v28  ;;  %v6946_v38 = vadd.f32 1e-05, %v6914_v48  ;;  %v6913_v54 = vmul.f32 0.03125, %v6839_v2  ;;  %v15710_v2 = vld [vmem:[%s18246_s14 + $0x48] sm:$0xff] }
 0xf42   : > { %v6836_v32 = vpop.xlane.xlu1 %6835 }
 0xf43   : > { %7820 = vperm.xlu1 %11002, %v15664_v46   ;;  %11673 = vrsqrt.f32 %v6946_v38  ;;  %v6945_v39 = vadd.f32 1e-05, %v6913_v54  ;;  %v6912_v61 = vmul.f32 0.03125, %v6836_v32 }
 0xf44   : > { %7549 = vperm.xlu0 %11036, %v15701_v26   ;;  %v6845_v9 = vpop.xlane.xlu0 %6844 }
 0xf45   : > { %11675 = vrsqrt.f32 %v6945_v39  ;;  %v6944_v6 = vadd.f32 1e-05, %v6912_v61  ;;  %v6915_v35 = vmul.f32 0.03125, %v6845_v9  ;;  %v18753_v39 = vmov 0  }
 0xf46   : > { %v6854_v58 = vpop.xlane.xlu1 %6853 }
 0xf47   : > { %7824 = vperm.xlu1 %11002, %v15682_v51   ;;  %11677 = vrsqrt.f32 %v6944_v6  ;;  %v6947_v23 = vadd.f32 1e-05, %v6915_v35  ;;  %v6918_v28 = vmul.f32 0.03125, %v6854_v58  ;;  %v15718_v6 = vld [vmem:[%s18246_s14 + $0x58] sm:$0xff]  ;;  %v15723_v58 = vld [vmem:[%s18246_s14 + $0x28] sm:$0xff] }
 0xf48   : > { %7559 = vperm.xlu0 %11036, %v15652_v59   ;;  %v6851_v48 = vpop.xlane.xlu0 %6850 }
 0xf49   : > { %11679 = vrsqrt.f32 %v6947_v23  ;;  %v6950_v38 = vadd.f32 1e-05, %v6918_v28  ;;  %v6917_v54 = vmul.f32 0.03125, %v6851_v48 }
 0xf4a   : > { %v6848_v32 = vpop.xlane.xlu1 %6847 }
 0xf4b   : > { %11004 = vset.pattern.permute.xlu1 %v18753_v39  ;;  %11681 = vrsqrt.f32 %v6950_v38  ;;  %v6949_v61 = vadd.f32 1e-05, %v6917_v54  ;;  %v6916_v9 = vmul.f32 0.03125, %v6848_v32 }
 0xf4c   : > { %8147 = vperm.xlu1 %11004, %v15601_v27   ;;  %7564 = vperm.xlu0 %11036, %v15710_v2   ;;  %v6857_v23 = vpop.xlane.xlu0 %6856 }
 0xf4d   : > { %11683 = vrsqrt.f32 %v6949_v61  ;;  %v6948_v35 = vadd.f32 1e-05, %v6916_v9  ;;  %v6919_v48 = vmul.f32 0.03125, %v6857_v23  ;;  %v15731_v61 = vld [vmem:[%s18246_s14 + $0x70] sm:$0xff] }
 0xf4e   : > { %v11672_v28 = vpop.eup %11671  ;;  %v6866_v38 = vpop.xlane.xlu1 %6865 }
 0xf4f   : > { %11685 = vrsqrt.f32 %v6948_v35  ;;  %v6951_v32 = vadd.f32 1e-05, %v6919_v48  ;;  %v6922_v36 = vmul.f32 0.03125, %v6866_v38  ;;  %v7007_v35 = vmul.f32 %v11672_v28, %v15454_v21 }
 0xf50   : > { %11005 = vset.pattern.permute.xlu1 %v18751_v17  ;;  %7574 = vperm.xlu0 %11036, %v15718_v6   ;;  %v11674_v54 = vpop.eup %11673  ;;  %v6863_v62 = vpop.xlane.xlu0 %6862 }
 0xf51   : > { %7544 = vperm.xlu1 %11005, %v15723_v58   ;;  %v7010_v9 = vmul.f32 %v11674_v54, %v15460_v11  ;;  %11687 = vrsqrt.f32 %v6951_v32  ;;  %v6954_v5 = vadd.f32 1e-05, %v6922_v36  ;;  %v6921_v8 = vmul.f32 0.03125, %v6863_v62 }
 0xf52   : > { %v11676_v23 = vpop.eup %11675  ;;  %v6860_v48 = vpop.xlane.xlu1 %6859  ;;  %v7045_v11 = vmul.f32 %v15613_v43, %v7007_v35 }
 0xf53   : > { %v7009_v0 = vmul.f32 %v11676_v23, %v15465_v14  ;;  %11689 = vrsqrt.f32 %v6954_v5  ;;  %v6953_v34 = vadd.f32 1e-05, %v6921_v8  ;;  %v6920_v12 = vmul.f32 0.03125, %v6860_v48 }
 0xf54   : > { %7589 = vperm.xlu0 %11036, %v15731_v61   ;;  %v11678_v38 = vpop.eup %11677  ;;  %v6869_v31 = vpop.xlane.xlu0 %6868  ;;  %v7048_v62 = vmul.f32 %v15613_v43, %v7010_v9 }
 0xf55   : > { %11006 = vset.pattern.permute.xlu1 %v18753_v39  ;;  %v7008_v21 = vmul.f32 %v11678_v38, %v15471_v24  ;;  %v7047_v36 = vmul.f32 %v15613_v43, %v7009_v0  ;;  %11691 = vrsqrt.f32 %v6953_v34  ;;  %v6952_v28 = vadd.f32 1e-05, %v6920_v12  ;;  %v15748_v24 = vld [vmem:[%s18246_s14 + $0x88] sm:$0xff] }
 0xf56   : > { %8151 = vperm.xlu1 %11006, %v15607_v25   ;;  %v11680_v14 = vpop.eup %11679  ;;  %v6923_v54 = vmul.f32 0.03125, %v6869_v31  ;;  %v6878_v5 = vpop.xlane.xlu1 %6877  ;;  %v7083_v31 = vadd.f32 %v15629_v4, %v7045_v11  ;;  %v7086_v34 = vadd.f32 %v15629_v4, %v7048_v62 }
 0xf57   : > { %v7046_v8 = vmul.f32 %v15613_v43, %v7008_v21  ;;  %11693 = vrsqrt.f32 %v6952_v28  ;;  %v6926_v48 = vmul.f32 0.03125, %v6878_v5  ;;  %v7085_v0 = vadd.f32 %v15629_v4, %v7047_v36 }
 0xf58   : > { %7599 = vperm.xlu0 %11036, %v15688_v19   ;;  %v11682_v32 = vpop.eup %11681  ;;  %v6955_v23 = vadd.f32 1e-05, %v6923_v54  ;;  %v6875_v9 = vpop.xlane.xlu0 %6874  ;;  %v7011_v35 = vmul.f32 %v11680_v14, %v15477_v20  ;;  %v15762_v20 = vld [vmem:[%s18246_s14 + $0x98] sm:$0xff] }
 0xf59   : > { %v7084_v12 = vadd.f32 %v15629_v4, %v7046_v8  ;;  %v7014_v21 = vmul.f32 %v11682_v32, %v15483_v22  ;;  %v6958_v28 = vadd.f32 1e-05, %v6926_v48  ;;  %v6925_v54 = vmul.f32 0.03125, %v6875_v9 }
 0xf5a   : > { %8155 = vperm.xlu1 %11006, %v15664_v46   ;;  %v11684_v38 = vpop.eup %11683  ;;  %11695 = vrsqrt.f32 %v6955_v23  ;;  %v6872_v36 = vpop.xlane.xlu1 %6871  ;;  %v7112_v49 = vpack.c.bf16 %v7086_v34, %v7085_v0  ;;  %v18375_v22 = vmov 1   ;;  %v7049_v62 = vmul.f32 %v15613_v43, %v7011_v35 }
 0xf5b   : > { %v7013_v5 = vmul.f32 %v11684_v38, %v15489_v45  ;;  %v7111_v10 = vpack.c.bf16 %v7084_v12, %v7083_v31  ;;  %11697 = vrsqrt.f32 %v6958_v28  ;;  %v6957_v11 = vadd.f32 1e-05, %v6925_v54  ;;  %v15792_v28 = vld [vmem:[%s18246_s14 + $0xc0] sm:$0xff] }
 0xf5c   : > { %7604 = vperm.xlu0 %11036, %v15748_v24   ;;  %v11686_v63 = vpop.eup %11685  ;;  %v6924_v8 = vmul.f32 0.03125, %v6872_v36  ;;  %v7052_v23 = vmul.f32 %v15613_v43, %v7014_v21 }
 0xf5d   : > { %10597 = vmatprep.mubr.msk.bf16.mxu0 %vm538_vm0, %v7111_v10  ;;  %v7012_v45 = vmul.f32 %v11686_v63, %v15495_v13  ;;  %v7051_v14 = vmul.f32 %v15613_v43, %v7013_v5  ;;  %11699 = vrsqrt.f32 %v6957_v11  ;;  %v15777_v63 = vld [vmem:[%s18246_s14 + $0xb0] sm:$0xff]  ;;  %v7380_v11 = vld [vmem:[%s18246_s14 + $0xc8] sm:$0xff] }
 0xf5e   : > { %11007 = vset.pattern.permute.xlu1 %v18375_v22  ;;  %v6956_v32 = vadd.f32 1e-05, %v6924_v8  ;;  %10598 = vmatmul.mubr.msk.bf16.gmra.mxu0 %vm538_vm0, %v7112_v49  ;;  %v11688_v48 = vpop.eup %11687  ;;  %v7087_v49 = vadd.f32 %v15629_v4, %v7049_v62  ;;  %v7090_v9 = vadd.f32 %v15629_v4, %v7052_v23 }
 0xf5f   : > { %8689 = vperm.xlu1 %11007, %v15601_v27   ;;  %v7050_v10 = vmul.f32 %v15613_v43, %v7012_v45  ;;  %v7089_v13 = vadd.f32 %v15629_v4, %v7051_v14  ;;  %v7015_v31 = vmul.f32 %v11688_v48, %v15504_v55 }
 0xf60   : > { %7614 = vperm.xlu0 %11036, %v15762_v20   ;;  %11701 = vrsqrt.f32 %v6956_v32  ;;  %v11690_v0 = vpop.eup %11689 }
 0xf61   : > { %v7088_v27 = vadd.f32 %v15629_v4, %v7050_v10  ;;  %v7018_v34 = vmul.f32 %v11690_v0, %v15508_v60  ;;  %v7114_v21 = vpack.c.bf16 %v7090_v9, %v7089_v13  ;;  %v7053_v60 = vmul.f32 %v15613_v43, %v7015_v31 }
 0xf62   : > { %v11692_v12 = vpop.eup %11691 }
 0xf63   : > { %11008 = vset.pattern.permute.xlu1 %v18751_v17  ;;  %v7113_v35 = vpack.c.bf16 %v7088_v27, %v7087_v49  ;;  %v7017_v38 = vmul.f32 %v11692_v12, %v15513_v50  ;;  %v7056_v50 = vmul.f32 %v15613_v43, %v7018_v34  ;;  %v7091_v62 = vadd.f32 %v15629_v4, %v7053_v60  ;;  %v15818_v49 = vld [vmem:[%s18246_s14 + $0xd8] sm:$0xff]  ;;  %v15830_v12 = vld [vmem:[%s18246_s14 + $0xf0] sm:$0xff] }
 0xf64   : > { %7554 = vperm.xlu1 %11008, %v15637_v15   ;;  %7629 = vperm.xlu0 %11036, %v15777_v63   ;;  %v11694_v54 = vpop.eup %11693  ;;  %v15848_v60 = vld [vmem:[%s18246_s14 + $0x50] sm:$0xff] }
 0xf65   : > { %10601 = vmatprep.mubr.msk.bf16.mxu0 %vm538_vm0, %v7113_v35  ;;  %v7016_v55 = vmul.f32 %v11694_v54, %v15519_v7  ;;  %v7055_v5 = vmul.f32 %v15613_v43, %v7017_v38  ;;  %v7094_v10 = vadd.f32 %v15629_v4, %v7056_v50  ;;  %v6740_v50 = vmul.f32 0.03125, %v15583_v40 }
 0xf66   : > { %10602 = vmatmul.mubr.msk.bf16.gmra.mxu0 %vm538_vm0, %v7114_v21 }
 0xf67   : > { %v11696_v36 = vpop.eup %11695  ;;  %v7054_v8 = vmul.f32 %v15613_v43, %v7016_v55  ;;  %v7093_v45 = vadd.f32 %v15629_v4, %v7055_v5  ;;  %v6742_v5 = vmul.f32 0.03125, %v15572_v37 }
 0xf68   : > { %11009 = vset.pattern.permute.xlu1 %v18752_v57  ;;  %7639 = vperm.xlu0 %11036, %v15792_v28   ;;  %v11698_v7 = vpop.eup %11697  ;;  %v7019_v32 = vmul.f32 %v11696_v36, %v15525_v41 }
 0xf69   : > { %7828 = vperm.xlu1 %11009, %v15723_v58   ;;  %v7092_v14 = vadd.f32 %v15629_v4, %v7054_v8  ;;  %v7022_v48 = vmul.f32 %v11698_v7, %v15531_v52  ;;  %v7116_v9 = vpack.c.bf16 %v7094_v10, %v7093_v45  ;;  %v15853_v36 = vsub.f32 %v15389_v56, %v6742_v5  ;;  %v16063_v56 = vld [vmem:[%s18246_s14 + $0xa0] sm:$0xff] }
 0xf6a   : > { %v11700_v23 = vpop.eup %11699  ;;  %v7057_v52 = vmul.f32 %v15613_v43, %v7019_v32  ;;  %18780 = vst [vmem:[#allocation83_spill] sm:$0xff] %v16063_v56 }
 0xf6b   : > { %v7021_v13 = vmul.f32 %v11700_v23, %v15537_v53  ;;  %v7115_v0 = vpack.c.bf16 %v7092_v14, %v7091_v62  ;;  %v7060_v53 = vmul.f32 %v15613_v43, %v7022_v48  ;;  %v6806_v37 = vmul.f32 %v15853_v36, %v15853_v36 }
 0xf6c   : > { %7644 = vperm.xlu0 %11036, %v7380_v11   ;;  %v7095_v35 = vadd.f32 %v15629_v4, %v7057_v52  ;;  %v15863_v11 = vsub.f32 %v15398_v33, %v6740_v50  ;;  %v15905_v50 = vld [vmem:[%s18246_s14 + $0xd0] sm:$0xff] }
 0xf6d   : > { %7832 = vperm.xlu1 %11009, %v15701_v26   ;;  %v11702_v27 = vpop.eup %11701  ;;  %10605 = vmatprep.mubr.msk.bf16.mxu0 %vm538_vm0, %v7115_v0  ;;  %v7059_v31 = vmul.f32 %v15613_v43, %v7021_v13  ;;  %v7098_v21 = vadd.f32 %v15629_v4, %v7060_v53  ;;  %v6900_v8 = vsel %vm538_vm0, %v6806_v37, 0.0  ;;  %18755 = vst [vmem:[#allocation75_spill] sm:$0xff] %v15905_v50 }
 0xf6e   : > { %v7020_v41 = vmul.f32 %v11702_v27, %v15543_v18  ;;  %10606 = vmatmul.mubr.msk.bf16.gmra.mxu0 %vm538_vm0, %v7116_v9  ;;  %v6804_v40 = vmul.f32 %v15863_v11, %v15863_v11 }
 0xf6f   : > { %v7097_v18 = vadd.f32 %v15629_v4, %v7059_v31 }
 0xf70   : > { %7654 = vperm.xlu0 %11036, %v15818_v49   ;;  %v7058_v34 = vmul.f32 %v15613_v43, %v7020_v41  ;;  %v6894_v14 = vsel %vm538_vm0, %v6804_v40, 0.0 }
 0xf71   : > { %11010 = vset.pattern.permute.xlu1 %v18375_v22  ;;  %v7118_v55 = vpack.c.bf16 %v7098_v21, %v7097_v18 }
 0xf72   : > { %v7096_v38 = vadd.f32 %v15629_v4, %v7058_v34 }
 0xf74   : > { %7669 = vperm.xlu0 %11036, %v15830_v12   ;;  %v7117_v54 = vpack.c.bf16 %v7096_v38, %v7095_v35 }
 0xf76   : > { %10609 = vmatprep.mubr.msk.bf16.mxu0 %vm538_vm0, %v7117_v54 }
 0xf77   : > { %10610 = vmatmul.mubr.msk.bf16.gmra.mxu0 %vm538_vm0, %v7118_v55 }
 0xf78   : > { %11055 = vset.pattern.permute.xlu0 %v18375_v22 }
 0xf79   : > { %8685 = vperm.xlu0 %11055, %v15621_v16   ;;  %v15860_v16 = vld [vmem:[%s18246_s14 + $0x90] sm:$0xff] }
 0xf7d   : > { %8693 = vperm.xlu0 %11055, %v15607_v25  }
 0xf81   : > { %8717 = vperm.xlu0 %11055, %v15652_v59  }
 0xf85   : > { %8725 = vperm.xlu0 %11055, %v15848_v60  }
 0xf89   : > { %8749 = vperm.xlu0 %11055, %v15688_v19  }
 0xf8d   : > { %8757 = vperm.xlu0 %11055, %v15860_v16  }
 0xf91   : > { %6901 = vadd.xlane.f32.xlu1 %v6900_v8  ;;  %8781 = vperm.xlu0 %11055, %v15792_v28  }
 0xf92   : > { %v6881_v7 = vpop.xlane.xlu0 %6880 }
 0xf93   : > { %v6927_v45 = vmul.f32 0.03125, %v6881_v7 }
 0xf94   : > { %v6890_v62 = vpop.xlane.xlu1 %6889 }
 0xf95   : > { %v6959_v32 = vadd.f32 1e-05, %v6927_v45  ;;  %v6930_v23 = vmul.f32 0.03125, %v6890_v62  ;;  %6895 = vadd.xlane.f32.xlu1 %v6894_v14  ;;  %11057 = vset.pattern.permute.xlu0 %v18752_v57  ;;  %v15931_v62 = vld [vmem:[%s18246_s14 + $0x60] sm:$0xff] }
 0xf96   : > { %7816 = vperm.xlu0 %11057, %v15607_v25   ;;  %v6887_v48 = vpop.xlane.xlu0 %6886 }
 0xf97   : > { %11703 = vrsqrt.f32 %v6959_v32  ;;  %v6962_v10 = vadd.f32 1e-05, %v6930_v23  ;;  %v6929_v13 = vmul.f32 0.03125, %v6887_v48 }
 0xf98   : > { %v6884_v0 = vpop.xlane.xlu1 %6883 }
 0xf99   : > { %11705 = vrsqrt.f32 %v6962_v10  ;;  %v6961_v27 = vadd.f32 1e-05, %v6929_v13  ;;  %v6928_v9 = vmul.f32 0.03125, %v6884_v0  ;;  %v15961_v13 = vld [vmem:[%s18246_s14 + $0xb8] sm:$0xff]  ;;  %v15973_v0 = vld [vmem:[%s18246_s14 + $0x68] sm:$0xff] }
 0xf9a   : > { %7840 = vperm.xlu0 %11057, %v15652_v59   ;;  %v6893_v7 = vpop.xlane.xlu0 %6892 }
 0xf9b   : > { %11707 = vrsqrt.f32 %v6961_v27  ;;  %v6960_v41 = vadd.f32 1e-05, %v6928_v9 }
 0xf9d   : > { %11709 = vrsqrt.f32 %v6960_v41 }
 0xf9e   : > { %7848 = vperm.xlu0 %11057, %v15848_v60   ;;  %v6899_v45 = vpop.xlane.xlu0 %6898 }
 0xfa2   : > { %7852 = vperm.xlu0 %11057, %v15718_v6  }
 0xfa4   : > { %v11704_v52 = vpop.eup %11703 }
 0xfa5   : > { %v7023_v25 = vmul.f32 %v11704_v52, %v15553_v3 }
 0xfa6   : > { %v11706_v31 = vpop.eup %11705  ;;  %8697 = vperm.xlu1 %11010, %v15664_v46   ;;  %7872 = vperm.xlu0 %11057, %v15688_v19  }
 0xfa7   : > { %v7026_v34 = vmul.f32 %v11706_v31, %v15556_v44  ;;  %v7061_v46 = vmul.f32 %v15613_v43, %v7023_v25 }
 0xfa8   : > { %v11708_v53 = vpop.eup %11707 }
 0xfa9   : > { %v7025_v59 = vmul.f32 %v11708_v53, %v15561_v30  ;;  %v7064_v3 = vmul.f32 %v15613_v43, %v7026_v34  ;;  %v7099_v30 = vadd.f32 %v15629_v4, %v7061_v46  ;;  %v6931_v46 = vmul.f32 0.03125, %v6893_v7  ;;  %v16034_v7 = vld [vmem:[%s18246_s14 + $0xe0] sm:$0xff] }
 0xfaa   : > { %v11710_v18 = vpop.eup %11709  ;;  %11011 = vset.pattern.permute.xlu1 %v18752_v57  ;;  %7880 = vperm.xlu0 %11057, %v15860_v16   ;;  %18773 = vst [vmem:[#allocation20_spill] sm:$0xff] %v16034_v7 }
 0xfab   : > { %7836 = vperm.xlu1 %11011, %v15637_v15   ;;  %v7024_v35 = vmul.f32 %v11710_v18, %v15567_v42  ;;  %v7063_v19 = vmul.f32 %v15613_v43, %v7025_v59  ;;  %v15897_v42 = vpop.permute.xlu1 %7674  ;;  %v7102_v54 = vadd.f32 %v15629_v4, %v7064_v3  ;;  %v6933_v3 = vmul.f32 0.03125, %v6899_v45 }
 0xfac   : > { %18754 = vst [vmem:[#allocation74_spill] sm:$0xff] %v15897_v42 }
 0xfad   : > { %v7062_v38 = vmul.f32 %v15613_v43, %v7024_v35  ;;  %v7101_v44 = vadd.f32 %v15629_v4, %v7063_v19 }
 0xfae   : > { %7884 = vperm.xlu0 %11057, %v15762_v20  }
 0xfaf   : > { %11012 = vset.pattern.permute.xlu1 %v18753_v39  ;;  %v7100_v21 = vadd.f32 %v15629_v4, %v7062_v38  ;;  %v7120_v5 = vpack.c.bf16 %v7102_v54, %v7101_v44  ;;  %v15909_v37 = vpop.permute.xlu1 %7524  ;;  %v6965_v44 = vadd.f32 1e-05, %v6933_v3 }
 0xfb0   : > { %8159 = vperm.xlu1 %11012, %v15682_v51  }
 0xfb1   : > { %v7119_v55 = vpack.c.bf16 %v7100_v21, %v7099_v30 }
 0xfb2   : > { %7904 = vperm.xlu0 %11057, %v15792_v28  }
 0xfb3   : > { %10613 = vmatprep.mubr.msk.bf16.mxu0 %vm538_vm0, %v7119_v55  ;;  %v15915_v8 = vpop.permute.xlu1 %7529 }
 0xfb4   : > { %8163 = vperm.xlu1 %11012, %v15723_v58   ;;  %10614 = vmatmul.mubr.msk.bf16.gmra.mxu0 %vm538_vm0, %v7120_v5 }
 0xfb6   : > { %7912 = vperm.xlu0 %11057, %v15905_v50  }
 0xfb7   : > { %v15921_v40 = vpop.permute.xlu1 %7808 }
 0xfb8   : > { %11013 = vset.pattern.permute.xlu1 %v18751_v17 }
 0xfb9   : > { %7569 = vperm.xlu1 %11013, %v15848_v60  }
 0xfba   : > { %7916 = vperm.xlu0 %11057, %v15818_v49  }
 0xfbb   : > { %v15926_v49 = vpop.permute.xlu1 %7932 }
 0xfbc   : > { %18756 = vst [vmem:[#allocation78_spill] sm:$0xff] %v15926_v49 }
 0xfbd   : > { %11014 = vset.pattern.permute.xlu1 %v18753_v39 }
 0xfbe   : > { %8167 = vperm.xlu1 %11014, %v15701_v26   ;;  %7928 = vperm.xlu0 %11057, %v15830_v12   ;;  %v15935_v12 = vpop.permute.xlu0 %8143 }
 0xfbf   : > { %18757 = vst [vmem:[#allocation63_spill] sm:$0xff] %v15935_v12  ;;  %v15937_v14 = vpop.permute.xlu1 %7534 }
 0xfc2   : > { %11015 = vset.pattern.permute.xlu1 %v18375_v22  ;;  %11060 = vset.pattern.permute.xlu0 %v18753_v39 }
 0xfc3   : > { %8701 = vperm.xlu1 %11015, %v15682_v51   ;;  %v15941_v51 = vpop.permute.xlu0 %8171  ;;  %8235 = vperm.xlu0 %11060, %v15961_v13  }
 0xfc4   : > { %18758 = vst [vmem:[#allocation61_spill] sm:$0xff] %v15941_v51 }
 0xfc7   : > { %8705 = vperm.xlu1 %11015, %v15723_v58   ;;  %v15943_v58 = vpop.permute.xlu1 %7539  ;;  %v15947_v32 = vpop.permute.xlu0 %8175  ;;  %8239 = vperm.xlu0 %11060, %v15792_v28  }
 0xfc8   : > { %18759 = vst [vmem:[#allocation64_spill] sm:$0xff] %v15947_v32 }
 0xfcb   : > { %11016 = vset.pattern.permute.xlu1 %v18751_v17  ;;  %v15949_v23 = vpop.permute.xlu1 %7812  ;;  %v15953_v48 = vpop.permute.xlu0 %8203  ;;  %8255 = vperm.xlu0 %11060, %v16034_v7  }
 0xfcc   : > { %7579 = vperm.xlu1 %11016, %v15931_v62   ;;  %18760 = vst [vmem:[#allocation62_spill] sm:$0xff] %v15953_v48 }
 0xfcf   : > { %v15956_v10 = vpop.permute.xlu1 %7820  ;;  %8267 = vperm.xlu0 %11060, %v15595_v1  }
 0xfd0   : > { %11017 = vset.pattern.permute.xlu1 %v18752_v57 }
 0xfd1   : > { %7844 = vperm.xlu1 %11017, %v15710_v2  }
 0xfd3   : > { %11064 = vset.pattern.permute.xlu0 %v18375_v22 }
 0xfd5   : > { %11018 = vset.pattern.permute.xlu1 %v18375_v22 }
 0xfd6   : > { %8709 = vperm.xlu1 %11018, %v15701_v26   ;;  %v15968_v26 = vpop.permute.xlu1 %7824 }
 0xfda   : > { %8713 = vperm.xlu1 %11018, %v15637_v15   ;;  %v15966_v15 = vpop.permute.xlu0 %8207  ;;  %v15980_v9 = vpop.permute.xlu1 %8147 }
 0xfdb   : > { %18761 = vst [vmem:[#allocation81_spill] sm:$0xff] %v15966_v15  ;;  %18763 = vst [vmem:[#allocation79_spill] sm:$0xff] %v15980_v9 }
 0xfde   : > { %11019 = vset.pattern.permute.xlu1 %v18752_v57  ;;  %v15978_v27 = vpop.permute.xlu0 %7519  ;;  %v15986_v52 = vpop.permute.xlu1 %7544 }
 0xfdf   : > { %7856 = vperm.xlu1 %11019, %v15931_v62   ;;  %18762 = vst [vmem:[#allocation77_spill] sm:$0xff] %v15978_v27 }
 0xfe2   : > { %v15984_v41 = vpop.permute.xlu0 %7549  ;;  %v15993_v31 = vpop.permute.xlu1 %8151 }
 0xfe3   : > { %11020 = vset.pattern.permute.xlu1 %v18753_v39 }
 0xfe4   : > { %8179 = vperm.xlu1 %11020, %v15710_v2  }
 0xfe6   : > { %v15990_v28 = vpop.permute.xlu0 %7559 }
 0xfe7   : > { %18764 = vst [vmem:[#allocation80_spill] sm:$0xff] %v15990_v28 }
 0xfe8   : > { %11021 = vset.pattern.permute.xlu1 %v18751_v17 }
 0xfe9   : > { %7584 = vperm.xlu1 %11021, %v15973_v0  }
 0xfea   : > { %v15997_v25 = vpop.permute.xlu0 %7564 }
 0xfeb   : > { %18765 = vst [vmem:[#allocation68_spill] sm:$0xff] %v15997_v25 }
 0xfed   : > { %11022 = vset.pattern.permute.xlu1 %v18753_v39 }
 0xfee   : > { %8183 = vperm.xlu1 %11022, %v15848_v60   ;;  %v15999_v60 = vpop.permute.xlu1 %8155  ;;  %v16003_v53 = vpop.permute.xlu0 %7574 }
 0xfef   : > { %18766 = vst [vmem:[#allocation66_spill] sm:$0xff] %v15999_v60  ;;  %18767 = vst [vmem:[#allocation69_spill] sm:$0xff] %v16003_v53 }
 0xff2   : > { %8187 = vperm.xlu1 %11022, %v15718_v6   ;;  %v16005_v34 = vpop.permute.xlu1 %8689 }
 0xff3   : > { %18768 = vst [vmem:[#allocation67_spill] sm:$0xff] %v16005_v34 }
 0xff6   : > { %11023 = vset.pattern.permute.xlu1 %v18375_v22  ;;  %v16011_v59 = vpop.permute.xlu1 %7554 }
 0xff7   : > { %8721 = vperm.xlu1 %11023, %v15710_v2   ;;  %v16008_v2 = vpop.permute.xlu0 %7589 }
 0xff8   : > { %18769 = vst [vmem:[#allocation14_spill] sm:$0xff] %v16008_v2 }
 0xffa   : > { %v16018_v35 = vpop.permute.xlu1 %7828 }
 0xffb   : > { %11024 = vset.pattern.permute.xlu1 %v18751_v17  ;;  %v16015_v18 = vpop.permute.xlu0 %7599 }
 0xffc   : > { %7594 = vperm.xlu1 %11024, %v15670_v47   ;;  %18770 = vst [vmem:[#allocation7_spill] sm:$0xff] %v16015_v18 }
 0xffe   : > { %v16024_v38 = vpop.permute.xlu1 %7832 }
 0xfff   : > { %v16022_v19 = vpop.permute.xlu0 %7604 }
0x1000   : > { %11025 = vset.pattern.permute.xlu1 %v18752_v57  ;;  %18771 = vst [vmem:[#allocation11_spill] sm:$0xff] %v16022_v19 }
0x1001   : > { %7860 = vperm.xlu1 %11025, %v15973_v0  }
0x1003   : > { %v16027_v21 = vpop.permute.xlu0 %7614 }
0x1004   : > { %18772 = vst [vmem:[#allocation10_spill] sm:$0xff] %v16027_v21 }
0x1005   : > { %7864 = vperm.xlu1 %11025, %v15731_v61  }
0x1009   : > { %11026 = vset.pattern.permute.xlu1 %v18375_v22 }
0x100a   : > { %8729 = vperm.xlu1 %11026, %v15718_v6   ;;  %v6963_v6 = vadd.f32 1e-05, %v6931_v46  ;;  %v16037_v46 = vpop.permute.xlu0 %7629 }
0x100b   : > { %18774 = vst [vmem:[#allocation15_spill] sm:$0xff] %v16037_v46 }
0x100c   : > { %11711 = vrsqrt.f32 %v6963_v6 }
0x100d   : > { %11713 = vrsqrt.f32 %v6965_v44 }
0x100e   : > { %11027 = vset.pattern.permute.xlu1 %v18752_v57 }
0x100f   : > { %7868 = vperm.xlu1 %11027, %v15670_v47  }
0x1013   : > { %11028 = vset.pattern.permute.xlu1 %v18753_v39 }
0x1014   : > { %8191 = vperm.xlu1 %11028, %v15931_v62  }
0x1018   : > { %8195 = vperm.xlu1 %11028, %v15973_v0  }
0x101a   : > { %v6902_v30 = vpop.xlane.xlu1 %6901 }
0x101b   : > { %v6934_v54 = vmul.f32 0.03125, %v6902_v30  ;;  %v7384_v30 = vld [vmem:[%s18246_s14 + $0xe8] sm:$0xff] }
0x101c   : > { %11029 = vset.pattern.permute.xlu1 %v18751_v17  ;;  %8801 = vperm.xlu0 %11064, %v7384_v30  }
0x101d   : > { %v6966_v55 = vadd.f32 1e-05, %v6934_v54  ;;  %7609 = vperm.xlu1 %11029, %v15860_v16   ;;  %v16050_v54 = vpop.permute.xlu0 %7639 }
0x101e   : > { %v6896_v5 = vpop.xlane.xlu1 %6895  ;;  %18777 = vst [vmem:[#allocation84_spill] sm:$0xff] %v16050_v54  ;;  %v16129_v54 = vld [vmem:[%s18241_s9] ss:$0 sm:$0xff] }
0x101f   : > { %11715 = vrsqrt.f32 %v6966_v55  ;;  %v6932_v45 = vmul.f32 0.03125, %v6896_v5  ;;  %v11712_v55 = vpop.eup %11711 }
0x1020   : > { %v11714_v5 = vpop.eup %11713 }
0x1021   : > { %v6964_v3 = vadd.f32 1e-05, %v6932_v45  ;;  %11030 = vset.pattern.permute.xlu1 %v18753_v39 }
0x1022   : > { %8199 = vperm.xlu1 %11030, %v15731_v61   ;;  %v16041_v6 = vpop.permute.xlu1 %8697 }
0x1023   : > { %18775 = vst [vmem:[#allocation22_spill] sm:$0xff] %v16041_v6  ;;  %11717 = vrsqrt.f32 %v6964_v3  ;;  %v16057_v3 = vpop.permute.xlu0 %7644 }
0x1024   : > { %18779 = vst [vmem:[#allocation85_spill] sm:$0xff] %v16057_v3 }
0x1026   : > { %11031 = vset.pattern.permute.xlu1 %v18375_v22  ;;  %v16045_v44 = vpop.permute.xlu1 %7836  ;;  %v18781_v22 = vld [vmem:[#allocation76_spill] sm:$0xff] }
0x1027   : > { %18776 = vst [vmem:[#allocation16_spill] sm:$0xff] %v16045_v44  ;;  %8733 = vperm.xlu1 %11031, %v15931_v62   ;;  %v7027_v62 = vmul.f32 %v11712_v55, %v15575_v29  ;;  %v7029_v30 = vmul.f32 %v11714_v5, %v18781_v22  ;;  %v16074_v12 = vpop.permute.xlu0 %7654 }
0x1028   : > { %18783 = vst [vmem:[#allocation23_spill] sm:$0xff] %v16074_v12 }
0x1029   : > { %v7067_v29 = vmul.f32 %v15613_v43, %v7029_v30 }
0x102b   : > { %8737 = vperm.xlu1 %11031, %v15973_v0   ;;  %v16055_v1 = vpop.permute.xlu1 %8159  ;;  %v7105_v5 = vadd.f32 %v15629_v4, %v7067_v29  ;;  %v16086_v12 = vpop.permute.xlu0 %7669 }
0x102c   : > { %18778 = vst [vmem:[#allocation82_spill] sm:$0xff] %v16055_v1  ;;  %v11716_v45 = vpop.eup %11715  ;;  %18785 = vst [vmem:[#allocation25_spill] sm:$0xff] %v16086_v12 }
0x102d   : > { %v7030_v33 = vmul.f32 %v11716_v45, %v15853_v36  ;;  %v7065_v45 = vmul.f32 %v15613_v43, %v7027_v62  ;;  %v10591_v62 = vpop.f32.mrf.mxu0 }
0x102f   : > { %11032 = vset.pattern.permute.xlu1 %v18751_v17  ;;  %v16068_v9 = vpop.permute.xlu1 %8163  ;;  %v7068_v36 = vmul.f32 %v15613_v43, %v7030_v33 }
0x1030   : > { %18782 = vst [vmem:[#allocation26_spill] sm:$0xff] %v16068_v9  ;;  %v11718_v0 = vpop.eup %11717  ;;  %7619 = vperm.xlu1 %11032, %v16063_v56  }
0x1031   : > { %v7028_v3 = vmul.f32 %v11718_v0, %v15863_v11  ;;  %v7106_v55 = vadd.f32 %v15629_v4, %v7068_v36  ;;  %v7103_v11 = vadd.f32 %v15629_v4, %v7065_v45  ;;  %v7228_v36 = vpop.f32.mrf.mxu0 }
0x1033   : > { %v7066_v27 = vmul.f32 %v15613_v43, %v7028_v3  ;;  %v18786_v3 = vmov 1   ;;  %v7122_v30 = vpack.c.bf16 %v7106_v55, %v7105_v5  ;;  %v10592_v45 = vpop.f32.mrf.mxu0 }
0x1034   : > { %11033 = vset.pattern.permute.xlu1 %v18752_v57  ;;  %v16079_v22 = vpop.permute.xlu1 %7569 }
0x1035   : > { %18784 = vst [vmem:[#allocation27_spill] sm:$0xff] %v16079_v22  ;;  %7876 = vperm.xlu1 %11033, %v15748_v24   ;;  %v7104_v33 = vadd.f32 %v15629_v4, %v7066_v27  ;;  %v16097_v4 = vpop.permute.xlu0 %8685  ;;  %v7231_v55 = vpop.f32.mrf.mxu0  ;;  %v16179_v22 = vld [vmem:[%s18242_s10 + $0x7] ss:$0 sm:$0xff] }
0x1036   : > { %18789 = vst [vmem:[#allocation31_spill] sm:$0xff] %v16097_v4  ;;  %v16132_v4 = vadd.f32 %v10592_v45, %v16129_v54  ;;  %v16137_v21 = vadd.f32 %v16129_v54, %v7231_v55 }
0x1037   : > { %v7121_v0 = vpack.c.bf16 %v7104_v33, %v7103_v11  ;;  %v10595_v33 = vpop.f32.mrf.mxu0 }
0x1038   : > { %v18803_v28 = vrot.slane %v16132_v4, 7 }
0x1039   : > { %11034 = vset.pattern.permute.xlu1 %v18786_v3  ;;  %v16089_v43 = vpop.permute.xlu1 %8167  ;;  %10617 = vmatprep.mubr.msk.bf16.mxu0 %vm538_vm0, %v7121_v0  ;;  %v16103_v11 = vpop.permute.xlu0 %8693 }
0x103a   : > { %18787 = vst [vmem:[#allocation30_spill] sm:$0xff] %v16089_v43  ;;  %8741 = vperm.xlu1 %11034, %v15731_v61   ;;  %10618 = vmatmul.mubr.msk.bf16.gmra.mxu0 %vm538_vm0, %v7122_v30  ;;  %v7244_v0 = vpop.f32.mrf.mxu0 }
0x103b   : > { %v16170_v45 = vadd.f32 %v16129_v54, %v7244_v0 }
0x103c   : > { %v10596_v12 = vpop.f32.mrf.mxu0 }
0x103d   : > { %v16114_v5 = vpop.permute.xlu0 %8717  ;;  %v16188_v0 = vadd.f32 %v10596_v12, %v16129_v54  ;;  %v18817_v34 = vrot.slane %v16170_v45, 7 }
0x103e   : > { %8745 = vperm.xlu1 %11034, %v15670_v47   ;;  %v16095_v27 = vpop.permute.xlu1 %8701  ;;  %v16112_v47 = vld [vmem:[%s18246_s14 + $0xa8] sm:$0xff]  ;;  %18793 = vst [vmem:[#allocation13_spill] sm:$0xff] %v16114_v5  ;;  %v7247_v46 = vpop.f32.mrf.mxu0 }
0x103f   : > { %18788 = vst [vmem:[#allocation28_spill] sm:$0xff] %v16095_v27  ;;  %18792 = vst [vmem:[#allocation17_spill] sm:$0xff] %v16112_v47  ;;  %v16153_v55 = vadd.f32 %v16129_v54, %v7247_v46  ;;  %v16162_v27 = vld [vmem:[%s18242_s10 + $0x1] ss:$0 sm:$0xff] }
0x1040   : > { %v8011_v7 = vmul.f32 %v16162_v27, %v16137_v21 }
0x1041   : > { %v16120_v49 = vpop.permute.xlu0 %8725  ;;  %v18810_v53 = vrot.slane %v16153_v55, 7 }
0x1042   : > { %11035 = vset.pattern.permute.xlu1 %v18752_v57  ;;  %v16100_v29 = vpop.permute.xlu1 %8705  ;;  %18795 = vst [vmem:[#allocation21_spill] sm:$0xff] %v16120_v49  ;;  %v16148_v49 = vadd.f32 %v16129_v54, %v7228_v36  ;;  %v16167_v36 = vld [vmem:[%s18242_s10 + $0x4] ss:$0 sm:$0xff] }
0x1043   : > { %18790 = vst [vmem:[#allocation29_spill] sm:$0xff] %v16100_v29  ;;  %7888 = vperm.xlu1 %11035, %v16063_v56  }
0x1044   : > { %18800 = vst [vmem:[#allocation32_spill] sm:$0xff] %v16148_v49  ;;  %v18377_v43 = vrot.slane %v16148_v49, 7  ;;  %v16222_v1 = vmul.f32 %v16167_v36, %v16148_v49 }
0x1046   : > { %18808 = vst [vmem:[#allocation76_spill] sm:$0xff] %v16222_v1  ;;  %v7715_v1 = vrot.slane %v16132_v4, 1 }
0x1047   : > { %11037 = vset.pattern.permute.xlu1 %v18753_v39  ;;  %v16106_v61 = vpop.permute.xlu1 %7579 }
0x1048   : > { %18791 = vst [vmem:[#allocation8_spill] sm:$0xff] %v16106_v61  ;;  %8211 = vperm.xlu1 %11037, %v15748_v24   ;;  %v18814_v61 = vrot.slane %v16148_v49, 1 }
0x104c   : > { %11038 = vset.pattern.permute.xlu1 %v18751_v17  ;;  %v16117_v30 = vpop.permute.xlu1 %7844 }
0x104d   : > { %18794 = vst [vmem:[#allocation12_spill] sm:$0xff] %v16117_v30  ;;  %7624 = vperm.xlu1 %11038, %v16112_v47   ;;  %v16145_v30 = vpop.f32.mrf.mxu0 }
0x104e   : > { %18799 = vst [vmem:[#allocation34_spill] sm:$0xff] %v16145_v30 }
0x104f   : > { %v16172_v46 = vpop.f32.mrf.mxu0 }
0x1050   : > { %18802 = vst [vmem:[#allocation33_spill] sm:$0xff] %v16172_v46 }
0x1051   : > { %11039 = vset.pattern.permute.xlu1 %v18753_v39  ;;  %v16123_v42 = vpop.permute.xlu1 %8709  ;;  %v16215_v9 = vpop.f32.mrf.mxu0 }
0x1052   : > { %18796 = vst [vmem:[#allocation18_spill] sm:$0xff] %v16123_v42  ;;  %8215 = vperm.xlu1 %11039, %v15860_v16   ;;  %v16141_v42 = vadd.f32 %v10591_v62, %v16129_v54  ;;  %v16143_v16 = vpop.permute.xlu0 %8749  ;;  %18806 = vst [vmem:[#allocation39_spill] sm:$0xff] %v16215_v9  ;;  %v7719_v9 = vrot.slane %v16153_v55, 1 }
0x1053   : > { %18798 = vst [vmem:[#allocation19_spill] sm:$0xff] %v16143_v16  ;;  %v16182_v16 = vadd.f32 %v10595_v33, %v16129_v54  ;;  %v16261_v51 = vpop.f32.mrf.mxu0 }
0x1054   : > { %v7425_v62 = vrot.slane %v16141_v42, 7  ;;  %v16199_v33 = vmul.f32 %v16162_v27, %v16141_v42  ;;  %18813 = vst [vmem:[#allocation88_spill] sm:$0xff] %v16261_v51  ;;  %v18816_v51 = vrot.slane %v16188_v0, 1 }
0x1055   : > { %v16134_v5 = vpop.permute.xlu1 %8713  ;;  %v7433_v32 = vrot.slane %v16182_v16, 7  ;;  %v7721_v44 = vrot.slane %v16182_v16, 1 }
0x1056   : > { %18797 = vst [vmem:[#allocation24_spill] sm:$0xff] %v16134_v5  ;;  %8219 = vperm.xlu1 %11039, %v15762_v20   ;;  %v7423_v5 = vrot.slane %v16137_v21, 7  ;;  %v7428_v15 = vsel %vm7421_vm5, %v7425_v62, %v18803_v28  ;;  %v16190_v18 = vpop.permute.xlu0 %8757  ;;  %v16203_v28 = vmul.f32 %v16167_v36, %v16141_v42 }
0x1057   : > { %18804 = vst [vmem:[#allocation38_spill] sm:$0xff] %v16190_v18  ;;  %v16208_v18 = vmul.f32 %v16162_v27, %v16148_v49  ;;  %v16225_v12 = vmul.f32 %v15937_v14, %v7428_v15  ;;  %v16240_v14 = vmul.f32 %v16179_v22, %v16148_v49  ;;  %v8553_v15 = vmul.f32 %v16179_v22, %v16132_v4 }
0x1058   : > { %v7424_v19 = vsel %vm7421_vm5, %v18377_v43, %v7423_v5  ;;  %v16213_v43 = vmul.f32 %v16179_v22, %v16141_v42  ;;  %v7434_v48 = vsel %vm7421_vm5, %v18810_v53, %v7433_v32  ;;  %v7724_v50 = vsel %vm7709_vm6, %v7721_v44, %v18816_v51 }
0x1059   : > { %18805 = vst [vmem:[#allocation36_spill] sm:$0xff] %v16208_v18  ;;  %v7711_v18 = vrot.slane %v16137_v21, 1  ;;  %18809 = vst [vmem:[#allocation86_spill] sm:$0xff] %v16240_v14  ;;  %v7426_v14 = vsel %vm7421_vm5, %v7423_v5, %v7425_v62  ;;  %v8345_v5 = vmul.f32 %v16167_v36, %v16137_v21  ;;  %v16286_v49 = vmul.f32 %v15984_v41, %v7434_v48 }
0x105a   : > { %11040 = vset.pattern.permute.xlu1 %v18786_v3  ;;  %v16156_v29 = vpop.permute.xlu1 %7856  ;;  %v16255_v6 = vpop.permute.xlu0 %8781  ;;  %v18388_v41 = vrot.slane %v16188_v0, 7 }
0x105b   : > { %18801 = vst [vmem:[#allocation35_spill] sm:$0xff] %v16156_v29  ;;  %8753 = vperm.xlu1 %11040, %v15748_v24   ;;  %v7713_v24 = vrot.slane %v16141_v42, 1  ;;  %v16233_v42 = vld [vmem:[%s18242_s10 + $0x6] ss:$0 sm:$0xff]  ;;  %18811 = vst [vmem:[#allocation87_spill] sm:$0xff] %v16255_v6  ;;  %v18812_v29 = vrot.slane %v16170_v45, 1  ;;  %v7712_v30 = vsel %vm7709_vm6, %v18814_v61, %v7711_v18 }
0x105c   : > { %v8516_v53 = vmul.f32 %v16233_v42, %v16225_v12  ;;  %v16311_v56 = vmul.f32 %v15921_v40, %v7712_v30  ;;  %v16331_v30 = vld [vmem:[%s18242_s10 + $0x8] ss:$0 sm:$0xff] }
0x105d   : > { %v7718_v46 = vsel %vm7709_vm6, %v7715_v1, %v18812_v29  ;;  %v16278_v29 = vld [vmem:[%s18242_s10] ss:$0 sm:$0xff]  ;;  %v7714_v62 = vsel %vm7709_vm6, %v7711_v18, %v7713_v24  ;;  %v8551_v18 = vmul.f32 %v16179_v22, %v16137_v21  ;;  %v16308_v21 = vpop.f32.mrf.mxu0 }
0x105e   : > { %v7936_v51 = vmul.f32 %v15949_v23, %v7714_v62  ;;  %18819 = vst [vmem:[#allocation90_spill] sm:$0xff] %v16311_v56  ;;  %v8016_v23 = vmul.f32 %v16162_v27, %v16182_v16  ;;  %v7979_v40 = vmul.f32 %v16278_v29, %v16286_v49 }
0x105f   : > { %11041 = vset.pattern.permute.xlu1 %v18751_v17  ;;  %v16218_v25 = vpop.permute.xlu1 %8179  ;;  %v16298_v17 = vmul.f32 %v15956_v10, %v7718_v46  ;;  %v16319_v10 = vmul.f32 %v16024_v38, %v7724_v50  ;;  %v8585_v46 = vadd.f32 %v8553_v15, %v8516_v53  ;;  %v18822_v15 = vrot.slane %v16170_v45, 1  ;;  %v16350_v62 = vpop.f32.mrf.mxu0 }
0x1060   : > { %18807 = vst [vmem:[#allocation37_spill] sm:$0xff] %v16218_v25  ;;  %7634 = vperm.xlu1 %11041, %v15961_v13   ;;  %v7678_v25 = vmul.f32 %v15909_v37, %v7424_v19  ;;  %v16251_v37 = vmul.f32 %v16167_v36, %v16132_v4  ;;  %v16271_v19 = vld [vmem:[%s18242_s10 + $0x3] ss:$0 sm:$0xff]  ;;  %v7436_v53 = vsel %vm7421_vm5, %v7433_v32, %v18388_v41 }
0x1061   : > { %v8048_v32 = vadd.f32 %v8016_v23, %v7979_v40  ;;  %v16382_v40 = vmul.f32 %v16011_v59, %v7436_v53 }
0x1062   : > { %v8308_v61 = vmul.f32 %v16271_v19, %v7678_v25  ;;  %v7974_v2 = vmul.f32 %v16278_v29, %v7678_v25  ;;  %v8514_v48 = vmul.f32 %v16233_v42, %v7678_v25  ;;  %v7716_v25 = vsel %vm7709_vm6, %v7713_v24, %v7715_v1 }
0x1063   : > { %v8622_v1 = vmul.f32 %v16331_v30, %v16298_v17 }
0x1064   : > { %11042 = vset.pattern.permute.xlu1 %v18752_v57  ;;  %v16282_v6 = vpop.permute.xlu1 %7584 }
0x1065   : > { %18815 = vst [vmem:[#allocation89_spill] sm:$0xff] %v16282_v6  ;;  %7892 = vperm.xlu1 %11042, %v16112_v47   ;;  %v7679_v6 = vmul.f32 %v15915_v8, %v7426_v14  ;;  %v18818_v47 = vrot.slane %v16132_v4, 7  ;;  %v16316_v8 = vld [vmem:[%s18242_s10 + $0x2] ss:$0 sm:$0xff]  ;;  %v7817_v14 = vpop.permute.xlu0 %7816 }
0x1067   : > { %v7430_v60 = vsel %vm7421_vm5, %v18818_v47, %v18817_v34  ;;  %v16324_v34 = vadd.f32 %v8345_v5, %v8308_v61  ;;  %v8043_v47 = vadd.f32 %v8011_v7, %v7974_v2  ;;  %v7975_v38 = vmul.f32 %v16278_v29, %v7679_v6 }
0x1068   : > { %v7681_v24 = vmul.f32 %v15943_v58, %v7430_v60  ;;  %v7720_v2 = vsel %vm7709_vm6, %v18822_v15, %v7719_v9  ;;  %v16343_v7 = vadd.f32 %v8551_v18, %v8514_v48  ;;  %v8309_v5 = vmul.f32 %v16271_v19, %v7679_v6  ;;  %v16355_v58 = vld [vmem:[%s18242_s10 + $0x5] ss:$0 sm:$0xff] }
0x1069   : > { %18820 = vst [vmem:[#allocation91_spill] sm:$0xff] %v16324_v34  ;;  %7896 = vperm.xlu1 %11042, %v15777_v63   ;;  %v16334_v50 = vpop.permute.xlu1 %8183  ;;  %v8080_v63 = vmul.f32 %v16316_v8, %v7936_v51  ;;  %v7722_v60 = vsel %vm7709_vm6, %v7719_v9, %v7721_v44  ;;  %v8085_v61 = vmul.f32 %v16316_v8, %v16319_v10 }
0x106a   : > { %18821 = vst [vmem:[#allocation92_spill] sm:$0xff] %v16334_v50  ;;  %18823 = vst [vmem:[#allocation93_spill] sm:$0xff] %v16343_v7  ;;  %v8515_v18 = vmul.f32 %v16233_v42, %v7679_v6  ;;  %v7937_v48 = vmul.f32 %v7817_v14, %v7716_v25  ;;  %v16363_v15 = vmul.f32 %v16355_v58, %v16319_v10 }
0x106b   : > { %v8112_v41 = vadd.f32 %v8080_v63, %v8043_v47  ;;  %v7939_v34 = vmul.f32 %v15968_v26, %v7720_v2  ;;  %v8044_v9 = vadd.f32 %v16199_v33, %v7975_v38  ;;  %v8654_v44 = vadd.f32 %v8622_v1, %v8585_v46  ;;  %v10604_v33 = vpop.f32.mrf.mxu0 }
0x106c   : > { %v8310_v50 = vmul.f32 %v16271_v19, %v16225_v12  ;;  %v8517_v6 = vmul.f32 %v16233_v42, %v7681_v24  ;;  %v8378_v23 = vadd.f32 %v16203_v28, %v8309_v5  ;;  %v16376_v25 = vmul.f32 %v16355_v58, %v7936_v51 }
0x106d   : > { %11043 = vset.pattern.permute.xlu1 %v18786_v3  ;;  %v16367_v7 = vpop.permute.xlu1 %8187  ;;  %v16379_v26 = vmul.f32 %v16331_v30, %v7936_v51  ;;  %v8584_v46 = vadd.f32 %v16213_v43, %v8515_v18  ;;  %v8415_v47 = vmul.f32 %v16355_v58, %v7937_v48  ;;  %v8554_v14 = vmul.f32 %v16179_v22, %v16170_v45 }
0x106e   : > { %18824 = vst [vmem:[#allocation94_spill] sm:$0xff] %v16367_v7  ;;  %8761 = vperm.xlu1 %11043, %v15762_v20   ;;  %18825 = vst [vmem:[#allocation95_spill] sm:$0xff] %v16376_v25  ;;  %v18827_v20 = vrot.slane %v16153_v55, 7  ;;  %v18828_v28 = vrot.slane %v16170_v45, 7  ;;  %v16393_v1 = vadd.f32 %v8085_v61, %v8048_v32  ;;  %v8272_v51 = vmul.f32 %v15993_v31, %v8112_v41  ;;  %v7279_v32 = vpop.f32.mrf.mxu0 }
0x106f   : > { %18826 = vst [vmem:[#allocation96_spill] sm:$0xff] %v16379_v26  ;;  %v8416_v59 = vmul.f32 %v16355_v58, %v16298_v17  ;;  %v8623_v43 = vmul.f32 %v16331_v30, %v7939_v34  ;;  %v8814_v2 = vmul.f32 %v16103_v11, %v8654_v44  ;;  %v8379_v53 = vadd.f32 %v16251_v37, %v8310_v50 }
0x1070   : > { %v7432_v38 = vsel %vm7421_vm5, %v18828_v28, %v18827_v20  ;;  %v8586_v63 = vadd.f32 %v8554_v14, %v8517_v6  ;;  %v7976_v5 = vmul.f32 %v16278_v29, %v16225_v12  ;;  %v8081_v61 = vmul.f32 %v16316_v8, %v7937_v48 }
0x1071   : > { %v7980_v31 = vmul.f32 %v16278_v29, %v16382_v40  ;;  %v8311_v41 = vmul.f32 %v16271_v19, %v7681_v24  ;;  %v7682_v11 = vmul.f32 %v15986_v52, %v7432_v38  ;;  %v8447_v37 = vadd.f32 %v8415_v47, %v8378_v23 }
0x1072   : > { %11044 = vset.pattern.permute.xlu1 %v18752_v57  ;;  %v16404_v18 = vpop.permute.xlu1 %8721  ;;  %v8017_v12 = vmul.f32 %v16162_v27, %v16188_v0  ;;  %v8013_v50 = vmul.f32 %v16162_v27, %v16132_v4  ;;  %v8082_v44 = vmul.f32 %v16316_v8, %v16298_v17  ;;  %v8621_v6 = vmul.f32 %v16331_v30, %v7937_v48 }
0x1073   : > { %18829 = vst [vmem:[#allocation97_spill] sm:$0xff] %v16404_v18  ;;  %7900 = vperm.xlu1 %11044, %v15961_v13   ;;  %v8448_v14 = vadd.f32 %v8416_v59, %v8379_v53  ;;  %v16419_v20 = vadd.f32 %v8623_v43, %v8586_v63  ;;  %v8348_v52 = vmul.f32 %v16167_v36, %v16170_v45 }
0x1074   : > { %v8045_v28 = vadd.f32 %v8013_v50, %v7976_v5  ;;  %v8417_v13 = vmul.f32 %v16355_v58, %v7939_v34  ;;  %v16425_v23 = vadd.f32 %v16129_v54, %v7279_v32  ;;  %v7977_v47 = vmul.f32 %v16278_v29, %v7681_v24 }
0x1075   : > { %v8113_v4 = vadd.f32 %v8081_v61, %v8044_v9  ;;  %v16428_v38 = vadd.f32 %v8017_v12, %v7980_v31  ;;  %v8380_v17 = vadd.f32 %v8348_v52, %v8311_v41  ;;  %v8312_v48 = vmul.f32 %v16271_v19, %v7682_v11  ;;  %v18830_v9 = vld [vmem:[#allocation83_spill] sm:$0xff]  ;;  %v18833_v52 = vld [vmem:[#allocation17_spill] sm:$0xff] }
0x1076   : > { %v8479_v43 = vadd.f32 %v8447_v37, %v8272_v51  ;;  %v16436_v53 = vadd.f32 %v16308_v21, %v16129_v54  ;;  %v7940_v63 = vmul.f32 %v16018_v35, %v7722_v60  ;;  %v8014_v24 = vmul.f32 %v16162_v27, %v16170_v45  ;;  %v18831_v60 = vld [vmem:[#allocation66_spill] sm:$0xff]  ;;  %v16453_v37 = vpop.f32.mrf.mxu0 }
0x1077   : > { %11045 = vset.pattern.permute.xlu1 %v18753_v39  ;;  %v16432_v59 = vpop.permute.xlu1 %7594  ;;  %v8653_v5 = vadd.f32 %v8621_v6, %v8584_v46  ;;  %v8083_v61 = vmul.f32 %v16316_v8, %v7939_v34  ;;  %v8349_v31 = vmul.f32 %v16167_v36, %v16153_v55  ;;  %v7978_v41 = vmul.f32 %v16278_v29, %v7682_v11 }
0x1078   : > { %8223 = vperm.xlu1 %11045, %v18830_v9   ;;  %v16447_v51 = vadd.f32 %v10604_v33, %v16129_v54  ;;  %v16449_v21 = vadd.f32 %v8082_v44, %v8045_v28  ;;  %v8046_v32 = vadd.f32 %v8014_v24, %v7977_v47  ;;  %v18389_v35 = vrot.slane %v16425_v23, 7  ;;  %18832 = vst [vmem:[#allocation83_spill] sm:$0xff] %v16453_v37  ;;  %v16469_v47 = vld [vmem:[%s18243_s11] ss:$0 sm:$0xff] }
0x1079   : > { %v8273_v45 = vmul.f32 %v18831_v60, %v8113_v4  ;;  %v8381_v46 = vadd.f32 %v8349_v31, %v8312_v48  ;;  %v8015_v34 = vmul.f32 %v16162_v27, %v16153_v55  ;;  %v8313_v12 = vmul.f32 %v16271_v19, %v16286_v49  ;;  %v18834_v4 = vld [vmem:[#allocation67_spill] sm:$0xff] }
0x107a   : > { %v8846_v50 = vadd.f32 %v8814_v2, %v8479_v43  ;;  %v16459_v6 = vadd.f32 %v8417_v13, %v8380_v17  ;;  %v8418_v33 = vmul.f32 %v16355_v58, %v7940_v63  ;;  %v7449_v44 = vrot.slane %v16436_v53, 7 }
0x107b   : > { %v16472_v48 = vmul.f32 %v18834_v4, %v8653_v5  ;;  %v16474_v24 = vadd.f32 %v8083_v61, %v8046_v32  ;;  %v8047_v2 = vadd.f32 %v8015_v34, %v7978_v41  ;;  %v8350_v13 = vmul.f32 %v16167_v36, %v16182_v16  ;;  %v7292_v41 = vpop.f32.mrf.mxu0 }
0x107c   : > { %8227 = vperm.xlu1 %11045, %v18833_v52   ;;  %v16464_v28 = vpop.permute.xlu1 %7860  ;;  %v8084_v17 = vmul.f32 %v16316_v8, %v7940_v63  ;;  %v8518_v43 = vmul.f32 %v16233_v42, %v7682_v11  ;;  %v7450_v31 = vsel %vm7421_vm5, %v18389_v35, %v7449_v44  ;;  %v7739_v60 = vrot.slane %v16447_v51, 1 }
0x107d   : > { %18835 = vst [vmem:[#allocation66_spill] sm:$0xff] %v16472_v48  ;;  %18836 = vst [vmem:[#allocation17_spill] sm:$0xff] %v16474_v24  ;;  %v16484_v25 = vadd.f32 %v8448_v14, %v8273_v45  ;;  %v16488_v5 = vadd.f32 %v16129_v54, %v16350_v62  ;;  %v16490_v61 = vadd.f32 %v8418_v33, %v8381_v46  ;;  %v7737_v35 = vrot.slane %v16436_v53, 1  ;;  %v18840_v45 = vld [vmem:[#allocation39_spill] sm:$0xff]  ;;  %v18843_v33 = vld [vmem:[#allocation14_spill] sm:$0xff] }
0x107e   : > { %v8382_v32 = vadd.f32 %v8350_v13, %v8313_v12  ;;  %v8885_v34 = vadd.f32 %v16469_v47, %v8846_v50  ;;  %v8555_v11 = vmul.f32 %v16179_v22, %v16153_v55  ;;  %v18839_v48 = vmov 2   ;;  %v18844_v13 = vld [vmem:[#allocation75_spill] sm:$0xff]  ;;  %v18857_v24 = vld [vmem:[#allocation33_spill] sm:$0xff] }
0x107f   : > { %18837 = vst [vmem:[#allocation67_spill] sm:$0xff] %v16488_v5  ;;  %18838 = vst [vmem:[#allocation98_spill] sm:$0xff] %v16490_v61  ;;  %v16500_v62 = vadd.f32 %v18840_v45, %v16129_v54  ;;  %v16502_v46 = vadd.f32 %v8084_v17, %v8047_v2  ;;  %v8624_v12 = vmul.f32 %v16331_v30, %v7940_v63  ;;  %v7445_v2 = vrot.slane %v16488_v5, 7 }
0x1080   : > { %11046 = vset.pattern.permute.xlu1 %v18839_v48  ;;  %v7865_v14 = vpop.permute.xlu1 %7864  ;;  %v16506_v50 = vmul.f32 %v18843_v33, %v7450_v31  ;;  %v16510_v55 = vadd.f32 %v16129_v54, %v7292_v41  ;;  %v8587_v4 = vadd.f32 %v8555_v11, %v8518_v43  ;;  %v8519_v26 = vmul.f32 %v16233_v42, %v16286_v49 }
0x1081   : > { %18841 = vst [vmem:[#allocation39_spill] sm:$0xff] %v16500_v62  ;;  %18842 = vst [vmem:[#allocation99_spill] sm:$0xff] %v16502_v46  ;;  %7649 = vperm.xlu1 %11046, %v18844_v13   ;;  %v7740_v7 = vsel %vm7709_vm6, %v7737_v35, %v7739_v60  ;;  %v16516_v45 = vadd.f32 %v16363_v15, %v8382_v32  ;;  %v8556_v63 = vmul.f32 %v16179_v22, %v16182_v16 }
0x1082   : > { %v16521_v17 = vmul.f32 %v7865_v14, %v7740_v7  ;;  %v16523_v31 = vmul.f32 0.5, %v8885_v34  ;;  %v8625_v43 = vmul.f32 %v16331_v30, %v16319_v10  ;;  %v8520_v49 = vmul.f32 %v16233_v42, %v16382_v40 }
0x1083   : > { %18845 = vst [vmem:[#allocation14_spill] sm:$0xff] %v16516_v45  ;;  %v18847_v41 = vrot.slane %v16447_v51, 7  ;;  %v7443_v32 = vrot.slane %v16500_v62, 7  ;;  %v7735_v16 = vrot.slane %v16425_v23, 1  ;;  %v7987_v7 = vmul.f32 %v16278_v29, %v16506_v50 }
0x1084   : > { %18846 = vst [vmem:[#allocation75_spill] sm:$0xff] %v16523_v31  ;;  %v8949_v14 = vmul.f32 0.70710677, %v8885_v34  ;;  %v16542_v33 = vadd.f32 %v8624_v12, %v8587_v4  ;;  %v8588_v13 = vadd.f32 %v8556_v63, %v8519_v26  ;;  %v8093_v34 = vmul.f32 %v16316_v8, %v16521_v17  ;;  %v18850_v26 = vld [vmem:[#allocation34_spill] sm:$0xff]  ;;  %v16561_v12 = vpop.permute.xlu0 %7840  ;;  %v18852_v63 = vld [vmem:[#allocation8_spill] sm:$0xff]  ;;  %v18860_v31 = vld [vmem:[#allocation89_spill] sm:$0xff] }
0x1085   : > { %v7452_v15 = vsel %vm7421_vm5, %v7449_v44, %v18847_v41  ;;  %11047 = vset.pattern.permute.xlu1 %v18753_v39  ;;  %v16540_v10 = vpop.permute.xlu1 %8729  ;;  %v16547_v44 = vld [vmem:[%s18246_s14 + $0xb0] sm:$0xff]  ;;  %v7733_v41 = vrot.slane %v16488_v5, 1  ;;  %v16559_v4 = vadd.f32 %v18850_v26, %v16129_v54  ;;  %18851 = vst [vmem:[#allocation34_spill] sm:$0xff] %v16561_v12  ;;  %v18856_v61 = vrot.slane %v16425_v23, 7 }
0x1086   : > { %v16535_v11 = vmul.f32 %v16432_v59, %v7452_v15  ;;  %18848 = vst [vmem:[#allocation100_spill] sm:$0xff] %v16540_v10  ;;  %18849 = vst [vmem:[#allocation101_spill] sm:$0xff] %v16542_v33  ;;  %8231 = vperm.xlu1 %11047, %v16547_v44   ;;  %v7446_v15 = vsel %vm7421_vm5, %v7443_v32, %v7445_v2  ;;  %v8024_v10 = vmul.f32 %v16162_v27, %v16436_v53  ;;  %v18854_v33 = vld [vmem:[#allocation61_spill] sm:$0xff] }
0x1087   : > { %v16564_v18 = vmul.f32 %v18852_v63, %v7446_v15  ;;  %v8557_v59 = vmul.f32 %v16179_v22, %v16188_v0  ;;  %v16570_v45 = vmul.f32 %v18854_v33, %v16393_v1  ;;  %v7736_v46 = vsel %vm7709_vm6, %v7733_v41, %v7735_v16  ;;  %v18858_v63 = vld [vmem:[#allocation35_spill] sm:$0xff] }
0x1088   : > { %v7448_v39 = vsel %vm7421_vm5, %v7445_v2, %v18856_v61  ;;  %v8322_v26 = vmul.f32 %v16271_v19, %v16535_v11  ;;  %v8056_v12 = vadd.f32 %v8024_v10, %v7987_v7  ;;  %v16580_v15 = vadd.f32 %v16129_v54, %v18857_v24 }
0x1089   : > { %18853 = vst [vmem:[#allocation8_spill] sm:$0xff] %v16564_v18  ;;  %18855 = vst [vmem:[#allocation61_spill] sm:$0xff] %v16570_v45  ;;  %v16583_v37 = vmul.f32 %v18858_v63, %v7736_v46  ;;  %v16586_v1 = vmul.f32 %v18860_v31, %v7448_v39  ;;  %v18861_v45 = vrot.slane %v16510_v55, 1  ;;  %v8359_v2 = vmul.f32 %v16167_v36, %v16447_v51 }
0x108a   : > { %11048 = vset.pattern.permute.xlu1 %v18786_v3  ;;  %v7869_v33 = vpop.permute.xlu1 %7868  ;;  %v7738_v7 = vsel %vm7709_vm6, %v7735_v16, %v7737_v35  ;;  %v8125_v24 = vadd.f32 %v8093_v34, %v8056_v12  ;;  %11719 = verf.f32 %v8949_v14  ;;  %v16598_v39 = vadd.f32 %v8625_v43, %v8588_v13  ;;  %v16612_v43 = vpop.permute.xlu0 %7848 }
0x108b   : > { %18859 = vst [vmem:[#allocation33_spill] sm:$0xff] %v16583_v37  ;;  %v7742_v61 = vsel %vm7709_vm6, %v7739_v60, %v18861_v45  ;;  %8765 = vperm.xlu1 %11048, %v18830_v9   ;;  %v7985_v46 = vmul.f32 %v16278_v29, %v16564_v18  ;;  %v16603_v31 = vmul.f32 %v16464_v28, %v7738_v7  ;;  %v18391_v60 = vrot.slane %v16559_v4, 7  ;;  %v18863_v9 = vld [vmem:[#allocation22_spill] sm:$0xff] }
0x108c   : > { %v16595_v10 = vmul.f32 %v7869_v33, %v7742_v61  ;;  %18862 = vst [vmem:[#allocation35_spill] sm:$0xff] %v16598_v39  ;;  %v8314_v45 = vmul.f32 %v16271_v19, %v16382_v40  ;;  %v8391_v35 = vadd.f32 %v8359_v2, %v8322_v26  ;;  %v8815_v14 = vmul.f32 %v18863_v9, %v16419_v20  ;;  %v18864_v20 = vld [vmem:[#allocation62_spill] sm:$0xff] }
0x108d   : > { %v8320_v13 = vmul.f32 %v16271_v19, %v16586_v1  ;;  %v8022_v28 = vmul.f32 %v16162_v27, %v16488_v5  ;;  %v8091_v34 = vmul.f32 %v16316_v8, %v16583_v37  ;;  %v7731_v12 = vrot.slane %v16500_v62, 1 }
0x108e   : > { %v8428_v16 = vmul.f32 %v16355_v58, %v16595_v10  ;;  %v8285_v63 = vmul.f32 %v18864_v20, %v8125_v24  ;;  %v7444_v61 = vsel %vm7421_vm5, %v18391_v60, %v7443_v32  ;;  %v8426_v2 = vmul.f32 %v16355_v58, %v16603_v31 }
0x108f   : > { %8769 = vperm.xlu1 %11048, %v18833_v52   ;;  %v16623_v26 = vpop.permute.xlu1 %8191  ;;  %v8054_v7 = vadd.f32 %v8022_v28, %v7985_v46  ;;  %v8357_v9 = vmul.f32 %v16167_v36, %v16425_v23  ;;  %v16633_v40 = vadd.f32 %v8557_v59, %v8520_v49  ;;  %v8351_v52 = vmul.f32 %v16167_v36, %v16188_v0  ;;  %v18868_v49 = vld [vmem:[#allocation69_spill] sm:$0xff] }
0x1090   : > { %v8460_v33 = vadd.f32 %v8428_v16, %v8391_v35  ;;  %v16641_v24 = vmul.f32 %v16316_v8, %v16311_v56  ;;  %v7734_v35 = vsel %vm7709_vm6, %v7731_v12, %v7733_v41  ;;  %v7853_v16 = vpop.permute.xlu0 %7852  ;;  %v8847_v20 = vadd.f32 %v8815_v14, %v16484_v25  ;;  %v11071_v41 = vld [vmem:[%s18244_s12 + $0x38] sm:$0xff]   ;;  %v11072_v25 = vld [vmem:[%s18244_s12 + $0x30] sm:$0xff]  }
0x1091   : > { %18865 = vst [vmem:[#allocation89_spill] sm:$0xff] %v16633_v40  ;;  %v8123_v46 = vadd.f32 %v8091_v34, %v8054_v7  ;;  %v8389_v28 = vadd.f32 %v8357_v9, %v8320_v13  ;;  %v16647_v59 = vmul.f32 %v18868_v49, %v7444_v61  ;;  %v16649_v60 = vadd.f32 %v8351_v52, %v8314_v45  ;;  %v18875_v9 = vld [vmem:[#allocation20_spill] sm:$0xff]  ;;  %v16699_v52 = vpop.f32.mrf.mxu0 }
0x1092   : > { %v16637_v39 = vadd.f32 %v8460_v33, %v8285_v63  ;;  %18867 = vst [vmem:[#allocation62_spill] sm:$0xff] %v16641_v24  ;;  %v16653_v63 = vmul.f32 %v16167_v36, %v16559_v4  ;;  %v18872_v14 = vrot.slane %v16580_v15, 1  ;;  %v18873_v45 = vrot.slane %v16188_v0, 1  ;;  %10621 = vmatprep.subr.bf16.mxu1 %v11071_v41 }
0x1093   : > { %18869 = vst [vmem:[#allocation69_spill] sm:$0xff] %v16647_v59  ;;  %18870 = vst [vmem:[#allocation102_spill] sm:$0xff] %v16649_v60  ;;  %11049 = vset.pattern.permute.xlu1 %v18839_v48  ;;  %v8196_v33 = vpop.permute.xlu1 %8195  ;;  %v16669_v34 = vmul.f32 %v16162_v27, %v16559_v4  ;;  %v8458_v7 = vadd.f32 %v8426_v2, %v8389_v28  ;;  %v16675_v49 = vmul.f32 %v16167_v36, %v16580_v15 }
0x1094   : > { %18866 = vst [vmem:[#allocation22_spill] sm:$0xff] %v16637_v39  ;;  %18871 = vst [vmem:[#allocation103_spill] sm:$0xff] %v16653_v63  ;;  %v7726_v13 = vsel %vm7709_vm6, %v18873_v45, %v18872_v14  ;;  %v8283_v61 = vmul.f32 %v8196_v33, %v8123_v46  ;;  %7659 = vperm.xlu1 %11049, %v18875_v9   ;;  %v16677_v32 = vmul.f32 %v7853_v16, %v7734_v35  ;;  %v18878_v14 = vld [vmem:[#allocation88_spill] sm:$0xff] }
0x1095   : > { %18874 = vst [vmem:[#allocation104_spill] sm:$0xff] %v16669_v34  ;;  %18876 = vst [vmem:[#allocation20_spill] sm:$0xff] %v16675_v49  ;;  %v16681_v24 = vmul.f32 %v16179_v22, %v16580_v15  ;;  %v16685_v45 = vadd.f32 %v16129_v54, %v18878_v14  ;;  %v16689_v2 = vmul.f32 %v16162_v27, %v16580_v15  ;;  %10622 = vmatpush3.bf16.msra.mxu1 %v11071_v41  ;;  %v18880_v16 = vld [vmem:[#allocation16_spill] sm:$0xff] }
0x1096   : > { %v7986_v46 = vmul.f32 %v16278_v29, %v16586_v1  ;;  %v16693_v28 = vadd.f32 %v8458_v7, %v8283_v61  ;;  %v8886_v35 = vadd.f32 %v16469_v47, %v8847_v20  ;;  %v16697_v33 = vmul.f32 %v18880_v16, %v7726_v13  ;;  %18881 = vst [vmem:[#allocation16_spill] sm:$0xff] %v16699_v52  ;;  %v11073_v61 = vld [vmem:[%s18244_s12 + $0x28] sm:$0xff]  }
0x1097   : > { %18877 = vst [vmem:[#allocation105_spill] sm:$0xff] %v16681_v24  ;;  %18879 = vst [vmem:[#allocation88_spill] sm:$0xff] %v16689_v2  ;;  %v16703_v14 = vmul.f32 %v16179_v22, %v16559_v4  ;;  %v7984_v49 = vmul.f32 %v16278_v29, %v16647_v59  ;;  %10623 = vmatprep.subr.bf16.mxu1 %v11072_v25  ;;  %v16712_v20 = vmul.f32 %v16179_v22, %v16500_v62  ;;  %v11720_v56 = vpop.eup %11719 }
0x1098   : > { %11050 = vset.pattern.permute.xlu1 %v18752_v57  ;;  %v16715_v41 = vpop.permute.xlu1 %7609  ;;  %v8023_v13 = vmul.f32 %v16162_v27, %v16425_v23  ;;  %v8092_v7 = vmul.f32 %v16316_v8, %v16603_v31  ;;  %v8321_v16 = vmul.f32 %v16271_v19, %v16506_v50  ;;  %v18885_v2 = vrot.slane %v16580_v15, 7 }
0x1099   : > { %18882 = vst [vmem:[#allocation106_spill] sm:$0xff] %v16703_v14  ;;  %18883 = vst [vmem:[#allocation107_spill] sm:$0xff] %v16715_v41  ;;  %v18884_v14 = vrot.slane %v16559_v4, 1  ;;  %v18886_v63 = vrot.slane %v16188_v0, 7  ;;  %v8021_v60 = vmul.f32 %v16162_v27, %v16500_v62  ;;  %v8090_v40 = vmul.f32 %v16316_v8, %v16677_v32  ;;  %v16740_v41 = vld [vmem:[%s18246_s14 + $0xc8] sm:$0xff]  ;;  %10624 = vmatpush3.bf16.msra.mxu1 %v11072_v25  ;;  %v7295_v62 = vpop.f32.mrf.mxu0 }
0x109a   : > { %18888 = vst [vmem:[#allocation109_spill] sm:$0xff] %v16740_v41  ;;  %7908 = vperm.xlu1 %11050, %v16740_v41   ;;  %v8427_v0 = vmul.f32 %v16355_v58, %v16521_v17  ;;  %v8319_v39 = vmul.f32 %v16271_v19, %v16564_v18  ;;  %10625 = vmatprep.subr.bf16.mxu1 %v11073_v61 }
0x109b   : > { %v7732_v34 = vsel %vm7709_vm6, %v18884_v14, %v7731_v12  ;;  %v16731_v24 = vsel %vm7421_vm5, %v18886_v63, %v18885_v2  ;;  %v7439_v12 = vrot.slane %v16685_v45, 7  ;;  %v8055_v63 = vadd.f32 %v8023_v13, %v7986_v46 }
0x109c   : > { %18887 = vst [vmem:[#allocation108_spill] sm:$0xff] %v16731_v24  ;;  %v8358_v2 = vmul.f32 %v16167_v36, %v16436_v53  ;;  %v16748_v14 = vmul.f32 0.5, %v8886_v35  ;;  %v8526_v24 = vmul.f32 %v16233_v42, %v16586_v1  ;;  %v8053_v48 = vadd.f32 %v8021_v60, %v7984_v49  ;;  %v11074_v49 = vld [vmem:[%s18244_s12 + $0x20] sm:$0xff]  }
0x109d   : > { %v8086_v52 = vmul.f32 %v16316_v8, %v16697_v33  ;;  %v8356_v46 = vmul.f32 %v16167_v36, %v16488_v5  ;;  %v8124_v13 = vadd.f32 %v8092_v7, %v8055_v63  ;;  %v8425_v25 = vmul.f32 %v16355_v58, %v16583_v37  ;;  %v8200_v18 = vpop.permute.xlu1 %8199  ;;  %10626 = vmatpush3.bf16.msra.mxu1 %v11073_v61 }
0x109e   : > { %18889 = vst [vmem:[#allocation110_spill] sm:$0xff] %v16748_v14  ;;  %v8390_v41 = vadd.f32 %v8358_v2, %v8321_v16  ;;  %v8122_v14 = vadd.f32 %v8090_v40, %v8053_v48  ;;  %11051 = vset.pattern.permute.xlu1 %v18786_v3  ;;  %v8563_v1 = vmul.f32 %v16179_v22, %v16425_v23  ;;  %v8950_v5 = vmul.f32 0.70710677, %v8886_v35 }
0x109f   : > { %v8632_v60 = vmul.f32 %v16331_v30, %v16603_v31  ;;  %v16769_v7 = vadd.f32 %v16129_v54, %v7295_v62  ;;  %v8284_v16 = vmul.f32 %v8200_v18, %v8124_v13  ;;  %8773 = vperm.xlu1 %11051, %v16547_v44   ;;  %v8388_v40 = vadd.f32 %v8356_v46, %v8319_v39  ;;  %v16800_v46 = vpop.f32.mrf.mxu0 }
0x10a0   : > { %v8459_v63 = vadd.f32 %v8427_v0, %v8390_v41  ;;  %v8282_v48 = vmul.f32 %v16623_v26, %v8122_v14  ;;  %v8595_v23 = vadd.f32 %v8563_v1, %v8526_v24  ;;  %v8527_v31 = vmul.f32 %v16233_v42, %v16506_v50  ;;  %10627 = vmatprep.subr.bf16.mxu1 %v11074_v49  ;;  %v18891_v41 = vld [vmem:[#allocation82_spill] sm:$0xff]  ;;  %v11817_v14 = vld [vmem:[%s18246_s14 + $0xb8] sm:$0xff] }
0x10a1   : > { %v16777_v2 = vmul.f32 %v16355_v58, %v16697_v33  ;;  %v7945_v62 = vmul.f32 %v16612_v43, %v7732_v34  ;;  %v18890_v18 = vrot.slane %v16580_v15, 7  ;;  %v8457_v61 = vadd.f32 %v8425_v25, %v8388_v40  ;;  %10628 = vmatpush3.bf16.msra.mxu1 %v11074_v49  ;;  %v18894_v25 = vld [vmem:[#allocation68_spill] sm:$0xff] }
0x10a2   : > { %v16783_v44 = vadd.f32 %v8459_v63, %v8284_v16  ;;  %v8664_v26 = vadd.f32 %v8632_v60, %v8595_v23  ;;  %v8564_v39 = vmul.f32 %v16179_v22, %v16436_v53  ;;  %v8633_v50 = vmul.f32 %v16331_v30, %v16521_v17  ;;  %v8734_v53 = vpop.permute.xlu1 %8733 }
0x10a3   : > { %v7440_v35 = vsel %vm7421_vm5, %v18890_v18, %v7439_v12  ;;  %11721 = verf.f32 %v8950_v5  ;;  %v8118_v24 = vadd.f32 %v8086_v52, %v16428_v38  ;;  %v8274_v43 = vmul.f32 %v18891_v41, %v16449_v21  ;;  %8777 = vperm.xlu1 %11051, %v11817_v14  }
0x10a4   : > { %v18892_v34 = vrot.slane %v16559_v4, 7  ;;  %v8489_v5 = vadd.f32 %v8457_v61, %v8282_v48  ;;  %v18400_v38 = vrot.slane %v16769_v7, 7  ;;  %v8824_v17 = vmul.f32 %v8734_v53, %v8664_v26  ;;  %v18897_v48 = vld [vmem:[#allocation64_spill] sm:$0xff] }
0x10a5   : > { %v8596_v52 = vadd.f32 %v8564_v39, %v8527_v31  ;;  %v9013_v21 = vadd.f32 1.0, %v11720_v56  ;;  %v16804_v13 = vmul.f32 %v16316_v8, %v7945_v62  ;;  %v16808_v1 = vmul.f32 %v18894_v25, %v7440_v35  ;;  %v7308_v35 = vpop.f32.mrf.mxu0 }
0x10a6   : > { %v16795_v0 = vsel %vm7421_vm5, %v7439_v12, %v18892_v34  ;;  %v7453_v12 = vrot.slane %v16510_v55, 7  ;;  %v16811_v60 = vmul.f32 %v16355_v58, %v7945_v62  ;;  %v8524_v49 = vmul.f32 %v16233_v42, %v16647_v59  ;;  %v8738_v31 = vpop.permute.xlu1 %8737  ;;  %v18905_v34 = vld [vmem:[#allocation26_spill] sm:$0xff] }
0x10a7   : > { %18893 = vst [vmem:[#allocation82_spill] sm:$0xff] %v16804_v13  ;;  %18895 = vst [vmem:[#allocation68_spill] sm:$0xff] %v16808_v1  ;;  %v8856_v16 = vadd.f32 %v8824_v17, %v8489_v5  ;;  %v8665_v63 = vadd.f32 %v8633_v50, %v8596_v52  ;;  %v16816_v40 = vmul.f32 %v18897_v48, %v8118_v24  ;;  %11052 = vset.pattern.permute.xlu1 %v18752_v57  ;;  %v18903_v24 = vld [vmem:[#allocation83_spill] sm:$0xff]  ;;  %v18920_v13 = vld [vmem:[#allocation81_spill] sm:$0xff] }
0x10a8   : > { %18896 = vst [vmem:[#allocation111_spill] sm:$0xff] %v16811_v60  ;;  %v16819_v56 = vmul.f32 %v16331_v30, %v7945_v62  ;;  %v16822_v23 = vadd.f32 %v16459_v6, %v8274_v43  ;;  %v7743_v18 = vrot.slane %v16769_v7, 1  ;;  %v18401_v61 = vrot.slane %v16685_v45, 1  ;;  %7920 = vperm.xlu1 %11052, %v18875_v9   ;;  %v18901_v6 = vld [vmem:[#allocation75_spill] sm:$0xff]  ;;  %v18904_v43 = vld [vmem:[#allocation17_spill] sm:$0xff] }
0x10a9   : > { %18898 = vst [vmem:[#allocation64_spill] sm:$0xff] %v16816_v40  ;;  %v7456_v26 = vsel %vm7421_vm5, %v7453_v12, %v18400_v38  ;;  %v16831_v39 = vadd.f32 %v16469_v47, %v8856_v16  ;;  %v8825_v62 = vmul.f32 %v8738_v31, %v8665_v63  ;;  %v16835_v50 = vmul.f32 %v9013_v21, %v18901_v6  ;;  %v18908_v63 = vld [vmem:[#allocation11_spill] sm:$0xff]  ;;  %v18916_v38 = vld [vmem:[#allocation109_spill] sm:$0xff] }
0x10aa   : > { %18899 = vst [vmem:[#allocation112_spill] sm:$0xff] %v16819_v56  ;;  %18900 = vst [vmem:[#allocation113_spill] sm:$0xff] %v16822_v23  ;;  %v16839_v41 = vadd.f32 %v18903_v24, %v16129_v54  ;;  %v8275_v14 = vmul.f32 %v18905_v34, %v18904_v43  ;;  %v18906_v53 = vrot.slane %v16447_v51, 7  ;;  %v16847_v17 = vadd.f32 %v16712_v20, %v8524_v49  ;;  %v16865_v49 = vpop.f32.mrf.mxu0  ;;  %v18911_v24 = vld [vmem:[#allocation7_spill] sm:$0xff]  ;;  %v18912_v34 = vld [vmem:[#allocation98_spill] sm:$0xff] }
0x10ab   : > { %18902 = vst [vmem:[#allocation75_spill] sm:$0xff] %v16835_v50  ;;  %v7988_v9 = vmul.f32 %v16278_v29, %v16535_v11  ;;  %v8959_v52 = vmul.f32 0.70710677, %v16831_v39  ;;  %v8857_v21 = vadd.f32 %v8825_v62, %v16693_v28  ;;  %v16855_v25 = vmul.f32 %v16355_v58, %v16677_v32  ;;  %v16873_v6 = vpop.permute.xlu1 %7619  ;;  %v18957_v50 = vld [vmem:[#allocation35_spill] sm:$0xff] }
0x10ac   : > { %v7454_v5 = vsel %vm7421_vm5, %v18906_v53, %v7453_v12  ;;  %v8025_v16 = vmul.f32 %v16162_v27, %v16447_v51  ;;  %v16860_v48 = vmul.f32 %v18908_v63, %v7456_v26  ;;  %v18909_v20 = vrot.slane %v16510_v55, 1  ;;  %v7873_v63 = vpop.permute.xlu0 %7872 }
0x10ad   : > { %18907 = vst [vmem:[#allocation83_spill] sm:$0xff] %v16855_v25  ;;  %v8094_v31 = vmul.f32 %v16316_v8, %v16595_v10  ;;  %11723 = verf.f32 %v8959_v52  ;;  %v16870_v28 = vadd.f32 %v16469_v47, %v8857_v21  ;;  %v18910_v62 = vmov 0  }
0x10ae   : > { %v7744_v12 = vsel %vm7709_vm6, %v18909_v20, %v7743_v18  ;;  %11053 = vset.pattern.permute.xlu1 %v18910_v62  ;;  %v16876_v26 = vmul.f32 %v18911_v24, %v7454_v5  ;;  %v16880_v43 = vmul.f32 %v16331_v30, %v16677_v32  ;;  %v16883_v53 = vadd.f32 %v18912_v34, %v8275_v14 }
0x10af   : > { %v18914_v21 = vrot.slane %v16559_v4, 1  ;;  %8243 = vperm.xlu1 %11053, %v18916_v38   ;;  %v16896_v5 = vmul.f32 %v16233_v42, %v16808_v1  ;;  %v8057_v32 = vadd.f32 %v8025_v16, %v7988_v9  ;;  %v8960_v14 = vmul.f32 0.70710677, %v16870_v28  ;;  %v7311_v9 = vpop.f32.mrf.mxu0  ;;  %v18922_v1 = vld [vmem:[#allocation80_spill] sm:$0xff] }
0x10b0   : > { %18913 = vst [vmem:[#allocation17_spill] sm:$0xff] %v16883_v53  ;;  %v16899_v24 = vmul.f32 %v7873_v63, %v7744_v12  ;;  %v16902_v34 = vadd.f32 %v16129_v54, %v7308_v35  ;;  %v16906_v4 = vmul.f32 %v16179_v22, %v16685_v45  ;;  %v16914_v52 = vpop.eup %11721  ;;  %v8530_v35 = vmul.f32 %v16233_v42, %v16860_v48  ;;  %v18917_v63 = vld [vmem:[#allocation16_spill] sm:$0xff]  ;;  %v7877_v37 = vpop.permute.xlu1 %7876 }
0x10b1   : > { %v16891_v20 = vsel %vm7709_vm6, %v18401_v61, %v18914_v21  ;;  %v16910_v21 = vmul.f32 %v16331_v30, %v16697_v33  ;;  %v8528_v61 = vmul.f32 %v16233_v42, %v16535_v11  ;;  %v8126_v16 = vadd.f32 %v8094_v31, %v8057_v32 }
0x10b2   : > { %18915 = vst [vmem:[#allocation26_spill] sm:$0xff] %v16891_v20  ;;  %11725 = verf.f32 %v8960_v14  ;;  %v8323_v12 = vmul.f32 %v16271_v19, %v16876_v26  ;;  %v16922_v40 = vadd.f32 %v18917_v63, %v16129_v54  ;;  %v18918_v33 = vmov 2  }
0x10b3   : > { %11054 = vset.pattern.permute.xlu1 %v18918_v33  ;;  %v18919_v11 = vrot.slane %v16839_v41, 1  ;;  %v8565_v31 = vmul.f32 %v16179_v22, %v16447_v51  ;;  %v8634_v32 = vmul.f32 %v16331_v30, %v16595_v10  ;;  %v8360_v14 = vmul.f32 %v16167_v36, %v16510_v55  ;;  %v16941_v33 = vld [vmem:[%s18246_s14 + $0xe8] sm:$0xff] }
0x10b4   : > { %v8567_v63 = vmul.f32 %v16179_v22, %v16769_v7  ;;  %7664 = vperm.xlu1 %11054, %v16941_v33   ;;  %v8429_v51 = vmul.f32 %v16355_v58, %v16899_v24  ;;  %v16947_v10 = vadd.f32 %v16129_v54, %v7311_v9  ;;  %v8286_v20 = vmul.f32 %v18920_v13, %v8126_v16 }
0x10b5   : > { %v7746_v25 = vsel %vm7709_vm6, %v7743_v18, %v18919_v11  ;;  %v11075_v11 = vld [vmem:[%s18244_s12 + $0x18] sm:$0xff]   ;;  %v8392_v53 = vadd.f32 %v8360_v14, %v8323_v12  ;;  %v18406_v54 = vrot.slane %v16922_v40, 7  ;;  %v18921_v18 = vld [vmem:[#allocation108_spill] sm:$0xff]  ;;  %v18408_v13 = vrot.slane %v16839_v41, 7 }
0x10b6   : > { %v16934_v56 = vmul.f32 %v7877_v37, %v7746_v25  ;;  %v8597_v37 = vadd.f32 %v8565_v31, %v8528_v61  ;;  %v8529_v25 = vmul.f32 %v16233_v42, %v16876_v26  ;;  %v8599_v59 = vadd.f32 %v8567_v63, %v8530_v35  ;;  %10629 = vmatprep.subr.bf16.mxu1 %v11075_v11  ;;  %v8742_v35 = vpop.permute.xlu1 %8741 }
0x10b7   : > { %v8566_v61 = vmul.f32 %v16179_v22, %v16510_v55  ;;  %v8635_v31 = vmul.f32 %v16331_v30, %v16899_v24  ;;  %v16965_v23 = vmul.f32 %v18922_v1, %v18921_v18  ;;  %v8461_v12 = vadd.f32 %v8429_v51, %v8392_v53  ;;  %10630 = vmatpush3.bf16.msra.mxu1 %v11075_v11  ;;  %v16977_v1 = vld [vmem:[%s18246_s14 + $0xd0] sm:$0xff]  ;;  %v11077_v51 = vld [vmem:[%s18244_s12 + $0x8] sm:$0xff]  }
0x10b8   : > { %v8636_v60 = vmul.f32 %v16331_v30, %v16934_v56  ;;  %v8666_v9 = vadd.f32 %v8634_v32, %v8597_v37  ;;  %11056 = vset.pattern.permute.xlu1 %v18910_v62  ;;  %v18923_v32 = vrot.slane %v16902_v34, 7  ;;  %v11076_v53 = vld [vmem:[%s18244_s12 + $0x10] sm:$0xff]   ;;  %v18924_v37 = vld [vmem:[#allocation19_spill] sm:$0xff] }
0x10b9   : > { %8247 = vperm.xlu1 %11056, %v16977_v1   ;;  %10631 = vmatprep.subr.bf16.mxu1 %v11076_v53 }
0x10ba   : > { %v8668_v16 = vadd.f32 %v8636_v60, %v8599_v59  ;;  %v7462_v14 = vsel %vm7421_vm5, %v18406_v54, %v18923_v32  ;;  %v8826_v63 = vmul.f32 %v8742_v35, %v8666_v9  ;;  %v8598_v59 = vadd.f32 %v8566_v61, %v8529_v25  ;;  %v11724_v32 = vpop.eup %11723 }
0x10bb   : > { %v7697_v18 = vmul.f32 %v16873_v6, %v7462_v14  ;;  %v7989_v9 = vmul.f32 %v16278_v29, %v16876_v26  ;;  %v8493_v35 = vadd.f32 %v8461_v12, %v8286_v20  ;;  %v18409_v25 = vrot.slane %v16902_v34, 1  ;;  %v8746_v6 = vpop.permute.xlu1 %8745  ;;  %10632 = vmatpush3.bf16.msra.mxu1 %v11076_v53 }
0x10bc   : > { %v8828_v11 = vmul.f32 %v18924_v37, %v8668_v16  ;;  %v18925_v61 = vrot.slane %v16769_v7, 7  ;;  %v8858_v60 = vadd.f32 %v8826_v63, %v16783_v44  ;;  %v8667_v62 = vadd.f32 %v8635_v31, %v8598_v59  ;;  %v17013_v31 = vld [vmem:[%s18246_s14 + $0xd8] sm:$0xff]  ;;  %10633 = vmatprep.subr.bf16.mxu1 %v11077_v51  ;;  %v11078_v63 = vld [vmem:[%s18244_s12] sm:$0xff]  }
0x10bd   : > { %v8026_v16 = vmul.f32 %v16162_v27, %v16510_v55  ;;  %v8095_v26 = vmul.f32 %v16316_v8, %v16899_v24  ;;  %v8324_v20 = vmul.f32 %v16271_v19, %v16860_v48  ;;  %8251 = vperm.xlu1 %11056, %v17013_v31   ;;  %v18926_v55 = vrot.slane %v16947_v10, 1 }
0x10be   : > { %v7458_v54 = vsel %vm7421_vm5, %v18925_v61, %v18408_v13  ;;  %v17004_v12 = vadd.f32 %v8828_v11, %v8493_v35  ;;  %v17008_v37 = vadd.f32 %v16469_v47, %v8858_v60  ;;  %v8827_v44 = vmul.f32 %v8746_v6, %v8667_v62 }
0x10bf   : > { %v7752_v24 = vsel %vm7709_vm6, %v18409_v25, %v18926_v55  ;;  %v8533_v62 = vmul.f32 %v16233_v42, %v7697_v18  ;;  %v8058_v59 = vadd.f32 %v8026_v16, %v7989_v9  ;;  %v8361_v60 = vmul.f32 %v16167_v36, %v16769_v7  ;;  %v11726_v11 = vpop.eup %11725  ;;  %v18927_v55 = vld [vmem:[#allocation22_spill] sm:$0xff]  ;;  %10634 = vmatpush3.bf16.msra.mxu1 %v11077_v51 }
0x10c0   : > { %v9023_v53 = vadd.f32 1.0, %v11724_v32  ;;  %v7993_v35 = vmul.f32 %v16278_v29, %v7697_v18  ;;  %v8327_v61 = vmul.f32 %v16271_v19, %v7697_v18  ;;  %v8961_v6 = vmul.f32 0.70710677, %v17008_v37  ;;  %v7889_v18 = vpop.permute.xlu1 %7888  ;;  %10635 = vmatprep.subr.bf16.mxu1 %v11078_v63 }
0x10c1   : > { %v8859_v13 = vadd.f32 %v8827_v44, %v18927_v55  ;;  %v8927_v25 = vmul.f32 0.5, %v16831_v39  ;;  %v8928_v14 = vmul.f32 0.5, %v16870_v28  ;;  %v8570_v42 = vmul.f32 %v16179_v22, %v16902_v34  ;;  %11058 = vset.pattern.permute.xlu1 %v18786_v3 }
0x10c2   : > { %v9024_v9 = vadd.f32 1.0, %v11726_v11  ;;  %11727 = verf.f32 %v8961_v6  ;;  %v8364_v16 = vmul.f32 %v16167_v36, %v16902_v34  ;;  %v8030_v39 = vmul.f32 %v16162_v27, %v16902_v34  ;;  %8785 = vperm.xlu1 %11058, %v18916_v38  }
0x10c3   : > { %v17036_v32 = vadd.f32 %v16469_v47, %v8859_v13  ;;  %v7955_v28 = vmul.f32 %v7889_v18, %v7752_v24  ;;  %v8602_v22 = vadd.f32 %v8570_v42, %v8533_v62  ;;  %v17044_v51 = vmul.f32 %v9023_v53, %v8927_v25  ;;  %10636 = vmatpush3.bf16.msra.mxu1 %v11078_v63  ;;  %v18930_v25 = vld [vmem:[#allocation107_spill] sm:$0xff] }
0x10c4   : > { %v17046_v44 = vmul.f32 %v9024_v9, %v8928_v14  ;;  %v8430_v13 = vmul.f32 %v16355_v58, %v16934_v56  ;;  %v8396_v6 = vadd.f32 %v8364_v16, %v8327_v61  ;;  %v8062_v55 = vadd.f32 %v8030_v39, %v7993_v35  ;;  %v8212_v9 = vpop.permute.xlu1 %8211 }
0x10c5   : > { %18928 = vst [vmem:[#allocation11_spill] sm:$0xff] %v17044_v51  ;;  %v8962_v11 = vmul.f32 0.70710677, %v17036_v32  ;;  %v8433_v36 = vmul.f32 %v16355_v58, %v7955_v28  ;;  %v8639_v27 = vmul.f32 %v16331_v30, %v7955_v28  ;;  %v8099_v24 = vmul.f32 %v16316_v8, %v7955_v28  ;;  %v17207_v51 = vld [vmem:[%s18242_s10 + $0x7] ss:$0 sm:$0xff] }
0x10c6   : > { %18929 = vst [vmem:[#allocation7_spill] sm:$0xff] %v17046_v44  ;;  %v7695_v14 = vmul.f32 %v18930_v25, %v7458_v54  ;;  %v8127_v62 = vadd.f32 %v8095_v26, %v8058_v59  ;;  %v8393_v53 = vadd.f32 %v8361_v60, %v8324_v20  ;;  %v18931_v42 = vrot.slane %v16685_v45, 1  ;;  %11059 = vset.pattern.permute.xlu1 %v18752_v57  ;;  %v18934_v26 = vld [vmem:[#allocation27_spill] sm:$0xff]  ;;  %v18941_v25 = vld [vmem:[#allocation102_spill] sm:$0xff] }
0x10c7   : > { %11729 = verf.f32 %v8962_v11  ;;  %v18932_v61 = vrot.slane %v16580_v15, 1  ;;  %v17063_v18 = vadd.f32 %v8639_v27, %v8602_v22  ;;  %v17065_v63 = vadd.f32 %v8433_v36, %v8396_v6  ;;  %7924 = vperm.xlu1 %11059, %v16941_v33   ;;  %v7881_v22 = vpop.permute.xlu0 %7880  ;;  %v18939_v36 = vld [vmem:[#allocation99_spill] sm:$0xff]  ;;  %v18940_v27 = vld [vmem:[#allocation30_spill] sm:$0xff] }
0x10c8   : > { %v17067_v16 = vadd.f32 %v8099_v24, %v8062_v55  ;;  %v17071_v54 = vadd.f32 %v16880_v43, %v16847_v17  ;;  %v7687_v20 = vmul.f32 %v18934_v26, %v16795_v0  ;;  %v8287_v59 = vmul.f32 %v8212_v9, %v8127_v62  ;;  %v18937_v43 = vld [vmem:[#allocation89_spill] sm:$0xff] }
0x10c9   : > { %v7728_v35 = vsel %vm7709_vm6, %v18932_v61, %v18931_v42  ;;  %18933 = vst [vmem:[#allocation98_spill] sm:$0xff] %v17065_v63  ;;  %v8462_v15 = vadd.f32 %v8430_v13, %v8393_v53  ;;  %v9014_v57 = vadd.f32 1.0, %v16914_v52  ;;  %v18935_v60 = vrot.slane %v16922_v40, 1  ;;  %v18938_v13 = vld [vmem:[#allocation34_spill] sm:$0xff] }
0x10ca   : > { %v18936_v39 = vrot.slane %v16839_v41, 1  ;;  %v17084_v17 = vadd.f32 %v16906_v4, %v16896_v5  ;;  %v17088_v0 = vadd.f32 %v16910_v21, %v18937_v43  ;;  %v17091_v11 = vmul.f32 %v18938_v13, %v7728_v35  ;;  %v17105_v4 = vld [vmem:[%s18242_s10 + $0x6] ss:$0 sm:$0xff]  ;;  %v17134_v35 = vld [vmem:[%s18242_s10] ss:$0 sm:$0xff] }
0x10cb   : > { %v8325_v52 = vmul.f32 %v16271_v19, %v7695_v14  ;;  %v17094_v6 = vadd.f32 %v8462_v15, %v8287_v59  ;;  %v7990_v55 = vmul.f32 %v16278_v29, %v16860_v48  ;;  %v8276_v24 = vmul.f32 %v18940_v27, %v18939_v36  ;;  %11061 = vset.pattern.permute.xlu1 %v18786_v3  ;;  %v17113_v48 = vpop.permute.xlu1 %7624  ;;  %v17154_v59 = vld [vmem:[%s18241_s9] ss:$0 sm:$0xff] }
0x10cc   : > { %v7748_v28 = vsel %vm7709_vm6, %v18936_v39, %v18935_v60  ;;  %v8452_v5 = vadd.f32 %v16777_v2, %v18941_v25  ;;  %v8521_v21 = vmul.f32 %v17105_v4, %v16965_v23  ;;  %v7991_v19 = vmul.f32 %v16278_v29, %v7695_v14  ;;  %v17118_v2 = vld [vmem:[%s18242_s10 + $0x1] ss:$0 sm:$0xff]  ;;  %v17127_v29 = vld [vmem:[%s18242_s10 + $0x4] ss:$0 sm:$0xff]  ;;  %8789 = vperm.xlu1 %11061, %v16977_v1   ;;  %v18949_v25 = vld [vmem:[#allocation61_spill] sm:$0xff] }
0x10cd   : > { %v17110_v62 = vmul.f32 %v7881_v22, %v7748_v28  ;;  %18942 = vst [vmem:[#allocation109_spill] sm:$0xff] %v17118_v2  ;;  %v8027_v53 = vmul.f32 %v17118_v2, %v16769_v7  ;;  %v8096_v42 = vmul.f32 %v16316_v8, %v16934_v56  ;;  %v8362_v61 = vmul.f32 %v17127_v29, %v16839_v41  ;;  %v17142_v8 = vld [vmem:[%s18242_s10 + $0x3] ss:$0 sm:$0xff] }
0x10ce   : > { %v17137_v9 = vmul.f32 %v17134_v35, %v7687_v20  ;;  %v8317_v7 = vmul.f32 %v17142_v8, %v7687_v20  ;;  %v17146_v56 = vmul.f32 %v17105_v4, %v7687_v20  ;;  %v8028_v26 = vmul.f32 %v17118_v2, %v16839_v41  ;;  %18943 = vst [vmem:[#allocation16_spill] sm:$0xff] %v17154_v59  ;;  %v18945_v1 = vld [vmem:[#allocation110_spill] sm:$0xff] }
0x10cf   : > { %v17158_v15 = vadd.f32 %v17154_v59, %v16800_v46  ;;  %v17162_v60 = vmul.f32 %v17142_v8, %v16965_v23  ;;  %v8059_v20 = vadd.f32 %v8027_v53, %v7990_v55  ;;  %v8394_v39 = vadd.f32 %v8362_v61, %v8325_v52  ;;  %v11728_v28 = vpop.eup %11727  ;;  %v18947_v43 = vld [vmem:[#allocation14_spill] sm:$0xff]  ;;  %v18950_v55 = vld [vmem:[#allocation105_spill] sm:$0xff] }
0x10d0   : > { %v17165_v22 = vmul.f32 %v9014_v57, %v18945_v1  ;;  %v17168_v13 = vadd.f32 %v18947_v43, %v8276_v24  ;;  %v17172_v36 = vmul.f32 %v16355_v58, %v17091_v11  ;;  %v8060_v27 = vadd.f32 %v8028_v26, %v7991_v19  ;;  %v18951_v61 = vld [vmem:[#allocation101_spill] sm:$0xff]  ;;  %v18952_v57 = vld [vmem:[#allocation28_spill] sm:$0xff]  ;;  %8793 = vperm.xlu1 %11061, %v17013_v31   ;;  %v8216_v19 = vpop.permute.xlu1 %8215 }
0x10d1   : > { %18944 = vst [vmem:[#allocation81_spill] sm:$0xff] %v17162_v60  ;;  %v8431_v46 = vmul.f32 %v16355_v58, %v17110_v62  ;;  %v17177_v38 = vadd.f32 %v8452_v5, %v18949_v25  ;;  %v8590_v52 = vadd.f32 %v18950_v55, %v8521_v21  ;;  %v8128_v53 = vadd.f32 %v8096_v42, %v8059_v20  ;;  %v17189_v58 = vld [vmem:[%s18242_s10 + $0x2] ss:$0 sm:$0xff] }
0x10d2   : > { %18946 = vst [vmem:[#allocation108_spill] sm:$0xff] %v17165_v22  ;;  %18948 = vst [vmem:[#allocation80_spill] sm:$0xff] %v17172_v36  ;;  %v8816_v1 = vmul.f32 %v18952_v57, %v18951_v61  ;;  %v8627_v24 = vmul.f32 %v16331_v30, %v17091_v11  ;;  %v8531_v43 = vmul.f32 %v17105_v4, %v7695_v14  ;;  %v18953_v21 = vrot.slane %v16902_v34, 1  ;;  %v7885_v30 = vpop.permute.xlu0 %7884  ;;  %v18958_v22 = vld [vmem:[#allocation29_spill] sm:$0xff]  ;;  %v18988_v36 = vld [vmem:[#allocation67_spill] sm:$0xff] }
0x10d3   : > { %v8097_v5 = vmul.f32 %v17189_v58, %v17110_v62  ;;  %v18954_v42 = vrot.slane %v16922_v40, 1  ;;  %v9025_v20 = vadd.f32 1.0, %v11728_v28  ;;  %v8288_v14 = vmul.f32 %v8216_v19, %v8128_v53 }
0x10d4   : > { %v8463_v25 = vadd.f32 %v8431_v46, %v8394_v39  ;;  %v11730_v31 = vpop.eup %11729  ;;  %v17202_v61 = vadd.f32 %v17154_v59, %v16865_v49  ;;  %v8929_v28 = vmul.f32 0.5, %v17008_v37  ;;  %v8930_v39 = vmul.f32 0.5, %v17036_v32  ;;  %v18955_v49 = vld [vmem:[#allocation113_spill] sm:$0xff]  ;;  %v8220_v55 = vpop.permute.xlu1 %8219 }
0x10d5   : > { %v7750_v26 = vsel %vm7709_vm6, %v18954_v42, %v18953_v21  ;;  %v8129_v57 = vadd.f32 %v8097_v5, %v8060_v27  ;;  %v8568_v21 = vmul.f32 %v17207_v51, %v16839_v41  ;;  %v9026_v46 = vadd.f32 1.0, %v11730_v31 }
0x10d6   : > { %v17213_v53 = vadd.f32 %v8463_v25, %v8288_v14  ;;  %v17215_v19 = vmul.f32 %v7885_v30, %v7750_v26  ;;  %v8848_v42 = vadd.f32 %v8816_v1, %v18955_v49  ;;  %v7981_v27 = vmul.f32 %v17134_v35, %v16965_v23  ;;  %v17235_v23 = vld [vmem:[%s18242_s10 + $0x8] ss:$0 sm:$0xff]  ;;  %v18963_v25 = vld [vmem:[#allocation88_spill] sm:$0xff] }
0x10d7   : > { %v18956_v5 = vmov 0   ;;  %v8600_v44 = vadd.f32 %v8568_v21, %v8531_v43  ;;  %v8817_v63 = vmul.f32 %v18958_v22, %v18957_v50  ;;  %v17223_v37 = vmul.f32 %v9025_v20, %v8929_v28  ;;  %v18961_v43 = vld [vmem:[#allocation68_spill] sm:$0xff] }
0x10d8   : > { %11062 = vset.pattern.permute.xlu1 %v18956_v5  ;;  %v17225_v32 = vmul.f32 %v9026_v46, %v8930_v39  ;;  %v17227_v14 = vmul.f32 %v8220_v55, %v8129_v57  ;;  %v8659_v26 = vadd.f32 %v8627_v24, %v8590_v52  ;;  %v8087_v1 = vmul.f32 %v17189_v58, %v17091_v11  ;;  %v18962_v52 = vld [vmem:[#allocation103_spill] sm:$0xff]  ;;  %v8754_v46 = vpop.permute.xlu1 %8753  ;;  %v18967_v24 = vld [vmem:[#allocation69_spill] sm:$0xff] }
0x10d9   : > { %18959 = vst [vmem:[#allocation19_spill] sm:$0xff] %v17223_v37  ;;  %8259 = vperm.xlu1 %11062, %v16941_v33   ;;  %v8637_v50 = vmul.f32 %v17235_v23, %v17110_v62  ;;  %v17241_v22 = vadd.f32 %v16469_v47, %v17004_v12  ;;  %v8316_v30 = vmul.f32 %v17142_v8, %v18961_v43  ;;  %v17256_v12 = vld [vmem:[%s18242_s10 + $0x5] ss:$0 sm:$0xff]  ;;  %v18968_v37 = vrot.slane %v16947_v10, 7 }
0x10da   : > { %18960 = vst [vmem:[#allocation22_spill] sm:$0xff] %v17225_v32  ;;  %v7982_v33 = vmul.f32 %v17134_v35, %v18961_v43  ;;  %v8386_v11 = vadd.f32 %v18962_v52, %v8317_v7  ;;  %v8887_v20 = vadd.f32 %v16469_v47, %v8848_v42  ;;  %v8050_v31 = vadd.f32 %v18963_v25, %v7981_v27  ;;  %v18964_v7 = vld [vmem:[#allocation17_spill] sm:$0xff]  ;;  %v18965_v43 = vld [vmem:[#allocation111_spill] sm:$0xff]  ;;  %v18966_v52 = vld [vmem:[#allocation104_spill] sm:$0xff] }
0x10db   : > { %v8669_v55 = vadd.f32 %v8637_v50, %v8600_v44  ;;  %v17260_v57 = vmul.f32 %v17256_v12, %v17215_v19  ;;  %v8849_v21 = vadd.f32 %v8817_v63, %v18964_v7  ;;  %v8353_v28 = vmul.f32 %v17127_v29, %v16685_v45  ;;  %v11831_v44 = vld [vmem:[%s18246_s14 + $0xf0] sm:$0xff] }
0x10dc   : > { %v8019_v39 = vmul.f32 %v17118_v2, %v16685_v45  ;;  %v17272_v49 = vmul.f32 %v17235_v23, %v17215_v19  ;;  %v17274_v42 = vadd.f32 %v8087_v1, %v8050_v31  ;;  %v8963_v63 = vmul.f32 0.70710677, %v17241_v22 }
0x10dd   : > { %8263 = vperm.xlu1 %11062, %v11831_v44   ;;  %v8829_v27 = vmul.f32 %v8754_v46, %v8669_v55  ;;  %v17277_v5 = vadd.f32 %v8353_v28, %v8316_v30  ;;  %v17280_v45 = vadd.f32 %v18965_v43, %v8386_v11  ;;  %v8052_v25 = vadd.f32 %v18966_v52, %v17137_v9  ;;  %v18970_v11 = vld [vmem:[#allocation21_spill] sm:$0xff]  ;;  %v18971_v28 = vld [vmem:[#allocation39_spill] sm:$0xff]  ;;  %v18973_v46 = vld [vmem:[#allocation12_spill] sm:$0xff] }
0x10de   : > { %v8051_v50 = vadd.f32 %v8019_v39, %v7982_v33  ;;  %v8951_v7 = vmul.f32 0.70710677, %v8887_v20  ;;  %v8318_v62 = vmul.f32 %v17142_v8, %v18967_v24  ;;  %v18969_v1 = vrot.slane %v16902_v34, 7  ;;  %v18972_v24 = vld [vmem:[#allocation26_spill] sm:$0xff] }
0x10df   : > { %v8861_v30 = vadd.f32 %v8829_v27, %v17094_v6  ;;  %v8888_v33 = vadd.f32 %v16469_v47, %v8849_v21  ;;  %v17295_v55 = vmul.f32 %v18970_v11, %v17071_v54  ;;  %v8355_v9 = vmul.f32 %v17127_v29, %v18971_v28  ;;  %v11832_v54 = vld [vmem:[%s18246_s14 + $0xe0] sm:$0xff] }
0x10e0   : > { %v7464_v31 = vsel %vm7421_vm5, %v18969_v1, %v18968_v37  ;;  %v7944_v34 = vmul.f32 %v18973_v46, %v18972_v24  ;;  %v18974_v37 = vrot.slane %v16922_v40, 7  ;;  %v18975_v6 = vrot.slane %v16839_v41, 7  ;;  %v18978_v43 = vld [vmem:[#allocation18_spill] sm:$0xff] }
0x10e1   : > { %v7698_v39 = vmul.f32 %v17113_v48, %v7464_v31  ;;  %11063 = vset.pattern.permute.xlu1 %v18786_v3  ;;  %v17309_v27 = vadd.f32 %v16469_v47, %v8861_v30  ;;  %v17314_v48 = vpop.permute.xlu1 %7634  ;;  %11731 = verf.f32 %v8963_v63  ;;  %v17316_v3 = vmul.f32 0.5, %v8887_v20  ;;  %v18979_v1 = vld [vmem:[#allocation82_spill] sm:$0xff]  ;;  %v18981_v30 = vld [vmem:[#allocation24_spill] sm:$0xff] }
0x10e2   : > { %v7460_v21 = vsel %vm7421_vm5, %v18975_v6, %v18974_v37  ;;  %8797 = vperm.xlu1 %11063, %v11832_v54   ;;  %18976 = vst [vmem:[#allocation107_spill] sm:$0xff] %v17314_v48  ;;  %v8818_v52 = vmul.f32 %v18978_v43, %v17088_v0  ;;  %v17321_v41 = vadd.f32 %v18979_v1, %v8052_v25  ;;  %v18980_v31 = vld [vmem:[#allocation106_spill] sm:$0xff]  ;;  %11733 = verf.f32 %v8951_v7  ;;  %v18984_v43 = vld [vmem:[#allocation8_spill] sm:$0xff] }
0x10e3   : > { %18977 = vst [vmem:[#allocation27_spill] sm:$0xff] %v17316_v3  ;;  %v8592_v47 = vadd.f32 %v18980_v31, %v17146_v56  ;;  %v8819_v11 = vmul.f32 %v18981_v30, %v8659_v26  ;;  %v8387_v28 = vadd.f32 %v8355_v9, %v8318_v62  ;;  %v8964_v24 = vmul.f32 0.70710677, %v17309_v27  ;;  %v18982_v46 = vld [vmem:[#allocation10_spill] sm:$0xff] }
0x10e4   : > { %v17328_v37 = vmul.f32 %v18982_v46, %v7460_v21  ;;  %v7994_v20 = vmul.f32 %v17134_v35, %v7698_v39  ;;  %v8328_v63 = vmul.f32 %v17142_v8, %v7698_v39  ;;  %v18415_v0 = vrot.slane %v17158_v15, 1 }
0x10e5   : > { %v8952_v25 = vmul.f32 0.70710677, %v8888_v33  ;;  %v8088_v6 = vmul.f32 %v17189_v58, %v7944_v34  ;;  %v8534_v56 = vmul.f32 %v17105_v4, %v7698_v39  ;;  %11735 = verf.f32 %v8964_v24  ;;  %v7893_v62 = vpop.permute.xlu1 %7892 }
0x10e6   : > { %8805 = vperm.xlu1 %11063, %v11831_v44   ;;  %v8850_v26 = vadd.f32 %v8818_v52, %v17168_v13  ;;  %v18983_v7 = vrot.slane %v16947_v10, 1  ;;  %v8365_v21 = vmul.f32 %v17127_v29, %v16947_v10  ;;  %v8031_v54 = vmul.f32 %v17118_v2, %v16947_v10 }
0x10e7   : > { %v8525_v39 = vmul.f32 %v17105_v4, %v18984_v43  ;;  %v8628_v44 = vmul.f32 %v17235_v23, %v7944_v34  ;;  %v8571_v13 = vmul.f32 %v17207_v51, %v16947_v10  ;;  %v8851_v52 = vadd.f32 %v8819_v11, %v17177_v38  ;;  %v17363_v38 = vld [vmem:[%s18243_s11] ss:$0 sm:$0xff] }
0x10e8   : > { %v7754_v9 = vsel %vm7709_vm6, %v18983_v7, %v18415_v0  ;;  %v8326_v31 = vmul.f32 %v17142_v8, %v17328_v37  ;;  %v8397_v30 = vadd.f32 %v8365_v21, %v8328_v63  ;;  %v8063_v24 = vadd.f32 %v8031_v54, %v7994_v20  ;;  %v11833_v7 = vld [vmem:[%s18246_s14 + $0xf8] sm:$0xff] }
0x10e9   : > { %v7956_v1 = vmul.f32 %v7893_v62, %v7754_v9  ;;  %v8603_v62 = vadd.f32 %v8571_v13, %v8534_v56  ;;  %v8422_v0 = vmul.f32 %v17256_v12, %v7944_v34  ;;  %v8889_v11 = vadd.f32 %v17363_v38, %v8850_v26  ;;  %v17368_v21 = vpop.permute.xlu1 %7896  ;;  %v18987_v26 = vld [vmem:[#allocation112_spill] sm:$0xff] }
0x10ea   : > { %8809 = vperm.xlu1 %11063, %v11833_v7   ;;  %v8120_v20 = vadd.f32 %v8088_v6, %v8051_v50  ;;  %v8363_v63 = vmul.f32 %v17127_v29, %v16922_v40  ;;  %v8532_v56 = vmul.f32 %v17105_v4, %v17328_v37  ;;  %v17378_v13 = vmul.f32 0.5, %v8888_v33  ;;  %v18986_v7 = vld [vmem:[#allocation92_spill] sm:$0xff] }
0x10eb   : > { %v8434_v46 = vmul.f32 %v17256_v12, %v7956_v1  ;;  %v8100_v43 = vmul.f32 %v17189_v58, %v7956_v1  ;;  %v8640_v9 = vmul.f32 %v17235_v23, %v7956_v1  ;;  %v8661_v50 = vadd.f32 %v18987_v26, %v8592_v47 }
0x10ec   : > { %18985 = vst [vmem:[#allocation89_spill] sm:$0xff] %v17378_v13  ;;  %v8280_v32 = vmul.f32 %v18986_v7, %v8120_v20  ;;  %v8395_v6 = vadd.f32 %v8363_v63, %v8326_v31  ;;  %v8660_v3 = vadd.f32 %v8628_v44, %v17084_v17  ;;  %v8890_v48 = vadd.f32 %v17363_v38, %v8851_v52  ;;  %v17394_v44 = vpop.f32.mrf.mxu0 }
0x10ed   : > { %v17372_v54 = vadd.f32 %v8434_v46, %v8397_v30  ;;  %v17374_v1 = vadd.f32 %v8100_v43, %v8063_v24  ;;  %v17376_v34 = vadd.f32 %v8640_v9, %v8603_v62  ;;  %v8562_v60 = vmul.f32 %v17207_v51, %v18988_v36  ;;  %v18989_v46 = vld [vmem:[#allocation83_spill] sm:$0xff]  ;;  %v8762_v36 = vpop.permute.xlu1 %8761 }
0x10ee   : > { %v8569_v30 = vmul.f32 %v17207_v51, %v16922_v40  ;;  %v11732_v24 = vpop.eup %11731  ;;  %11737 = verf.f32 %v8952_v25  ;;  %v17389_v33 = vadd.f32 %v18989_v46, %v8387_v28  ;;  %v8464_v43 = vadd.f32 %v17260_v57, %v8395_v6  ;;  %v17399_v25 = vpop.permute.xlu0 %7904  ;;  %v18994_v6 = vld [vmem:[#allocation33_spill] sm:$0xff] }
0x10ef   : > { %v7465_v47 = vrot.slane %v17158_v15, 7  ;;  %v8953_v31 = vmul.f32 0.70710677, %v8889_v11  ;;  %v8454_v17 = vadd.f32 %v8422_v0, %v17277_v5  ;;  %v8594_v52 = vadd.f32 %v8562_v60, %v8525_v39  ;;  %v17396_v9 = vpop.eup %11733  ;;  %v18991_v5 = vld [vmem:[#allocation13_spill] sm:$0xff]  ;;  %v7324_v46 = vpop.f32.mrf.mxu0 }
0x10f0   : > { %v8601_v62 = vadd.f32 %v8569_v30, %v8532_v56  ;;  %v8487_v20 = vadd.f32 %v17280_v45, %v8280_v32  ;;  %v8496_v28 = vadd.f32 %v8464_v43, %v17227_v14  ;;  %v18990_v57 = vrot.slane %v16947_v10, 7  ;;  %v18993_v32 = vld [vmem:[#allocation37_spill] sm:$0xff]  ;;  %v18995_v43 = vld [vmem:[#allocation15_spill] sm:$0xff] }
0x10f1   : > { %v8831_v7 = vmul.f32 %v8762_v36, %v17063_v18  ;;  %v17407_v0 = vmul.f32 %v18991_v5, %v8660_v3  ;;  %v17409_v60 = vmul.f32 0.5, %v8889_v11  ;;  %v8954_v39 = vmul.f32 0.70710677, %v8890_v48  ;;  %v17423_v5 = vpop.permute.xlu1 %7900 }
0x10f2   : > { %v7466_v63 = vsel %vm7421_vm5, %v18990_v57, %v7465_v47  ;;  %v9027_v56 = vadd.f32 1.0, %v11732_v24  ;;  %v11736_v26 = vpop.eup %11735  ;;  %v8279_v45 = vmul.f32 %v18993_v32, %v17274_v42  ;;  %v8631_v14 = vmul.f32 %v17235_v23, %v18994_v6 }
0x10f3   : > { %18992 = vst [vmem:[#allocation34_spill] sm:$0xff] %v17409_v60  ;;  %v8670_v10 = vadd.f32 %v17272_v49, %v8601_v62  ;;  %v8863_v30 = vadd.f32 %v8831_v7, %v8496_v28  ;;  %v8932_v18 = vmul.f32 0.5, %v17309_v27  ;;  %v7699_v3 = vmul.f32 %v18995_v43, %v7466_v63  ;;  %v18997_v49 = vld [vmem:[#allocation97_spill] sm:$0xff]  ;;  %v17430_v7 = vpop.permute.xlu0 %7912 }
0x10f4   : > { %v8931_v11 = vmul.f32 0.5, %v17241_v22  ;;  %v9028_v36 = vadd.f32 1.0, %v11736_v26  ;;  %11739 = verf.f32 %v8953_v31  ;;  %v17419_v24 = vmul.f32 0.5, %v8890_v48  ;;  %v19000_v31 = vld [vmem:[#allocation94_spill] sm:$0xff] }
0x10f5   : > { %v8854_v57 = vadd.f32 %v17295_v55, %v8487_v20  ;;  %v18418_v42 = vrot.slane %v17202_v61, 7  ;;  %11741 = verf.f32 %v8954_v39  ;;  %v8821_v62 = vmul.f32 %v18997_v49, %v8661_v50  ;;  %v10616_v39 = vpop.f32.mrf.mxu0  ;;  %v19001_v26 = vld [vmem:[#allocation38_spill] sm:$0xff] }
0x10f6   : > { %18996 = vst [vmem:[#allocation99_spill] sm:$0xff] %v17419_v24  ;;  %v17426_v28 = vmul.f32 %v9027_v56, %v8931_v11  ;;  %v17428_v27 = vmul.f32 %v9028_v36, %v8932_v18  ;;  %v8486_v63 = vadd.f32 %v8454_v17, %v8279_v45  ;;  %v17432_v22 = vadd.f32 %v8631_v14, %v8594_v52 }
0x10f7   : > { %v18417_v48 = vrot.slane %v17202_v61, 1  ;;  %v7992_v55 = vmul.f32 %v17134_v35, %v17328_v37  ;;  %v8281_v20 = vmul.f32 %v19000_v31, %v17321_v41  ;;  %v8830_v50 = vmul.f32 %v19001_v26, %v8670_v10  ;;  %v17459_v10 = vpop.permute.xlu1 %8223  ;;  %v17463_v43 = vpop.permute.xlu0 %7916 }
0x10f8   : > { %18998 = vst [vmem:[#allocation30_spill] sm:$0xff] %v17426_v28  ;;  %18999 = vst [vmem:[#allocation102_spill] sm:$0xff] %v17428_v27  ;;  %v7995_v56 = vmul.f32 %v17134_v35, %v7699_v3  ;;  %v8893_v32 = vadd.f32 %v17363_v38, %v8854_v57  ;;  %v17447_v52 = vsel %vm7421_vm5, %v7465_v47, %v18418_v42  ;;  %v19011_v42 = vld [vmem:[#allocation90_spill] sm:$0xff]  ;;  %v19012_v28 = vld [vmem:[#allocation91_spill] sm:$0xff] }
0x10f9   : > { %v8029_v37 = vmul.f32 %v17118_v2, %v16922_v40  ;;  %v8098_v41 = vmul.f32 %v17189_v58, %v17215_v19  ;;  %v8853_v45 = vadd.f32 %v8821_v62, %v8486_v63  ;;  %v17455_v6 = vmul.f32 %v17127_v29, %v17202_v61  ;;  %19002 = vst [vmem:[#allocation110_spill] sm:$0xff] %v17463_v43 }
0x10fa   : > { %v8032_v14 = vmul.f32 %v17118_v2, %v17158_v15  ;;  %v8329_v18 = vmul.f32 %v17142_v8, %v7699_v3  ;;  %v8862_v47 = vadd.f32 %v8830_v50, %v17213_v53  ;;  %v19003_v40 = vrot.slane %v17158_v15, 1  ;;  %v7327_v53 = vpop.f32.mrf.mxu0 }
0x10fb   : > { %v8061_v11 = vadd.f32 %v8029_v37, %v7992_v55  ;;  %v17472_v36 = vmul.f32 %v17118_v2, %v17202_v61  ;;  %v11738_v57 = vpop.eup %11737  ;;  %v17475_v49 = vadd.f32 %v17389_v33, %v8281_v20  ;;  %v17478_v62 = vadd.f32 %v17154_v59, %v7324_v46  ;;  %v8228_v46 = vpop.permute.xlu1 %8227 }
0x10fc   : > { %v7756_v19 = vsel %vm7709_vm6, %v19003_v40, %v18417_v48  ;;  %v17480_v63 = vadd.f32 %v8032_v14, %v7995_v56  ;;  %v8366_v31 = vmul.f32 %v17127_v29, %v17158_v15  ;;  %v8957_v26 = vmul.f32 0.70710677, %v8893_v32 }
0x10fd   : > { %19004 = vst [vmem:[#allocation14_spill] sm:$0xff] %v17472_v36  ;;  %v17485_v55 = vadd.f32 %v17154_v59, %v10616_v39  ;;  %v17488_v50 = vadd.f32 %v17363_v38, %v8863_v30  ;;  %v8130_v37 = vadd.f32 %v8098_v41, %v8061_v11  ;;  %v17490_v40 = vmul.f32 0.5, %v8893_v32 }
0x10fe   : > { %v17493_v33 = vadd.f32 %v17363_v38, %v8853_v45  ;;  %v17495_v20 = vadd.f32 %v8366_v31, %v8329_v18  ;;  %v8535_v56 = vmul.f32 %v17105_v4, %v7699_v3  ;;  %v17500_v14 = vadd.f32 %v17154_v59, %v17394_v44  ;;  %v19009_v18 = vld [vmem:[#allocation93_spill] sm:$0xff]  ;;  %v19010_v44 = vld [vmem:[#allocation96_spill] sm:$0xff]  ;;  %v7929_v31 = vpop.permute.xlu0 %7928 }
0x10ff   : > { %19005 = vst [vmem:[#allocation61_spill] sm:$0xff] %v17485_v55  ;;  %19006 = vst [vmem:[#allocation105_spill] sm:$0xff] %v17490_v40  ;;  %v17503_v39 = vadd.f32 %v17154_v59, %v7327_v53  ;;  %v17506_v30 = vadd.f32 %v17363_v38, %v8862_v47  ;;  %v8291_v32 = vmul.f32 %v8228_v46, %v17067_v16  ;;  %11743 = verf.f32 %v8957_v26  ;;  %v19019_v53 = vld [vmem:[#allocation31_spill] sm:$0xff] }
0x1100   : > { %19007 = vst [vmem:[#allocation101_spill] sm:$0xff] %v17493_v33  ;;  %19008 = vst [vmem:[#allocation28_spill] sm:$0xff] %v17500_v14  ;;  %v8572_v45 = vmul.f32 %v17207_v51, %v17158_v15  ;;  %v17514_v3 = vmul.f32 %v17207_v51, %v17202_v61  ;;  %v8652_v11 = vadd.f32 %v19010_v44, %v19009_v18  ;;  %v8966_v47 = vmul.f32 0.70710677, %v17488_v50  ;;  %v10619_v15 = vpop.f32.mrf.mxu0  ;;  %v19013_v18 = vld [vmem:[#allocation95_spill] sm:$0xff] }
0x1101   : > { %v17521_v16 = vadd.f32 %v17372_v54, %v8291_v32  ;;  %v11740_v46 = vpop.eup %11739  ;;  %v8956_v17 = vmul.f32 0.70710677, %v17493_v33  ;;  %v17526_v41 = vmul.f32 %v17256_v12, %v19011_v42  ;;  %v17530_v26 = vadd.f32 %v19013_v18, %v19012_v28  ;;  %v17535_v32 = vpop.permute.xlu1 %7649  ;;  %v19039_v33 = vld [vmem:[#allocation32_spill] sm:$0xff] }
0x1102   : > { %v8604_v48 = vadd.f32 %v8572_v45, %v8535_v56  ;;  %v11742_v44 = vpop.eup %11741  ;;  %v8965_v54 = vmul.f32 0.70710677, %v17506_v30  ;;  %19014 = vst [vmem:[#allocation113_spill] sm:$0xff] %v17535_v32  ;;  %v17538_v40 = vadd.f32 1.0, %v17396_v9  ;;  %v19016_v56 = vrot.slane %v17478_v62, 7  ;;  %v17548_v18 = vpop.f32.mrf.mxu0 }
0x1103   : > { %v19017_v45 = vrot.slane %v17202_v61, 7  ;;  %v17546_v28 = vmul.f32 %v17368_v21, %v7756_v19  ;;  %19018 = vst [vmem:[#allocation29_spill] sm:$0xff] %v17548_v18  ;;  %v17551_v27 = vmul.f32 %v19019_v53, %v8652_v11  ;;  %v17553_v43 = vadd.f32 1.0, %v11738_v57  ;;  %v19025_v53 = vld [vmem:[#allocation84_spill] sm:$0xff]  ;;  %v17572_v18 = vpop.permute.xlu0 %8235 }
0x1104   : > { %19015 = vst [vmem:[#allocation35_spill] sm:$0xff] %v17538_v40  ;;  %v19021_v24 = vrot.slane %v17485_v55, 1  ;;  %v19022_v9 = vrot.slane %v17500_v14, 1  ;;  %11745 = verf.f32 %v8966_v47  ;;  %v7757_v32 = vrot.slane %v17478_v62, 1  ;;  %v10620_v19 = vpop.f32.mrf.mxu0 }
0x1105   : > { %v7470_v42 = vsel %vm7421_vm5, %v19017_v45, %v19016_v56  ;;  %19020 = vst [vmem:[#allocation68_spill] sm:$0xff] %v17553_v43  ;;  %v17562_v56 = vadd.f32 %v17154_v59, %v10619_v15  ;;  %11747 = verf.f32 %v8956_v17  ;;  %v17565_v11 = vadd.f32 1.0, %v11740_v46 }
0x1106   : > { %v7764_v60 = vsel %vm7709_vm6, %v19022_v9, %v19021_v24  ;;  %v17567_v57 = vadd.f32 1.0, %v11742_v44  ;;  %11749 = verf.f32 %v8965_v54  ;;  %v17570_v45 = vmul.f32 %v19025_v53, %v7470_v42  ;;  %v7343_v44 = vpop.f32.mrf.mxu0  ;;  %v17584_v9 = vpop.permute.xlu1 %8231  ;;  %v19029_v54 = vld [vmem:[#allocation81_spill] sm:$0xff]  ;;  %v19030_v53 = vld [vmem:[#allocation20_spill] sm:$0xff] }
0x1107   : > { %19023 = vst [vmem:[#allocation103_spill] sm:$0xff] %v17565_v11  ;;  %v19026_v24 = vrot.slane %v17503_v39, 1  ;;  %v17578_v15 = vadd.f32 %v17154_v59, %v10620_v19  ;;  %v17581_v17 = vmul.f32 %v17430_v7, %v7764_v60  ;;  %v8290_v46 = vmul.f32 %v17459_v10, %v8130_v37  ;;  %v19031_v7 = vld [vmem:[#allocation100_spill] sm:$0xff] }
0x1108   : > { %19024 = vst [vmem:[#allocation88_spill] sm:$0xff] %v17567_v57  ;;  %v8641_v42 = vmul.f32 %v17235_v23, %v17546_v28  ;;  %v8384_v21 = vadd.f32 %v19030_v53, %v19029_v54  ;;  %v7481_v57 = vrot.slane %v17562_v56, 7  ;;  %v17596_v10 = vmul.f32 %v19031_v7, %v17432_v22  ;;  %v19034_v7 = vld [vmem:[#allocation80_spill] sm:$0xff] }
0x1109   : > { %v7760_v47 = vsel %vm7709_vm6, %v7757_v32, %v19026_v24  ;;  %19027 = vst [vmem:[#allocation17_spill] sm:$0xff] %v17578_v15  ;;  %19028 = vst [vmem:[#allocation111_spill] sm:$0xff] %v17581_v17  ;;  %v18426_v24 = vrot.slane %v17562_v56, 1  ;;  %v7388_v19 = vrot.slane %v17578_v15, 7  ;;  %v7771_v60 = vrot.slane %v17578_v15, 1 }
0x110a   : > { %v19032_v37 = vrot.slane %v17202_v61, 1  ;;  %v17602_v55 = vmul.f32 %v17399_v25, %v7760_v47  ;;  %v17605_v54 = vadd.f32 %v17154_v59, %v7343_v44  ;;  %v17613_v22 = vmul.f32 %v17105_v4, %v17570_v45  ;;  %v17619_v25 = vpop.permute.xlu0 %8239  ;;  %v19037_v44 = vld [vmem:[#allocation74_spill] sm:$0xff]  ;;  %v8766_v40 = vpop.permute.xlu1 %8765 }
0x110b   : > { %v7483_v53 = vsel %vm7421_vm5, %v7481_v57, %v7388_v19  ;;  %v7772_v36 = vsel %vm7709_vm6, %v18426_v24, %v7771_v60  ;;  %v17616_v61 = vadd.f32 %v19034_v7, %v8384_v21  ;;  %19036 = vst [vmem:[#allocation69_spill] sm:$0xff] %v17619_v25  ;;  %v8673_v17 = vadd.f32 %v8641_v42, %v8604_v48  ;;  %v19043_v42 = vld [vmem:[#allocation78_spill] sm:$0xff] }
0x110c   : > { %v7758_v11 = vsel %vm7709_vm6, %v19032_v37, %v7757_v32  ;;  %19033 = vst [vmem:[#allocation104_spill] sm:$0xff] %v17605_v54  ;;  %v19035_v32 = vld [vmem:[#allocation98_spill] sm:$0xff]  ;;  %v18427_v47 = vrot.slane %v17605_v54, 7  ;;  %v17623_v59 = vmul.f32 %v19037_v44, %v7483_v53  ;;  %v19040_v43 = vrot.slane %v19039_v33, 7  ;;  %v19045_v44 = vld [vmem:[#allocation25_spill] sm:$0xff] }
0x110d   : > { %v8497_v37 = vadd.f32 %v19035_v32, %v8290_v46  ;;  %v8009_v13 = vmul.f32 %v17118_v2, %v17578_v15  ;;  %v19041_v21 = vrot.slane %v19039_v33, 1  ;;  %v17633_v7 = vmul.f32 %v7929_v31, %v7772_v36  ;;  %v17635_v32 = vpop.eup %11743 }
0x110e   : > { %19038 = vst [vmem:[#allocation21_spill] sm:$0xff] %v17623_v59  ;;  %v7516_v24 = vsel %vm7421_vm5, %v7388_v19, %v19040_v43  ;;  %19042 = vst [vmem:[#allocation39_spill] sm:$0xff] %v17635_v32  ;;  %v8832_v53 = vmul.f32 %v8766_v40, %v17376_v34  ;;  %v7482_v48 = vsel %vm7421_vm5, %v18427_v47, %v7481_v57  ;;  %v19046_v40 = vld [vmem:[#allocation77_spill] sm:$0xff]  ;;  %v8770_v54 = vpop.permute.xlu1 %8769 }
0x110f   : > { %v7806_v46 = vsel %vm7709_vm6, %v7771_v60, %v19041_v21  ;;  %v7972_v19 = vmul.f32 %v17134_v35, %v17623_v59  ;;  %v17647_v33 = vmul.f32 %v19045_v44, %v7482_v48  ;;  %v8040_v36 = vmul.f32 %v17118_v2, %v17562_v56  ;;  %v17658_v60 = vpop.permute.xlu0 %8255 }
0x1110   : > { %v17642_v43 = vmul.f32 %v19043_v42, %v7806_v46  ;;  %v8338_v31 = vmul.f32 %v17142_v8, %v17623_v59  ;;  %v8375_v34 = vmul.f32 %v17127_v29, %v17578_v15  ;;  %v17656_v57 = vmul.f32 %v19046_v40, %v7516_v24  ;;  %19047 = vst [vmem:[#allocation12_spill] sm:$0xff] %v17658_v60  ;;  %v19048_v59 = vld [vmem:[#allocation107_spill] sm:$0xff] }
0x1111   : > { %v8864_v21 = vadd.f32 %v8832_v53, %v8497_v37  ;;  %v8041_v46 = vadd.f32 %v8009_v13, %v7972_v19  ;;  %v8580_v48 = vmul.f32 %v17207_v51, %v17562_v56  ;;  %v8003_v42 = vmul.f32 %v17134_v35, %v17647_v33  ;;  %v11746_v24 = vpop.eup %11745 }
0x1112   : > { %19044 = vst [vmem:[#allocation26_spill] sm:$0xff] %v17642_v43  ;;  %v8407_v44 = vadd.f32 %v8375_v34, %v8338_v31  ;;  %v8444_v47 = vmul.f32 %v17256_v12, %v17642_v43  ;;  %v8543_v32 = vmul.f32 %v17105_v4, %v17647_v33  ;;  %v8078_v13 = vmul.f32 %v17189_v58, %v17642_v43  ;;  %v17675_v19 = vpop.eup %11747 }
0x1113   : > { %v17669_v40 = vadd.f32 %v17363_v38, %v8864_v21  ;;  %v8109_v37 = vmul.f32 %v17189_v58, %v17633_v7  ;;  %v8833_v53 = vmul.f32 %v8770_v54, %v8673_v17  ;;  %v8072_v31 = vadd.f32 %v8040_v36, %v8003_v42  ;;  %v11750_v2 = vpop.eup %11749  ;;  %v17692_v42 = vpop.permute.xlu1 %7659 }
0x1114   : > { %v8476_v34 = vadd.f32 %v8444_v47, %v8407_v44  ;;  %v8612_v60 = vadd.f32 %v8580_v48, %v8543_v32  ;;  %v8649_v25 = vmul.f32 %v17235_v23, %v17633_v7  ;;  %v8110_v21 = vadd.f32 %v8078_v13, %v8041_v46  ;;  %v8268_v32 = vpop.permute.xlu0 %8267  ;;  %v19050_v46 = vld [vmem:[#allocation36_spill] sm:$0xff] }
0x1115   : > { %v8967_v14 = vmul.f32 0.70710677, %v17669_v40  ;;  %v8865_v15 = vadd.f32 %v8833_v53, %v17521_v16  ;;  %v7973_v43 = vmul.f32 %v17134_v35, %v17656_v57  ;;  %v17685_v17 = vmul.f32 %v19048_v59, %v17447_v52  ;;  %v19053_v53 = vld [vmem:[#allocation76_spill] sm:$0xff] }
0x1116   : > { %v9030_v54 = vadd.f32 1.0, %v11746_v24  ;;  %v8141_v36 = vadd.f32 %v8109_v37, %v8072_v31  ;;  %v17687_v47 = vadd.f32 %v8649_v25, %v8612_v60  ;;  %v8307_v44 = vmul.f32 %v17142_v8, %v17656_v57  ;;  %v19051_v60 = vld [vmem:[#allocation62_spill] sm:$0xff] }
0x1117   : > { %11751 = verf.f32 %v8967_v14  ;;  %v17690_v48 = vadd.f32 %v17363_v38, %v8865_v15  ;;  %v8042_v16 = vadd.f32 %v19050_v46, %v7973_v43  ;;  %v8934_v13 = vmul.f32 0.5, %v17488_v50  ;;  %v19052_v15 = vld [vmem:[#allocation63_spill] sm:$0xff] }
0x1118   : > { %19049 = vst [vmem:[#allocation18_spill] sm:$0xff] %v17687_v47  ;;  %v17699_v59 = vmul.f32 %v17423_v5, %v7758_v11  ;;  %v8301_v52 = vmul.f32 %v8268_v32, %v8141_v36  ;;  %v9029_v25 = vadd.f32 1.0, %v11750_v2  ;;  %v8270_v37 = vmul.f32 %v19052_v15, %v8110_v21  ;;  %v19055_v5 = vld [vmem:[#allocation79_spill] sm:$0xff]  ;;  %v17720_v32 = vpop.permute.xlu1 %7908 }
0x1119   : > { %v8968_v14 = vmul.f32 0.70710677, %v17690_v48  ;;  %v8111_v24 = vadd.f32 %v19051_v60, %v8042_v16  ;;  %v8376_v31 = vadd.f32 %v19053_v53, %v8307_v44  ;;  %v8933_v43 = vmul.f32 0.5, %v17506_v30 }
0x111a   : > { %v8536_v46 = vmul.f32 %v17105_v4, %v17685_v17  ;;  %v17708_v47 = vmul.f32 %v9030_v54, %v8934_v13  ;;  %v17710_v50 = vadd.f32 %v8476_v34, %v8301_v52  ;;  %v8330_v2 = vmul.f32 %v17142_v8, %v17685_v17 }
0x111b   : > { %11753 = verf.f32 %v8968_v14  ;;  %v8271_v11 = vmul.f32 %v19055_v5, %v8111_v24  ;;  %v8445_v36 = vadd.f32 %v17526_v41, %v8376_v31  ;;  %v8435_v21 = vmul.f32 %v17256_v12, %v17546_v28  ;;  %v19056_v41 = vld [vmem:[#allocation64_spill] sm:$0xff] }
0x111c   : > { %19054 = vst [vmem:[#allocation82_spill] sm:$0xff] %v17710_v50  ;;  %v8101_v30 = vmul.f32 %v17189_v58, %v17546_v28  ;;  %v8642_v34 = vmul.f32 %v17235_v23, %v17699_v59  ;;  %v17724_v54 = vmul.f32 %v9029_v25, %v8933_v43  ;;  %v8574_v16 = vmul.f32 %v17207_v51, %v17478_v62  ;;  %v8774_v43 = vpop.permute.xlu1 %8773  ;;  %v19079_v25 = vld [vmem:[#allocation109_spill] sm:$0xff]  ;;  %v19081_v50 = vld [vmem:[#allocation23_spill] sm:$0xff] }
0x111d   : > { %v8477_v44 = vadd.f32 %v8445_v36, %v8270_v37  ;;  %v8478_v13 = vadd.f32 %v17530_v26, %v8271_v11  ;;  %v8485_v52 = vadd.f32 %v17616_v61, %v19056_v41  ;;  %v8436_v14 = vmul.f32 %v17256_v12, %v17699_v59  ;;  %v19057_v26 = vld [vmem:[#allocation66_spill] sm:$0xff] }
0x111e   : > { %v8292_v28 = vmul.f32 %v17584_v9, %v17374_v1  ;;  %v8605_v60 = vadd.f32 %v17514_v3, %v8536_v46  ;;  %v8643_v24 = vmul.f32 %v17235_v23, %v17602_v55  ;;  %v8399_v53 = vadd.f32 %v17455_v6, %v8330_v2 }
0x111f   : > { %v8844_v15 = vadd.f32 %v17551_v27, %v8477_v44  ;;  %v8845_v37 = vadd.f32 %v19057_v26, %v8478_v13  ;;  %v8852_v61 = vadd.f32 %v17407_v0, %v8485_v52  ;;  %v8133_v31 = vadd.f32 %v8101_v30, %v17480_v63 }
0x1120   : > { %v8467_v1 = vadd.f32 %v8435_v21, %v17495_v20  ;;  %v8674_v9 = vadd.f32 %v8642_v34, %v8605_v60  ;;  %v7471_v3 = vrot.slane %v17503_v39, 7  ;;  %v8606_v46 = vadd.f32 %v8574_v16, %v17613_v22  ;;  %v8778_v41 = vpop.permute.xlu1 %8777 }
0x1121   : > { %v17749_v5 = vadd.f32 %v17363_v38, %v8844_v15  ;;  %v17752_v27 = vadd.f32 %v17363_v38, %v8845_v37  ;;  %v8368_v0 = vmul.f32 %v17127_v29, %v17478_v62  ;;  %v8468_v63 = vadd.f32 %v8436_v14, %v8399_v53 }
0x1122   : > { %v8499_v6 = vadd.f32 %v8467_v1, %v8292_v28  ;;  %v8834_v2 = vmul.f32 %v8774_v43, %v8674_v9  ;;  %v8855_v20 = vadd.f32 %v17596_v10, %v17475_v49  ;;  %v8675_v11 = vadd.f32 %v8643_v24, %v8606_v46 }
0x1123   : > { %v8947_v36 = vmul.f32 0.70710677, %v17749_v5  ;;  %v17760_v22 = vadd.f32 %v17363_v38, %v8852_v61  ;;  %v8293_v30 = vmul.f32 %v17572_v18, %v8133_v31  ;;  %v8948_v16 = vmul.f32 0.70710677, %v17752_v27  ;;  %v19059_v31 = vld [vmem:[#allocation21_spill] sm:$0xff] }
0x1124   : > { %v11752_v21 = vpop.eup %11751  ;;  %v8866_v34 = vadd.f32 %v8834_v2, %v8499_v6  ;;  %v8337_v44 = vmul.f32 %v17142_v8, %v17647_v33  ;;  %v8331_v13 = vmul.f32 %v17142_v8, %v17570_v45  ;;  %v19058_v49 = vrot.slane %v17478_v62, 7  ;;  %v19060_v2 = vld [vmem:[#allocation85_spill] sm:$0xff] }
0x1125   : > { %11755 = verf.f32 %v8947_v36  ;;  %v8374_v18 = vmul.f32 %v17127_v29, %v17562_v56  ;;  %v8500_v14 = vadd.f32 %v8468_v63, %v8293_v30  ;;  %v8835_v28 = vmul.f32 %v8778_v41, %v8675_v11  ;;  %v19061_v11 = vld [vmem:[#allocation17_spill] sm:$0xff] }
0x1126   : > { %v7472_v10 = vsel %vm7421_vm5, %v19058_v49, %v7471_v3  ;;  %v17776_v52 = vadd.f32 %v17363_v38, %v8866_v34  ;;  %11757 = verf.f32 %v8948_v16  ;;  %v8955_v33 = vmul.f32 0.70710677, %v17760_v22 }
0x1127   : > { %v9031_v60 = vadd.f32 1.0, %v11752_v21  ;;  %v8406_v24 = vadd.f32 %v8374_v18, %v8337_v44  ;;  %v8443_v15 = vmul.f32 %v17256_v12, %v17633_v7  ;;  %v17782_v37 = vadd.f32 %v17363_v38, %v8855_v20  ;;  %v17795_v20 = vpop.permute.xlu1 %7920  ;;  %v19062_v44 = vld [vmem:[#allocation26_spill] sm:$0xff]  ;;  %v19063_v18 = vld [vmem:[#allocation28_spill] sm:$0xff] }
0x1128   : > { %v11754_v26 = vpop.eup %11753  ;;  %v8969_v61 = vmul.f32 0.70710677, %v17776_v52  ;;  %v8867_v53 = vadd.f32 %v8835_v28, %v8500_v14  ;;  %v8544_v1 = vmul.f32 %v17105_v4, %v19059_v31  ;;  %v8935_v9 = vmul.f32 0.5, %v17669_v40  ;;  %v19069_v31 = vld [vmem:[#allocation27_spill] sm:$0xff] }
0x1129   : > { %v8936_v43 = vmul.f32 0.5, %v17690_v48  ;;  %v9032_v46 = vadd.f32 1.0, %v11754_v26  ;;  %v17789_v6 = vadd.f32 %v8443_v15, %v8406_v24  ;;  %v7702_v63 = vmul.f32 %v19060_v2, %v7472_v10  ;;  %v19067_v15 = vld [vmem:[#allocation86_spill] sm:$0xff] }
0x112a   : > { %11759 = verf.f32 %v8969_v61  ;;  %v17793_v7 = vadd.f32 %v17363_v38, %v8867_v53  ;;  %v8581_v36 = vmul.f32 %v17207_v51, %v19061_v11  ;;  %v17799_v21 = vmul.f32 %v9031_v60, %v8935_v9 }
0x112b   : > { %11761 = verf.f32 %v8955_v33  ;;  %v17801_v40 = vmul.f32 %v9032_v46, %v8936_v43  ;;  %v8545_v48 = vmul.f32 %v17105_v4, %v17656_v57  ;;  %v8958_v30 = vmul.f32 0.70710677, %v17782_v37  ;;  %v17831_v53 = vpop.permute.xlu1 %8243  ;;  %v19071_v43 = vld [vmem:[#allocation89_spill] sm:$0xff] }
0x112c   : > { %v8970_v34 = vmul.f32 0.70710677, %v17793_v7  ;;  %v8613_v16 = vadd.f32 %v8581_v36, %v8544_v1  ;;  %v8650_v49 = vmul.f32 %v17235_v23, %v19062_v44  ;;  %v7996_v10 = vmul.f32 %v17134_v35, %v17685_v17  ;;  %v19070_v1 = vld [vmem:[#allocation35_spill] sm:$0xff]  ;;  %v19075_v44 = vld [vmem:[#allocation14_spill] sm:$0xff] }
0x112d   : > { %v8437_v41 = vmul.f32 %v17256_v12, %v17602_v55  ;;  %v19064_v14 = vrot.slane %v19063_v18, 1  ;;  %v19065_v28 = vrot.slane %v17503_v39, 1  ;;  %v17826_v17 = vadd.f32 %v19067_v15, %v8545_v48 }
0x112e   : > { %11763 = verf.f32 %v8970_v34  ;;  %v17823_v24 = vadd.f32 %v8650_v49, %v8613_v16  ;;  %v8102_v26 = vmul.f32 %v17189_v58, %v17699_v59  ;;  %v7473_v61 = vrot.slane %v19063_v18, 7  ;;  %v19073_v59 = vld [vmem:[#allocation101_spill] sm:$0xff]  ;;  %v19074_v34 = vld [vmem:[#allocation111_spill] sm:$0xff] }
0x112f   : > { %v7762_v57 = vsel %vm7709_vm6, %v19065_v28, %v19064_v14  ;;  %19068 = vst [vmem:[#allocation24_spill] sm:$0xff] %v17826_v17  ;;  %v17835_v9 = vmul.f32 %v19070_v1, %v19069_v31  ;;  %11765 = verf.f32 %v8958_v30  ;;  %v8400_v2 = vadd.f32 %v8368_v0, %v8331_v13  ;;  %v19076_v13 = vld [vmem:[#allocation61_spill] sm:$0xff] }
0x1130   : > { %v17821_v60 = vmul.f32 %v17720_v32, %v7762_v57  ;;  %19066 = vst [vmem:[#allocation106_spill] sm:$0xff] %v17823_v24  ;;  %v19072_v32 = vld [vmem:[#allocation68_spill] sm:$0xff]  ;;  %v8538_v11 = vmul.f32 %v17105_v4, %v7702_v63  ;;  %v17842_v36 = vmul.f32 %v17127_v29, %v19063_v18  ;;  %v8924_v48 = vmul.f32 0.5, %v19073_v59  ;;  %v19082_v24 = vld [vmem:[#allocation29_spill] sm:$0xff] }
0x1131   : > { %v9048_v46 = vmul.f32 %v19072_v32, %v19071_v43  ;;  %v17847_v16 = vmul.f32 %v17256_v12, %v19074_v34  ;;  %v8065_v49 = vadd.f32 %v19075_v44, %v7996_v10  ;;  %v7474_v14 = vsel %vm7421_vm5, %v7471_v3, %v7473_v61  ;;  %v17865_v44 = vpop.permute.xlu1 %7664 }
0x1132   : > { %v11756_v30 = vpop.eup %11755  ;;  %v8469_v0 = vadd.f32 %v8437_v41, %v8400_v2  ;;  %v19077_v28 = vrot.slane %v19076_v13, 7  ;;  %v8575_v15 = vmul.f32 %v17207_v51, %v17503_v39  ;;  %v8644_v31 = vmul.f32 %v17235_v23, %v17821_v60 }
0x1133   : > { %v11758_v1 = vpop.eup %11757  ;;  %v8134_v43 = vadd.f32 %v8102_v26, %v8065_v49  ;;  %v7997_v10 = vmul.f32 %v17134_v35, %v17570_v45  ;;  %v8915_v32 = vmul.f32 0.5, %v17749_v5  ;;  %v9011_v3 = vadd.f32 1.0, %v11756_v30 }
0x1134   : > { %v7476_v57 = vsel %vm7421_vm5, %v7473_v61, %v19077_v28  ;;  %v8607_v59 = vadd.f32 %v8575_v15, %v8538_v11  ;;  %v8332_v41 = vmul.f32 %v17142_v8, %v7702_v63  ;;  %v8916_v2 = vmul.f32 0.5, %v17752_v27  ;;  %v19078_v28 = vld [vmem:[#allocation113_spill] sm:$0xff] }
0x1135   : > { %v9012_v61 = vadd.f32 1.0, %v11758_v1  ;;  %v17868_v33 = vmul.f32 %v19078_v28, %v7474_v14  ;;  %v8034_v26 = vmul.f32 %v19079_v25, %v17478_v62  ;;  %v8103_v45 = vmul.f32 %v17189_v58, %v17602_v55  ;;  %v19080_v15 = vld [vmem:[#allocation69_spill] sm:$0xff]  ;;  %v19083_v55 = vld [vmem:[#allocation16_spill] sm:$0xff] }
0x1136   : > { %v9043_v49 = vmul.f32 %v9011_v3, %v8915_v32  ;;  %v8676_v5 = vadd.f32 %v8644_v31, %v8607_v59  ;;  %v8369_v11 = vmul.f32 %v17127_v29, %v17503_v39  ;;  %v7998_v27 = vmul.f32 %v17134_v35, %v7702_v63  ;;  %v19085_v59 = vld [vmem:[#allocation34_spill] sm:$0xff] }
0x1137   : > { %v9044_v8 = vmul.f32 %v9012_v61, %v8916_v2  ;;  %v11760_v30 = vpop.eup %11759  ;;  %v8294_v1 = vmul.f32 %v19080_v15, %v8134_v43  ;;  %v17879_v14 = vmul.f32 %v19081_v50, %v7476_v57  ;;  %v8066_v28 = vadd.f32 %v8034_v26, %v7997_v10  ;;  %v17891_v57 = vpop.permute.xlu1 %8247  ;;  %v19088_v61 = vld [vmem:[#allocation75_spill] sm:$0xff] }
0x1138   : > { %v9077_v62 = vpack.c.bf16 %v9048_v46, %v17835_v9  ;;  %v11762_v17 = vpop.eup %11761  ;;  %v17884_v32 = vadd.f32 %v19083_v55, %v19082_v24  ;;  %v8401_v31 = vadd.f32 %v8369_v11, %v8332_v41  ;;  %v8035_v29 = vmul.f32 %v19079_v25, %v17503_v39  ;;  %v19084_v46 = vld [vmem:[#allocation87_spill] sm:$0xff] }
0x1139   : > { %v9075_v3 = vpack.c.bf16 %v9044_v8, %v9043_v49  ;;  %v8926_v35 = vmul.f32 0.5, %v17782_v37  ;;  %v8539_v63 = vmul.f32 %v17105_v4, %v17868_v33  ;;  %v8135_v50 = vadd.f32 %v8103_v45, %v8066_v28  ;;  %v19086_v41 = vld [vmem:[#allocation103_spill] sm:$0xff]  ;;  %v19087_v37 = vld [vmem:[#allocation108_spill] sm:$0xff] }
0x113a   : > { %v9020_v9 = vadd.f32 1.0, %v17675_v19  ;;  %v8836_v43 = vmul.f32 %v19084_v46, %v8676_v5  ;;  %v9033_v10 = vadd.f32 1.0, %v11760_v30  ;;  %v17895_v24 = vadd.f32 %v8035_v29, %v7998_v27  ;;  %v19090_v4 = vld [vmem:[#allocation99_spill] sm:$0xff]  ;;  %v19091_v45 = vld [vmem:[#allocation88_spill] sm:$0xff] }
0x113b   : > { %10637 = vmatprep.mubr.bf16.mxu1 %v9075_v3  ;;  %v9049_v2 = vmul.f32 %v19086_v41, %v19085_v59  ;;  %v11764_v39 = vpop.eup %11763  ;;  %v8501_v25 = vadd.f32 %v8469_v0, %v8294_v1  ;;  %v19089_v26 = vpack.c.bf16 %v19087_v37, %v19088_v61  ;;  %v9050_v49 = vmul.f32 %v19091_v45, %v19090_v4  ;;  %v17912_v55 = vpop.permute.xlu1 %8251  ;;  %v19093_v37 = vld [vmem:[#allocation39_spill] sm:$0xff]  ;;  %v17945_v61 = vld [vmem:[%s18242_s10 + $0x3] ss:$0 sm:$0xff] }
0x113c   : > { %v9019_v11 = vadd.f32 1.0, %v11762_v17  ;;  %v8576_v19 = vmul.f32 %v17207_v51, %v19063_v18  ;;  %v7765_v5 = vrot.slane %v17884_v32, 1  ;;  %v8937_v8 = vmul.f32 0.5, %v17776_v52  ;;  %v11766_v0 = vpop.eup %11765  ;;  %v17921_v52 = vld [vmem:[%s18242_s10 + $0x1] ss:$0 sm:$0xff] }
0x113d   : > { %10638 = vmatmul.mubr.bf16.vlgmr.msra.gmra.mxu1 %v19089_v26  ;;  %v8938_v27 = vmul.f32 0.5, %v17793_v7  ;;  %v9034_v30 = vadd.f32 1.0, %v11764_v39  ;;  %v8438_v15 = vmul.f32 %v17256_v12, %v17821_v60  ;;  %v8923_v1 = vmul.f32 0.5, %v17760_v22  ;;  %v19094_v26 = vld [vmem:[#allocation104_spill] sm:$0xff] }
0x113e   : > { %10641 = vmatprep.mubr.bf16.mxu1 %v9077_v62  ;;  %v9052_v28 = vmul.f32 %v9020_v9, %v8924_v48  ;;  %v8608_v17 = vadd.f32 %v8576_v19, %v8539_v63  ;;  %v8868_v3 = vadd.f32 %v8836_v43, %v8501_v25  ;;  %v17914_v29 = vmul.f32 %v9033_v10, %v8937_v8 }
0x113f   : > { %v17916_v46 = vmul.f32 %v9034_v30, %v8938_v27  ;;  %v8036_v7 = vmul.f32 %v17921_v52, %v19063_v18  ;;  %v8295_v62 = vmul.f32 %v17831_v53, %v8135_v50  ;;  %v9078_v22 = vpack.c.bf16 %v9050_v49, %v9049_v2  ;;  %v17938_v50 = vld [vmem:[%s18242_s10] ss:$0 sm:$0xff]  ;;  %v8786_v45 = vpop.permute.xlu1 %8785 }
0x1140   : > { %v9051_v48 = vmul.f32 %v9019_v11, %v8923_v1  ;;  %v8645_v63 = vmul.f32 %v17235_v23, %v19074_v34  ;;  %v9022_v9 = vadd.f32 1.0, %v11766_v0  ;;  %v19092_v43 = vrot.slane %v19076_v13, 1  ;;  %v19095_v11 = vld [vmem:[#allocation110_spill] sm:$0xff] }
0x1141   : > { %v7477_v59 = vrot.slane %v17884_v32, 7  ;;  %v9086_v41 = vpack.c.bf16 %v17916_v46, %v17914_v29  ;;  %v8470_v39 = vadd.f32 %v8438_v15, %v8401_v31  ;;  %v9021_v53 = vadd.f32 1.0, %v19093_v37  ;;  %v17964_v1 = vld [vmem:[%s18242_s10 + $0x2] ss:$0 sm:$0xff] }
0x1142   : > { %v7766_v10 = vsel %vm7709_vm6, %v19092_v43, %v7765_v5  ;;  %v9079_v25 = vpack.c.bf16 %v9052_v28, %v9051_v48  ;;  %v8677_v18 = vadd.f32 %v8645_v63, %v8608_v17  ;;  %v7999_v2 = vmul.f32 %v17938_v50, %v17868_v33 }
0x1143   : > { %v8333_v31 = vmul.f32 %v17945_v61, %v17868_v33  ;;  %v7767_v4 = vrot.slane %v19094_v26, 1  ;;  %v17951_v49 = vadd.f32 %v17363_v38, %v8868_v3  ;;  %v17954_v19 = vmul.f32 %v19095_v11, %v7766_v10  ;;  %v19097_v3 = vld [vmem:[#allocation105_spill] sm:$0xff] }
0x1144   : > { %v8502_v8 = vadd.f32 %v8470_v39, %v8295_v62  ;;  %v8104_v27 = vmul.f32 %v17189_v58, %v17821_v60  ;;  %v8837_v30 = vmul.f32 %v8786_v45, %v8677_v18  ;;  %v9054_v0 = vmul.f32 %v9022_v9, %v8926_v35  ;;  %v17971_v58 = vld [vmem:[%s18242_s10 + $0x6] ss:$0 sm:$0xff]  ;;  %v7925_v39 = vpop.permute.xlu1 %7924 }
0x1145   : > { %10642 = vmatmul.mubr.bf16.gmra.mxu1 %v9078_v22  ;;  %v19096_v15 = vrot.slane %v19076_v13, 7  ;;  %v8105_v28 = vmul.f32 %v17964_v1, %v19074_v34  ;;  %v8540_v60 = vmul.f32 %v17971_v58, %v17879_v14  ;;  %v9053_v62 = vmul.f32 %v9021_v53, %v19097_v3 }
0x1146   : > { %10645 = vmatprep.mubr.bf16.mxu1 %v9079_v25  ;;  %v8869_v17 = vadd.f32 %v8837_v30, %v8502_v8  ;;  %v8577_v22 = vmul.f32 %v17207_v51, %v19076_v13  ;;  %v7768_v48 = vsel %vm7709_vm6, %v7765_v5, %v7767_v4  ;;  %v8402_v34 = vadd.f32 %v17842_v36, %v8333_v31  ;;  %v11840_v36 = vld [vmem:[%s18242_s10 + $0x4] ss:$0 sm:$0xff]  ;;  %v18009_v8 = vld [vmem:[%s18242_s10 + $0x7] ss:$0 sm:$0xff]  ;;  %v19099_v30 = vld [vmem:[#allocation7_spill] sm:$0xff] }
0x1147   : > { %v7478_v33 = vsel %vm7421_vm5, %v19096_v15, %v7477_v59  ;;  %v8068_v63 = vadd.f32 %v8036_v7, %v7999_v2  ;;  %v8971_v9 = vmul.f32 0.70710677, %v17951_v49  ;;  %v17983_v43 = vmul.f32 %v17795_v20, %v7768_v48 }
0x1148   : > { %v7705_v35 = vmul.f32 %v17692_v42, %v7478_v33  ;;  %v8136_v10 = vadd.f32 %v8104_v27, %v17895_v24  ;;  %v17987_v42 = vadd.f32 %v17363_v38, %v8869_v17  ;;  %v8646_v25 = vmul.f32 %v17235_v23, %v17954_v19 }
0x1149   : > { %v8334_v51 = vmul.f32 %v17945_v61, %v17879_v14  ;;  %v8371_v5 = vmul.f32 %v11840_v36, %v19076_v13  ;;  %v9080_v20 = vpack.c.bf16 %v9054_v0, %v9053_v62  ;;  %v8609_v7 = vadd.f32 %v8577_v22, %v8540_v60  ;;  %v19100_v0 = vld [vmem:[#allocation11_spill] sm:$0xff]  ;;  %v8790_v60 = vpop.permute.xlu1 %8789 }
0x114a   : > { %v8541_v24 = vmul.f32 %v17971_v58, %v7705_v35  ;;  %v19098_v18 = vrot.slane %v19094_v26, 7  ;;  %v8296_v53 = vmul.f32 %v17891_v57, %v8136_v10  ;;  %v8972_v23 = vmul.f32 0.70710677, %v17987_v42 }
0x114b   : > { %v8471_v2 = vadd.f32 %v17847_v16, %v8402_v34  ;;  %v8137_v31 = vadd.f32 %v8105_v28, %v8068_v63  ;;  %v8440_v45 = vmul.f32 %v17256_v12, %v17954_v19  ;;  %11767 = verf.f32 %v8971_v9  ;;  %v18016_v16 = vld [vmem:[%s18242_s10 + $0x8] ss:$0 sm:$0xff] }
0x114c   : > { %v7480_v37 = vsel %vm7421_vm5, %v7477_v59, %v19098_v18  ;;  %11769 = verf.f32 %v8972_v23  ;;  %v8678_v11 = vadd.f32 %v8646_v25, %v8609_v7  ;;  %v8578_v57 = vmul.f32 %v18009_v8, %v17884_v32  ;;  %v19103_v23 = vld [vmem:[#allocation22_spill] sm:$0xff] }
0x114d   : > { %10646 = vmatmul.mubr.bf16.gmra.mxu1 %v9080_v20  ;;  %v8647_v12 = vmul.f32 %v18016_v16, %v17983_v43  ;;  %v7706_v59 = vmul.f32 %v17865_v44, %v7480_v37  ;;  %v8403_v27 = vadd.f32 %v8371_v5, %v8334_v51  ;;  %v19101_v15 = vpack.c.bf16 %v19099_v30, %v19100_v0 }
0x114e   : > { %v19102_v33 = vrot.slane %v17562_v56, 1  ;;  %v8503_v17 = vadd.f32 %v8471_v2, %v8296_v53  ;;  %v8297_v3 = vmul.f32 %v17912_v55, %v8137_v31  ;;  %v8838_v62 = vmul.f32 %v8790_v60, %v8678_v11  ;;  %v8794_v56 = vpop.permute.xlu1 %8793  ;;  %v19104_v2 = vld [vmem:[#allocation19_spill] sm:$0xff]  ;;  %v19106_v11 = vld [vmem:[#allocation102_spill] sm:$0xff] }
0x114f   : > { %10649 = vmatprep.mubr.bf16.mxu1 %v19101_v15  ;;  %v8610_v22 = vadd.f32 %v8578_v57, %v8541_v24  ;;  %v8001_v48 = vmul.f32 %v17938_v50, %v7705_v35  ;;  %v8472_v63 = vadd.f32 %v8440_v45, %v8403_v27  ;;  %v8037_v10 = vmul.f32 %v17921_v52, %v19076_v13  ;;  %v11843_v13 = vld [vmem:[%s18242_s10 + $0x5] ss:$0 sm:$0xff] }
0x1150   : > { %v7770_v28 = vsel %vm7709_vm6, %v7767_v4, %v19102_v33  ;;  %v8870_v44 = vadd.f32 %v8838_v62, %v8503_v17  ;;  %v8336_v25 = vmul.f32 %v17945_v61, %v7706_v59  ;;  %v8038_v4 = vmul.f32 %v17921_v52, %v17884_v32  ;;  %v19107_v57 = vld [vmem:[#allocation30_spill] sm:$0xff] }
0x1151   : > { %v7964_v34 = vmul.f32 %v7925_v39, %v7770_v28  ;;  %v8679_v9 = vadd.f32 %v8647_v12, %v8610_v22  ;;  %v8107_v55 = vmul.f32 %v17964_v1, %v17983_v43  ;;  %v8000_v51 = vmul.f32 %v17938_v50, %v17879_v14 }
0x1152   : > { %v8504_v5 = vadd.f32 %v8472_v63, %v8297_v3  ;;  %v18039_v39 = vadd.f32 %v17363_v38, %v8870_v44  ;;  %v8002_v7 = vmul.f32 %v17938_v50, %v7706_v59  ;;  %v8070_v18 = vadd.f32 %v8038_v4, %v8001_v48 }
0x1153   : > { %v8839_v20 = vmul.f32 %v8794_v56, %v8679_v9  ;;  %v8442_v24 = vmul.f32 %v11843_v13, %v7964_v34  ;;  %v8373_v37 = vmul.f32 %v11840_v36, %v19094_v26  ;;  %v8106_v53 = vmul.f32 %v17964_v1, %v17954_v19 }
0x1154   : > { %v8335_v14 = vmul.f32 %v17945_v61, %v7705_v35  ;;  %v19105_v31 = vpack.c.bf16 %v19103_v23, %v19104_v2  ;;  %v8973_v45 = vmul.f32 0.70710677, %v18039_v39  ;;  %v19108_v12 = vpack.c.bf16 %v19106_v11, %v19107_v57  ;;  %v8802_v61 = vpop.permute.xlu0 %8801  ;;  %v8260_v33 = vpop.permute.xlu1 %8259 }
0x1155   : > { %v8871_v50 = vadd.f32 %v8839_v20, %v8504_v5  ;;  %v8139_v27 = vadd.f32 %v8107_v55, %v8070_v18  ;;  %v8405_v30 = vadd.f32 %v8373_v37, %v8336_v25  ;;  %v8039_v0 = vmul.f32 %v17921_v52, %v19094_v26 }
0x1156   : > { %10650 = vmatmul.mubr.bf16.gmra.mxu1 %v19105_v31  ;;  %v8108_v19 = vmul.f32 %v17964_v1, %v7964_v34  ;;  %v8069_v15 = vadd.f32 %v8037_v10, %v8000_v51  ;;  %11771 = verf.f32 %v8973_v45  ;;  %v8372_v28 = vmul.f32 %v11840_v36, %v17884_v32  ;;  %v19109_v1 = vld [vmem:[#allocation18_spill] sm:$0xff] }
0x1157   : > { %10653 = vmatprep.mubr.bf16.mxu1 %v19108_v12  ;;  %v8910_v35 = vadd.f32 %v17363_v38, %v8871_v50  ;;  %v8299_v60 = vmul.f32 %v8260_v33, %v8139_v27  ;;  %v8474_v17 = vadd.f32 %v8442_v24, %v8405_v30  ;;  %v8071_v3 = vadd.f32 %v8039_v0, %v8002_v7  ;;  %v19112_v24 = vld [vmem:[#allocation12_spill] sm:$0xff]  ;;  %v19114_v50 = vld [vmem:[#allocation90_spill] sm:$0xff] }
0x1158   : > { %v11768_v62 = vpop.eup %11767  ;;  %v8138_v22 = vadd.f32 %v8106_v53, %v8069_v15  ;;  %v8441_v48 = vmul.f32 %v11843_v13, %v17983_v43  ;;  %v8542_v63 = vmul.f32 %v17971_v58, %v7706_v59  ;;  %v8841_v9 = vmul.f32 %v8802_v61, %v19109_v1  ;;  %v8264_v38 = vpop.permute.xlu1 %8263  ;;  %v19115_v30 = vld [vmem:[#allocation24_spill] sm:$0xff] }
0x1159   : > { %v8974_v52 = vmul.f32 0.70710677, %v8910_v35  ;;  %v11770_v44 = vpop.eup %11769  ;;  %v8404_v10 = vadd.f32 %v8372_v28, %v8335_v14  ;;  %v8506_v25 = vadd.f32 %v8474_v17, %v8299_v60  ;;  %v8140_v56 = vadd.f32 %v8108_v19, %v8071_v3  ;;  %v19116_v3 = vld [vmem:[#allocation82_spill] sm:$0xff] }
0x115a   : > { %v8579_v32 = vmul.f32 %v18009_v8, %v19094_v26  ;;  %v8648_v36 = vmul.f32 %v18016_v16, %v7964_v34  ;;  %v9036_v4 = vadd.f32 1.0, %v11770_v44  ;;  %v8940_v55 = vmul.f32 0.5, %v17987_v42  ;;  %v11844_v26 = vld [vmem:[%s18243_s11] ss:$0 sm:$0xff] }
0x115b   : > { %11773 = verf.f32 %v8974_v52  ;;  %v8873_v43 = vadd.f32 %v8841_v9, %v8506_v25  ;;  %v8300_v51 = vmul.f32 %v8264_v38, %v8140_v56  ;;  %v9035_v58 = vadd.f32 1.0, %v11768_v62 }
0x115c   : > { %v19110_v59 = vpack.c.bf16 %v17708_v47, %v17724_v54  ;;  %v8473_v5 = vadd.f32 %v8441_v48, %v8404_v10  ;;  %v8611_v20 = vadd.f32 %v8579_v32, %v8542_v63  ;;  %v19111_v7 = vpack.c.bf16 %v17801_v40, %v17799_v21 }
0x115d   : > { %v8912_v8 = vadd.f32 %v11844_v26, %v8873_v43  ;;  %v8507_v42 = vadd.f32 %v17789_v6, %v8300_v51  ;;  %v8939_v34 = vmul.f32 0.5, %v17951_v49  ;;  %v9068_v13 = vmul.f32 %v9036_v4, %v8940_v55  ;;  %v8798_v54 = vpop.permute.xlu1 %8797  ;;  %v19113_v49 = vld [vmem:[#allocation106_spill] sm:$0xff] }
0x115e   : > { %10654 = vmatmul.mubr.bf16.gmra.mxu1 %v19110_v59  ;;  %v8298_v18 = vmul.f32 %v19112_v24, %v8138_v22  ;;  %v8680_v47 = vadd.f32 %v8648_v36, %v8611_v20  ;;  %v8651_v11 = vmul.f32 %v18016_v16, %v19114_v50  ;;  %v8941_v15 = vmul.f32 0.5, %v18039_v39  ;;  %v18092_v59 = vld [vmem:[%s18245_s13] ss:$0 sm:$0xff]  ;;  %v19122_v50 = vld [vmem:[#allocation47_spill] sm:$0xff] }
0x115f   : > { %10657 = vmatprep.mubr.bf16.mxu1 %v19111_v7  ;;  %v9067_v37 = vmul.f32 %v9035_v58, %v8939_v34  ;;  %v8976_v53 = vmul.f32 0.70710677, %v8912_v8  ;;  %v8942_v61 = vmul.f32 0.5, %v8910_v35  ;;  %v8944_v44 = vmul.f32 0.5, %v8912_v8 }
0x1160   : > { %v8505_v14 = vadd.f32 %v8473_v5, %v8298_v18  ;;  %v8840_v23 = vmul.f32 %v8798_v54, %v8680_v47  ;;  %v8683_v0 = vadd.f32 %v8651_v11, %v19115_v30  ;;  %v19119_v54 = vld [vmem:[#allocation44_spill] sm:$0xff] }
0x1161   : > { %v9087_v21 = vpack.c.bf16 %v9068_v13, %v9067_v37  ;;  %v8806_v31 = vpop.permute.xlu1 %8805  ;;  %11775 = verf.f32 %v8976_v53  ;;  %v19118_v13 = vld [vmem:[#allocation5_spill] sm:$0xff] }
0x1162   : > { %v8872_v40 = vadd.f32 %v8840_v23, %v8505_v14  ;;  %v8842_v45 = vmul.f32 %v8806_v31, %v19113_v49  ;;  %v19120_v23 = vld [vmem:[#allocation41_spill] sm:$0xff]  ;;  %v19121_v31 = vld [vmem:[#allocation51_spill] sm:$0xff] }
0x1163   : > { %v11772_v2 = vpop.eup %11771 }
0x1164   : > { %v8911_v6 = vadd.f32 %v11844_v26, %v8872_v40  ;;  %v9037_v57 = vadd.f32 1.0, %v11772_v2  ;;  %v8874_v27 = vadd.f32 %v8842_v45, %v8507_v42 }
0x1165   : > { %v8810_v33 = vpop.permute.xlu1 %8809 }
0x1166   : > { %10658 = vmatmul.mubr.bf16.gmra.mxu1 %v9086_v41  ;;  %v8975_v12 = vmul.f32 0.70710677, %v8911_v6  ;;  %v8913_v29 = vadd.f32 %v11844_v26, %v8874_v27  ;;  %v8843_v46 = vmul.f32 %v8810_v33, %v8683_v0  ;;  %v9069_v41 = vmul.f32 %v9037_v57, %v8941_v15  ;;  %v19123_v27 = vld [vmem:[#allocation46_spill] sm:$0xff]  ;;  %v19124_v15 = vld [vmem:[#allocation49_spill] sm:$0xff] }
0x1167   : > { %10661 = vmatprep.mubr.bf16.mxu1 %v9087_v21  ;;  %v8943_v35 = vmul.f32 0.5, %v8911_v6 }
0x1168   : > { %v11774_v19 = vpop.eup %11773  ;;  %11777 = verf.f32 %v8975_v12  ;;  %v8977_v17 = vmul.f32 0.70710677, %v8913_v29  ;;  %v8875_v16 = vadd.f32 %v8843_v46, %v19116_v3  ;;  %v8945_v36 = vmul.f32 0.5, %v8913_v29  ;;  %v19125_v29 = vld [vmem:[#allocation54_spill] sm:$0xff] }
0x1169   : > { %v9038_v28 = vadd.f32 1.0, %v11774_v19 }
0x116a   : > { %11779 = verf.f32 %v8977_v17  ;;  %v8914_v62 = vadd.f32 %v11844_v26, %v8875_v16  ;;  %v19117_v26 = vld [vmem:[#allocation9_spill] sm:$0xff]  ;;  %v19126_v17 = vld [vmem:[#allocation56_spill] sm:$0xff] }
0x116b   : > { %v9070_v60 = vmul.f32 %v9038_v28, %v8942_v61 }
0x116c   : > { %v8978_v48 = vmul.f32 0.70710677, %v8914_v62  ;;  %v8946_v4 = vmul.f32 0.5, %v8914_v62 }
0x116d   : > { %v9088_v22 = vpack.c.bf16 %v9070_v60, %v9069_v41 }
0x116e   : > { %11781 = verf.f32 %v8978_v48  ;;  %v11776_v63 = vpop.eup %11775 }
0x116f   : > { %10662 = vmatmul.mubr.bf16.gmra.mxu1 %v9088_v22  ;;  %v9040_v52 = vadd.f32 1.0, %v11776_v63  ;;  %v19127_v22 = vld [vmem:[#allocation4_spill] sm:$0xff] }
0x1171   : > { %v9072_v10 = vmul.f32 %v9040_v52, %v8944_v44 }
0x1175   : > { %v11778_v39 = vpop.eup %11777 }
0x1176   : > { %v9039_v1 = vadd.f32 1.0, %v11778_v39  ;;  %v19128_v39 = vld [vmem:[#allocation40_spill] sm:$0xff] }
0x1177   : > { %v11780_v25 = vpop.eup %11779 }
0x1178   : > { %v9071_v9 = vmul.f32 %v9039_v1, %v8943_v35  ;;  %v9041_v38 = vadd.f32 1.0, %v11780_v25 }
0x117a   : > { %v9089_v56 = vpack.c.bf16 %v9072_v10, %v9071_v9  ;;  %v9073_v43 = vmul.f32 %v9041_v38, %v8945_v36  ;;  %v19129_v9 = vld [vmem:[#allocation52_spill] sm:$0xff]  ;;  %v19130_v38 = vld [vmem:[#allocation43_spill] sm:$0xff] }
0x117b   : > { %v11782_v32 = vpop.eup %11781 }
0x117c   : > { %10665 = vmatprep.mubr.bf16.mxu1 %v9089_v56  ;;  %v9042_v55 = vadd.f32 1.0, %v11782_v32 }
0x117e   : > { %v9074_v51 = vmul.f32 %v9042_v55, %v8946_v4  ;;  %v19131_v55 = vld [vmem:[#allocation45_spill] sm:$0xff] }
0x1180   : > { %v9090_v58 = vpack.c.bf16 %v9074_v51, %v9073_v43 }
0x1182   : > { %10666 = vmatmul.mubr.bf16.gmra.mxu1 %v9090_v58 }
0x11fd   : > { %v10639_v5 = vpop.f32.mrf.mxu1 }
0x11fe   : > { %v9205_v20 = vadd.f32 %v10639_v5, %v18092_v59  ;;  %v19132_v5 = vld [vmem:[#allocation48_spill] sm:$0xff] }
0x11ff   : > { %v9196_v7 = vpop.f32.mrf.mxu1 }
0x1200   : > { %v9325_v8 = vadd.f32 %v9205_v20, %v19117_v26  ;;  %v9197_v42 = vadd.f32 %v18092_v59, %v9196_v7 }
0x1201   : > { %v10640_v34 = vpop.f32.mrf.mxu1 }
0x1202   : > { %9357 = vst.msk [vmem:[%s18100_s25 + $0x10] sm:$0xff] %vm538_vm0, %v9325_v8  ;;  %v9323_v24 = vadd.f32 %v9197_v42, %v19118_v13  ;;  %v9208_v18 = vadd.f32 %v10640_v34, %v18092_v59  ;;  %v19133_v8 = vld [vmem:[#allocation6_spill] sm:$0xff] }
0x1203   : > { %v9199_v47 = vpop.f32.mrf.mxu1 }
0x1204   : > { %9355 = vst.msk [vmem:[%s18100_s25] sm:$0xff] %vm538_vm0, %v9323_v24  ;;  %v9326_v37 = vadd.f32 %v9208_v18, %v19119_v54  ;;  %v9200_v53 = vadd.f32 %v18092_v59, %v9199_v47  ;;  %v19134_v24 = vld [vmem:[#allocation42_spill] sm:$0xff] }
0x1205   : > { %v10643_v14 = vpop.f32.mrf.mxu1 }
0x1206   : > { %9358 = vst.msk [vmem:[%s18100_s25 + $0x18] sm:$0xff] %vm538_vm0, %v9326_v37  ;;  %v9324_v21 = vadd.f32 %v9200_v53, %v19120_v23  ;;  %v9221_v40 = vadd.f32 %v10643_v14, %v18092_v59  ;;  %v19135_v37 = vld [vmem:[#allocation53_spill] sm:$0xff] }
0x1207   : > { %v9212_v2 = vpop.f32.mrf.mxu1 }
0x1208   : > { %9356 = vst.msk [vmem:[%s18100_s25 + $0x8] sm:$0xff] %vm538_vm0, %v9324_v21  ;;  %v9329_v6 = vadd.f32 %v9221_v40, %v19121_v31  ;;  %v9213_v49 = vadd.f32 %v18092_v59, %v9212_v2  ;;  %v19136_v21 = vld [vmem:[#allocation50_spill] sm:$0xff] }
0x1209   : > { %v10644_v45 = vpop.f32.mrf.mxu1 }
0x120a   : > { %9361 = vst.msk [vmem:[%s18100_s25 + $0x30] sm:$0xff] %vm538_vm0, %v9329_v6  ;;  %v9327_v11 = vadd.f32 %v9213_v49, %v19122_v50  ;;  %v9224_v57 = vadd.f32 %v10644_v45, %v18092_v59  ;;  %v19137_v6 = vld [vmem:[#allocation3_spill] sm:$0xff] }
0x120b   : > { %v9215_v12 = vpop.f32.mrf.mxu1 }
0x120c   : > { %9359 = vst.msk [vmem:[%s18100_s25 + $0x20] sm:$0xff] %vm538_vm0, %v9327_v11  ;;  %v9330_v30 = vadd.f32 %v9224_v57, %v19123_v27  ;;  %v9216_v0 = vadd.f32 %v18092_v59, %v9215_v12  ;;  %v19138_v11 = vld [vmem:[#allocation72_spill] sm:$0xff] }
0x120d   : > { %v10647_v19 = vpop.f32.mrf.mxu1 }
0x120e   : > { %9362 = vst.msk [vmem:[%s18100_s25 + $0x38] sm:$0xff] %vm538_vm0, %v9330_v30  ;;  %v9328_v61 = vadd.f32 %v9216_v0, %v19124_v15  ;;  %v9237_v33 = vadd.f32 %v10647_v19, %v18092_v59  ;;  %v19139_v30 = vld [vmem:[#allocation55_spill] sm:$0xff]  ;;  %v19140_v15 = vld [vmem:[#allocation57_spill] sm:$0xff] }
0x120f   : > { %v9228_v28 = vpop.f32.mrf.mxu1 }
0x1210   : > { %9360 = vst.msk [vmem:[%s18100_s25 + $0x28] sm:$0xff] %vm538_vm0, %v9328_v61  ;;  %v9333_v46 = vadd.f32 %v9237_v33, %v19125_v29  ;;  %v9229_v41 = vadd.f32 %v18092_v59, %v9228_v28 }
0x1211   : > { %v10648_v60 = vpop.f32.mrf.mxu1 }
0x1212   : > { %9365 = vst.msk [vmem:[%s18100_s25 + $0x50] sm:$0xff] %vm538_vm0, %v9333_v46  ;;  %v9331_v3 = vadd.f32 %v9229_v41, %v19126_v17  ;;  %v9240_v16 = vadd.f32 %v10648_v60, %v18092_v59  ;;  %v19141_v46 = vld [vmem:[#allocation2_spill] sm:$0xff] }
0x1213   : > { %v9231_v62 = vpop.f32.mrf.mxu1 }
0x1214   : > { %9363 = vst.msk [vmem:[%s18100_s25 + $0x40] sm:$0xff] %vm538_vm0, %v9331_v3  ;;  %v9334_v48 = vadd.f32 %v9240_v16, %v19127_v22  ;;  %v9232_v63 = vadd.f32 %v18092_v59, %v9231_v62  ;;  %v19142_v3 = vld [vmem:[#allocation71_spill] sm:$0xff] }
0x1216   : > { %v10651_v52 = vpop.f32.mrf.mxu1  ;;  %9366 = vst.msk [vmem:[%s18100_s25 + $0x58] sm:$0xff] %vm538_vm0, %v9334_v48  ;;  %v9332_v35 = vadd.f32 %v9232_v63, %v19128_v39  ;;  %v19143_v48 = vld [vmem:[#allocation73_spill] sm:$0xff]  ;;  %v19144_v39 = vld [vmem:[#allocation70_spill] sm:$0xff] }
0x1217   : > { %v9253_v44 = vadd.f32 %v10651_v52, %v18092_v59 }
0x1218   : > { %v9244_v1 = vpop.f32.mrf.mxu1  ;;  %9364 = vst.msk [vmem:[%s18100_s25 + $0x48] sm:$0xff] %vm538_vm0, %v9332_v35 }
0x1219   : > { %v9337_v10 = vadd.f32 %v9253_v44, %v19129_v9  ;;  %v9245_v25 = vadd.f32 %v18092_v59, %v9244_v1 }
0x121a   : > { %v10652_v56 = vpop.f32.mrf.mxu1 }
0x121b   : > { %9369 = vst.msk [vmem:[%s18100_s25 + $0x70] sm:$0xff] %vm538_vm0, %v9337_v10  ;;  %v9335_v32 = vadd.f32 %v9245_v25, %v19130_v38  ;;  %v9256_v36 = vadd.f32 %v10652_v56, %v18092_v59  ;;  %v19145_v10 = vld [vmem:[#allocation65_spill] sm:$0xff] }
0x121c   : > { %v9247_v4 = vpop.f32.mrf.mxu1 }
0x121d   : > { %9367 = vst.msk [vmem:[%s18100_s25 + $0x60] sm:$0xff] %vm538_vm0, %v9335_v32  ;;  %v9338_v43 = vadd.f32 %v9256_v36, %v19131_v55  ;;  %v9248_v51 = vadd.f32 %v18092_v59, %v9247_v4  ;;  %v19146_v32 = vld [vmem:[#allocation59_spill] sm:$0xff] }
0x121e   : > { %v10655_v58 = vpop.f32.mrf.mxu1 }
0x121f   : > { %9370 = vst.msk [vmem:[%s18100_s25 + $0x78] sm:$0xff] %vm538_vm0, %v9338_v43  ;;  %v9336_v20 = vadd.f32 %v9248_v51, %v19132_v5  ;;  %v9269_v7 = vadd.f32 %v10655_v58, %v18092_v59  ;;  %v19147_v43 = vld [vmem:[#allocation60_spill] sm:$0xff]  ;;  %v19148_v5 = vld [vmem:[#allocation58_spill] sm:$0xff] }
0x1220   : > { %v9260_v26 = vpop.f32.mrf.mxu1 }
0x1221   : > { %9368 = vst.msk [vmem:[%s18100_s25 + $0x68] sm:$0xff] %vm538_vm0, %v9336_v20  ;;  %v9341_v42 = vadd.f32 %v9269_v7, %v19133_v8  ;;  %v9261_v34 = vadd.f32 %v18092_v59, %v9260_v26 }
0x1222   : > { %v10656_v13 = vpop.f32.mrf.mxu1 }
0x1223   : > { %9373 = vst.msk [vmem:[%s18100_s25 + $0x90] sm:$0xff] %vm538_vm0, %v9341_v42  ;;  %v9339_v18 = vadd.f32 %v9261_v34, %v19134_v24  ;;  %v9272_v47 = vadd.f32 %v10656_v13, %v18092_v59 }
0x1224   : > { %v9263_v54 = vpop.f32.mrf.mxu1 }
0x1225   : > { %9371 = vst.msk [vmem:[%s18100_s25 + $0x80] sm:$0xff] %vm538_vm0, %v9339_v18  ;;  %v9342_v53 = vadd.f32 %v9272_v47, %v19135_v37  ;;  %v9264_v14 = vadd.f32 %v18092_v59, %v9263_v54 }
0x1226   : > { %v10659_v23 = vpop.f32.mrf.mxu1 }
0x1227   : > { %9374 = vst.msk [vmem:[%s18100_s25 + $0x98] sm:$0xff] %vm538_vm0, %v9342_v53  ;;  %v9340_v40 = vadd.f32 %v9264_v14, %v19136_v21  ;;  %v9285_v2 = vadd.f32 %v10659_v23, %v18092_v59 }
0x1228   : > { %v9276_v31 = vpop.f32.mrf.mxu1 }
0x1229   : > { %9372 = vst.msk [vmem:[%s18100_s25 + $0x88] sm:$0xff] %vm538_vm0, %v9340_v40  ;;  %v9345_v49 = vadd.f32 %v9285_v2, %v19137_v6  ;;  %v9277_v45 = vadd.f32 %v18092_v59, %v9276_v31 }
0x122a   : > { %v10660_v50 = vpop.f32.mrf.mxu1 }
0x122b   : > { %9377 = vst.msk [vmem:[%s18100_s25 + $0xb0] sm:$0xff] %vm538_vm0, %v9345_v49  ;;  %v9343_v57 = vadd.f32 %v9277_v45, %v19138_v11  ;;  %v9288_v12 = vadd.f32 %v10660_v50, %v18092_v59 }
0x122c   : > { %v9279_v27 = vpop.f32.mrf.mxu1 }
0x122d   : > { %9375 = vst.msk [vmem:[%s18100_s25 + $0xa0] sm:$0xff] %vm538_vm0, %v9343_v57  ;;  %v9346_v0 = vadd.f32 %v9288_v12, %v19139_v30  ;;  %v9280_v19 = vadd.f32 %v18092_v59, %v9279_v27 }
0x122f   : > { %9378 = vst.msk [vmem:[%s18100_s25 + $0xb8] sm:$0xff] %vm538_vm0, %v9346_v0  ;;  %v9344_v61 = vadd.f32 %v9280_v19, %v19140_v15  ;;  %v10663_v33 = vpop.f32.mrf.mxu1 }
0x1230   : > { %v9301_v28 = vadd.f32 %v10663_v33, %v18092_v59 }
0x1231   : > { %9376 = vst.msk [vmem:[%s18100_s25 + $0xa8] sm:$0xff] %vm538_vm0, %v9344_v61  ;;  %v9292_v29 = vpop.f32.mrf.mxu1 }
0x1232   : > { %v9349_v41 = vadd.f32 %v9301_v28, %v19141_v46  ;;  %v9293_v60 = vadd.f32 %v18092_v59, %v9292_v29 }
0x1233   : > { %v10664_v17 = vpop.f32.mrf.mxu1 }
0x1234   : > { %9381 = vst.msk [vmem:[%s18100_s25 + $0xd0] sm:$0xff] %vm538_vm0, %v9349_v41  ;;  %v9347_v16 = vadd.f32 %v9293_v60, %v19142_v3  ;;  %v9304_v62 = vadd.f32 %v10664_v17, %v18092_v59 }
0x1235   : > { %v9295_v22 = vpop.f32.mrf.mxu1 }
0x1236   : > { %9379 = vst.msk [vmem:[%s18100_s25 + $0xc0] sm:$0xff] %vm538_vm0, %v9347_v16  ;;  %v9350_v63 = vadd.f32 %v9304_v62, %v19143_v48  ;;  %v9296_v52 = vadd.f32 %v18092_v59, %v9295_v22 }
0x1238   : > { %9382 = vst.msk [vmem:[%s18100_s25 + $0xd8] sm:$0xff] %vm538_vm0, %v9350_v63  ;;  %v9348_v35 = vadd.f32 %v9296_v52, %v19144_v39 }
0x123a   : > { %9380 = vst.msk [vmem:[%s18100_s25 + $0xc8] sm:$0xff] %vm538_vm0, %v9348_v35 }
0x1242   : > { %v10667_v44 = vpop.f32.mrf.mxu1 }
0x1243   : > { %v9317_v1 = vadd.f32 %v10667_v44, %v18092_v59 }
0x1244   : > { %v9308_v9 = vpop.f32.mrf.mxu1 }
0x1245   : > { %v9353_v25 = vadd.f32 %v9317_v1, %v19145_v10  ;;  %v9309_v56 = vadd.f32 %v18092_v59, %v9308_v9 }
0x1246   : > { %v10668_v38 = vpop.f32.mrf.mxu1 }
0x1247   : > { %9385 = vst.msk [vmem:[%s18100_s25 + $0xf0] sm:$0xff] %vm538_vm0, %v9353_v25  ;;  %v9351_v36 = vadd.f32 %v9309_v56, %v19146_v32  ;;  %v9320_v4 = vadd.f32 %v10668_v38, %v18092_v59 }
0x1248   : > { %v9311_v55 = vpop.f32.mrf.mxu1 }
0x1249   : > { %9383 = vst.msk [vmem:[%s18100_s25 + $0xe0] sm:$0xff] %vm538_vm0, %v9351_v36  ;;  %v9354_v51 = vadd.f32 %v9320_v4, %v19147_v43  ;;  %v9312_v58 = vadd.f32 %v18092_v59, %v9311_v55 }
0x124b   : > { %9386 = vst.msk [vmem:[%s18100_s25 + $0xf8] sm:$0xff] %vm538_vm0, %v9354_v51  ;;  %v9352_v20 = vadd.f32 %v9312_v58, %v19148_v5 }
0x124d   : > { %9384 = vst.msk [vmem:[%s18100_s25 + $0xe8] sm:$0xff] %vm538_vm0, %v9352_v20 }
0x124e PF: > { %s25_s18 = sadd.s32 1, %s11851_s18  }
0x124f   : > { %p22_p4 = scmp.ge.s32.totalorder %s25_s18, 4  }
0x1251   :  { %24 = sbr.rel (!%p22_p4) target bundleno = 1 (0x1), region = 110 }

</bundles_post_ra>
